<compile_context>
chip_gen: v7x
topology: tpu7x:2x2x1
jax: 0.10.0
libtpu: 0.0.40
codegen_flags: <defaults>
</compile_context>

<pallas_src>
import jax
import jax.numpy as jnp
from jax.experimental import pallas as pl
from jax.experimental.pallas import tpu as pltpu

BN_EPS = 1e-5
LANES = 128                  # padded channel width (lane-dense stores / MXU N-dim)
MXU_DTYPE = jnp.bfloat16     # matmul operand dtype (accumulation stays f32)


# ----------------------------------------------------------------------------
# The single fused Pallas kernel (one grid step = one image)
# ----------------------------------------------------------------------------
def _cnn_kernel(x_ref,                                   # (28, 28, 1) f32
                w1_ref, p1_ref,                          # conv1: (25,128) f32, (3,128) f32
                w2_ref, p2_ref,                          # conv2: (25*128,128) bf16
                w3_ref, p3_ref,                          # conv3: (9*128,128) bf16
                w4_ref, p4_ref,                          # conv4: (9*128,128) bf16
                f1w_ref, f1b_ref,                        # fc1: (9*128,256) bf16, (1,256) f32
                f2w_ref, f2b_ref,                        # fc2: (256,128) bf16, (1,128) f32
                o_ref,                                   # (8, 128) f32 output tile
                a1, a2, q1, a3, a4, q2):                 # VMEM scratch activations

    def conv_bn_relu(src, dst, w_ref, p_ref, k, oh_n, ow_n, cin):
        """VALID conv(kxk) + bias + ReLU + folded BN, row-by-row tap accumulation."""
        bias = p_ref[pl.ds(0, 1), :]     # (1, 128)
        scale = p_ref[pl.ds(1, 1), :]
        shift = p_ref[pl.ds(2, 1), :]

        @pl.loop(0, oh_n)
        def _(oh):
            acc = jnp.zeros((ow_n, LANES), jnp.float32)
            for i in range(k):
                for j in range(k):
                    patch = src[oh + i, pl.ds(j, ow_n), :]              # (ow_n, cin)
                    wtap = w_ref[pl.ds((i * k + j) * cin, cin), :]      # (cin, 128)
                    if cin == 1:
                        # conv1: Cin=1 -> broadcasted outer product on the VPU (f32)
                        acc = acc + patch * wtap
                    else:
                        acc = acc + jnp.dot(patch.astype(MXU_DTYPE), wtap,
                                            preferred_element_type=jnp.float32)
            # epilogue in f32 (v5e-friendly): bias + ReLU + folded BatchNorm
            dst[oh] = jnp.maximum(acc + bias, 0.0) * scale + shift

    def maxpool2x2(src, dst, oh_n, ow_n):
        @pl.loop(0, oh_n)
        def _(ph):
            for pw in range(ow_n):
                win = src[pl.ds(2 * ph, 2), pl.ds(2 * pw, 2), :]        # (2,2,128)
                m = jnp.maximum(win[0], win[1])                          # (2,128)
                dst[ph, pl.ds(pw, 1), :] = jnp.max(m, axis=0, keepdims=True)

    # conv1 -> relu -> bn1 : (28,28,1)  -> (24,24,128)
    conv_bn_relu(x_ref, a1, w1_ref, p1_ref, k=5, oh_n=24, ow_n=24, cin=1)
    # conv2 -> relu -> bn2 : -> (20,20,128)
    conv_bn_relu(a1, a2, w2_ref, p2_ref, k=5, oh_n=20, ow_n=20, cin=LANES)
    # maxpool1 : -> (10,10,128)      (conv1_drop = identity at inference)
    maxpool2x2(a2, q1, oh_n=10, ow_n=10)
    # conv3 -> relu -> bn3 : -> (8,8,128)
    conv_bn_relu(q1, a3, w3_ref, p3_ref, k=3, oh_n=8, ow_n=8, cin=LANES)
    # conv4 -> relu -> bn4 : -> (6,6,128)
    conv_bn_relu(a3, a4, w4_ref, p4_ref, k=3, oh_n=6, ow_n=6, cin=LANES)
    # maxpool2 : -> (3,3,128)        (conv2_drop = identity at inference)
    maxpool2x2(a4, q2, oh_n=3, ow_n=3)

    # fc1 + ReLU : PyTorch (C,H,W) flatten order is baked into the fc1 weight
    # packing ((h*3+w)*128 + c), so we just sum 9 spatial-position matmuls.
    hacc = jnp.zeros((1, 256), jnp.float32)
    for fh in range(3):
        for fw in range(3):
            v = q2[fh, pl.ds(fw, 1), :]                                  # (1, 128)
            wt = f1w_ref[pl.ds((fh * 3 + fw) * LANES, LANES), :]         # (128, 256)
            hacc = hacc + jnp.dot(v.astype(MXU_DTYPE), wt,
                                  preferred_element_type=jnp.float32)
    hidden = jnp.maximum(hacc + f1b_ref[...], 0.0)                       # (1, 256)
    # dp1 = identity at inference
    logits = jnp.dot(hidden.astype(MXU_DTYPE), f2w_ref[...],
                     preferred_element_type=jnp.float32) + f2b_ref[...]  # (1, 128)
    # lane-dense, sublane-aligned output tile (wrapper slices row 0, cols :10)
    o_ref[...] = jnp.broadcast_to(logits, (8, LANES))


# ----------------------------------------------------------------------------
# Parameter packing (PyTorch layouts -> kernel layouts, BN folded, lanes padded)
# ----------------------------------------------------------------------------
def _pack_conv_w(w_oikk, cin_pad, dtype=MXU_DTYPE):
    o, ci, kh, kw = w_oikk.shape
    w = jnp.transpose(w_oikk, (2, 3, 1, 0))                       # (kh, kw, ci, o)
    w = jnp.pad(w, ((0, 0), (0, 0), (0, cin_pad - ci), (0, LANES - o)))
    return w.reshape(kh * kw * cin_pad, LANES).astype(dtype)      # row = (i*k+j)*cin_pad + c


def _fold_bn(bias, gamma, beta, mean, var):
    scale = gamma * jax.lax.rsqrt(var + BN_EPS)
    shift = beta - mean * scale

    def pad(v):
        return jnp.pad(v, (0, LANES - v.shape[0]))
    # rows: [bias, scale, shift]; padded lanes are exactly zero so padded
    # channels stay zero through every layer.
    return jnp.stack([pad(bias), pad(scale), pad(shift)]).astype(jnp.float32)


def _pack_fc1(w_torch):                        # (256, 576), cols indexed c*9 + h*3 + w
    o = w_torch.shape[0]
    w = w_torch.reshape(o, 64, 3, 3)           # (O, c, h, w)
    w = jnp.transpose(w, (2, 3, 1, 0))         # (h, w, c, O)
    w = jnp.pad(w, ((0, 0), (0, 0), (0, LANES - 64), (0, 0)))
    return w.reshape(9 * LANES, o).astype(MXU_DTYPE)   # row = (h*3+w)*128 + c


def pack_params(p):
    k = {}
    k["w1"] = _pack_conv_w(p["conv1_w"], cin_pad=1, dtype=jnp.float32)   # VPU path -> f32
    k["w2"] = _pack_conv_w(p["conv2_w"], cin_pad=LANES)
    k["w3"] = _pack_conv_w(p["conv3_w"], cin_pad=LANES)
    k["w4"] = _pack_conv_w(p["conv4_w"], cin_pad=LANES)
    k["p1"] = _fold_bn(p["conv1_b"], *p["bn1"])
    k["p2"] = _fold_bn(p["conv2_b"], *p["bn2"])
    k["p3"] = _fold_bn(p["conv3_b"], *p["bn3"])
    k["p4"] = _fold_bn(p["conv4_b"], *p["bn4"])
    k["f1w"] = _pack_fc1(p["fc1_w"])
    k["f1b"] = p["fc1_b"].reshape(1, 256).astype(jnp.float32)
    k["f2w"] = jnp.pad(p["fc2_w"].T, ((0, 0), (0, LANES - 10))).astype(MXU_DTYPE)
    k["f2b"] = jnp.pad(p["fc2_b"], (0, LANES - 10)).reshape(1, LANES).astype(jnp.float32)
    return k


# ----------------------------------------------------------------------------
# Forward pass: one pallas_call, grid over the batch
# ----------------------------------------------------------------------------
@jax.jit
def forward(kp, x_nchw):
    n = x_nchw.shape[0]
    x = jnp.transpose(x_nchw, (0, 2, 3, 1)).astype(jnp.float32)   # NCHW -> NHWC (N,28,28,1)

    args = [x, kp["w1"], kp["p1"], kp["w2"], kp["p2"], kp["w3"], kp["p3"],
            kp["w4"], kp["p4"], kp["f1w"], kp["f1b"], kp["f2w"], kp["f2b"]]

    def resident(a):  # full array, VMEM-resident across all grid steps
        return pl.BlockSpec(a.shape, lambda i, _z=(0,) * a.ndim: _z)

    in_specs = ([pl.BlockSpec((None, 28, 28, 1), lambda i: (i, 0, 0, 0))]
                + [resident(a) for a in args[1:]])

    out = pl.pallas_call(
        _cnn_kernel,
        out_shape=jax.ShapeDtypeStruct((n, 8, LANES), jnp.float32),
        grid=(n,),
        in_specs=in_specs,
        out_specs=pl.BlockSpec((None, 8, LANES), lambda i: (i, 0, 0)),
        scratch_shapes=[
            pltpu.VMEM((24, 24, LANES), jnp.float32),   # conv1 out
            pltpu.VMEM((20, 20, LANES), jnp.float32),   # conv2 out
            pltpu.VMEM((10, 10, LANES), jnp.float32),   # pool1 out
            pltpu.VMEM((8, 8, LANES), jnp.float32),     # conv3 out
            pltpu.VMEM((6, 6, LANES), jnp.float32),     # conv4 out
            pltpu.VMEM((3, 3, LANES), jnp.float32),     # pool2 out
        ],
        compiler_params=pltpu.CompilerParams(
            dimension_semantics=("parallel",)),          # batch split across TCs (v7x)
        cost_estimate=pl.CostEstimate(
            flops=27_000_000 * n,
            transcendentals=0,
            bytes_accessed=2_200_000 + 8_000 * n),
    )(*args)
    return out[:, 0, :10]


# ----------------------------------------------------------------------------
# Torch-like random parameters + pure-JAX reference (for a self-check)
# ----------------------------------------------------------------------------
def init_params(key):
    ks = iter(jax.random.split(key, 32))

    def conv(o, c, k):
        return (jax.random.normal(next(ks), (o, c, k, k), jnp.float32) * 0.1,
                jax.random.normal(next(ks), (o,), jnp.float32) * 0.1)

    def bn(c):
        return (1.0 + 0.1 * jax.random.normal(next(ks), (c,), jnp.float32),
                0.1 * jax.random.normal(next(ks), (c,), jnp.float32),
                0.1 * jax.random.normal(next(ks), (c,), jnp.float32),
                jax.random.uniform(next(ks), (c,), jnp.float32, minval=0.5, maxval=1.5))

    def lin(o, i):
        return (jax.random.normal(next(ks), (o, i), jnp.float32) * 0.05,
                jax.random.normal(next(ks), (o,), jnp.float32) * 0.05)

    p = {}
    p["conv1_w"], p["conv1_b"] = conv(32, 1, 5);  p["bn1"] = bn(32)
    p["conv2_w"], p["conv2_b"] = conv(32, 32, 5); p["bn2"] = bn(32)
    p["conv3_w"], p["conv3_b"] = conv(64, 32, 3); p["bn3"] = bn(64)
    p["conv4_w"], p["conv4_b"] = conv(64, 64, 3); p["bn4"] = bn(64)
    p["fc1_w"], p["fc1_b"] = lin(256, 576)
    p["fc2_w"], p["fc2_b"] = lin(10, 256)
    return p


def reference_forward(p, x_nchw):
    """Pure-XLA reference mirroring the kernel's bf16 MXU operands (f32 math)."""
    hi = jax.lax.Precision.HIGHEST

    def rnd(a):  # mimic the kernel's bf16 rounding of matmul operands
        return a.astype(jnp.bfloat16).astype(jnp.float32)

    def conv(x, w, b, bn, use_bf16):
        gamma, beta, mean, var = bn
        wt = jnp.transpose(w, (2, 3, 1, 0))                     # OIHW -> HWIO
        xin, wt = (rnd(x), rnd(wt)) if use_bf16 else (x, wt)
        y = jax.lax.conv_general_dilated(
            xin, wt, window_strides=(1, 1), padding="VALID",
            dimension_numbers=("NHWC", "HWIO", "NHWC"), precision=hi)
        y = jnp.maximum(y + b, 0.0)
        scale = gamma * jax.lax.rsqrt(var + BN_EPS)
        return y * scale + (beta - mean * scale)

    def pool(x):
        return jax.lax.reduce_window(x, -jnp.inf, jax.lax.max,
                                     (1, 2, 2, 1), (1, 2, 2, 1), "VALID")

    x = jnp.transpose(x_nchw, (0, 2, 3, 1)).astype(jnp.float32)
    x = conv(x, p["conv1_w"], p["conv1_b"], p["bn1"], use_bf16=False)
    x = conv(x, p["conv2_w"], p["conv2_b"], p["bn2"], use_bf16=True)
    x = pool(x)
    x = conv(x, p["conv3_w"], p["conv3_b"], p["bn3"], use_bf16=True)
    x = conv(x, p["conv4_w"], p["conv4_b"], p["bn4"], use_bf16=True)
    x = pool(x)
    n = x.shape[0]
    flat = jnp.transpose(x, (0, 3, 1, 2)).reshape(n, -1)        # torch (C,H,W) flatten
    h = jnp.maximum(jnp.dot(rnd(flat), rnd(p["fc1_w"].T), precision=hi) + p["fc1_b"], 0.0)
    return jnp.dot(rnd(h), rnd(p["fc2_w"].T), precision=hi) + p["fc2_b"]


if __name__ == "__main__":
    key = jax.random.PRNGKey(0)
    kparams, kx = jax.random.split(key)
    params = init_params(kparams)
    packed = pack_params(params)
    # fc1 expects 576 = 64*3*3 features, which pins the input to 1x28x28 (MNIST-like).
    x = jax.random.normal(kx, (2, 1, 28, 28), jnp.float32)

    logits = forward(packed, x)
    jax.block_until_ready(logits)

    ref = reference_forward(params, x)
    assert logits.shape == (2, 10)
    assert bool(jnp.all(jnp.isfinite(logits)))
    assert bool(jnp.allclose(logits, ref, rtol=2e-2, atol=2e-2)), (
        "max |diff| = %g" % float(jnp.max(jnp.abs(logits - ref))))
    print("KERNEL_OK")
</pallas_src>

<mosaic_0001>
module attributes {stable_mosaic.version = 11 : i64} {
  func.func @_cnn_kernel(%arg0: i32, %arg1: memref<1x28x28x1xf32, #tpu.memory_space<vmem>>, %arg2: memref<25x128xf32, #tpu.memory_space<vmem>>, %arg3: memref<3x128xf32, #tpu.memory_space<vmem>>, %arg4: memref<3200x128xbf16, #tpu.memory_space<vmem>>, %arg5: memref<3x128xf32, #tpu.memory_space<vmem>>, %arg6: memref<1152x128xbf16, #tpu.memory_space<vmem>>, %arg7: memref<3x128xf32, #tpu.memory_space<vmem>>, %arg8: memref<1152x128xbf16, #tpu.memory_space<vmem>>, %arg9: memref<3x128xf32, #tpu.memory_space<vmem>>, %arg10: memref<1152x256xbf16, #tpu.memory_space<vmem>>, %arg11: memref<1x256xf32, #tpu.memory_space<vmem>>, %arg12: memref<256x128xbf16, #tpu.memory_space<vmem>>, %arg13: memref<1x128xf32, #tpu.memory_space<vmem>>, %arg14: memref<1x8x128xf32, #tpu.memory_space<vmem>>, %arg15: memref<24x24x128xf32, #tpu.memory_space<vmem>>, %arg16: memref<20x20x128xf32, #tpu.memory_space<vmem>>, %arg17: memref<10x10x128xf32, #tpu.memory_space<vmem>>, %arg18: memref<8x8x128xf32, #tpu.memory_space<vmem>>, %arg19: memref<6x6x128xf32, #tpu.memory_space<vmem>>, %arg20: memref<3x3x128xf32, #tpu.memory_space<vmem>>) attributes {dimension_semantics = [#tpu.dimension_semantics<parallel>], iteration_bounds = array<i64: 2>, scalar_prefetch = 0 : i64, scratch_operands = 6 : i64, tpu.core_type = #tpu.core_type<tc>, window_params = [{transform_indices = @transform_0, window_bounds = array<i64: 1, 28, 28, 1>}, {pipeline_mode = #tpu.pipeline_mode<synchronous>, transform_indices = @transform_1, window_bounds = array<i64: 25, 128>}, {pipeline_mode = #tpu.pipeline_mode<synchronous>, transform_indices = @transform_2, window_bounds = array<i64: 3, 128>}, {pipeline_mode = #tpu.pipeline_mode<synchronous>, transform_indices = @transform_3, window_bounds = array<i64: 3200, 128>}, {pipeline_mode = #tpu.pipeline_mode<synchronous>, transform_indices = @transform_4, window_bounds = array<i64: 3, 128>}, {pipeline_mode = #tpu.pipeline_mode<synchronous>, transform_indices = @transform_5, window_bounds = array<i64: 1152, 128>}, {pipeline_mode = #tpu.pipeline_mode<synchronous>, transform_indices = @transform_6, window_bounds = array<i64: 3, 128>}, {pipeline_mode = #tpu.pipeline_mode<synchronous>, transform_indices = @transform_7, window_bounds = array<i64: 1152, 128>}, {pipeline_mode = #tpu.pipeline_mode<synchronous>, transform_indices = @transform_8, window_bounds = array<i64: 3, 128>}, {pipeline_mode = #tpu.pipeline_mode<synchronous>, transform_indices = @transform_9, window_bounds = array<i64: 1152, 256>}, {pipeline_mode = #tpu.pipeline_mode<synchronous>, transform_indices = @transform_10, window_bounds = array<i64: 1, 256>}, {pipeline_mode = #tpu.pipeline_mode<synchronous>, transform_indices = @transform_11, window_bounds = array<i64: 256, 128>}, {pipeline_mode = #tpu.pipeline_mode<synchronous>, transform_indices = @transform_12, window_bounds = array<i64: 1, 128>}, {transform_indices = @transform_13, window_bounds = array<i64: 1, 8, 128>}]} {
    %c0 = arith.constant 0 : index
    %c0_0 = arith.constant 0 : index
    %0 = vector.load %arg3[%c0, %c0_0] : memref<3x128xf32, #tpu.memory_space<vmem>>, vector<1x128xf32>
    %c1 = arith.constant 1 : index
    %c0_1 = arith.constant 0 : index
    %1 = vector.load %arg3[%c1, %c0_1] : memref<3x128xf32, #tpu.memory_space<vmem>>, vector<1x128xf32>
    %c2 = arith.constant 2 : index
    %c0_2 = arith.constant 0 : index
    %2 = vector.load %arg3[%c2, %c0_2] : memref<3x128xf32, #tpu.memory_space<vmem>>, vector<1x128xf32>
    %c0_i32 = arith.constant 0 : i32
    %c24_i32 = arith.constant 24 : i32
    %3 = arith.addi %c0_i32, %c24_i32 : i32
    %c1_i32 = arith.constant 1 : i32
    scf.for %arg21 = %c0_i32 to %3 step %c1_i32  : i32 {
      %c1_i32_94 = arith.constant 1 : i32
      %87 = arith.muli %arg21, %c1_i32_94 : i32
      %c0_i32_95 = arith.constant 0 : i32
      %88 = arith.addi %c0_i32_95, %87 : i32
      %cst_96 = arith.constant 0.000000e+00 : f32
      %89 = vector.broadcast %cst_96 : f32 to vector<24x128xf32>
      %c0_i32_97 = arith.constant 0 : i32
      %90 = arith.addi %88, %c0_i32_97 : i32
      %c0_98 = arith.constant 0 : index
      %91 = arith.index_cast %90 : i32 to index
      %c0_99 = arith.constant 0 : index
      %c0_100 = arith.constant 0 : index
      %92 = vector.load %arg1[%c0_98, %91, %c0_99, %c0_100] : memref<1x28x28x1xf32, #tpu.memory_space<vmem>>, vector<1x1x24x1xf32>
      %93 = vector.shape_cast %92 : vector<1x1x24x1xf32> to vector<24x1xf32>
      %c0_101 = arith.constant 0 : index
      %c0_102 = arith.constant 0 : index
      %94 = vector.load %arg2[%c0_101, %c0_102] : memref<25x128xf32, #tpu.memory_space<vmem>>, vector<1x128xf32>
      %95 = vector.broadcast %93 : vector<24x1xf32> to vector<24x128xf32>
      %96 = vector.broadcast %94 : vector<1x128xf32> to vector<24x128xf32>
      %97 = arith.mulf %95, %96 : vector<24x128xf32>
      %98 = arith.addf %89, %97 : vector<24x128xf32>
      %c0_i32_103 = arith.constant 0 : i32
      %99 = arith.addi %88, %c0_i32_103 : i32
      %c0_104 = arith.constant 0 : index
      %100 = arith.index_cast %99 : i32 to index
      %c1_105 = arith.constant 1 : index
      %c0_106 = arith.constant 0 : index
      %101 = vector.load %arg1[%c0_104, %100, %c1_105, %c0_106] : memref<1x28x28x1xf32, #tpu.memory_space<vmem>>, vector<1x1x24x1xf32>
      %102 = vector.shape_cast %101 : vector<1x1x24x1xf32> to vector<24x1xf32>
      %c1_107 = arith.constant 1 : index
      %c0_108 = arith.constant 0 : index
      %103 = vector.load %arg2[%c1_107, %c0_108] : memref<25x128xf32, #tpu.memory_space<vmem>>, vector<1x128xf32>
      %104 = vector.broadcast %102 : vector<24x1xf32> to vector<24x128xf32>
      %105 = vector.broadcast %103 : vector<1x128xf32> to vector<24x128xf32>
      %106 = arith.mulf %104, %105 : vector<24x128xf32>
      %107 = arith.addf %98, %106 : vector<24x128xf32>
      %c0_i32_109 = arith.constant 0 : i32
      %108 = arith.addi %88, %c0_i32_109 : i32
      %c0_110 = arith.constant 0 : index
      %109 = arith.index_cast %108 : i32 to index
      %c2_111 = arith.constant 2 : index
      %c0_112 = arith.constant 0 : index
      %110 = vector.load %arg1[%c0_110, %109, %c2_111, %c0_112] : memref<1x28x28x1xf32, #tpu.memory_space<vmem>>, vector<1x1x24x1xf32>
      %111 = vector.shape_cast %110 : vector<1x1x24x1xf32> to vector<24x1xf32>
      %c2_113 = arith.constant 2 : index
      %c0_114 = arith.constant 0 : index
      %112 = vector.load %arg2[%c2_113, %c0_114] : memref<25x128xf32, #tpu.memory_space<vmem>>, vector<1x128xf32>
      %113 = vector.broadcast %111 : vector<24x1xf32> to vector<24x128xf32>
      %114 = vector.broadcast %112 : vector<1x128xf32> to vector<24x128xf32>
      %115 = arith.mulf %113, %114 : vector<24x128xf32>
      %116 = arith.addf %107, %115 : vector<24x128xf32>
      %c0_i32_115 = arith.constant 0 : i32
      %117 = arith.addi %88, %c0_i32_115 : i32
      %c0_116 = arith.constant 0 : index
      %118 = arith.index_cast %117 : i32 to index
      %c3 = arith.constant 3 : index
      %c0_117 = arith.constant 0 : index
      %119 = vector.load %arg1[%c0_116, %118, %c3, %c0_117] : memref<1x28x28x1xf32, #tpu.memory_space<vmem>>, vector<1x1x24x1xf32>
      %120 = vector.shape_cast %119 : vector<1x1x24x1xf32> to vector<24x1xf32>
      %c3_118 = arith.constant 3 : index
      %c0_119 = arith.constant 0 : index
      %121 = vector.load %arg2[%c3_118, %c0_119] : memref<25x128xf32, #tpu.memory_space<vmem>>, vector<1x128xf32>
      %122 = vector.broadcast %120 : vector<24x1xf32> to vector<24x128xf32>
      %123 = vector.broadcast %121 : vector<1x128xf32> to vector<24x128xf32>
      %124 = arith.mulf %122, %123 : vector<24x128xf32>
      %125 = arith.addf %116, %124 : vector<24x128xf32>
      %c0_i32_120 = arith.constant 0 : i32
      %126 = arith.addi %88, %c0_i32_120 : i32
      %c0_121 = arith.constant 0 : index
      %127 = arith.index_cast %126 : i32 to index
      %c4 = arith.constant 4 : index
      %c0_122 = arith.constant 0 : index
      %128 = vector.load %arg1[%c0_121, %127, %c4, %c0_122] : memref<1x28x28x1xf32, #tpu.memory_space<vmem>>, vector<1x1x24x1xf32>
      %129 = vector.shape_cast %128 : vector<1x1x24x1xf32> to vector<24x1xf32>
      %c4_123 = arith.constant 4 : index
      %c0_124 = arith.constant 0 : index
      %130 = vector.load %arg2[%c4_123, %c0_124] : memref<25x128xf32, #tpu.memory_space<vmem>>, vector<1x128xf32>
      %131 = vector.broadcast %129 : vector<24x1xf32> to vector<24x128xf32>
      %132 = vector.broadcast %130 : vector<1x128xf32> to vector<24x128xf32>
      %133 = arith.mulf %131, %132 : vector<24x128xf32>
      %134 = arith.addf %125, %133 : vector<24x128xf32>
      %c1_i32_125 = arith.constant 1 : i32
      %135 = arith.addi %88, %c1_i32_125 : i32
      %c0_126 = arith.constant 0 : index
      %136 = arith.index_cast %135 : i32 to index
      %c0_127 = arith.constant 0 : index
      %c0_128 = arith.constant 0 : index
      %137 = vector.load %arg1[%c0_126, %136, %c0_127, %c0_128] : memref<1x28x28x1xf32, #tpu.memory_space<vmem>>, vector<1x1x24x1xf32>
      %138 = vector.shape_cast %137 : vector<1x1x24x1xf32> to vector<24x1xf32>
      %c5 = arith.constant 5 : index
      %c0_129 = arith.constant 0 : index
      %139 = vector.load %arg2[%c5, %c0_129] : memref<25x128xf32, #tpu.memory_space<vmem>>, vector<1x128xf32>
      %140 = vector.broadcast %138 : vector<24x1xf32> to vector<24x128xf32>
      %141 = vector.broadcast %139 : vector<1x128xf32> to vector<24x128xf32>
      %142 = arith.mulf %140, %141 : vector<24x128xf32>
      %143 = arith.addf %134, %142 : vector<24x128xf32>
      %c1_i32_130 = arith.constant 1 : i32
      %144 = arith.addi %88, %c1_i32_130 : i32
      %c0_131 = arith.constant 0 : index
      %145 = arith.index_cast %144 : i32 to index
      %c1_132 = arith.constant 1 : index
      %c0_133 = arith.constant 0 : index
      %146 = vector.load %arg1[%c0_131, %145, %c1_132, %c0_133] : memref<1x28x28x1xf32, #tpu.memory_space<vmem>>, vector<1x1x24x1xf32>
      %147 = vector.shape_cast %146 : vector<1x1x24x1xf32> to vector<24x1xf32>
      %c6 = arith.constant 6 : index
      %c0_134 = arith.constant 0 : index
      %148 = vector.load %arg2[%c6, %c0_134] : memref<25x128xf32, #tpu.memory_space<vmem>>, vector<1x128xf32>
      %149 = vector.broadcast %147 : vector<24x1xf32> to vector<24x128xf32>
      %150 = vector.broadcast %148 : vector<1x128xf32> to vector<24x128xf32>
      %151 = arith.mulf %149, %150 : vector<24x128xf32>
      %152 = arith.addf %143, %151 : vector<24x128xf32>
      %c1_i32_135 = arith.constant 1 : i32
      %153 = arith.addi %88, %c1_i32_135 : i32
      %c0_136 = arith.constant 0 : index
      %154 = arith.index_cast %153 : i32 to index
      %c2_137 = arith.constant 2 : index
      %c0_138 = arith.constant 0 : index
      %155 = vector.load %arg1[%c0_136, %154, %c2_137, %c0_138] : memref<1x28x28x1xf32, #tpu.memory_space<vmem>>, vector<1x1x24x1xf32>
      %156 = vector.shape_cast %155 : vector<1x1x24x1xf32> to vector<24x1xf32>
      %c7 = arith.constant 7 : index
      %c0_139 = arith.constant 0 : index
      %157 = vector.load %arg2[%c7, %c0_139] : memref<25x128xf32, #tpu.memory_space<vmem>>, vector<1x128xf32>
      %158 = vector.broadcast %156 : vector<24x1xf32> to vector<24x128xf32>
      %159 = vector.broadcast %157 : vector<1x128xf32> to vector<24x128xf32>
      %160 = arith.mulf %158, %159 : vector<24x128xf32>
      %161 = arith.addf %152, %160 : vector<24x128xf32>
      %c1_i32_140 = arith.constant 1 : i32
      %162 = arith.addi %88, %c1_i32_140 : i32
      %c0_141 = arith.constant 0 : index
      %163 = arith.index_cast %162 : i32 to index
      %c3_142 = arith.constant 3 : index
      %c0_143 = arith.constant 0 : index
      %164 = vector.load %arg1[%c0_141, %163, %c3_142, %c0_143] : memref<1x28x28x1xf32, #tpu.memory_space<vmem>>, vector<1x1x24x1xf32>
      %165 = vector.shape_cast %164 : vector<1x1x24x1xf32> to vector<24x1xf32>
      %c8 = arith.constant 8 : index
      %c0_144 = arith.constant 0 : index
      %166 = vector.load %arg2[%c8, %c0_144] : memref<25x128xf32, #tpu.memory_space<vmem>>, vector<1x128xf32>
      %167 = vector.broadcast %165 : vector<24x1xf32> to vector<24x128xf32>
      %168 = vector.broadcast %166 : vector<1x128xf32> to vector<24x128xf32>
      %169 = arith.mulf %167, %168 : vector<24x128xf32>
      %170 = arith.addf %161, %169 : vector<24x128xf32>
      %c1_i32_145 = arith.constant 1 : i32
      %171 = arith.addi %88, %c1_i32_145 : i32
      %c0_146 = arith.constant 0 : index
      %172 = arith.index_cast %171 : i32 to index
      %c4_147 = arith.constant 4 : index
      %c0_148 = arith.constant 0 : index
      %173 = vector.load %arg1[%c0_146, %172, %c4_147, %c0_148] : memref<1x28x28x1xf32, #tpu.memory_space<vmem>>, vector<1x1x24x1xf32>
      %174 = vector.shape_cast %173 : vector<1x1x24x1xf32> to vector<24x1xf32>
      %c9 = arith.constant 9 : index
      %c0_149 = arith.constant 0 : index
      %175 = vector.load %arg2[%c9, %c0_149] : memref<25x128xf32, #tpu.memory_space<vmem>>, vector<1x128xf32>
      %176 = vector.broadcast %174 : vector<24x1xf32> to vector<24x128xf32>
      %177 = vector.broadcast %175 : vector<1x128xf32> to vector<24x128xf32>
      %178 = arith.mulf %176, %177 : vector<24x128xf32>
      %179 = arith.addf %170, %178 : vector<24x128xf32>
      %c2_i32 = arith.constant 2 : i32
      %180 = arith.addi %88, %c2_i32 : i32
      %c0_150 = arith.constant 0 : index
      %181 = arith.index_cast %180 : i32 to index
      %c0_151 = arith.constant 0 : index
      %c0_152 = arith.constant 0 : index
      %182 = vector.load %arg1[%c0_150, %181, %c0_151, %c0_152] : memref<1x28x28x1xf32, #tpu.memory_space<vmem>>, vector<1x1x24x1xf32>
      %183 = vector.shape_cast %182 : vector<1x1x24x1xf32> to vector<24x1xf32>
      %c10 = arith.constant 10 : index
      %c0_153 = arith.constant 0 : index
      %184 = vector.load %arg2[%c10, %c0_153] : memref<25x128xf32, #tpu.memory_space<vmem>>, vector<1x128xf32>
      %185 = vector.broadcast %183 : vector<24x1xf32> to vector<24x128xf32>
      %186 = vector.broadcast %184 : vector<1x128xf32> to vector<24x128xf32>
      %187 = arith.mulf %185, %186 : vector<24x128xf32>
      %188 = arith.addf %179, %187 : vector<24x128xf32>
      %c2_i32_154 = arith.constant 2 : i32
      %189 = arith.addi %88, %c2_i32_154 : i32
      %c0_155 = arith.constant 0 : index
      %190 = arith.index_cast %189 : i32 to index
      %c1_156 = arith.constant 1 : index
      %c0_157 = arith.constant 0 : index
      %191 = vector.load %arg1[%c0_155, %190, %c1_156, %c0_157] : memref<1x28x28x1xf32, #tpu.memory_space<vmem>>, vector<1x1x24x1xf32>
      %192 = vector.shape_cast %191 : vector<1x1x24x1xf32> to vector<24x1xf32>
      %c11 = arith.constant 11 : index
      %c0_158 = arith.constant 0 : index
      %193 = vector.load %arg2[%c11, %c0_158] : memref<25x128xf32, #tpu.memory_space<vmem>>, vector<1x128xf32>
      %194 = vector.broadcast %192 : vector<24x1xf32> to vector<24x128xf32>
      %195 = vector.broadcast %193 : vector<1x128xf32> to vector<24x128xf32>
      %196 = arith.mulf %194, %195 : vector<24x128xf32>
      %197 = arith.addf %188, %196 : vector<24x128xf32>
      %c2_i32_159 = arith.constant 2 : i32
      %198 = arith.addi %88, %c2_i32_159 : i32
      %c0_160 = arith.constant 0 : index
      %199 = arith.index_cast %198 : i32 to index
      %c2_161 = arith.constant 2 : index
      %c0_162 = arith.constant 0 : index
      %200 = vector.load %arg1[%c0_160, %199, %c2_161, %c0_162] : memref<1x28x28x1xf32, #tpu.memory_space<vmem>>, vector<1x1x24x1xf32>
      %201 = vector.shape_cast %200 : vector<1x1x24x1xf32> to vector<24x1xf32>
      %c12 = arith.constant 12 : index
      %c0_163 = arith.constant 0 : index
      %202 = vector.load %arg2[%c12, %c0_163] : memref<25x128xf32, #tpu.memory_space<vmem>>, vector<1x128xf32>
      %203 = vector.broadcast %201 : vector<24x1xf32> to vector<24x128xf32>
      %204 = vector.broadcast %202 : vector<1x128xf32> to vector<24x128xf32>
      %205 = arith.mulf %203, %204 : vector<24x128xf32>
      %206 = arith.addf %197, %205 : vector<24x128xf32>
      %c2_i32_164 = arith.constant 2 : i32
      %207 = arith.addi %88, %c2_i32_164 : i32
      %c0_165 = arith.constant 0 : index
      %208 = arith.index_cast %207 : i32 to index
      %c3_166 = arith.constant 3 : index
      %c0_167 = arith.constant 0 : index
      %209 = vector.load %arg1[%c0_165, %208, %c3_166, %c0_167] : memref<1x28x28x1xf32, #tpu.memory_space<vmem>>, vector<1x1x24x1xf32>
      %210 = vector.shape_cast %209 : vector<1x1x24x1xf32> to vector<24x1xf32>
      %c13 = arith.constant 13 : index
      %c0_168 = arith.constant 0 : index
      %211 = vector.load %arg2[%c13, %c0_168] : memref<25x128xf32, #tpu.memory_space<vmem>>, vector<1x128xf32>
      %212 = vector.broadcast %210 : vector<24x1xf32> to vector<24x128xf32>
      %213 = vector.broadcast %211 : vector<1x128xf32> to vector<24x128xf32>
      %214 = arith.mulf %212, %213 : vector<24x128xf32>
      %215 = arith.addf %206, %214 : vector<24x128xf32>
      %c2_i32_169 = arith.constant 2 : i32
      %216 = arith.addi %88, %c2_i32_169 : i32
      %c0_170 = arith.constant 0 : index
      %217 = arith.index_cast %216 : i32 to index
      %c4_171 = arith.constant 4 : index
      %c0_172 = arith.constant 0 : index
      %218 = vector.load %arg1[%c0_170, %217, %c4_171, %c0_172] : memref<1x28x28x1xf32, #tpu.memory_space<vmem>>, vector<1x1x24x1xf32>
      %219 = vector.shape_cast %218 : vector<1x1x24x1xf32> to vector<24x1xf32>
      %c14 = arith.constant 14 : index
      %c0_173 = arith.constant 0 : index
      %220 = vector.load %arg2[%c14, %c0_173] : memref<25x128xf32, #tpu.memory_space<vmem>>, vector<1x128xf32>
      %221 = vector.broadcast %219 : vector<24x1xf32> to vector<24x128xf32>
      %222 = vector.broadcast %220 : vector<1x128xf32> to vector<24x128xf32>
      %223 = arith.mulf %221, %222 : vector<24x128xf32>
      %224 = arith.addf %215, %223 : vector<24x128xf32>
      %c3_i32_174 = arith.constant 3 : i32
      %225 = arith.addi %88, %c3_i32_174 : i32
      %c0_175 = arith.constant 0 : index
      %226 = arith.index_cast %225 : i32 to index
      %c0_176 = arith.constant 0 : index
      %c0_177 = arith.constant 0 : index
      %227 = vector.load %arg1[%c0_175, %226, %c0_176, %c0_177] : memref<1x28x28x1xf32, #tpu.memory_space<vmem>>, vector<1x1x24x1xf32>
      %228 = vector.shape_cast %227 : vector<1x1x24x1xf32> to vector<24x1xf32>
      %c15 = arith.constant 15 : index
      %c0_178 = arith.constant 0 : index
      %229 = vector.load %arg2[%c15, %c0_178] : memref<25x128xf32, #tpu.memory_space<vmem>>, vector<1x128xf32>
      %230 = vector.broadcast %228 : vector<24x1xf32> to vector<24x128xf32>
      %231 = vector.broadcast %229 : vector<1x128xf32> to vector<24x128xf32>
      %232 = arith.mulf %230, %231 : vector<24x128xf32>
      %233 = arith.addf %224, %232 : vector<24x128xf32>
      %c3_i32_179 = arith.constant 3 : i32
      %234 = arith.addi %88, %c3_i32_179 : i32
      %c0_180 = arith.constant 0 : index
      %235 = arith.index_cast %234 : i32 to index
      %c1_181 = arith.constant 1 : index
      %c0_182 = arith.constant 0 : index
      %236 = vector.load %arg1[%c0_180, %235, %c1_181, %c0_182] : memref<1x28x28x1xf32, #tpu.memory_space<vmem>>, vector<1x1x24x1xf32>
      %237 = vector.shape_cast %236 : vector<1x1x24x1xf32> to vector<24x1xf32>
      %c16 = arith.constant 16 : index
      %c0_183 = arith.constant 0 : index
      %238 = vector.load %arg2[%c16, %c0_183] : memref<25x128xf32, #tpu.memory_space<vmem>>, vector<1x128xf32>
      %239 = vector.broadcast %237 : vector<24x1xf32> to vector<24x128xf32>
      %240 = vector.broadcast %238 : vector<1x128xf32> to vector<24x128xf32>
      %241 = arith.mulf %239, %240 : vector<24x128xf32>
      %242 = arith.addf %233, %241 : vector<24x128xf32>
      %c3_i32_184 = arith.constant 3 : i32
      %243 = arith.addi %88, %c3_i32_184 : i32
      %c0_185 = arith.constant 0 : index
      %244 = arith.index_cast %243 : i32 to index
      %c2_186 = arith.constant 2 : index
      %c0_187 = arith.constant 0 : index
      %245 = vector.load %arg1[%c0_185, %244, %c2_186, %c0_187] : memref<1x28x28x1xf32, #tpu.memory_space<vmem>>, vector<1x1x24x1xf32>
      %246 = vector.shape_cast %245 : vector<1x1x24x1xf32> to vector<24x1xf32>
      %c17 = arith.constant 17 : index
      %c0_188 = arith.constant 0 : index
      %247 = vector.load %arg2[%c17, %c0_188] : memref<25x128xf32, #tpu.memory_space<vmem>>, vector<1x128xf32>
      %248 = vector.broadcast %246 : vector<24x1xf32> to vector<24x128xf32>
      %249 = vector.broadcast %247 : vector<1x128xf32> to vector<24x128xf32>
      %250 = arith.mulf %248, %249 : vector<24x128xf32>
      %251 = arith.addf %242, %250 : vector<24x128xf32>
      %c3_i32_189 = arith.constant 3 : i32
      %252 = arith.addi %88, %c3_i32_189 : i32
      %c0_190 = arith.constant 0 : index
      %253 = arith.index_cast %252 : i32 to index
      %c3_191 = arith.constant 3 : index
      %c0_192 = arith.constant 0 : index
      %254 = vector.load %arg1[%c0_190, %253, %c3_191, %c0_192] : memref<1x28x28x1xf32, #tpu.memory_space<vmem>>, vector<1x1x24x1xf32>
      %255 = vector.shape_cast %254 : vector<1x1x24x1xf32> to vector<24x1xf32>
      %c18 = arith.constant 18 : index
      %c0_193 = arith.constant 0 : index
      %256 = vector.load %arg2[%c18, %c0_193] : memref<25x128xf32, #tpu.memory_space<vmem>>, vector<1x128xf32>
      %257 = vector.broadcast %255 : vector<24x1xf32> to vector<24x128xf32>
      %258 = vector.broadcast %256 : vector<1x128xf32> to vector<24x128xf32>
      %259 = arith.mulf %257, %258 : vector<24x128xf32>
      %260 = arith.addf %251, %259 : vector<24x128xf32>
      %c3_i32_194 = arith.constant 3 : i32
      %261 = arith.addi %88, %c3_i32_194 : i32
      %c0_195 = arith.constant 0 : index
      %262 = arith.index_cast %261 : i32 to index
      %c4_196 = arith.constant 4 : index
      %c0_197 = arith.constant 0 : index
      %263 = vector.load %arg1[%c0_195, %262, %c4_196, %c0_197] : memref<1x28x28x1xf32, #tpu.memory_space<vmem>>, vector<1x1x24x1xf32>
      %264 = vector.shape_cast %263 : vector<1x1x24x1xf32> to vector<24x1xf32>
      %c19 = arith.constant 19 : index
      %c0_198 = arith.constant 0 : index
      %265 = vector.load %arg2[%c19, %c0_198] : memref<25x128xf32, #tpu.memory_space<vmem>>, vector<1x128xf32>
      %266 = vector.broadcast %264 : vector<24x1xf32> to vector<24x128xf32>
      %267 = vector.broadcast %265 : vector<1x128xf32> to vector<24x128xf32>
      %268 = arith.mulf %266, %267 : vector<24x128xf32>
      %269 = arith.addf %260, %268 : vector<24x128xf32>
      %c4_i32 = arith.constant 4 : i32
      %270 = arith.addi %88, %c4_i32 : i32
      %c0_199 = arith.constant 0 : index
      %271 = arith.index_cast %270 : i32 to index
      %c0_200 = arith.constant 0 : index
      %c0_201 = arith.constant 0 : index
      %272 = vector.load %arg1[%c0_199, %271, %c0_200, %c0_201] : memref<1x28x28x1xf32, #tpu.memory_space<vmem>>, vector<1x1x24x1xf32>
      %273 = vector.shape_cast %272 : vector<1x1x24x1xf32> to vector<24x1xf32>
      %c20 = arith.constant 20 : index
      %c0_202 = arith.constant 0 : index
      %274 = vector.load %arg2[%c20, %c0_202] : memref<25x128xf32, #tpu.memory_space<vmem>>, vector<1x128xf32>
      %275 = vector.broadcast %273 : vector<24x1xf32> to vector<24x128xf32>
      %276 = vector.broadcast %274 : vector<1x128xf32> to vector<24x128xf32>
      %277 = arith.mulf %275, %276 : vector<24x128xf32>
      %278 = arith.addf %269, %277 : vector<24x128xf32>
      %c4_i32_203 = arith.constant 4 : i32
      %279 = arith.addi %88, %c4_i32_203 : i32
      %c0_204 = arith.constant 0 : index
      %280 = arith.index_cast %279 : i32 to index
      %c1_205 = arith.constant 1 : index
      %c0_206 = arith.constant 0 : index
      %281 = vector.load %arg1[%c0_204, %280, %c1_205, %c0_206] : memref<1x28x28x1xf32, #tpu.memory_space<vmem>>, vector<1x1x24x1xf32>
      %282 = vector.shape_cast %281 : vector<1x1x24x1xf32> to vector<24x1xf32>
      %c21 = arith.constant 21 : index
      %c0_207 = arith.constant 0 : index
      %283 = vector.load %arg2[%c21, %c0_207] : memref<25x128xf32, #tpu.memory_space<vmem>>, vector<1x128xf32>
      %284 = vector.broadcast %282 : vector<24x1xf32> to vector<24x128xf32>
      %285 = vector.broadcast %283 : vector<1x128xf32> to vector<24x128xf32>
      %286 = arith.mulf %284, %285 : vector<24x128xf32>
      %287 = arith.addf %278, %286 : vector<24x128xf32>
      %c4_i32_208 = arith.constant 4 : i32
      %288 = arith.addi %88, %c4_i32_208 : i32
      %c0_209 = arith.constant 0 : index
      %289 = arith.index_cast %288 : i32 to index
      %c2_210 = arith.constant 2 : index
      %c0_211 = arith.constant 0 : index
      %290 = vector.load %arg1[%c0_209, %289, %c2_210, %c0_211] : memref<1x28x28x1xf32, #tpu.memory_space<vmem>>, vector<1x1x24x1xf32>
      %291 = vector.shape_cast %290 : vector<1x1x24x1xf32> to vector<24x1xf32>
      %c22 = arith.constant 22 : index
      %c0_212 = arith.constant 0 : index
      %292 = vector.load %arg2[%c22, %c0_212] : memref<25x128xf32, #tpu.memory_space<vmem>>, vector<1x128xf32>
      %293 = vector.broadcast %291 : vector<24x1xf32> to vector<24x128xf32>
      %294 = vector.broadcast %292 : vector<1x128xf32> to vector<24x128xf32>
      %295 = arith.mulf %293, %294 : vector<24x128xf32>
      %296 = arith.addf %287, %295 : vector<24x128xf32>
      %c4_i32_213 = arith.constant 4 : i32
      %297 = arith.addi %88, %c4_i32_213 : i32
      %c0_214 = arith.constant 0 : index
      %298 = arith.index_cast %297 : i32 to index
      %c3_215 = arith.constant 3 : index
      %c0_216 = arith.constant 0 : index
      %299 = vector.load %arg1[%c0_214, %298, %c3_215, %c0_216] : memref<1x28x28x1xf32, #tpu.memory_space<vmem>>, vector<1x1x24x1xf32>
      %300 = vector.shape_cast %299 : vector<1x1x24x1xf32> to vector<24x1xf32>
      %c23 = arith.constant 23 : index
      %c0_217 = arith.constant 0 : index
      %301 = vector.load %arg2[%c23, %c0_217] : memref<25x128xf32, #tpu.memory_space<vmem>>, vector<1x128xf32>
      %302 = vector.broadcast %300 : vector<24x1xf32> to vector<24x128xf32>
      %303 = vector.broadcast %301 : vector<1x128xf32> to vector<24x128xf32>
      %304 = arith.mulf %302, %303 : vector<24x128xf32>
      %305 = arith.addf %296, %304 : vector<24x128xf32>
      %c4_i32_218 = arith.constant 4 : i32
      %306 = arith.addi %88, %c4_i32_218 : i32
      %c0_219 = arith.constant 0 : index
      %307 = arith.index_cast %306 : i32 to index
      %c4_220 = arith.constant 4 : index
      %c0_221 = arith.constant 0 : index
      %308 = vector.load %arg1[%c0_219, %307, %c4_220, %c0_221] : memref<1x28x28x1xf32, #tpu.memory_space<vmem>>, vector<1x1x24x1xf32>
      %309 = vector.shape_cast %308 : vector<1x1x24x1xf32> to vector<24x1xf32>
      %c24 = arith.constant 24 : index
      %c0_222 = arith.constant 0 : index
      %310 = vector.load %arg2[%c24, %c0_222] : memref<25x128xf32, #tpu.memory_space<vmem>>, vector<1x128xf32>
      %311 = vector.broadcast %309 : vector<24x1xf32> to vector<24x128xf32>
      %312 = vector.broadcast %310 : vector<1x128xf32> to vector<24x128xf32>
      %313 = arith.mulf %311, %312 : vector<24x128xf32>
      %314 = arith.addf %305, %313 : vector<24x128xf32>
      %315 = vector.broadcast %0 : vector<1x128xf32> to vector<24x128xf32>
      %316 = arith.addf %314, %315 : vector<24x128xf32>
      %cst_223 = arith.constant 0.000000e+00 : f32
      %317 = vector.broadcast %cst_223 : f32 to vector<24x128xf32>
      %318 = arith.maximumf %316, %317 : vector<24x128xf32>
      %319 = vector.broadcast %1 : vector<1x128xf32> to vector<24x128xf32>
      %320 = arith.mulf %318, %319 : vector<24x128xf32>
      %321 = vector.broadcast %2 : vector<1x128xf32> to vector<24x128xf32>
      %322 = arith.addf %320, %321 : vector<24x128xf32>
      %323 = arith.index_cast %88 : i32 to index
      %c0_224 = arith.constant 0 : index
      %c0_225 = arith.constant 0 : index
      %324 = vector.load %arg15[%323, %c0_224, %c0_225] : memref<24x24x128xf32, #tpu.memory_space<vmem>>, vector<1x24x128xf32>
      %325 = vector.shape_cast %324 : vector<1x24x128xf32> to vector<24x128xf32>
      %326 = vector.shape_cast %322 : vector<24x128xf32> to vector<1x24x128xf32>
      tpu.vector_store %arg15[%323, %c0_224, %c0_225], %326 {strides = array<i32>} : memref<24x24x128xf32, #tpu.memory_space<vmem>>, vector<1x24x128xf32>,
    }
    %c24_i32_3 = arith.constant 24 : i32
    %c0_4 = arith.constant 0 : index
    %c0_5 = arith.constant 0 : index
    %4 = vector.load %arg5[%c0_4, %c0_5] : memref<3x128xf32, #tpu.memory_space<vmem>>, vector<1x128xf32>
    %c1_6 = arith.constant 1 : index
    %c0_7 = arith.constant 0 : index
    %5 = vector.load %arg5[%c1_6, %c0_7] : memref<3x128xf32, #tpu.memory_space<vmem>>, vector<1x128xf32>
    %c2_8 = arith.constant 2 : index
    %c0_9 = arith.constant 0 : index
    %6 = vector.load %arg5[%c2_8, %c0_9] : memref<3x128xf32, #tpu.memory_space<vmem>>, vector<1x128xf32>
    %c0_i32_10 = arith.constant 0 : i32
    %c20_i32 = arith.constant 20 : i32
    %7 = arith.addi %c0_i32_10, %c20_i32 : i32
    %c1_i32_11 = arith.constant 1 : i32
    scf.for %arg21 = %c0_i32_10 to %7 step %c1_i32_11  : i32 {
      %c1_i32_94 = arith.constant 1 : i32
      %87 = arith.muli %arg21, %c1_i32_94 : i32
      %c0_i32_95 = arith.constant 0 : i32
      %88 = arith.addi %c0_i32_95, %87 : i32
      %cst_96 = arith.constant 0.000000e+00 : f32
      %89 = vector.broadcast %cst_96 : f32 to vector<20x128xf32>
      %c0_i32_97 = arith.constant 0 : i32
      %90 = arith.addi %88, %c0_i32_97 : i32
      %91 = arith.index_cast %90 : i32 to index
      %c0_98 = arith.constant 0 : index
      %c0_99 = arith.constant 0 : index
      %92 = vector.load %arg15[%91, %c0_98, %c0_99] : memref<24x24x128xf32, #tpu.memory_space<vmem>>, vector<1x20x128xf32>
      %93 = vector.shape_cast %92 : vector<1x20x128xf32> to vector<20x128xf32>
      %c0_100 = arith.constant 0 : index
      %c0_101 = arith.constant 0 : index
      %94 = vector.load %arg4[%c0_100, %c0_101] : memref<3200x128xbf16, #tpu.memory_space<vmem>>, vector<128x128xbf16>
      %95 = arith.truncf %93 : vector<20x128xf32> to vector<20x128xbf16>
      %cst_102 = arith.constant dense<0.000000e+00> : vector<20x128xf32>
      %96 = tpu.matmul %95, %94, %cst_102 {dimension_numbers = #tpu.dot_dimension_numbers<[1], [0], [0], [1], [0, 0, 1, 1], [], []>} : vector<20x128xbf16>, vector<128x128xbf16>, vector<20x128xf32> -> vector<20x128xf32>
      %97 = arith.addf %89, %96 : vector<20x128xf32>
      %c0_i32_103 = arith.constant 0 : i32
      %98 = arith.addi %88, %c0_i32_103 : i32
      %99 = arith.index_cast %98 : i32 to index
      %c1_104 = arith.constant 1 : index
      %c0_105 = arith.constant 0 : index
      %100 = vector.load %arg15[%99, %c1_104, %c0_105] : memref<24x24x128xf32, #tpu.memory_space<vmem>>, vector<1x20x128xf32>
      %101 = vector.shape_cast %100 : vector<1x20x128xf32> to vector<20x128xf32>
      %c128_106 = arith.constant 128 : index
      %c0_107 = arith.constant 0 : index
      %102 = vector.load %arg4[%c128_106, %c0_107] : memref<3200x128xbf16, #tpu.memory_space<vmem>>, vector<128x128xbf16>
      %103 = arith.truncf %101 : vector<20x128xf32> to vector<20x128xbf16>
      %cst_108 = arith.constant dense<0.000000e+00> : vector<20x128xf32>
      %104 = tpu.matmul %103, %102, %cst_108 {dimension_numbers = #tpu.dot_dimension_numbers<[1], [0], [0], [1], [0, 0, 1, 1], [], []>} : vector<20x128xbf16>, vector<128x128xbf16>, vector<20x128xf32> -> vector<20x128xf32>
      %105 = arith.addf %97, %104 : vector<20x128xf32>
      %c0_i32_109 = arith.constant 0 : i32
      %106 = arith.addi %88, %c0_i32_109 : i32
      %107 = arith.index_cast %106 : i32 to index
      %c2_110 = arith.constant 2 : index
      %c0_111 = arith.constant 0 : index
      %108 = vector.load %arg15[%107, %c2_110, %c0_111] : memref<24x24x128xf32, #tpu.memory_space<vmem>>, vector<1x20x128xf32>
      %109 = vector.shape_cast %108 : vector<1x20x128xf32> to vector<20x128xf32>
      %c256_112 = arith.constant 256 : index
      %c0_113 = arith.constant 0 : index
      %110 = vector.load %arg4[%c256_112, %c0_113] : memref<3200x128xbf16, #tpu.memory_space<vmem>>, vector<128x128xbf16>
      %111 = arith.truncf %109 : vector<20x128xf32> to vector<20x128xbf16>
      %cst_114 = arith.constant dense<0.000000e+00> : vector<20x128xf32>
      %112 = tpu.matmul %111, %110, %cst_114 {dimension_numbers = #tpu.dot_dimension_numbers<[1], [0], [0], [1], [0, 0, 1, 1], [], []>} : vector<20x128xbf16>, vector<128x128xbf16>, vector<20x128xf32> -> vector<20x128xf32>
      %113 = arith.addf %105, %112 : vector<20x128xf32>
      %c0_i32_115 = arith.constant 0 : i32
      %114 = arith.addi %88, %c0_i32_115 : i32
      %115 = arith.index_cast %114 : i32 to index
      %c3 = arith.constant 3 : index
      %c0_116 = arith.constant 0 : index
      %116 = vector.load %arg15[%115, %c3, %c0_116] : memref<24x24x128xf32, #tpu.memory_space<vmem>>, vector<1x20x128xf32>
      %117 = vector.shape_cast %116 : vector<1x20x128xf32> to vector<20x128xf32>
      %c384_117 = arith.constant 384 : index
      %c0_118 = arith.constant 0 : index
      %118 = vector.load %arg4[%c384_117, %c0_118] : memref<3200x128xbf16, #tpu.memory_space<vmem>>, vector<128x128xbf16>
      %119 = arith.truncf %117 : vector<20x128xf32> to vector<20x128xbf16>
      %cst_119 = arith.constant dense<0.000000e+00> : vector<20x128xf32>
      %120 = tpu.matmul %119, %118, %cst_119 {dimension_numbers = #tpu.dot_dimension_numbers<[1], [0], [0], [1], [0, 0, 1, 1], [], []>} : vector<20x128xbf16>, vector<128x128xbf16>, vector<20x128xf32> -> vector<20x128xf32>
      %121 = arith.addf %113, %120 : vector<20x128xf32>
      %c0_i32_120 = arith.constant 0 : i32
      %122 = arith.addi %88, %c0_i32_120 : i32
      %123 = arith.index_cast %122 : i32 to index
      %c4 = arith.constant 4 : index
      %c0_121 = arith.constant 0 : index
      %124 = vector.load %arg15[%123, %c4, %c0_121] : memref<24x24x128xf32, #tpu.memory_space<vmem>>, vector<1x20x128xf32>
      %125 = vector.shape_cast %124 : vector<1x20x128xf32> to vector<20x128xf32>
      %c512_122 = arith.constant 512 : index
      %c0_123 = arith.constant 0 : index
      %126 = vector.load %arg4[%c512_122, %c0_123] : memref<3200x128xbf16, #tpu.memory_space<vmem>>, vector<128x128xbf16>
      %127 = arith.truncf %125 : vector<20x128xf32> to vector<20x128xbf16>
      %cst_124 = arith.constant dense<0.000000e+00> : vector<20x128xf32>
      %128 = tpu.matmul %127, %126, %cst_124 {dimension_numbers = #tpu.dot_dimension_numbers<[1], [0], [0], [1], [0, 0, 1, 1], [], []>} : vector<20x128xbf16>, vector<128x128xbf16>, vector<20x128xf32> -> vector<20x128xf32>
      %129 = arith.addf %121, %128 : vector<20x128xf32>
      %c1_i32_125 = arith.constant 1 : i32
      %130 = arith.addi %88, %c1_i32_125 : i32
      %131 = arith.index_cast %130 : i32 to index
      %c0_126 = arith.constant 0 : index
      %c0_127 = arith.constant 0 : index
      %132 = vector.load %arg15[%131, %c0_126, %c0_127] : memref<24x24x128xf32, #tpu.memory_space<vmem>>, vector<1x20x128xf32>
      %133 = vector.shape_cast %132 : vector<1x20x128xf32> to vector<20x128xf32>
      %c640_128 = arith.constant 640 : index
      %c0_129 = arith.constant 0 : index
      %134 = vector.load %arg4[%c640_128, %c0_129] : memref<3200x128xbf16, #tpu.memory_space<vmem>>, vector<128x128xbf16>
      %135 = arith.truncf %133 : vector<20x128xf32> to vector<20x128xbf16>
      %cst_130 = arith.constant dense<0.000000e+00> : vector<20x128xf32>
      %136 = tpu.matmul %135, %134, %cst_130 {dimension_numbers = #tpu.dot_dimension_numbers<[1], [0], [0], [1], [0, 0, 1, 1], [], []>} : vector<20x128xbf16>, vector<128x128xbf16>, vector<20x128xf32> -> vector<20x128xf32>
      %137 = arith.addf %129, %136 : vector<20x128xf32>
      %c1_i32_131 = arith.constant 1 : i32
      %138 = arith.addi %88, %c1_i32_131 : i32
      %139 = arith.index_cast %138 : i32 to index
      %c1_132 = arith.constant 1 : index
      %c0_133 = arith.constant 0 : index
      %140 = vector.load %arg15[%139, %c1_132, %c0_133] : memref<24x24x128xf32, #tpu.memory_space<vmem>>, vector<1x20x128xf32>
      %141 = vector.shape_cast %140 : vector<1x20x128xf32> to vector<20x128xf32>
      %c768_134 = arith.constant 768 : index
      %c0_135 = arith.constant 0 : index
      %142 = vector.load %arg4[%c768_134, %c0_135] : memref<3200x128xbf16, #tpu.memory_space<vmem>>, vector<128x128xbf16>
      %143 = arith.truncf %141 : vector<20x128xf32> to vector<20x128xbf16>
      %cst_136 = arith.constant dense<0.000000e+00> : vector<20x128xf32>
      %144 = tpu.matmul %143, %142, %cst_136 {dimension_numbers = #tpu.dot_dimension_numbers<[1], [0], [0], [1], [0, 0, 1, 1], [], []>} : vector<20x128xbf16>, vector<128x128xbf16>, vector<20x128xf32> -> vector<20x128xf32>
      %145 = arith.addf %137, %144 : vector<20x128xf32>
      %c1_i32_137 = arith.constant 1 : i32
      %146 = arith.addi %88, %c1_i32_137 : i32
      %147 = arith.index_cast %146 : i32 to index
      %c2_138 = arith.constant 2 : index
      %c0_139 = arith.constant 0 : index
      %148 = vector.load %arg15[%147, %c2_138, %c0_139] : memref<24x24x128xf32, #tpu.memory_space<vmem>>, vector<1x20x128xf32>
      %149 = vector.shape_cast %148 : vector<1x20x128xf32> to vector<20x128xf32>
      %c896_140 = arith.constant 896 : index
      %c0_141 = arith.constant 0 : index
      %150 = vector.load %arg4[%c896_140, %c0_141] : memref<3200x128xbf16, #tpu.memory_space<vmem>>, vector<128x128xbf16>
      %151 = arith.truncf %149 : vector<20x128xf32> to vector<20x128xbf16>
      %cst_142 = arith.constant dense<0.000000e+00> : vector<20x128xf32>
      %152 = tpu.matmul %151, %150, %cst_142 {dimension_numbers = #tpu.dot_dimension_numbers<[1], [0], [0], [1], [0, 0, 1, 1], [], []>} : vector<20x128xbf16>, vector<128x128xbf16>, vector<20x128xf32> -> vector<20x128xf32>
      %153 = arith.addf %145, %152 : vector<20x128xf32>
      %c1_i32_143 = arith.constant 1 : i32
      %154 = arith.addi %88, %c1_i32_143 : i32
      %155 = arith.index_cast %154 : i32 to index
      %c3_144 = arith.constant 3 : index
      %c0_145 = arith.constant 0 : index
      %156 = vector.load %arg15[%155, %c3_144, %c0_145] : memref<24x24x128xf32, #tpu.memory_space<vmem>>, vector<1x20x128xf32>
      %157 = vector.shape_cast %156 : vector<1x20x128xf32> to vector<20x128xf32>
      %c1024_146 = arith.constant 1024 : index
      %c0_147 = arith.constant 0 : index
      %158 = vector.load %arg4[%c1024_146, %c0_147] : memref<3200x128xbf16, #tpu.memory_space<vmem>>, vector<128x128xbf16>
      %159 = arith.truncf %157 : vector<20x128xf32> to vector<20x128xbf16>
      %cst_148 = arith.constant dense<0.000000e+00> : vector<20x128xf32>
      %160 = tpu.matmul %159, %158, %cst_148 {dimension_numbers = #tpu.dot_dimension_numbers<[1], [0], [0], [1], [0, 0, 1, 1], [], []>} : vector<20x128xbf16>, vector<128x128xbf16>, vector<20x128xf32> -> vector<20x128xf32>
      %161 = arith.addf %153, %160 : vector<20x128xf32>
      %c1_i32_149 = arith.constant 1 : i32
      %162 = arith.addi %88, %c1_i32_149 : i32
      %163 = arith.index_cast %162 : i32 to index
      %c4_150 = arith.constant 4 : index
      %c0_151 = arith.constant 0 : index
      %164 = vector.load %arg15[%163, %c4_150, %c0_151] : memref<24x24x128xf32, #tpu.memory_space<vmem>>, vector<1x20x128xf32>
      %165 = vector.shape_cast %164 : vector<1x20x128xf32> to vector<20x128xf32>
      %c1152 = arith.constant 1152 : index
      %c0_152 = arith.constant 0 : index
      %166 = vector.load %arg4[%c1152, %c0_152] : memref<3200x128xbf16, #tpu.memory_space<vmem>>, vector<128x128xbf16>
      %167 = arith.truncf %165 : vector<20x128xf32> to vector<20x128xbf16>
      %cst_153 = arith.constant dense<0.000000e+00> : vector<20x128xf32>
      %168 = tpu.matmul %167, %166, %cst_153 {dimension_numbers = #tpu.dot_dimension_numbers<[1], [0], [0], [1], [0, 0, 1, 1], [], []>} : vector<20x128xbf16>, vector<128x128xbf16>, vector<20x128xf32> -> vector<20x128xf32>
      %169 = arith.addf %161, %168 : vector<20x128xf32>
      %c2_i32 = arith.constant 2 : i32
      %170 = arith.addi %88, %c2_i32 : i32
      %171 = arith.index_cast %170 : i32 to index
      %c0_154 = arith.constant 0 : index
      %c0_155 = arith.constant 0 : index
      %172 = vector.load %arg15[%171, %c0_154, %c0_155] : memref<24x24x128xf32, #tpu.memory_space<vmem>>, vector<1x20x128xf32>
      %173 = vector.shape_cast %172 : vector<1x20x128xf32> to vector<20x128xf32>
      %c1280 = arith.constant 1280 : index
      %c0_156 = arith.constant 0 : index
      %174 = vector.load %arg4[%c1280, %c0_156] : memref<3200x128xbf16, #tpu.memory_space<vmem>>, vector<128x128xbf16>
      %175 = arith.truncf %173 : vector<20x128xf32> to vector<20x128xbf16>
      %cst_157 = arith.constant dense<0.000000e+00> : vector<20x128xf32>
      %176 = tpu.matmul %175, %174, %cst_157 {dimension_numbers = #tpu.dot_dimension_numbers<[1], [0], [0], [1], [0, 0, 1, 1], [], []>} : vector<20x128xbf16>, vector<128x128xbf16>, vector<20x128xf32> -> vector<20x128xf32>
      %177 = arith.addf %169, %176 : vector<20x128xf32>
      %c2_i32_158 = arith.constant 2 : i32
      %178 = arith.addi %88, %c2_i32_158 : i32
      %179 = arith.index_cast %178 : i32 to index
      %c1_159 = arith.constant 1 : index
      %c0_160 = arith.constant 0 : index
      %180 = vector.load %arg15[%179, %c1_159, %c0_160] : memref<24x24x128xf32, #tpu.memory_space<vmem>>, vector<1x20x128xf32>
      %181 = vector.shape_cast %180 : vector<1x20x128xf32> to vector<20x128xf32>
      %c1408 = arith.constant 1408 : index
      %c0_161 = arith.constant 0 : index
      %182 = vector.load %arg4[%c1408, %c0_161] : memref<3200x128xbf16, #tpu.memory_space<vmem>>, vector<128x128xbf16>
      %183 = arith.truncf %181 : vector<20x128xf32> to vector<20x128xbf16>
      %cst_162 = arith.constant dense<0.000000e+00> : vector<20x128xf32>
      %184 = tpu.matmul %183, %182, %cst_162 {dimension_numbers = #tpu.dot_dimension_numbers<[1], [0], [0], [1], [0, 0, 1, 1], [], []>} : vector<20x128xbf16>, vector<128x128xbf16>, vector<20x128xf32> -> vector<20x128xf32>
      %185 = arith.addf %177, %184 : vector<20x128xf32>
      %c2_i32_163 = arith.constant 2 : i32
      %186 = arith.addi %88, %c2_i32_163 : i32
      %187 = arith.index_cast %186 : i32 to index
      %c2_164 = arith.constant 2 : index
      %c0_165 = arith.constant 0 : index
      %188 = vector.load %arg15[%187, %c2_164, %c0_165] : memref<24x24x128xf32, #tpu.memory_space<vmem>>, vector<1x20x128xf32>
      %189 = vector.shape_cast %188 : vector<1x20x128xf32> to vector<20x128xf32>
      %c1536 = arith.constant 1536 : index
      %c0_166 = arith.constant 0 : index
      %190 = vector.load %arg4[%c1536, %c0_166] : memref<3200x128xbf16, #tpu.memory_space<vmem>>, vector<128x128xbf16>
      %191 = arith.truncf %189 : vector<20x128xf32> to vector<20x128xbf16>
      %cst_167 = arith.constant dense<0.000000e+00> : vector<20x128xf32>
      %192 = tpu.matmul %191, %190, %cst_167 {dimension_numbers = #tpu.dot_dimension_numbers<[1], [0], [0], [1], [0, 0, 1, 1], [], []>} : vector<20x128xbf16>, vector<128x128xbf16>, vector<20x128xf32> -> vector<20x128xf32>
      %193 = arith.addf %185, %192 : vector<20x128xf32>
      %c2_i32_168 = arith.constant 2 : i32
      %194 = arith.addi %88, %c2_i32_168 : i32
      %195 = arith.index_cast %194 : i32 to index
      %c3_169 = arith.constant 3 : index
      %c0_170 = arith.constant 0 : index
      %196 = vector.load %arg15[%195, %c3_169, %c0_170] : memref<24x24x128xf32, #tpu.memory_space<vmem>>, vector<1x20x128xf32>
      %197 = vector.shape_cast %196 : vector<1x20x128xf32> to vector<20x128xf32>
      %c1664 = arith.constant 1664 : index
      %c0_171 = arith.constant 0 : index
      %198 = vector.load %arg4[%c1664, %c0_171] : memref<3200x128xbf16, #tpu.memory_space<vmem>>, vector<128x128xbf16>
      %199 = arith.truncf %197 : vector<20x128xf32> to vector<20x128xbf16>
      %cst_172 = arith.constant dense<0.000000e+00> : vector<20x128xf32>
      %200 = tpu.matmul %199, %198, %cst_172 {dimension_numbers = #tpu.dot_dimension_numbers<[1], [0], [0], [1], [0, 0, 1, 1], [], []>} : vector<20x128xbf16>, vector<128x128xbf16>, vector<20x128xf32> -> vector<20x128xf32>
      %201 = arith.addf %193, %200 : vector<20x128xf32>
      %c2_i32_173 = arith.constant 2 : i32
      %202 = arith.addi %88, %c2_i32_173 : i32
      %203 = arith.index_cast %202 : i32 to index
      %c4_174 = arith.constant 4 : index
      %c0_175 = arith.constant 0 : index
      %204 = vector.load %arg15[%203, %c4_174, %c0_175] : memref<24x24x128xf32, #tpu.memory_space<vmem>>, vector<1x20x128xf32>
      %205 = vector.shape_cast %204 : vector<1x20x128xf32> to vector<20x128xf32>
      %c1792 = arith.constant 1792 : index
      %c0_176 = arith.constant 0 : index
      %206 = vector.load %arg4[%c1792, %c0_176] : memref<3200x128xbf16, #tpu.memory_space<vmem>>, vector<128x128xbf16>
      %207 = arith.truncf %205 : vector<20x128xf32> to vector<20x128xbf16>
      %cst_177 = arith.constant dense<0.000000e+00> : vector<20x128xf32>
      %208 = tpu.matmul %207, %206, %cst_177 {dimension_numbers = #tpu.dot_dimension_numbers<[1], [0], [0], [1], [0, 0, 1, 1], [], []>} : vector<20x128xbf16>, vector<128x128xbf16>, vector<20x128xf32> -> vector<20x128xf32>
      %209 = arith.addf %201, %208 : vector<20x128xf32>
      %c3_i32_178 = arith.constant 3 : i32
      %210 = arith.addi %88, %c3_i32_178 : i32
      %211 = arith.index_cast %210 : i32 to index
      %c0_179 = arith.constant 0 : index
      %c0_180 = arith.constant 0 : index
      %212 = vector.load %arg15[%211, %c0_179, %c0_180] : memref<24x24x128xf32, #tpu.memory_space<vmem>>, vector<1x20x128xf32>
      %213 = vector.shape_cast %212 : vector<1x20x128xf32> to vector<20x128xf32>
      %c1920 = arith.constant 1920 : index
      %c0_181 = arith.constant 0 : index
      %214 = vector.load %arg4[%c1920, %c0_181] : memref<3200x128xbf16, #tpu.memory_space<vmem>>, vector<128x128xbf16>
      %215 = arith.truncf %213 : vector<20x128xf32> to vector<20x128xbf16>
      %cst_182 = arith.constant dense<0.000000e+00> : vector<20x128xf32>
      %216 = tpu.matmul %215, %214, %cst_182 {dimension_numbers = #tpu.dot_dimension_numbers<[1], [0], [0], [1], [0, 0, 1, 1], [], []>} : vector<20x128xbf16>, vector<128x128xbf16>, vector<20x128xf32> -> vector<20x128xf32>
      %217 = arith.addf %209, %216 : vector<20x128xf32>
      %c3_i32_183 = arith.constant 3 : i32
      %218 = arith.addi %88, %c3_i32_183 : i32
      %219 = arith.index_cast %218 : i32 to index
      %c1_184 = arith.constant 1 : index
      %c0_185 = arith.constant 0 : index
      %220 = vector.load %arg15[%219, %c1_184, %c0_185] : memref<24x24x128xf32, #tpu.memory_space<vmem>>, vector<1x20x128xf32>
      %221 = vector.shape_cast %220 : vector<1x20x128xf32> to vector<20x128xf32>
      %c2048 = arith.constant 2048 : index
      %c0_186 = arith.constant 0 : index
      %222 = vector.load %arg4[%c2048, %c0_186] : memref<3200x128xbf16, #tpu.memory_space<vmem>>, vector<128x128xbf16>
      %223 = arith.truncf %221 : vector<20x128xf32> to vector<20x128xbf16>
      %cst_187 = arith.constant dense<0.000000e+00> : vector<20x128xf32>
      %224 = tpu.matmul %223, %222, %cst_187 {dimension_numbers = #tpu.dot_dimension_numbers<[1], [0], [0], [1], [0, 0, 1, 1], [], []>} : vector<20x128xbf16>, vector<128x128xbf16>, vector<20x128xf32> -> vector<20x128xf32>
      %225 = arith.addf %217, %224 : vector<20x128xf32>
      %c3_i32_188 = arith.constant 3 : i32
      %226 = arith.addi %88, %c3_i32_188 : i32
      %227 = arith.index_cast %226 : i32 to index
      %c2_189 = arith.constant 2 : index
      %c0_190 = arith.constant 0 : index
      %228 = vector.load %arg15[%227, %c2_189, %c0_190] : memref<24x24x128xf32, #tpu.memory_space<vmem>>, vector<1x20x128xf32>
      %229 = vector.shape_cast %228 : vector<1x20x128xf32> to vector<20x128xf32>
      %c2176 = arith.constant 2176 : index
      %c0_191 = arith.constant 0 : index
      %230 = vector.load %arg4[%c2176, %c0_191] : memref<3200x128xbf16, #tpu.memory_space<vmem>>, vector<128x128xbf16>
      %231 = arith.truncf %229 : vector<20x128xf32> to vector<20x128xbf16>
      %cst_192 = arith.constant dense<0.000000e+00> : vector<20x128xf32>
      %232 = tpu.matmul %231, %230, %cst_192 {dimension_numbers = #tpu.dot_dimension_numbers<[1], [0], [0], [1], [0, 0, 1, 1], [], []>} : vector<20x128xbf16>, vector<128x128xbf16>, vector<20x128xf32> -> vector<20x128xf32>
      %233 = arith.addf %225, %232 : vector<20x128xf32>
      %c3_i32_193 = arith.constant 3 : i32
      %234 = arith.addi %88, %c3_i32_193 : i32
      %235 = arith.index_cast %234 : i32 to index
      %c3_194 = arith.constant 3 : index
      %c0_195 = arith.constant 0 : index
      %236 = vector.load %arg15[%235, %c3_194, %c0_195] : memref<24x24x128xf32, #tpu.memory_space<vmem>>, vector<1x20x128xf32>
      %237 = vector.shape_cast %236 : vector<1x20x128xf32> to vector<20x128xf32>
      %c2304 = arith.constant 2304 : index
      %c0_196 = arith.constant 0 : index
      %238 = vector.load %arg4[%c2304, %c0_196] : memref<3200x128xbf16, #tpu.memory_space<vmem>>, vector<128x128xbf16>
      %239 = arith.truncf %237 : vector<20x128xf32> to vector<20x128xbf16>
      %cst_197 = arith.constant dense<0.000000e+00> : vector<20x128xf32>
      %240 = tpu.matmul %239, %238, %cst_197 {dimension_numbers = #tpu.dot_dimension_numbers<[1], [0], [0], [1], [0, 0, 1, 1], [], []>} : vector<20x128xbf16>, vector<128x128xbf16>, vector<20x128xf32> -> vector<20x128xf32>
      %241 = arith.addf %233, %240 : vector<20x128xf32>
      %c3_i32_198 = arith.constant 3 : i32
      %242 = arith.addi %88, %c3_i32_198 : i32
      %243 = arith.index_cast %242 : i32 to index
      %c4_199 = arith.constant 4 : index
      %c0_200 = arith.constant 0 : index
      %244 = vector.load %arg15[%243, %c4_199, %c0_200] : memref<24x24x128xf32, #tpu.memory_space<vmem>>, vector<1x20x128xf32>
      %245 = vector.shape_cast %244 : vector<1x20x128xf32> to vector<20x128xf32>
      %c2432 = arith.constant 2432 : index
      %c0_201 = arith.constant 0 : index
      %246 = vector.load %arg4[%c2432, %c0_201] : memref<3200x128xbf16, #tpu.memory_space<vmem>>, vector<128x128xbf16>
      %247 = arith.truncf %245 : vector<20x128xf32> to vector<20x128xbf16>
      %cst_202 = arith.constant dense<0.000000e+00> : vector<20x128xf32>
      %248 = tpu.matmul %247, %246, %cst_202 {dimension_numbers = #tpu.dot_dimension_numbers<[1], [0], [0], [1], [0, 0, 1, 1], [], []>} : vector<20x128xbf16>, vector<128x128xbf16>, vector<20x128xf32> -> vector<20x128xf32>
      %249 = arith.addf %241, %248 : vector<20x128xf32>
      %c4_i32 = arith.constant 4 : i32
      %250 = arith.addi %88, %c4_i32 : i32
      %251 = arith.index_cast %250 : i32 to index
      %c0_203 = arith.constant 0 : index
      %c0_204 = arith.constant 0 : index
      %252 = vector.load %arg15[%251, %c0_203, %c0_204] : memref<24x24x128xf32, #tpu.memory_space<vmem>>, vector<1x20x128xf32>
      %253 = vector.shape_cast %252 : vector<1x20x128xf32> to vector<20x128xf32>
      %c2560 = arith.constant 2560 : index
      %c0_205 = arith.constant 0 : index
      %254 = vector.load %arg4[%c2560, %c0_205] : memref<3200x128xbf16, #tpu.memory_space<vmem>>, vector<128x128xbf16>
      %255 = arith.truncf %253 : vector<20x128xf32> to vector<20x128xbf16>
      %cst_206 = arith.constant dense<0.000000e+00> : vector<20x128xf32>
      %256 = tpu.matmul %255, %254, %cst_206 {dimension_numbers = #tpu.dot_dimension_numbers<[1], [0], [0], [1], [0, 0, 1, 1], [], []>} : vector<20x128xbf16>, vector<128x128xbf16>, vector<20x128xf32> -> vector<20x128xf32>
      %257 = arith.addf %249, %256 : vector<20x128xf32>
      %c4_i32_207 = arith.constant 4 : i32
      %258 = arith.addi %88, %c4_i32_207 : i32
      %259 = arith.index_cast %258 : i32 to index
      %c1_208 = arith.constant 1 : index
      %c0_209 = arith.constant 0 : index
      %260 = vector.load %arg15[%259, %c1_208, %c0_209] : memref<24x24x128xf32, #tpu.memory_space<vmem>>, vector<1x20x128xf32>
      %261 = vector.shape_cast %260 : vector<1x20x128xf32> to vector<20x128xf32>
      %c2688 = arith.constant 2688 : index
      %c0_210 = arith.constant 0 : index
      %262 = vector.load %arg4[%c2688, %c0_210] : memref<3200x128xbf16, #tpu.memory_space<vmem>>, vector<128x128xbf16>
      %263 = arith.truncf %261 : vector<20x128xf32> to vector<20x128xbf16>
      %cst_211 = arith.constant dense<0.000000e+00> : vector<20x128xf32>
      %264 = tpu.matmul %263, %262, %cst_211 {dimension_numbers = #tpu.dot_dimension_numbers<[1], [0], [0], [1], [0, 0, 1, 1], [], []>} : vector<20x128xbf16>, vector<128x128xbf16>, vector<20x128xf32> -> vector<20x128xf32>
      %265 = arith.addf %257, %264 : vector<20x128xf32>
      %c4_i32_212 = arith.constant 4 : i32
      %266 = arith.addi %88, %c4_i32_212 : i32
      %267 = arith.index_cast %266 : i32 to index
      %c2_213 = arith.constant 2 : index
      %c0_214 = arith.constant 0 : index
      %268 = vector.load %arg15[%267, %c2_213, %c0_214] : memref<24x24x128xf32, #tpu.memory_space<vmem>>, vector<1x20x128xf32>
      %269 = vector.shape_cast %268 : vector<1x20x128xf32> to vector<20x128xf32>
      %c2816 = arith.constant 2816 : index
      %c0_215 = arith.constant 0 : index
      %270 = vector.load %arg4[%c2816, %c0_215] : memref<3200x128xbf16, #tpu.memory_space<vmem>>, vector<128x128xbf16>
      %271 = arith.truncf %269 : vector<20x128xf32> to vector<20x128xbf16>
      %cst_216 = arith.constant dense<0.000000e+00> : vector<20x128xf32>
      %272 = tpu.matmul %271, %270, %cst_216 {dimension_numbers = #tpu.dot_dimension_numbers<[1], [0], [0], [1], [0, 0, 1, 1], [], []>} : vector<20x128xbf16>, vector<128x128xbf16>, vector<20x128xf32> -> vector<20x128xf32>
      %273 = arith.addf %265, %272 : vector<20x128xf32>
      %c4_i32_217 = arith.constant 4 : i32
      %274 = arith.addi %88, %c4_i32_217 : i32
      %275 = arith.index_cast %274 : i32 to index
      %c3_218 = arith.constant 3 : index
      %c0_219 = arith.constant 0 : index
      %276 = vector.load %arg15[%275, %c3_218, %c0_219] : memref<24x24x128xf32, #tpu.memory_space<vmem>>, vector<1x20x128xf32>
      %277 = vector.shape_cast %276 : vector<1x20x128xf32> to vector<20x128xf32>
      %c2944 = arith.constant 2944 : index
      %c0_220 = arith.constant 0 : index
      %278 = vector.load %arg4[%c2944, %c0_220] : memref<3200x128xbf16, #tpu.memory_space<vmem>>, vector<128x128xbf16>
      %279 = arith.truncf %277 : vector<20x128xf32> to vector<20x128xbf16>
      %cst_221 = arith.constant dense<0.000000e+00> : vector<20x128xf32>
      %280 = tpu.matmul %279, %278, %cst_221 {dimension_numbers = #tpu.dot_dimension_numbers<[1], [0], [0], [1], [0, 0, 1, 1], [], []>} : vector<20x128xbf16>, vector<128x128xbf16>, vector<20x128xf32> -> vector<20x128xf32>
      %281 = arith.addf %273, %280 : vector<20x128xf32>
      %c4_i32_222 = arith.constant 4 : i32
      %282 = arith.addi %88, %c4_i32_222 : i32
      %283 = arith.index_cast %282 : i32 to index
      %c4_223 = arith.constant 4 : index
      %c0_224 = arith.constant 0 : index
      %284 = vector.load %arg15[%283, %c4_223, %c0_224] : memref<24x24x128xf32, #tpu.memory_space<vmem>>, vector<1x20x128xf32>
      %285 = vector.shape_cast %284 : vector<1x20x128xf32> to vector<20x128xf32>
      %c3072 = arith.constant 3072 : index
      %c0_225 = arith.constant 0 : index
      %286 = vector.load %arg4[%c3072, %c0_225] : memref<3200x128xbf16, #tpu.memory_space<vmem>>, vector<128x128xbf16>
      %287 = arith.truncf %285 : vector<20x128xf32> to vector<20x128xbf16>
      %cst_226 = arith.constant dense<0.000000e+00> : vector<20x128xf32>
      %288 = tpu.matmul %287, %286, %cst_226 {dimension_numbers = #tpu.dot_dimension_numbers<[1], [0], [0], [1], [0, 0, 1, 1], [], []>} : vector<20x128xbf16>, vector<128x128xbf16>, vector<20x128xf32> -> vector<20x128xf32>
      %289 = arith.addf %281, %288 : vector<20x128xf32>
      %290 = vector.broadcast %4 : vector<1x128xf32> to vector<20x128xf32>
      %291 = arith.addf %289, %290 : vector<20x128xf32>
      %cst_227 = arith.constant 0.000000e+00 : f32
      %292 = vector.broadcast %cst_227 : f32 to vector<20x128xf32>
      %293 = arith.maximumf %291, %292 : vector<20x128xf32>
      %294 = vector.broadcast %5 : vector<1x128xf32> to vector<20x128xf32>
      %295 = arith.mulf %293, %294 : vector<20x128xf32>
      %296 = vector.broadcast %6 : vector<1x128xf32> to vector<20x128xf32>
      %297 = arith.addf %295, %296 : vector<20x128xf32>
      %298 = arith.index_cast %88 : i32 to index
      %c0_228 = arith.constant 0 : index
      %c0_229 = arith.constant 0 : index
      %299 = vector.load %arg16[%298, %c0_228, %c0_229] : memref<20x20x128xf32, #tpu.memory_space<vmem>>, vector<1x20x128xf32>
      %300 = vector.shape_cast %299 : vector<1x20x128xf32> to vector<20x128xf32>
      %301 = vector.shape_cast %297 : vector<20x128xf32> to vector<1x20x128xf32>
      tpu.vector_store %arg16[%298, %c0_228, %c0_229], %301 {strides = array<i32>} : memref<20x20x128xf32, #tpu.memory_space<vmem>>, vector<1x20x128xf32>,
    }
    %c20_i32_12 = arith.constant 20 : i32
    %c0_i32_13 = arith.constant 0 : i32
    %c10_i32 = arith.constant 10 : i32
    %8 = arith.addi %c0_i32_13, %c10_i32 : i32
    %c1_i32_14 = arith.constant 1 : i32
    scf.for %arg21 = %c0_i32_13 to %8 step %c1_i32_14  : i32 {
      %c1_i32_94 = arith.constant 1 : i32
      %87 = arith.muli %arg21, %c1_i32_94 : i32
      %c0_i32_95 = arith.constant 0 : i32
      %88 = arith.addi %c0_i32_95, %87 : i32
      %c2_i32 = arith.constant 2 : i32
      %89 = arith.muli %c2_i32, %88 : i32
      %90 = arith.index_cast %89 : i32 to index
      %c0_96 = arith.constant 0 : index
      %c0_97 = arith.constant 0 : index
      %91 = vector.load %arg16[%90, %c0_96, %c0_97] : memref<20x20x128xf32, #tpu.memory_space<vmem>>, vector<2x2x128xf32>
      %92 = vector.extract_strided_slice %91 {offsets = [0, 0, 0], sizes = [1, 2, 128], strides = [1, 1, 1]} : vector<2x2x128xf32> to vector<1x2x128xf32>
      %93 = vector.shape_cast %92 : vector<1x2x128xf32> to vector<2x128xf32>
      %94 = vector.extract_strided_slice %91 {offsets = [1, 0, 0], sizes = [1, 2, 128], strides = [1, 1, 1]} : vector<2x2x128xf32> to vector<1x2x128xf32>
      %95 = vector.shape_cast %94 : vector<1x2x128xf32> to vector<2x128xf32>
      %96 = arith.maximumf %93, %95 : vector<2x128xf32>
      %cst_98 = arith.constant dense<0xFF800000> : vector<128xf32>
      %97 = vector.multi_reduction <maximumf>, %96, %cst_98 [0] : vector<2x128xf32> to vector<128xf32>
      %98 = vector.shape_cast %97 : vector<128xf32> to vector<1x128xf32>
      %99 = arith.index_cast %88 : i32 to index
      %c0_99 = arith.constant 0 : index
      %c0_100 = arith.constant 0 : index
      %100 = vector.load %arg17[%99, %c0_99, %c0_100] : memref<10x10x128xf32, #tpu.memory_space<vmem>>, vector<1x1x128xf32>
      %101 = vector.shape_cast %100 : vector<1x1x128xf32> to vector<1x128xf32>
      %102 = vector.shape_cast %98 : vector<1x128xf32> to vector<1x1x128xf32>
      tpu.vector_store %arg17[%99, %c0_99, %c0_100], %102 {strides = array<i32>} : memref<10x10x128xf32, #tpu.memory_space<vmem>>, vector<1x1x128xf32>,
      %c2_i32_101 = arith.constant 2 : i32
      %103 = arith.muli %c2_i32_101, %88 : i32
      %104 = arith.index_cast %103 : i32 to index
      %c2_102 = arith.constant 2 : index
      %c0_103 = arith.constant 0 : index
      %105 = vector.load %arg16[%104, %c2_102, %c0_103] : memref<20x20x128xf32, #tpu.memory_space<vmem>>, vector<2x2x128xf32>
      %106 = vector.extract_strided_slice %105 {offsets = [0, 0, 0], sizes = [1, 2, 128], strides = [1, 1, 1]} : vector<2x2x128xf32> to vector<1x2x128xf32>
      %107 = vector.shape_cast %106 : vector<1x2x128xf32> to vector<2x128xf32>
      %108 = vector.extract_strided_slice %105 {offsets = [1, 0, 0], sizes = [1, 2, 128], strides = [1, 1, 1]} : vector<2x2x128xf32> to vector<1x2x128xf32>
      %109 = vector.shape_cast %108 : vector<1x2x128xf32> to vector<2x128xf32>
      %110 = arith.maximumf %107, %109 : vector<2x128xf32>
      %cst_104 = arith.constant dense<0xFF800000> : vector<128xf32>
      %111 = vector.multi_reduction <maximumf>, %110, %cst_104 [0] : vector<2x128xf32> to vector<128xf32>
      %112 = vector.shape_cast %111 : vector<128xf32> to vector<1x128xf32>
      %113 = arith.index_cast %88 : i32 to index
      %c1_105 = arith.constant 1 : index
      %c0_106 = arith.constant 0 : index
      %114 = vector.load %arg17[%113, %c1_105, %c0_106] : memref<10x10x128xf32, #tpu.memory_space<vmem>>, vector<1x1x128xf32>
      %115 = vector.shape_cast %114 : vector<1x1x128xf32> to vector<1x128xf32>
      %116 = vector.shape_cast %112 : vector<1x128xf32> to vector<1x1x128xf32>
      tpu.vector_store %arg17[%113, %c1_105, %c0_106], %116 {strides = array<i32>} : memref<10x10x128xf32, #tpu.memory_space<vmem>>, vector<1x1x128xf32>,
      %c2_i32_107 = arith.constant 2 : i32
      %117 = arith.muli %c2_i32_107, %88 : i32
      %118 = arith.index_cast %117 : i32 to index
      %c4 = arith.constant 4 : index
      %c0_108 = arith.constant 0 : index
      %119 = vector.load %arg16[%118, %c4, %c0_108] : memref<20x20x128xf32, #tpu.memory_space<vmem>>, vector<2x2x128xf32>
      %120 = vector.extract_strided_slice %119 {offsets = [0, 0, 0], sizes = [1, 2, 128], strides = [1, 1, 1]} : vector<2x2x128xf32> to vector<1x2x128xf32>
      %121 = vector.shape_cast %120 : vector<1x2x128xf32> to vector<2x128xf32>
      %122 = vector.extract_strided_slice %119 {offsets = [1, 0, 0], sizes = [1, 2, 128], strides = [1, 1, 1]} : vector<2x2x128xf32> to vector<1x2x128xf32>
      %123 = vector.shape_cast %122 : vector<1x2x128xf32> to vector<2x128xf32>
      %124 = arith.maximumf %121, %123 : vector<2x128xf32>
      %cst_109 = arith.constant dense<0xFF800000> : vector<128xf32>
      %125 = vector.multi_reduction <maximumf>, %124, %cst_109 [0] : vector<2x128xf32> to vector<128xf32>
      %126 = vector.shape_cast %125 : vector<128xf32> to vector<1x128xf32>
      %127 = arith.index_cast %88 : i32 to index
      %c2_110 = arith.constant 2 : index
      %c0_111 = arith.constant 0 : index
      %128 = vector.load %arg17[%127, %c2_110, %c0_111] : memref<10x10x128xf32, #tpu.memory_space<vmem>>, vector<1x1x128xf32>
      %129 = vector.shape_cast %128 : vector<1x1x128xf32> to vector<1x128xf32>
      %130 = vector.shape_cast %126 : vector<1x128xf32> to vector<1x1x128xf32>
      tpu.vector_store %arg17[%127, %c2_110, %c0_111], %130 {strides = array<i32>} : memref<10x10x128xf32, #tpu.memory_space<vmem>>, vector<1x1x128xf32>,
      %c2_i32_112 = arith.constant 2 : i32
      %131 = arith.muli %c2_i32_112, %88 : i32
      %132 = arith.index_cast %131 : i32 to index
      %c6 = arith.constant 6 : index
      %c0_113 = arith.constant 0 : index
      %133 = vector.load %arg16[%132, %c6, %c0_113] : memref<20x20x128xf32, #tpu.memory_space<vmem>>, vector<2x2x128xf32>
      %134 = vector.extract_strided_slice %133 {offsets = [0, 0, 0], sizes = [1, 2, 128], strides = [1, 1, 1]} : vector<2x2x128xf32> to vector<1x2x128xf32>
      %135 = vector.shape_cast %134 : vector<1x2x128xf32> to vector<2x128xf32>
      %136 = vector.extract_strided_slice %133 {offsets = [1, 0, 0], sizes = [1, 2, 128], strides = [1, 1, 1]} : vector<2x2x128xf32> to vector<1x2x128xf32>
      %137 = vector.shape_cast %136 : vector<1x2x128xf32> to vector<2x128xf32>
      %138 = arith.maximumf %135, %137 : vector<2x128xf32>
      %cst_114 = arith.constant dense<0xFF800000> : vector<128xf32>
      %139 = vector.multi_reduction <maximumf>, %138, %cst_114 [0] : vector<2x128xf32> to vector<128xf32>
      %140 = vector.shape_cast %139 : vector<128xf32> to vector<1x128xf32>
      %141 = arith.index_cast %88 : i32 to index
      %c3 = arith.constant 3 : index
      %c0_115 = arith.constant 0 : index
      %142 = vector.load %arg17[%141, %c3, %c0_115] : memref<10x10x128xf32, #tpu.memory_space<vmem>>, vector<1x1x128xf32>
      %143 = vector.shape_cast %142 : vector<1x1x128xf32> to vector<1x128xf32>
      %144 = vector.shape_cast %140 : vector<1x128xf32> to vector<1x1x128xf32>
      tpu.vector_store %arg17[%141, %c3, %c0_115], %144 {strides = array<i32>} : memref<10x10x128xf32, #tpu.memory_space<vmem>>, vector<1x1x128xf32>,
      %c2_i32_116 = arith.constant 2 : i32
      %145 = arith.muli %c2_i32_116, %88 : i32
      %146 = arith.index_cast %145 : i32 to index
      %c8 = arith.constant 8 : index
      %c0_117 = arith.constant 0 : index
      %147 = vector.load %arg16[%146, %c8, %c0_117] : memref<20x20x128xf32, #tpu.memory_space<vmem>>, vector<2x2x128xf32>
      %148 = vector.extract_strided_slice %147 {offsets = [0, 0, 0], sizes = [1, 2, 128], strides = [1, 1, 1]} : vector<2x2x128xf32> to vector<1x2x128xf32>
      %149 = vector.shape_cast %148 : vector<1x2x128xf32> to vector<2x128xf32>
      %150 = vector.extract_strided_slice %147 {offsets = [1, 0, 0], sizes = [1, 2, 128], strides = [1, 1, 1]} : vector<2x2x128xf32> to vector<1x2x128xf32>
      %151 = vector.shape_cast %150 : vector<1x2x128xf32> to vector<2x128xf32>
      %152 = arith.maximumf %149, %151 : vector<2x128xf32>
      %cst_118 = arith.constant dense<0xFF800000> : vector<128xf32>
      %153 = vector.multi_reduction <maximumf>, %152, %cst_118 [0] : vector<2x128xf32> to vector<128xf32>
      %154 = vector.shape_cast %153 : vector<128xf32> to vector<1x128xf32>
      %155 = arith.index_cast %88 : i32 to index
      %c4_119 = arith.constant 4 : index
      %c0_120 = arith.constant 0 : index
      %156 = vector.load %arg17[%155, %c4_119, %c0_120] : memref<10x10x128xf32, #tpu.memory_space<vmem>>, vector<1x1x128xf32>
      %157 = vector.shape_cast %156 : vector<1x1x128xf32> to vector<1x128xf32>
      %158 = vector.shape_cast %154 : vector<1x128xf32> to vector<1x1x128xf32>
      tpu.vector_store %arg17[%155, %c4_119, %c0_120], %158 {strides = array<i32>} : memref<10x10x128xf32, #tpu.memory_space<vmem>>, vector<1x1x128xf32>,
      %c2_i32_121 = arith.constant 2 : i32
      %159 = arith.muli %c2_i32_121, %88 : i32
      %160 = arith.index_cast %159 : i32 to index
      %c10 = arith.constant 10 : index
      %c0_122 = arith.constant 0 : index
      %161 = vector.load %arg16[%160, %c10, %c0_122] : memref<20x20x128xf32, #tpu.memory_space<vmem>>, vector<2x2x128xf32>
      %162 = vector.extract_strided_slice %161 {offsets = [0, 0, 0], sizes = [1, 2, 128], strides = [1, 1, 1]} : vector<2x2x128xf32> to vector<1x2x128xf32>
      %163 = vector.shape_cast %162 : vector<1x2x128xf32> to vector<2x128xf32>
      %164 = vector.extract_strided_slice %161 {offsets = [1, 0, 0], sizes = [1, 2, 128], strides = [1, 1, 1]} : vector<2x2x128xf32> to vector<1x2x128xf32>
      %165 = vector.shape_cast %164 : vector<1x2x128xf32> to vector<2x128xf32>
      %166 = arith.maximumf %163, %165 : vector<2x128xf32>
      %cst_123 = arith.constant dense<0xFF800000> : vector<128xf32>
      %167 = vector.multi_reduction <maximumf>, %166, %cst_123 [0] : vector<2x128xf32> to vector<128xf32>
      %168 = vector.shape_cast %167 : vector<128xf32> to vector<1x128xf32>
      %169 = arith.index_cast %88 : i32 to index
      %c5 = arith.constant 5 : index
      %c0_124 = arith.constant 0 : index
      %170 = vector.load %arg17[%169, %c5, %c0_124] : memref<10x10x128xf32, #tpu.memory_space<vmem>>, vector<1x1x128xf32>
      %171 = vector.shape_cast %170 : vector<1x1x128xf32> to vector<1x128xf32>
      %172 = vector.shape_cast %168 : vector<1x128xf32> to vector<1x1x128xf32>
      tpu.vector_store %arg17[%169, %c5, %c0_124], %172 {strides = array<i32>} : memref<10x10x128xf32, #tpu.memory_space<vmem>>, vector<1x1x128xf32>,
      %c2_i32_125 = arith.constant 2 : i32
      %173 = arith.muli %c2_i32_125, %88 : i32
      %174 = arith.index_cast %173 : i32 to index
      %c12 = arith.constant 12 : index
      %c0_126 = arith.constant 0 : index
      %175 = vector.load %arg16[%174, %c12, %c0_126] : memref<20x20x128xf32, #tpu.memory_space<vmem>>, vector<2x2x128xf32>
      %176 = vector.extract_strided_slice %175 {offsets = [0, 0, 0], sizes = [1, 2, 128], strides = [1, 1, 1]} : vector<2x2x128xf32> to vector<1x2x128xf32>
      %177 = vector.shape_cast %176 : vector<1x2x128xf32> to vector<2x128xf32>
      %178 = vector.extract_strided_slice %175 {offsets = [1, 0, 0], sizes = [1, 2, 128], strides = [1, 1, 1]} : vector<2x2x128xf32> to vector<1x2x128xf32>
      %179 = vector.shape_cast %178 : vector<1x2x128xf32> to vector<2x128xf32>
      %180 = arith.maximumf %177, %179 : vector<2x128xf32>
      %cst_127 = arith.constant dense<0xFF800000> : vector<128xf32>
      %181 = vector.multi_reduction <maximumf>, %180, %cst_127 [0] : vector<2x128xf32> to vector<128xf32>
      %182 = vector.shape_cast %181 : vector<128xf32> to vector<1x128xf32>
      %183 = arith.index_cast %88 : i32 to index
      %c6_128 = arith.constant 6 : index
      %c0_129 = arith.constant 0 : index
      %184 = vector.load %arg17[%183, %c6_128, %c0_129] : memref<10x10x128xf32, #tpu.memory_space<vmem>>, vector<1x1x128xf32>
      %185 = vector.shape_cast %184 : vector<1x1x128xf32> to vector<1x128xf32>
      %186 = vector.shape_cast %182 : vector<1x128xf32> to vector<1x1x128xf32>
      tpu.vector_store %arg17[%183, %c6_128, %c0_129], %186 {strides = array<i32>} : memref<10x10x128xf32, #tpu.memory_space<vmem>>, vector<1x1x128xf32>,
      %c2_i32_130 = arith.constant 2 : i32
      %187 = arith.muli %c2_i32_130, %88 : i32
      %188 = arith.index_cast %187 : i32 to index
      %c14 = arith.constant 14 : index
      %c0_131 = arith.constant 0 : index
      %189 = vector.load %arg16[%188, %c14, %c0_131] : memref<20x20x128xf32, #tpu.memory_space<vmem>>, vector<2x2x128xf32>
      %190 = vector.extract_strided_slice %189 {offsets = [0, 0, 0], sizes = [1, 2, 128], strides = [1, 1, 1]} : vector<2x2x128xf32> to vector<1x2x128xf32>
      %191 = vector.shape_cast %190 : vector<1x2x128xf32> to vector<2x128xf32>
      %192 = vector.extract_strided_slice %189 {offsets = [1, 0, 0], sizes = [1, 2, 128], strides = [1, 1, 1]} : vector<2x2x128xf32> to vector<1x2x128xf32>
      %193 = vector.shape_cast %192 : vector<1x2x128xf32> to vector<2x128xf32>
      %194 = arith.maximumf %191, %193 : vector<2x128xf32>
      %cst_132 = arith.constant dense<0xFF800000> : vector<128xf32>
      %195 = vector.multi_reduction <maximumf>, %194, %cst_132 [0] : vector<2x128xf32> to vector<128xf32>
      %196 = vector.shape_cast %195 : vector<128xf32> to vector<1x128xf32>
      %197 = arith.index_cast %88 : i32 to index
      %c7 = arith.constant 7 : index
      %c0_133 = arith.constant 0 : index
      %198 = vector.load %arg17[%197, %c7, %c0_133] : memref<10x10x128xf32, #tpu.memory_space<vmem>>, vector<1x1x128xf32>
      %199 = vector.shape_cast %198 : vector<1x1x128xf32> to vector<1x128xf32>
      %200 = vector.shape_cast %196 : vector<1x128xf32> to vector<1x1x128xf32>
      tpu.vector_store %arg17[%197, %c7, %c0_133], %200 {strides = array<i32>} : memref<10x10x128xf32, #tpu.memory_space<vmem>>, vector<1x1x128xf32>,
      %c2_i32_134 = arith.constant 2 : i32
      %201 = arith.muli %c2_i32_134, %88 : i32
      %202 = arith.index_cast %201 : i32 to index
      %c16 = arith.constant 16 : index
      %c0_135 = arith.constant 0 : index
      %203 = vector.load %arg16[%202, %c16, %c0_135] : memref<20x20x128xf32, #tpu.memory_space<vmem>>, vector<2x2x128xf32>
      %204 = vector.extract_strided_slice %203 {offsets = [0, 0, 0], sizes = [1, 2, 128], strides = [1, 1, 1]} : vector<2x2x128xf32> to vector<1x2x128xf32>
      %205 = vector.shape_cast %204 : vector<1x2x128xf32> to vector<2x128xf32>
      %206 = vector.extract_strided_slice %203 {offsets = [1, 0, 0], sizes = [1, 2, 128], strides = [1, 1, 1]} : vector<2x2x128xf32> to vector<1x2x128xf32>
      %207 = vector.shape_cast %206 : vector<1x2x128xf32> to vector<2x128xf32>
      %208 = arith.maximumf %205, %207 : vector<2x128xf32>
      %cst_136 = arith.constant dense<0xFF800000> : vector<128xf32>
      %209 = vector.multi_reduction <maximumf>, %208, %cst_136 [0] : vector<2x128xf32> to vector<128xf32>
      %210 = vector.shape_cast %209 : vector<128xf32> to vector<1x128xf32>
      %211 = arith.index_cast %88 : i32 to index
      %c8_137 = arith.constant 8 : index
      %c0_138 = arith.constant 0 : index
      %212 = vector.load %arg17[%211, %c8_137, %c0_138] : memref<10x10x128xf32, #tpu.memory_space<vmem>>, vector<1x1x128xf32>
      %213 = vector.shape_cast %212 : vector<1x1x128xf32> to vector<1x128xf32>
      %214 = vector.shape_cast %210 : vector<1x128xf32> to vector<1x1x128xf32>
      tpu.vector_store %arg17[%211, %c8_137, %c0_138], %214 {strides = array<i32>} : memref<10x10x128xf32, #tpu.memory_space<vmem>>, vector<1x1x128xf32>,
      %c2_i32_139 = arith.constant 2 : i32
      %215 = arith.muli %c2_i32_139, %88 : i32
      %216 = arith.index_cast %215 : i32 to index
      %c18 = arith.constant 18 : index
      %c0_140 = arith.constant 0 : index
      %217 = vector.load %arg16[%216, %c18, %c0_140] : memref<20x20x128xf32, #tpu.memory_space<vmem>>, vector<2x2x128xf32>
      %218 = vector.extract_strided_slice %217 {offsets = [0, 0, 0], sizes = [1, 2, 128], strides = [1, 1, 1]} : vector<2x2x128xf32> to vector<1x2x128xf32>
      %219 = vector.shape_cast %218 : vector<1x2x128xf32> to vector<2x128xf32>
      %220 = vector.extract_strided_slice %217 {offsets = [1, 0, 0], sizes = [1, 2, 128], strides = [1, 1, 1]} : vector<2x2x128xf32> to vector<1x2x128xf32>
      %221 = vector.shape_cast %220 : vector<1x2x128xf32> to vector<2x128xf32>
      %222 = arith.maximumf %219, %221 : vector<2x128xf32>
      %cst_141 = arith.constant dense<0xFF800000> : vector<128xf32>
      %223 = vector.multi_reduction <maximumf>, %222, %cst_141 [0] : vector<2x128xf32> to vector<128xf32>
      %224 = vector.shape_cast %223 : vector<128xf32> to vector<1x128xf32>
      %225 = arith.index_cast %88 : i32 to index
      %c9 = arith.constant 9 : index
      %c0_142 = arith.constant 0 : index
      %226 = vector.load %arg17[%225, %c9, %c0_142] : memref<10x10x128xf32, #tpu.memory_space<vmem>>, vector<1x1x128xf32>
      %227 = vector.shape_cast %226 : vector<1x1x128xf32> to vector<1x128xf32>
      %228 = vector.shape_cast %224 : vector<1x128xf32> to vector<1x1x128xf32>
      tpu.vector_store %arg17[%225, %c9, %c0_142], %228 {strides = array<i32>} : memref<10x10x128xf32, #tpu.memory_space<vmem>>, vector<1x1x128xf32>,
    }
    %c10_i32_15 = arith.constant 10 : i32
    %c0_16 = arith.constant 0 : index
    %c0_17 = arith.constant 0 : index
    %9 = vector.load %arg7[%c0_16, %c0_17] : memref<3x128xf32, #tpu.memory_space<vmem>>, vector<1x128xf32>
    %c1_18 = arith.constant 1 : index
    %c0_19 = arith.constant 0 : index
    %10 = vector.load %arg7[%c1_18, %c0_19] : memref<3x128xf32, #tpu.memory_space<vmem>>, vector<1x128xf32>
    %c2_20 = arith.constant 2 : index
    %c0_21 = arith.constant 0 : index
    %11 = vector.load %arg7[%c2_20, %c0_21] : memref<3x128xf32, #tpu.memory_space<vmem>>, vector<1x128xf32>
    %c0_i32_22 = arith.constant 0 : i32
    %c8_i32 = arith.constant 8 : i32
    %12 = arith.addi %c0_i32_22, %c8_i32 : i32
    %c1_i32_23 = arith.constant 1 : i32
    scf.for %arg21 = %c0_i32_22 to %12 step %c1_i32_23  : i32 {
      %c1_i32_94 = arith.constant 1 : i32
      %87 = arith.muli %arg21, %c1_i32_94 : i32
      %c0_i32_95 = arith.constant 0 : i32
      %88 = arith.addi %c0_i32_95, %87 : i32
      %cst_96 = arith.constant 0.000000e+00 : f32
      %89 = vector.broadcast %cst_96 : f32 to vector<8x128xf32>
      %c0_i32_97 = arith.constant 0 : i32
      %90 = arith.addi %88, %c0_i32_97 : i32
      %91 = arith.index_cast %90 : i32 to index
      %c0_98 = arith.constant 0 : index
      %c0_99 = arith.constant 0 : index
      %92 = vector.load %arg17[%91, %c0_98, %c0_99] : memref<10x10x128xf32, #tpu.memory_space<vmem>>, vector<1x8x128xf32>
      %93 = vector.shape_cast %92 : vector<1x8x128xf32> to vector<8x128xf32>
      %c0_100 = arith.constant 0 : index
      %c0_101 = arith.constant 0 : index
      %94 = vector.load %arg6[%c0_100, %c0_101] : memref<1152x128xbf16, #tpu.memory_space<vmem>>, vector<128x128xbf16>
      %95 = arith.truncf %93 : vector<8x128xf32> to vector<8x128xbf16>
      %cst_102 = arith.constant dense<0.000000e+00> : vector<8x128xf32>
      %96 = tpu.matmul %95, %94, %cst_102 {dimension_numbers = #tpu.dot_dimension_numbers<[1], [0], [0], [1], [0, 0, 1, 1], [], []>} : vector<8x128xbf16>, vector<128x128xbf16>, vector<8x128xf32> -> vector<8x128xf32>
      %97 = arith.addf %89, %96 : vector<8x128xf32>
      %c0_i32_103 = arith.constant 0 : i32
      %98 = arith.addi %88, %c0_i32_103 : i32
      %99 = arith.index_cast %98 : i32 to index
      %c1_104 = arith.constant 1 : index
      %c0_105 = arith.constant 0 : index
      %100 = vector.load %arg17[%99, %c1_104, %c0_105] : memref<10x10x128xf32, #tpu.memory_space<vmem>>, vector<1x8x128xf32>
      %101 = vector.shape_cast %100 : vector<1x8x128xf32> to vector<8x128xf32>
      %c128_106 = arith.constant 128 : index
      %c0_107 = arith.constant 0 : index
      %102 = vector.load %arg6[%c128_106, %c0_107] : memref<1152x128xbf16, #tpu.memory_space<vmem>>, vector<128x128xbf16>
      %103 = arith.truncf %101 : vector<8x128xf32> to vector<8x128xbf16>
      %cst_108 = arith.constant dense<0.000000e+00> : vector<8x128xf32>
      %104 = tpu.matmul %103, %102, %cst_108 {dimension_numbers = #tpu.dot_dimension_numbers<[1], [0], [0], [1], [0, 0, 1, 1], [], []>} : vector<8x128xbf16>, vector<128x128xbf16>, vector<8x128xf32> -> vector<8x128xf32>
      %105 = arith.addf %97, %104 : vector<8x128xf32>
      %c0_i32_109 = arith.constant 0 : i32
      %106 = arith.addi %88, %c0_i32_109 : i32
      %107 = arith.index_cast %106 : i32 to index
      %c2_110 = arith.constant 2 : index
      %c0_111 = arith.constant 0 : index
      %108 = vector.load %arg17[%107, %c2_110, %c0_111] : memref<10x10x128xf32, #tpu.memory_space<vmem>>, vector<1x8x128xf32>
      %109 = vector.shape_cast %108 : vector<1x8x128xf32> to vector<8x128xf32>
      %c256_112 = arith.constant 256 : index
      %c0_113 = arith.constant 0 : index
      %110 = vector.load %arg6[%c256_112, %c0_113] : memref<1152x128xbf16, #tpu.memory_space<vmem>>, vector<128x128xbf16>
      %111 = arith.truncf %109 : vector<8x128xf32> to vector<8x128xbf16>
      %cst_114 = arith.constant dense<0.000000e+00> : vector<8x128xf32>
      %112 = tpu.matmul %111, %110, %cst_114 {dimension_numbers = #tpu.dot_dimension_numbers<[1], [0], [0], [1], [0, 0, 1, 1], [], []>} : vector<8x128xbf16>, vector<128x128xbf16>, vector<8x128xf32> -> vector<8x128xf32>
      %113 = arith.addf %105, %112 : vector<8x128xf32>
      %c1_i32_115 = arith.constant 1 : i32
      %114 = arith.addi %88, %c1_i32_115 : i32
      %115 = arith.index_cast %114 : i32 to index
      %c0_116 = arith.constant 0 : index
      %c0_117 = arith.constant 0 : index
      %116 = vector.load %arg17[%115, %c0_116, %c0_117] : memref<10x10x128xf32, #tpu.memory_space<vmem>>, vector<1x8x128xf32>
      %117 = vector.shape_cast %116 : vector<1x8x128xf32> to vector<8x128xf32>
      %c384_118 = arith.constant 384 : index
      %c0_119 = arith.constant 0 : index
      %118 = vector.load %arg6[%c384_118, %c0_119] : memref<1152x128xbf16, #tpu.memory_space<vmem>>, vector<128x128xbf16>
      %119 = arith.truncf %117 : vector<8x128xf32> to vector<8x128xbf16>
      %cst_120 = arith.constant dense<0.000000e+00> : vector<8x128xf32>
      %120 = tpu.matmul %119, %118, %cst_120 {dimension_numbers = #tpu.dot_dimension_numbers<[1], [0], [0], [1], [0, 0, 1, 1], [], []>} : vector<8x128xbf16>, vector<128x128xbf16>, vector<8x128xf32> -> vector<8x128xf32>
      %121 = arith.addf %113, %120 : vector<8x128xf32>
      %c1_i32_121 = arith.constant 1 : i32
      %122 = arith.addi %88, %c1_i32_121 : i32
      %123 = arith.index_cast %122 : i32 to index
      %c1_122 = arith.constant 1 : index
      %c0_123 = arith.constant 0 : index
      %124 = vector.load %arg17[%123, %c1_122, %c0_123] : memref<10x10x128xf32, #tpu.memory_space<vmem>>, vector<1x8x128xf32>
      %125 = vector.shape_cast %124 : vector<1x8x128xf32> to vector<8x128xf32>
      %c512_124 = arith.constant 512 : index
      %c0_125 = arith.constant 0 : index
      %126 = vector.load %arg6[%c512_124, %c0_125] : memref<1152x128xbf16, #tpu.memory_space<vmem>>, vector<128x128xbf16>
      %127 = arith.truncf %125 : vector<8x128xf32> to vector<8x128xbf16>
      %cst_126 = arith.constant dense<0.000000e+00> : vector<8x128xf32>
      %128 = tpu.matmul %127, %126, %cst_126 {dimension_numbers = #tpu.dot_dimension_numbers<[1], [0], [0], [1], [0, 0, 1, 1], [], []>} : vector<8x128xbf16>, vector<128x128xbf16>, vector<8x128xf32> -> vector<8x128xf32>
      %129 = arith.addf %121, %128 : vector<8x128xf32>
      %c1_i32_127 = arith.constant 1 : i32
      %130 = arith.addi %88, %c1_i32_127 : i32
      %131 = arith.index_cast %130 : i32 to index
      %c2_128 = arith.constant 2 : index
      %c0_129 = arith.constant 0 : index
      %132 = vector.load %arg17[%131, %c2_128, %c0_129] : memref<10x10x128xf32, #tpu.memory_space<vmem>>, vector<1x8x128xf32>
      %133 = vector.shape_cast %132 : vector<1x8x128xf32> to vector<8x128xf32>
      %c640_130 = arith.constant 640 : index
      %c0_131 = arith.constant 0 : index
      %134 = vector.load %arg6[%c640_130, %c0_131] : memref<1152x128xbf16, #tpu.memory_space<vmem>>, vector<128x128xbf16>
      %135 = arith.truncf %133 : vector<8x128xf32> to vector<8x128xbf16>
      %cst_132 = arith.constant dense<0.000000e+00> : vector<8x128xf32>
      %136 = tpu.matmul %135, %134, %cst_132 {dimension_numbers = #tpu.dot_dimension_numbers<[1], [0], [0], [1], [0, 0, 1, 1], [], []>} : vector<8x128xbf16>, vector<128x128xbf16>, vector<8x128xf32> -> vector<8x128xf32>
      %137 = arith.addf %129, %136 : vector<8x128xf32>
      %c2_i32 = arith.constant 2 : i32
      %138 = arith.addi %88, %c2_i32 : i32
      %139 = arith.index_cast %138 : i32 to index
      %c0_133 = arith.constant 0 : index
      %c0_134 = arith.constant 0 : index
      %140 = vector.load %arg17[%139, %c0_133, %c0_134] : memref<10x10x128xf32, #tpu.memory_space<vmem>>, vector<1x8x128xf32>
      %141 = vector.shape_cast %140 : vector<1x8x128xf32> to vector<8x128xf32>
      %c768_135 = arith.constant 768 : index
      %c0_136 = arith.constant 0 : index
      %142 = vector.load %arg6[%c768_135, %c0_136] : memref<1152x128xbf16, #tpu.memory_space<vmem>>, vector<128x128xbf16>
      %143 = arith.truncf %141 : vector<8x128xf32> to vector<8x128xbf16>
      %cst_137 = arith.constant dense<0.000000e+00> : vector<8x128xf32>
      %144 = tpu.matmul %143, %142, %cst_137 {dimension_numbers = #tpu.dot_dimension_numbers<[1], [0], [0], [1], [0, 0, 1, 1], [], []>} : vector<8x128xbf16>, vector<128x128xbf16>, vector<8x128xf32> -> vector<8x128xf32>
      %145 = arith.addf %137, %144 : vector<8x128xf32>
      %c2_i32_138 = arith.constant 2 : i32
      %146 = arith.addi %88, %c2_i32_138 : i32
      %147 = arith.index_cast %146 : i32 to index
      %c1_139 = arith.constant 1 : index
      %c0_140 = arith.constant 0 : index
      %148 = vector.load %arg17[%147, %c1_139, %c0_140] : memref<10x10x128xf32, #tpu.memory_space<vmem>>, vector<1x8x128xf32>
      %149 = vector.shape_cast %148 : vector<1x8x128xf32> to vector<8x128xf32>
      %c896_141 = arith.constant 896 : index
      %c0_142 = arith.constant 0 : index
      %150 = vector.load %arg6[%c896_141, %c0_142] : memref<1152x128xbf16, #tpu.memory_space<vmem>>, vector<128x128xbf16>
      %151 = arith.truncf %149 : vector<8x128xf32> to vector<8x128xbf16>
      %cst_143 = arith.constant dense<0.000000e+00> : vector<8x128xf32>
      %152 = tpu.matmul %151, %150, %cst_143 {dimension_numbers = #tpu.dot_dimension_numbers<[1], [0], [0], [1], [0, 0, 1, 1], [], []>} : vector<8x128xbf16>, vector<128x128xbf16>, vector<8x128xf32> -> vector<8x128xf32>
      %153 = arith.addf %145, %152 : vector<8x128xf32>
      %c2_i32_144 = arith.constant 2 : i32
      %154 = arith.addi %88, %c2_i32_144 : i32
      %155 = arith.index_cast %154 : i32 to index
      %c2_145 = arith.constant 2 : index
      %c0_146 = arith.constant 0 : index
      %156 = vector.load %arg17[%155, %c2_145, %c0_146] : memref<10x10x128xf32, #tpu.memory_space<vmem>>, vector<1x8x128xf32>
      %157 = vector.shape_cast %156 : vector<1x8x128xf32> to vector<8x128xf32>
      %c1024_147 = arith.constant 1024 : index
      %c0_148 = arith.constant 0 : index
      %158 = vector.load %arg6[%c1024_147, %c0_148] : memref<1152x128xbf16, #tpu.memory_space<vmem>>, vector<128x128xbf16>
      %159 = arith.truncf %157 : vector<8x128xf32> to vector<8x128xbf16>
      %cst_149 = arith.constant dense<0.000000e+00> : vector<8x128xf32>
      %160 = tpu.matmul %159, %158, %cst_149 {dimension_numbers = #tpu.dot_dimension_numbers<[1], [0], [0], [1], [0, 0, 1, 1], [], []>} : vector<8x128xbf16>, vector<128x128xbf16>, vector<8x128xf32> -> vector<8x128xf32>
      %161 = arith.addf %153, %160 : vector<8x128xf32>
      %162 = vector.broadcast %9 : vector<1x128xf32> to vector<8x128xf32>
      %163 = arith.addf %161, %162 : vector<8x128xf32>
      %cst_150 = arith.constant 0.000000e+00 : f32
      %164 = vector.broadcast %cst_150 : f32 to vector<8x128xf32>
      %165 = arith.maximumf %163, %164 : vector<8x128xf32>
      %166 = vector.broadcast %10 : vector<1x128xf32> to vector<8x128xf32>
      %167 = arith.mulf %165, %166 : vector<8x128xf32>
      %168 = vector.broadcast %11 : vector<1x128xf32> to vector<8x128xf32>
      %169 = arith.addf %167, %168 : vector<8x128xf32>
      %170 = arith.index_cast %88 : i32 to index
      %c0_151 = arith.constant 0 : index
      %c0_152 = arith.constant 0 : index
      %171 = vector.load %arg18[%170, %c0_151, %c0_152] : memref<8x8x128xf32, #tpu.memory_space<vmem>>, vector<1x8x128xf32>
      %172 = vector.shape_cast %171 : vector<1x8x128xf32> to vector<8x128xf32>
      %173 = vector.shape_cast %169 : vector<8x128xf32> to vector<1x8x128xf32>
      tpu.vector_store %arg18[%170, %c0_151, %c0_152], %173 {strides = array<i32>} : memref<8x8x128xf32, #tpu.memory_space<vmem>>, vector<1x8x128xf32>,
    }
    %c8_i32_24 = arith.constant 8 : i32
    %c0_25 = arith.constant 0 : index
    %c0_26 = arith.constant 0 : index
    %13 = vector.load %arg9[%c0_25, %c0_26] : memref<3x128xf32, #tpu.memory_space<vmem>>, vector<1x128xf32>
    %c1_27 = arith.constant 1 : index
    %c0_28 = arith.constant 0 : index
    %14 = vector.load %arg9[%c1_27, %c0_28] : memref<3x128xf32, #tpu.memory_space<vmem>>, vector<1x128xf32>
    %c2_29 = arith.constant 2 : index
    %c0_30 = arith.constant 0 : index
    %15 = vector.load %arg9[%c2_29, %c0_30] : memref<3x128xf32, #tpu.memory_space<vmem>>, vector<1x128xf32>
    %c0_i32_31 = arith.constant 0 : i32
    %c6_i32 = arith.constant 6 : i32
    %16 = arith.addi %c0_i32_31, %c6_i32 : i32
    %c1_i32_32 = arith.constant 1 : i32
    scf.for %arg21 = %c0_i32_31 to %16 step %c1_i32_32  : i32 {
      %c1_i32_94 = arith.constant 1 : i32
      %87 = arith.muli %arg21, %c1_i32_94 : i32
      %c0_i32_95 = arith.constant 0 : i32
      %88 = arith.addi %c0_i32_95, %87 : i32
      %cst_96 = arith.constant 0.000000e+00 : f32
      %89 = vector.broadcast %cst_96 : f32 to vector<6x128xf32>
      %c0_i32_97 = arith.constant 0 : i32
      %90 = arith.addi %88, %c0_i32_97 : i32
      %91 = arith.index_cast %90 : i32 to index
      %c0_98 = arith.constant 0 : index
      %c0_99 = arith.constant 0 : index
      %92 = vector.load %arg18[%91, %c0_98, %c0_99] : memref<8x8x128xf32, #tpu.memory_space<vmem>>, vector<1x6x128xf32>
      %93 = vector.shape_cast %92 : vector<1x6x128xf32> to vector<6x128xf32>
      %c0_100 = arith.constant 0 : index
      %c0_101 = arith.constant 0 : index
      %94 = vector.load %arg8[%c0_100, %c0_101] : memref<1152x128xbf16, #tpu.memory_space<vmem>>, vector<128x128xbf16>
      %95 = arith.truncf %93 : vector<6x128xf32> to vector<6x128xbf16>
      %cst_102 = arith.constant dense<0.000000e+00> : vector<6x128xf32>
      %96 = tpu.matmul %95, %94, %cst_102 {dimension_numbers = #tpu.dot_dimension_numbers<[1], [0], [0], [1], [0, 0, 1, 1], [], []>} : vector<6x128xbf16>, vector<128x128xbf16>, vector<6x128xf32> -> vector<6x128xf32>
      %97 = arith.addf %89, %96 : vector<6x128xf32>
      %c0_i32_103 = arith.constant 0 : i32
      %98 = arith.addi %88, %c0_i32_103 : i32
      %99 = arith.index_cast %98 : i32 to index
      %c1_104 = arith.constant 1 : index
      %c0_105 = arith.constant 0 : index
      %100 = vector.load %arg18[%99, %c1_104, %c0_105] : memref<8x8x128xf32, #tpu.memory_space<vmem>>, vector<1x6x128xf32>
      %101 = vector.shape_cast %100 : vector<1x6x128xf32> to vector<6x128xf32>
      %c128_106 = arith.constant 128 : index
      %c0_107 = arith.constant 0 : index
      %102 = vector.load %arg8[%c128_106, %c0_107] : memref<1152x128xbf16, #tpu.memory_space<vmem>>, vector<128x128xbf16>
      %103 = arith.truncf %101 : vector<6x128xf32> to vector<6x128xbf16>
      %cst_108 = arith.constant dense<0.000000e+00> : vector<6x128xf32>
      %104 = tpu.matmul %103, %102, %cst_108 {dimension_numbers = #tpu.dot_dimension_numbers<[1], [0], [0], [1], [0, 0, 1, 1], [], []>} : vector<6x128xbf16>, vector<128x128xbf16>, vector<6x128xf32> -> vector<6x128xf32>
      %105 = arith.addf %97, %104 : vector<6x128xf32>
      %c0_i32_109 = arith.constant 0 : i32
      %106 = arith.addi %88, %c0_i32_109 : i32
      %107 = arith.index_cast %106 : i32 to index
      %c2_110 = arith.constant 2 : index
      %c0_111 = arith.constant 0 : index
      %108 = vector.load %arg18[%107, %c2_110, %c0_111] : memref<8x8x128xf32, #tpu.memory_space<vmem>>, vector<1x6x128xf32>
      %109 = vector.shape_cast %108 : vector<1x6x128xf32> to vector<6x128xf32>
      %c256_112 = arith.constant 256 : index
      %c0_113 = arith.constant 0 : index
      %110 = vector.load %arg8[%c256_112, %c0_113] : memref<1152x128xbf16, #tpu.memory_space<vmem>>, vector<128x128xbf16>
      %111 = arith.truncf %109 : vector<6x128xf32> to vector<6x128xbf16>
      %cst_114 = arith.constant dense<0.000000e+00> : vector<6x128xf32>
      %112 = tpu.matmul %111, %110, %cst_114 {dimension_numbers = #tpu.dot_dimension_numbers<[1], [0], [0], [1], [0, 0, 1, 1], [], []>} : vector<6x128xbf16>, vector<128x128xbf16>, vector<6x128xf32> -> vector<6x128xf32>
      %113 = arith.addf %105, %112 : vector<6x128xf32>
      %c1_i32_115 = arith.constant 1 : i32
      %114 = arith.addi %88, %c1_i32_115 : i32
      %115 = arith.index_cast %114 : i32 to index
      %c0_116 = arith.constant 0 : index
      %c0_117 = arith.constant 0 : index
      %116 = vector.load %arg18[%115, %c0_116, %c0_117] : memref<8x8x128xf32, #tpu.memory_space<vmem>>, vector<1x6x128xf32>
      %117 = vector.shape_cast %116 : vector<1x6x128xf32> to vector<6x128xf32>
      %c384_118 = arith.constant 384 : index
      %c0_119 = arith.constant 0 : index
      %118 = vector.load %arg8[%c384_118, %c0_119] : memref<1152x128xbf16, #tpu.memory_space<vmem>>, vector<128x128xbf16>
      %119 = arith.truncf %117 : vector<6x128xf32> to vector<6x128xbf16>
      %cst_120 = arith.constant dense<0.000000e+00> : vector<6x128xf32>
      %120 = tpu.matmul %119, %118, %cst_120 {dimension_numbers = #tpu.dot_dimension_numbers<[1], [0], [0], [1], [0, 0, 1, 1], [], []>} : vector<6x128xbf16>, vector<128x128xbf16>, vector<6x128xf32> -> vector<6x128xf32>
      %121 = arith.addf %113, %120 : vector<6x128xf32>
      %c1_i32_121 = arith.constant 1 : i32
      %122 = arith.addi %88, %c1_i32_121 : i32
      %123 = arith.index_cast %122 : i32 to index
      %c1_122 = arith.constant 1 : index
      %c0_123 = arith.constant 0 : index
      %124 = vector.load %arg18[%123, %c1_122, %c0_123] : memref<8x8x128xf32, #tpu.memory_space<vmem>>, vector<1x6x128xf32>
      %125 = vector.shape_cast %124 : vector<1x6x128xf32> to vector<6x128xf32>
      %c512_124 = arith.constant 512 : index
      %c0_125 = arith.constant 0 : index
      %126 = vector.load %arg8[%c512_124, %c0_125] : memref<1152x128xbf16, #tpu.memory_space<vmem>>, vector<128x128xbf16>
      %127 = arith.truncf %125 : vector<6x128xf32> to vector<6x128xbf16>
      %cst_126 = arith.constant dense<0.000000e+00> : vector<6x128xf32>
      %128 = tpu.matmul %127, %126, %cst_126 {dimension_numbers = #tpu.dot_dimension_numbers<[1], [0], [0], [1], [0, 0, 1, 1], [], []>} : vector<6x128xbf16>, vector<128x128xbf16>, vector<6x128xf32> -> vector<6x128xf32>
      %129 = arith.addf %121, %128 : vector<6x128xf32>
      %c1_i32_127 = arith.constant 1 : i32
      %130 = arith.addi %88, %c1_i32_127 : i32
      %131 = arith.index_cast %130 : i32 to index
      %c2_128 = arith.constant 2 : index
      %c0_129 = arith.constant 0 : index
      %132 = vector.load %arg18[%131, %c2_128, %c0_129] : memref<8x8x128xf32, #tpu.memory_space<vmem>>, vector<1x6x128xf32>
      %133 = vector.shape_cast %132 : vector<1x6x128xf32> to vector<6x128xf32>
      %c640_130 = arith.constant 640 : index
      %c0_131 = arith.constant 0 : index
      %134 = vector.load %arg8[%c640_130, %c0_131] : memref<1152x128xbf16, #tpu.memory_space<vmem>>, vector<128x128xbf16>
      %135 = arith.truncf %133 : vector<6x128xf32> to vector<6x128xbf16>
      %cst_132 = arith.constant dense<0.000000e+00> : vector<6x128xf32>
      %136 = tpu.matmul %135, %134, %cst_132 {dimension_numbers = #tpu.dot_dimension_numbers<[1], [0], [0], [1], [0, 0, 1, 1], [], []>} : vector<6x128xbf16>, vector<128x128xbf16>, vector<6x128xf32> -> vector<6x128xf32>
      %137 = arith.addf %129, %136 : vector<6x128xf32>
      %c2_i32 = arith.constant 2 : i32
      %138 = arith.addi %88, %c2_i32 : i32
      %139 = arith.index_cast %138 : i32 to index
      %c0_133 = arith.constant 0 : index
      %c0_134 = arith.constant 0 : index
      %140 = vector.load %arg18[%139, %c0_133, %c0_134] : memref<8x8x128xf32, #tpu.memory_space<vmem>>, vector<1x6x128xf32>
      %141 = vector.shape_cast %140 : vector<1x6x128xf32> to vector<6x128xf32>
      %c768_135 = arith.constant 768 : index
      %c0_136 = arith.constant 0 : index
      %142 = vector.load %arg8[%c768_135, %c0_136] : memref<1152x128xbf16, #tpu.memory_space<vmem>>, vector<128x128xbf16>
      %143 = arith.truncf %141 : vector<6x128xf32> to vector<6x128xbf16>
      %cst_137 = arith.constant dense<0.000000e+00> : vector<6x128xf32>
      %144 = tpu.matmul %143, %142, %cst_137 {dimension_numbers = #tpu.dot_dimension_numbers<[1], [0], [0], [1], [0, 0, 1, 1], [], []>} : vector<6x128xbf16>, vector<128x128xbf16>, vector<6x128xf32> -> vector<6x128xf32>
      %145 = arith.addf %137, %144 : vector<6x128xf32>
      %c2_i32_138 = arith.constant 2 : i32
      %146 = arith.addi %88, %c2_i32_138 : i32
      %147 = arith.index_cast %146 : i32 to index
      %c1_139 = arith.constant 1 : index
      %c0_140 = arith.constant 0 : index
      %148 = vector.load %arg18[%147, %c1_139, %c0_140] : memref<8x8x128xf32, #tpu.memory_space<vmem>>, vector<1x6x128xf32>
      %149 = vector.shape_cast %148 : vector<1x6x128xf32> to vector<6x128xf32>
      %c896_141 = arith.constant 896 : index
      %c0_142 = arith.constant 0 : index
      %150 = vector.load %arg8[%c896_141, %c0_142] : memref<1152x128xbf16, #tpu.memory_space<vmem>>, vector<128x128xbf16>
      %151 = arith.truncf %149 : vector<6x128xf32> to vector<6x128xbf16>
      %cst_143 = arith.constant dense<0.000000e+00> : vector<6x128xf32>
      %152 = tpu.matmul %151, %150, %cst_143 {dimension_numbers = #tpu.dot_dimension_numbers<[1], [0], [0], [1], [0, 0, 1, 1], [], []>} : vector<6x128xbf16>, vector<128x128xbf16>, vector<6x128xf32> -> vector<6x128xf32>
      %153 = arith.addf %145, %152 : vector<6x128xf32>
      %c2_i32_144 = arith.constant 2 : i32
      %154 = arith.addi %88, %c2_i32_144 : i32
      %155 = arith.index_cast %154 : i32 to index
      %c2_145 = arith.constant 2 : index
      %c0_146 = arith.constant 0 : index
      %156 = vector.load %arg18[%155, %c2_145, %c0_146] : memref<8x8x128xf32, #tpu.memory_space<vmem>>, vector<1x6x128xf32>
      %157 = vector.shape_cast %156 : vector<1x6x128xf32> to vector<6x128xf32>
      %c1024_147 = arith.constant 1024 : index
      %c0_148 = arith.constant 0 : index
      %158 = vector.load %arg8[%c1024_147, %c0_148] : memref<1152x128xbf16, #tpu.memory_space<vmem>>, vector<128x128xbf16>
      %159 = arith.truncf %157 : vector<6x128xf32> to vector<6x128xbf16>
      %cst_149 = arith.constant dense<0.000000e+00> : vector<6x128xf32>
      %160 = tpu.matmul %159, %158, %cst_149 {dimension_numbers = #tpu.dot_dimension_numbers<[1], [0], [0], [1], [0, 0, 1, 1], [], []>} : vector<6x128xbf16>, vector<128x128xbf16>, vector<6x128xf32> -> vector<6x128xf32>
      %161 = arith.addf %153, %160 : vector<6x128xf32>
      %162 = vector.broadcast %13 : vector<1x128xf32> to vector<6x128xf32>
      %163 = arith.addf %161, %162 : vector<6x128xf32>
      %cst_150 = arith.constant 0.000000e+00 : f32
      %164 = vector.broadcast %cst_150 : f32 to vector<6x128xf32>
      %165 = arith.maximumf %163, %164 : vector<6x128xf32>
      %166 = vector.broadcast %14 : vector<1x128xf32> to vector<6x128xf32>
      %167 = arith.mulf %165, %166 : vector<6x128xf32>
      %168 = vector.broadcast %15 : vector<1x128xf32> to vector<6x128xf32>
      %169 = arith.addf %167, %168 : vector<6x128xf32>
      %170 = arith.index_cast %88 : i32 to index
      %c0_151 = arith.constant 0 : index
      %c0_152 = arith.constant 0 : index
      %171 = vector.load %arg19[%170, %c0_151, %c0_152] : memref<6x6x128xf32, #tpu.memory_space<vmem>>, vector<1x6x128xf32>
      %172 = vector.shape_cast %171 : vector<1x6x128xf32> to vector<6x128xf32>
      %173 = vector.shape_cast %169 : vector<6x128xf32> to vector<1x6x128xf32>
      tpu.vector_store %arg19[%170, %c0_151, %c0_152], %173 {strides = array<i32>} : memref<6x6x128xf32, #tpu.memory_space<vmem>>, vector<1x6x128xf32>,
    }
    %c6_i32_33 = arith.constant 6 : i32
    %c0_i32_34 = arith.constant 0 : i32
    %c3_i32 = arith.constant 3 : i32
    %17 = arith.addi %c0_i32_34, %c3_i32 : i32
    %c1_i32_35 = arith.constant 1 : i32
    scf.for %arg21 = %c0_i32_34 to %17 step %c1_i32_35  : i32 {
      %c1_i32_94 = arith.constant 1 : i32
      %87 = arith.muli %arg21, %c1_i32_94 : i32
      %c0_i32_95 = arith.constant 0 : i32
      %88 = arith.addi %c0_i32_95, %87 : i32
      %c2_i32 = arith.constant 2 : i32
      %89 = arith.muli %c2_i32, %88 : i32
      %90 = arith.index_cast %89 : i32 to index
      %c0_96 = arith.constant 0 : index
      %c0_97 = arith.constant 0 : index
      %91 = vector.load %arg19[%90, %c0_96, %c0_97] : memref<6x6x128xf32, #tpu.memory_space<vmem>>, vector<2x2x128xf32>
      %92 = vector.extract_strided_slice %91 {offsets = [0, 0, 0], sizes = [1, 2, 128], strides = [1, 1, 1]} : vector<2x2x128xf32> to vector<1x2x128xf32>
      %93 = vector.shape_cast %92 : vector<1x2x128xf32> to vector<2x128xf32>
      %94 = vector.extract_strided_slice %91 {offsets = [1, 0, 0], sizes = [1, 2, 128], strides = [1, 1, 1]} : vector<2x2x128xf32> to vector<1x2x128xf32>
      %95 = vector.shape_cast %94 : vector<1x2x128xf32> to vector<2x128xf32>
      %96 = arith.maximumf %93, %95 : vector<2x128xf32>
      %cst_98 = arith.constant dense<0xFF800000> : vector<128xf32>
      %97 = vector.multi_reduction <maximumf>, %96, %cst_98 [0] : vector<2x128xf32> to vector<128xf32>
      %98 = vector.shape_cast %97 : vector<128xf32> to vector<1x128xf32>
      %99 = arith.index_cast %88 : i32 to index
      %c0_99 = arith.constant 0 : index
      %c0_100 = arith.constant 0 : index
      %100 = vector.load %arg20[%99, %c0_99, %c0_100] : memref<3x3x128xf32, #tpu.memory_space<vmem>>, vector<1x1x128xf32>
      %101 = vector.shape_cast %100 : vector<1x1x128xf32> to vector<1x128xf32>
      %102 = vector.shape_cast %98 : vector<1x128xf32> to vector<1x1x128xf32>
      tpu.vector_store %arg20[%99, %c0_99, %c0_100], %102 {strides = array<i32>} : memref<3x3x128xf32, #tpu.memory_space<vmem>>, vector<1x1x128xf32>,
      %c2_i32_101 = arith.constant 2 : i32
      %103 = arith.muli %c2_i32_101, %88 : i32
      %104 = arith.index_cast %103 : i32 to index
      %c2_102 = arith.constant 2 : index
      %c0_103 = arith.constant 0 : index
      %105 = vector.load %arg19[%104, %c2_102, %c0_103] : memref<6x6x128xf32, #tpu.memory_space<vmem>>, vector<2x2x128xf32>
      %106 = vector.extract_strided_slice %105 {offsets = [0, 0, 0], sizes = [1, 2, 128], strides = [1, 1, 1]} : vector<2x2x128xf32> to vector<1x2x128xf32>
      %107 = vector.shape_cast %106 : vector<1x2x128xf32> to vector<2x128xf32>
      %108 = vector.extract_strided_slice %105 {offsets = [1, 0, 0], sizes = [1, 2, 128], strides = [1, 1, 1]} : vector<2x2x128xf32> to vector<1x2x128xf32>
      %109 = vector.shape_cast %108 : vector<1x2x128xf32> to vector<2x128xf32>
      %110 = arith.maximumf %107, %109 : vector<2x128xf32>
      %cst_104 = arith.constant dense<0xFF800000> : vector<128xf32>
      %111 = vector.multi_reduction <maximumf>, %110, %cst_104 [0] : vector<2x128xf32> to vector<128xf32>
      %112 = vector.shape_cast %111 : vector<128xf32> to vector<1x128xf32>
      %113 = arith.index_cast %88 : i32 to index
      %c1_105 = arith.constant 1 : index
      %c0_106 = arith.constant 0 : index
      %114 = vector.load %arg20[%113, %c1_105, %c0_106] : memref<3x3x128xf32, #tpu.memory_space<vmem>>, vector<1x1x128xf32>
      %115 = vector.shape_cast %114 : vector<1x1x128xf32> to vector<1x128xf32>
      %116 = vector.shape_cast %112 : vector<1x128xf32> to vector<1x1x128xf32>
      tpu.vector_store %arg20[%113, %c1_105, %c0_106], %116 {strides = array<i32>} : memref<3x3x128xf32, #tpu.memory_space<vmem>>, vector<1x1x128xf32>,
      %c2_i32_107 = arith.constant 2 : i32
      %117 = arith.muli %c2_i32_107, %88 : i32
      %118 = arith.index_cast %117 : i32 to index
      %c4 = arith.constant 4 : index
      %c0_108 = arith.constant 0 : index
      %119 = vector.load %arg19[%118, %c4, %c0_108] : memref<6x6x128xf32, #tpu.memory_space<vmem>>, vector<2x2x128xf32>
      %120 = vector.extract_strided_slice %119 {offsets = [0, 0, 0], sizes = [1, 2, 128], strides = [1, 1, 1]} : vector<2x2x128xf32> to vector<1x2x128xf32>
      %121 = vector.shape_cast %120 : vector<1x2x128xf32> to vector<2x128xf32>
      %122 = vector.extract_strided_slice %119 {offsets = [1, 0, 0], sizes = [1, 2, 128], strides = [1, 1, 1]} : vector<2x2x128xf32> to vector<1x2x128xf32>
      %123 = vector.shape_cast %122 : vector<1x2x128xf32> to vector<2x128xf32>
      %124 = arith.maximumf %121, %123 : vector<2x128xf32>
      %cst_109 = arith.constant dense<0xFF800000> : vector<128xf32>
      %125 = vector.multi_reduction <maximumf>, %124, %cst_109 [0] : vector<2x128xf32> to vector<128xf32>
      %126 = vector.shape_cast %125 : vector<128xf32> to vector<1x128xf32>
      %127 = arith.index_cast %88 : i32 to index
      %c2_110 = arith.constant 2 : index
      %c0_111 = arith.constant 0 : index
      %128 = vector.load %arg20[%127, %c2_110, %c0_111] : memref<3x3x128xf32, #tpu.memory_space<vmem>>, vector<1x1x128xf32>
      %129 = vector.shape_cast %128 : vector<1x1x128xf32> to vector<1x128xf32>
      %130 = vector.shape_cast %126 : vector<1x128xf32> to vector<1x1x128xf32>
      tpu.vector_store %arg20[%127, %c2_110, %c0_111], %130 {strides = array<i32>} : memref<3x3x128xf32, #tpu.memory_space<vmem>>, vector<1x1x128xf32>,
    }
    %c3_i32_36 = arith.constant 3 : i32
    %cst = arith.constant 0.000000e+00 : f32
    %18 = vector.broadcast %cst : f32 to vector<1x256xf32>
    %c0_37 = arith.constant 0 : index
    %c0_38 = arith.constant 0 : index
    %c0_39 = arith.constant 0 : index
    %19 = vector.load %arg20[%c0_37, %c0_38, %c0_39] : memref<3x3x128xf32, #tpu.memory_space<vmem>>, vector<1x1x128xf32>
    %20 = vector.shape_cast %19 : vector<1x1x128xf32> to vector<1x128xf32>
    %c0_40 = arith.constant 0 : index
    %c0_41 = arith.constant 0 : index
    %21 = vector.load %arg10[%c0_40, %c0_41] : memref<1152x256xbf16, #tpu.memory_space<vmem>>, vector<128x256xbf16>
    %22 = arith.truncf %20 : vector<1x128xf32> to vector<1x128xbf16>
    %cst_42 = arith.constant dense<0.000000e+00> : vector<1x256xf32>
    %23 = tpu.matmul %22, %21, %cst_42 {dimension_numbers = #tpu.dot_dimension_numbers<[1], [0], [0], [1], [0, 0, 1, 1], [], []>} : vector<1x128xbf16>, vector<128x256xbf16>, vector<1x256xf32> -> vector<1x256xf32>
    %24 = arith.addf %18, %23 : vector<1x256xf32>
    %c0_43 = arith.constant 0 : index
    %c1_44 = arith.constant 1 : index
    %c0_45 = arith.constant 0 : index
    %25 = vector.load %arg20[%c0_43, %c1_44, %c0_45] : memref<3x3x128xf32, #tpu.memory_space<vmem>>, vector<1x1x128xf32>
    %26 = vector.shape_cast %25 : vector<1x1x128xf32> to vector<1x128xf32>
    %c128 = arith.constant 128 : index
    %c0_46 = arith.constant 0 : index
    %27 = vector.load %arg10[%c128, %c0_46] : memref<1152x256xbf16, #tpu.memory_space<vmem>>, vector<128x256xbf16>
    %28 = arith.truncf %26 : vector<1x128xf32> to vector<1x128xbf16>
    %cst_47 = arith.constant dense<0.000000e+00> : vector<1x256xf32>
    %29 = tpu.matmul %28, %27, %cst_47 {dimension_numbers = #tpu.dot_dimension_numbers<[1], [0], [0], [1], [0, 0, 1, 1], [], []>} : vector<1x128xbf16>, vector<128x256xbf16>, vector<1x256xf32> -> vector<1x256xf32>
    %30 = arith.addf %24, %29 : vector<1x256xf32>
    %c0_48 = arith.constant 0 : index
    %c2_49 = arith.constant 2 : index
    %c0_50 = arith.constant 0 : index
    %31 = vector.load %arg20[%c0_48, %c2_49, %c0_50] : memref<3x3x128xf32, #tpu.memory_space<vmem>>, vector<1x1x128xf32>
    %32 = vector.shape_cast %31 : vector<1x1x128xf32> to vector<1x128xf32>
    %c256 = arith.constant 256 : index
    %c0_51 = arith.constant 0 : index
    %33 = vector.load %arg10[%c256, %c0_51] : memref<1152x256xbf16, #tpu.memory_space<vmem>>, vector<128x256xbf16>
    %34 = arith.truncf %32 : vector<1x128xf32> to vector<1x128xbf16>
    %cst_52 = arith.constant dense<0.000000e+00> : vector<1x256xf32>
    %35 = tpu.matmul %34, %33, %cst_52 {dimension_numbers = #tpu.dot_dimension_numbers<[1], [0], [0], [1], [0, 0, 1, 1], [], []>} : vector<1x128xbf16>, vector<128x256xbf16>, vector<1x256xf32> -> vector<1x256xf32>
    %36 = arith.addf %30, %35 : vector<1x256xf32>
    %c1_53 = arith.constant 1 : index
    %c0_54 = arith.constant 0 : index
    %c0_55 = arith.constant 0 : index
    %37 = vector.load %arg20[%c1_53, %c0_54, %c0_55] : memref<3x3x128xf32, #tpu.memory_space<vmem>>, vector<1x1x128xf32>
    %38 = vector.shape_cast %37 : vector<1x1x128xf32> to vector<1x128xf32>
    %c384 = arith.constant 384 : index
    %c0_56 = arith.constant 0 : index
    %39 = vector.load %arg10[%c384, %c0_56] : memref<1152x256xbf16, #tpu.memory_space<vmem>>, vector<128x256xbf16>
    %40 = arith.truncf %38 : vector<1x128xf32> to vector<1x128xbf16>
    %cst_57 = arith.constant dense<0.000000e+00> : vector<1x256xf32>
    %41 = tpu.matmul %40, %39, %cst_57 {dimension_numbers = #tpu.dot_dimension_numbers<[1], [0], [0], [1], [0, 0, 1, 1], [], []>} : vector<1x128xbf16>, vector<128x256xbf16>, vector<1x256xf32> -> vector<1x256xf32>
    %42 = arith.addf %36, %41 : vector<1x256xf32>
    %c1_58 = arith.constant 1 : index
    %c1_59 = arith.constant 1 : index
    %c0_60 = arith.constant 0 : index
    %43 = vector.load %arg20[%c1_58, %c1_59, %c0_60] : memref<3x3x128xf32, #tpu.memory_space<vmem>>, vector<1x1x128xf32>
    %44 = vector.shape_cast %43 : vector<1x1x128xf32> to vector<1x128xf32>
    %c512 = arith.constant 512 : index
    %c0_61 = arith.constant 0 : index
    %45 = vector.load %arg10[%c512, %c0_61] : memref<1152x256xbf16, #tpu.memory_space<vmem>>, vector<128x256xbf16>
    %46 = arith.truncf %44 : vector<1x128xf32> to vector<1x128xbf16>
    %cst_62 = arith.constant dense<0.000000e+00> : vector<1x256xf32>
    %47 = tpu.matmul %46, %45, %cst_62 {dimension_numbers = #tpu.dot_dimension_numbers<[1], [0], [0], [1], [0, 0, 1, 1], [], []>} : vector<1x128xbf16>, vector<128x256xbf16>, vector<1x256xf32> -> vector<1x256xf32>
    %48 = arith.addf %42, %47 : vector<1x256xf32>
    %c1_63 = arith.constant 1 : index
    %c2_64 = arith.constant 2 : index
    %c0_65 = arith.constant 0 : index
    %49 = vector.load %arg20[%c1_63, %c2_64, %c0_65] : memref<3x3x128xf32, #tpu.memory_space<vmem>>, vector<1x1x128xf32>
    %50 = vector.shape_cast %49 : vector<1x1x128xf32> to vector<1x128xf32>
    %c640 = arith.constant 640 : index
    %c0_66 = arith.constant 0 : index
    %51 = vector.load %arg10[%c640, %c0_66] : memref<1152x256xbf16, #tpu.memory_space<vmem>>, vector<128x256xbf16>
    %52 = arith.truncf %50 : vector<1x128xf32> to vector<1x128xbf16>
    %cst_67 = arith.constant dense<0.000000e+00> : vector<1x256xf32>
    %53 = tpu.matmul %52, %51, %cst_67 {dimension_numbers = #tpu.dot_dimension_numbers<[1], [0], [0], [1], [0, 0, 1, 1], [], []>} : vector<1x128xbf16>, vector<128x256xbf16>, vector<1x256xf32> -> vector<1x256xf32>
    %54 = arith.addf %48, %53 : vector<1x256xf32>
    %c2_68 = arith.constant 2 : index
    %c0_69 = arith.constant 0 : index
    %c0_70 = arith.constant 0 : index
    %55 = vector.load %arg20[%c2_68, %c0_69, %c0_70] : memref<3x3x128xf32, #tpu.memory_space<vmem>>, vector<1x1x128xf32>
    %56 = vector.shape_cast %55 : vector<1x1x128xf32> to vector<1x128xf32>
    %c768 = arith.constant 768 : index
    %c0_71 = arith.constant 0 : index
    %57 = vector.load %arg10[%c768, %c0_71] : memref<1152x256xbf16, #tpu.memory_space<vmem>>, vector<128x256xbf16>
    %58 = arith.truncf %56 : vector<1x128xf32> to vector<1x128xbf16>
    %cst_72 = arith.constant dense<0.000000e+00> : vector<1x256xf32>
    %59 = tpu.matmul %58, %57, %cst_72 {dimension_numbers = #tpu.dot_dimension_numbers<[1], [0], [0], [1], [0, 0, 1, 1], [], []>} : vector<1x128xbf16>, vector<128x256xbf16>, vector<1x256xf32> -> vector<1x256xf32>
    %60 = arith.addf %54, %59 : vector<1x256xf32>
    %c2_73 = arith.constant 2 : index
    %c1_74 = arith.constant 1 : index
    %c0_75 = arith.constant 0 : index
    %61 = vector.load %arg20[%c2_73, %c1_74, %c0_75] : memref<3x3x128xf32, #tpu.memory_space<vmem>>, vector<1x1x128xf32>
    %62 = vector.shape_cast %61 : vector<1x1x128xf32> to vector<1x128xf32>
    %c896 = arith.constant 896 : index
    %c0_76 = arith.constant 0 : index
    %63 = vector.load %arg10[%c896, %c0_76] : memref<1152x256xbf16, #tpu.memory_space<vmem>>, vector<128x256xbf16>
    %64 = arith.truncf %62 : vector<1x128xf32> to vector<1x128xbf16>
    %cst_77 = arith.constant dense<0.000000e+00> : vector<1x256xf32>
    %65 = tpu.matmul %64, %63, %cst_77 {dimension_numbers = #tpu.dot_dimension_numbers<[1], [0], [0], [1], [0, 0, 1, 1], [], []>} : vector<1x128xbf16>, vector<128x256xbf16>, vector<1x256xf32> -> vector<1x256xf32>
    %66 = arith.addf %60, %65 : vector<1x256xf32>
    %c2_78 = arith.constant 2 : index
    %c2_79 = arith.constant 2 : index
    %c0_80 = arith.constant 0 : index
    %67 = vector.load %arg20[%c2_78, %c2_79, %c0_80] : memref<3x3x128xf32, #tpu.memory_space<vmem>>, vector<1x1x128xf32>
    %68 = vector.shape_cast %67 : vector<1x1x128xf32> to vector<1x128xf32>
    %c1024 = arith.constant 1024 : index
    %c0_81 = arith.constant 0 : index
    %69 = vector.load %arg10[%c1024, %c0_81] : memref<1152x256xbf16, #tpu.memory_space<vmem>>, vector<128x256xbf16>
    %70 = arith.truncf %68 : vector<1x128xf32> to vector<1x128xbf16>
    %cst_82 = arith.constant dense<0.000000e+00> : vector<1x256xf32>
    %71 = tpu.matmul %70, %69, %cst_82 {dimension_numbers = #tpu.dot_dimension_numbers<[1], [0], [0], [1], [0, 0, 1, 1], [], []>} : vector<1x128xbf16>, vector<128x256xbf16>, vector<1x256xf32> -> vector<1x256xf32>
    %72 = arith.addf %66, %71 : vector<1x256xf32>
    %c0_83 = arith.constant 0 : index
    %c0_84 = arith.constant 0 : index
    %73 = vector.load %arg11[%c0_83, %c0_84] : memref<1x256xf32, #tpu.memory_space<vmem>>, vector<1x256xf32>
    %74 = arith.addf %72, %73 : vector<1x256xf32>
    %cst_85 = arith.constant 0.000000e+00 : f32
    %75 = vector.broadcast %cst_85 : f32 to vector<1x256xf32>
    %76 = arith.maximumf %74, %75 : vector<1x256xf32>
    %77 = arith.truncf %76 : vector<1x256xf32> to vector<1x256xbf16>
    %c0_86 = arith.constant 0 : index
    %c0_87 = arith.constant 0 : index
    %78 = vector.load %arg12[%c0_86, %c0_87] : memref<256x128xbf16, #tpu.memory_space<vmem>>, vector<256x128xbf16>
    %cst_88 = arith.constant dense<0.000000e+00> : vector<1x128xf32>
    %79 = tpu.matmul %77, %78, %cst_88 {dimension_numbers = #tpu.dot_dimension_numbers<[1], [0], [0], [1], [0, 0, 1, 1], [], []>} : vector<1x256xbf16>, vector<256x128xbf16>, vector<1x128xf32> -> vector<1x128xf32>
    %c0_89 = arith.constant 0 : index
    %c0_90 = arith.constant 0 : index
    %80 = vector.load %arg13[%c0_89, %c0_90] : memref<1x128xf32, #tpu.memory_space<vmem>>, vector<1x128xf32>
    %81 = arith.addf %79, %80 : vector<1x128xf32>
    %82 = vector.shape_cast %81 : vector<1x128xf32> to vector<1x128xf32>
    %83 = vector.broadcast %82 : vector<1x128xf32> to vector<8x128xf32>
    %c0_91 = arith.constant 0 : index
    %c0_92 = arith.constant 0 : index
    %c0_93 = arith.constant 0 : index
    %84 = vector.load %arg14[%c0_91, %c0_92, %c0_93] : memref<1x8x128xf32, #tpu.memory_space<vmem>>, vector<1x8x128xf32>
    %85 = vector.shape_cast %84 : vector<1x8x128xf32> to vector<8x128xf32>
    %86 = vector.shape_cast %83 : vector<8x128xf32> to vector<1x8x128xf32>
    tpu.vector_store %arg14[%c0_91, %c0_92, %c0_93], %86 {strides = array<i32>} : memref<1x8x128xf32, #tpu.memory_space<vmem>>, vector<1x8x128xf32>,
    return
  }
  func.func @transform_0(%arg0: i32) -> (i32, i32, i32, i32) {
    %c0_i32 = arith.constant 0 : i32
    %c0_i32_0 = arith.constant 0 : i32
    %c0_i32_1 = arith.constant 0 : i32
    %c0_i32_2 = arith.constant 0 : i32
    return %arg0, %c0_i32, %c0_i32_0, %c0_i32_1 : i32, i32, i32, i32
  }
  func.func @transform_1(%arg0: i32) -> (i32, i32) {
    %c0_i32 = arith.constant 0 : i32
    %c0_i32_0 = arith.constant 0 : i32
    %c0_i32_1 = arith.constant 0 : i32
    return %c0_i32, %c0_i32_0 : i32, i32
  }
  func.func @transform_2(%arg0: i32) -> (i32, i32) {
    %c0_i32 = arith.constant 0 : i32
    %c0_i32_0 = arith.constant 0 : i32
    %c0_i32_1 = arith.constant 0 : i32
    return %c0_i32, %c0_i32_0 : i32, i32
  }
  func.func @transform_3(%arg0: i32) -> (i32, i32) {
    %c0_i32 = arith.constant 0 : i32
    %c0_i32_0 = arith.constant 0 : i32
    %c0_i32_1 = arith.constant 0 : i32
    return %c0_i32, %c0_i32_0 : i32, i32
  }
  func.func @transform_4(%arg0: i32) -> (i32, i32) {
    %c0_i32 = arith.constant 0 : i32
    %c0_i32_0 = arith.constant 0 : i32
    %c0_i32_1 = arith.constant 0 : i32
    return %c0_i32, %c0_i32_0 : i32, i32
  }
  func.func @transform_5(%arg0: i32) -> (i32, i32) {
    %c0_i32 = arith.constant 0 : i32
    %c0_i32_0 = arith.constant 0 : i32
    %c0_i32_1 = arith.constant 0 : i32
    return %c0_i32, %c0_i32_0 : i32, i32
  }
  func.func @transform_6(%arg0: i32) -> (i32, i32) {
    %c0_i32 = arith.constant 0 : i32
    %c0_i32_0 = arith.constant 0 : i32
    %c0_i32_1 = arith.constant 0 : i32
    return %c0_i32, %c0_i32_0 : i32, i32
  }
  func.func @transform_7(%arg0: i32) -> (i32, i32) {
    %c0_i32 = arith.constant 0 : i32
    %c0_i32_0 = arith.constant 0 : i32
    %c0_i32_1 = arith.constant 0 : i32
    return %c0_i32, %c0_i32_0 : i32, i32
  }
  func.func @transform_8(%arg0: i32) -> (i32, i32) {
    %c0_i32 = arith.constant 0 : i32
    %c0_i32_0 = arith.constant 0 : i32
    %c0_i32_1 = arith.constant 0 : i32
    return %c0_i32, %c0_i32_0 : i32, i32
  }
  func.func @transform_9(%arg0: i32) -> (i32, i32) {
    %c0_i32 = arith.constant 0 : i32
    %c0_i32_0 = arith.constant 0 : i32
    %c0_i32_1 = arith.constant 0 : i32
    return %c0_i32, %c0_i32_0 : i32, i32
  }
  func.func @transform_10(%arg0: i32) -> (i32, i32) {
    %c0_i32 = arith.constant 0 : i32
    %c0_i32_0 = arith.constant 0 : i32
    %c0_i32_1 = arith.constant 0 : i32
    return %c0_i32, %c0_i32_0 : i32, i32
  }
  func.func @transform_11(%arg0: i32) -> (i32, i32) {
    %c0_i32 = arith.constant 0 : i32
    %c0_i32_0 = arith.constant 0 : i32
    %c0_i32_1 = arith.constant 0 : i32
    return %c0_i32, %c0_i32_0 : i32, i32
  }
  func.func @transform_12(%arg0: i32) -> (i32, i32) {
    %c0_i32 = arith.constant 0 : i32
    %c0_i32_0 = arith.constant 0 : i32
    %c0_i32_1 = arith.constant 0 : i32
    return %c0_i32, %c0_i32_0 : i32, i32
  }
  func.func @transform_13(%arg0: i32) -> (i32, i32, i32) {
    %c0_i32 = arith.constant 0 : i32
    %c0_i32_0 = arith.constant 0 : i32
    %c0_i32_1 = arith.constant 0 : i32
    return %arg0, %c0_i32, %c0_i32_0 : i32, i32, i32
  }
}

</mosaic_0001>

<bundles_post_ra>
// kernel: forward.1
= control target key start
LH: loop header
LB: loop body
LE: loop exit
PB: predicated region body
PF: predicated region fallthrough
CT: control target
= control target key end

     0   :  { %s12500_s0 = inlined_call_operand.vmem [shape: f32[2,28,28,1], index: 0, kind: input, shape index: {}]   ;;  %s12501_s1 = inlined_call_operand.vmem [shape: f32[25,128], index: 1, kind: input, shape index: {}]   ;;  %s12502_s2 = inlined_call_operand.vmem [shape: f32[3,128], index: 2, kind: input, shape index: {}]   ;;  %s12503_s3 = inlined_call_operand.vmem [shape: bf16[3200,128], index: 3, kind: input, shape index: {}]   ;;  %s12504_s4 = inlined_call_operand.vmem [shape: f32[3,128], index: 4, kind: input, shape index: {}]   ;;  %s12505_s5 = inlined_call_operand.hbm [shape: bf16[1152,128], index: 5, kind: input, shape index: {}]   ;;  %s12506_s6 = inlined_call_operand.vmem [shape: f32[3,128], index: 6, kind: input, shape index: {}]   ;;  %s12507_s7 = inlined_call_operand.hbm [shape: bf16[1152,128], index: 7, kind: input, shape index: {}]   ;;  %s12508_s8 = inlined_call_operand.vmem [shape: f32[3,128], index: 8, kind: input, shape index: {}]   ;;  %s12509_s9 = inlined_call_operand.hbm [shape: bf16[1152,256], index: 9, kind: input, shape index: {}]   ;;  %s12510_s10 = inlined_call_operand.vmem [shape: f32[1,256], index: 10, kind: input, shape index: {}]   ;;  %s12511_s11 = inlined_call_operand.vmem [shape: bf16[256,128], index: 11, kind: input, shape index: {}]   ;;  %s12512_s12 = inlined_call_operand.vmem [shape: f32[1,128], index: 12, kind: input, shape index: {}]   ;;  %s12513_s13 = inlined_call_operand.vmem [shape: f32[2,8,128], index: 13, kind: output, shape index: {}]  }
   0x1   :  { %12515 = sst [smem:[#allocation16_spill]] %s12512_s12 }
   0x2   :  { %18 = vsyncpa [#allocation9], 0 }
   0x3   :  { %19 = vsyncpa [#allocation11], 0  ;;  %s11007_s25 = smov 0  }
   0x4 LB: > { %12516 = sst [smem:[#allocation15_spill]] %s10898_s25  ;;  %s11013_s26 = sadd.s32 4294967295, %s10898_s25   ;;  %s10898_s25 = sphi %s11007_s25, %s25_s25  }
   0x5   : > { %p8101_p0 = scmp.ge.s32.totalorder %s10898_s25, 1  ;;  %p334_p1 = scmp.lt.s32.totalorder %s10898_s25, 3 }
   0x6   : > { %p10123_p2 = scmp.eq.s32.totalorder %s11013_s26, 0  ;;  %s10924_s28 = smov [#allocation10]  }
   0x7   : > { %p11018_p3 = pnand %p8101_p0, %p334_p1  ;;  %s374_s29 = sshll.u32 %s10924_s28, 4  ;;  %s11022_s29 = int_to_ptr.vmem [resolvable:$true] %s374_s29 }
   0x8   : > { %s10925_s30 = smov [#allocation8]   ;;  %s10926_s16 = smov [#allocation12]  }
   0x9   : > { %p10113_p4 = pneg %p11018_p3  ;;  %s358_s14 = sshll.u32 %s10925_s30, 4  ;;  %s11026_s14 = int_to_ptr.vmem [resolvable:$true] %s358_s14 }
   0xa   : > { %s390_s17 = sshll.u32 %s10926_s16, 4  ;;  %s10776_s20 = scalar_lea.hbm %s12507_s7, 9216  ;;  %s11034_s17 = int_to_ptr.vmem [resolvable:$true] %s390_s17 }
   0xb   : > { %p11030_p5 = pnand %p10123_p2, %p10113_p4  ;;  %p10777_p6 = scmp.ne.s32.totalorder %s12507_s7, %s10776_s20 }
   0xc   : > { %p10783_p10 = scmp.lt.u32.totalorder %s10776_s20, %s12507_s7 }
   0xd   : > { %p11044_p7 = pneg %p11030_p5 }
   0xf   : > { %p10779_p8 = pnand %p11044_p7, %p10777_p6 }
  0x11   : > { %p10780_p9 = pneg %p10779_p8 }
  0x13   : > { %p10785_p11 = pnand %p10783_p10, %p10780_p9 }
  0x15   : > { %10788 = shalt.err (!%p10785_p11)
}
  0x16   : > { %s10789_s30 = scalar_lea.vmem %s11022_s29, 9216  ;;  %p10797_p1 = scmp.lt.s32.totalorder %s11022_s29, %s11022_s29 }
  0x17   : > { %p10790_p12 = scmp.ne.s32.totalorder %s11022_s29, %s10789_s30  ;;  %p10798_p4 = scmp.lt.s32.totalorder %s10789_s30, %s10789_s30 }
  0x19   : > { %p10792_p13 = pnand %p10790_p12, %p11044_p7  ;;  %p10799_p6 = por %p10798_p4, %p10797_p1 }
  0x1b   : > { %p10793_p0 = pneg %p10792_p13 }
  0x1d   : > { %p10800_p8 = pnand %p10799_p6, %p10793_p0 }
  0x1f   : > { %10803 = shalt.err (!%p10800_p8)
}
  0x20   : > { %s10927_s16 = smov 64   ;;  %s10928_s18 = smov 4  }
  0x21   : > { %10119 = dma.hbm_to_vmem [thread:$0]  (!%p11030_p5), %s12507_s7, 9216, %s11022_s29, [#allocation11], %s10927_s16, %s10927_s16, %s10928_s18  }
  0x22   : > { %s10804_s24 = scalar_lea.hbm %s12505_s5, 9216 }
  0x23   : > { %p10805_p9 = scmp.ne.s32.totalorder %s12505_s5, %s10804_s24  ;;  %p10811_p12 = scmp.lt.u32.totalorder %s10804_s24, %s12505_s5 }
  0x25   : > { %p10807_p10 = pnand %p10805_p9, %p11044_p7 }
  0x27   : > { %p10808_p11 = pneg %p10807_p10 }
  0x29   : > { %p10813_p13 = pnand %p10811_p12, %p10808_p11 }
  0x2b   : > { %10816 = shalt.err (!%p10813_p13)
}
  0x2c   : > { %s10817_s29 = scalar_lea.vmem %s11026_s14, 9216  ;;  %p10825_p6 = scmp.lt.s32.totalorder %s11026_s14, %s11026_s14 }
  0x2d   : > { %p10818_p0 = scmp.ne.s32.totalorder %s11026_s14, %s10817_s29  ;;  %p10826_p8 = scmp.lt.s32.totalorder %s10817_s29, %s10817_s29 }
  0x2f   : > { %p10820_p1 = pnand %p10818_p0, %p11044_p7  ;;  %p10827_p9 = por %p10826_p8, %p10825_p6 }
  0x31   : > { %p10821_p4 = pneg %p10820_p1 }
  0x33   : > { %p10828_p10 = pnand %p10827_p9, %p10821_p4 }
  0x35   : > { %10831 = shalt.err (!%p10828_p10)
}
  0x36   : > { %10116 = dma.hbm_to_vmem [thread:$0]  (!%p11030_p5), %s12505_s5, 9216, %s11026_s14, [#allocation9], %s10927_s16, %s10927_s16, %s10928_s18  }
  0x37   : > { %s10832_s21 = scalar_lea.hbm %s12509_s9, 18432 }
  0x38   : > { %p10833_p11 = scmp.ne.s32.totalorder %s12509_s9, %s10832_s21  ;;  %p10839_p0 = scmp.lt.u32.totalorder %s10832_s21, %s12509_s9 }
  0x3a   : > { %p10835_p12 = pnand %p10833_p11, %p11044_p7 }
  0x3c   : > { %p10836_p13 = pneg %p10835_p12 }
  0x3e   : > { %p10841_p1 = pnand %p10839_p0, %p10836_p13 }
  0x40   : > { %10844 = shalt.err (!%p10841_p1)
}
  0x41   : > { %s10845_s14 = scalar_lea.vmem %s11034_s17, 18432  ;;  %p10853_p9 = scmp.lt.s32.totalorder %s11034_s17, %s11034_s17 }
  0x42   : > { %p10846_p4 = scmp.ne.s32.totalorder %s11034_s17, %s10845_s14  ;;  %p10854_p10 = scmp.lt.s32.totalorder %s10845_s14, %s10845_s14 }
  0x44   : > { %p10848_p6 = pnand %p10846_p4, %p11044_p7  ;;  %p10855_p11 = por %p10854_p10, %p10853_p9 }
  0x46   : > { %p10849_p8 = pneg %p10848_p6 }
  0x48   : > { %p10856_p12 = pnand %p10855_p11, %p10849_p8 }
  0x4a   : > { %10859 = shalt.err (!%p10856_p12)
}
  0x4b   : > { %s10929_s16 = smov 128   ;;  %s10930_s18 = smov 8  }
  0x4c   : > { %10122 = dma.hbm_to_vmem [thread:$0]  (!%p11030_p5), %s12509_s9, 18432, %s11034_s17, [#allocation11], %s10929_s16, %s10929_s16, %s10930_s18  }
  0x4d   : > { %423 = sbr.rel (%p11018_p3) target bundleno = 2443 (0x98b), region = 72 }
  0x54   : > { %10889 = dma.done.wait (%p10123_p2), [#allocation9], 9216  }
  0x55   : > { %10891 = vsyncadd (%p10123_p2), [#allocation9], 4294958080 }
  0x56   : > { %10893 = dma.done.wait (%p10123_p2), [#allocation11], 27648  }
  0x57   : > { %10895 = vsyncadd (%p10123_p2), [#allocation11], 4294939648  ;;  %p474_p7 = scmp.lt.s32.totalorder %s11013_s26, 1  ;;  %v11136_v0 = vld [vmem:[%s12502_s2] ss:$0 sm:$0xff]  ;;  %s11148_s16 = smov 0  }
  0x58   : > { %v11141_v1 = vld [vmem:[%s12502_s2 + $0x1] ss:$0 sm:$0xff]  ;;  %v11146_v2 = vld [vmem:[%s12502_s2 + $0x2] ss:$0 sm:$0xff] }
  0x59   : > { %s12523_s26 = smov (!%p474_p7, %s11013_s26), 1 }
  0x5a   : > { %s10100_s15 = smul.u32 896, %s12523_s26  ;;  %s8111_s17 = sshll.u32 %s12523_s26, 3 }
  0x5b   : > { %s11126_s25 = scalar_lea.vmem %s12513_s13, %s8111_s17 }
  0x5c   : > { %s11131_s21 = scalar_lea.vmem %s12500_s0, %s10100_s15 }
  0x5d LB: >> { %v10931_v3 = vmov 0   ;;  %s8112_s18 = sshll.u32 %s10902_s16, 5  ;;  %s1256_s19 = smul.u32 24, %s10902_s16  ;;  %s10902_s16 = sphi %s11148_s16, %s492_s16  }
  0x5e   : >> { %10199 = vset.pattern.permute.xlu1 %v10931_v3  ;;  %10198 = vset.pattern.permute.xlu0 %v10931_v3  ;;  %s11155_s29 = scalar_lea.vmem %s11131_s21, %s8112_s18  ;;  %s492_s16 = sadd.s32 1, %s10902_s16  }
  0x5f   : >> { %v497_v4 = vld [vmem:[%s11155_s29 + $0x10] sm:$0xff]  ;;  %v495_v5 = vld [vmem:[%s11155_s29] sm:$0xff]  ;;  %v496_v7 = vld [vmem:[%s11155_s29 + $0x8] sm:$0xff]  ;;  %s1257_s20 = scalar_lea.vmem [#allocation2], %s1256_s19  ;;  %p489_p2 = scmp.ge.s32.totalorder %s492_s16, 24  }
  0x60   : >> { %511 = vperm.xlu1 %10199, %v497_v4   ;;  %501 = vperm.xlu0 %10198, %v495_v5   ;;  %v524_v6 = vld [vmem:[%s11155_s29 + $0x1] sm:$0xff]  ;;  %v526_v8 = vld [vmem:[%s11155_s29 + $0x11] sm:$0xff]  ;;  %v525_v9 = vld [vmem:[%s11155_s29 + $0x9] sm:$0xff]  ;;  %s11368_s18 = smov (%p489_p2), 0  }
  0x61   : >> { %v554_v10 = vld [vmem:[%s11155_s29 + $0xa] sm:$0xff]  ;;  %v553_v11 = vld [vmem:[%s11155_s29 + $0x2] sm:$0xff]  ;;  %v555_v13 = vld [vmem:[%s11155_s29 + $0x12] sm:$0xff] }
  0x62   : >> { %v582_v12 = vld [vmem:[%s11155_s29 + $0x3] sm:$0xff]  ;;  %v584_v14 = vld [vmem:[%s11155_s29 + $0x13] sm:$0xff]  ;;  %v583_v15 = vld [vmem:[%s11155_s29 + $0xb] sm:$0xff] }
  0x63   : >> { %v612_v16 = vld [vmem:[%s11155_s29 + $0xc] sm:$0xff]  ;;  %v611_v17 = vld [vmem:[%s11155_s29 + $0x4] sm:$0xff]  ;;  %v613_v19 = vld [vmem:[%s11155_s29 + $0x14] sm:$0xff] }
  0x64   : >> { %530 = vperm.xlu1 %10199, %v524_v6   ;;  %506 = vperm.xlu0 %10198, %v496_v7   ;;  %v8119_v18 = vld [vmem:[%s11155_s29 + $0x20] sm:$0xff]  ;;  %v8121_v20 = vld [vmem:[%s11155_s29 + $0x30] sm:$0xff]  ;;  %v8120_v21 = vld [vmem:[%s11155_s29 + $0x28] sm:$0xff] }
  0x65   : >> { %v8124_v22 = vld [vmem:[%s11155_s29 + $0x29] sm:$0xff]  ;;  %v8123_v23 = vld [vmem:[%s11155_s29 + $0x21] sm:$0xff]  ;;  %v8125_v25 = vld [vmem:[%s11155_s29 + $0x31] sm:$0xff] }
  0x66   : >> { %v8127_v24 = vld [vmem:[%s11155_s29 + $0x22] sm:$0xff]  ;;  %v8129_v26 = vld [vmem:[%s11155_s29 + $0x32] sm:$0xff]  ;;  %v8128_v27 = vld [vmem:[%s11155_s29 + $0x2a] sm:$0xff] }
  0x67   : >> { %v8132_v28 = vld [vmem:[%s11155_s29 + $0x2b] sm:$0xff]  ;;  %v8131_v29 = vld [vmem:[%s11155_s29 + $0x23] sm:$0xff]  ;;  %v8133_v31 = vld [vmem:[%s11155_s29 + $0x33] sm:$0xff] }
  0x68   : >> { %540 = vperm.xlu1 %10199, %v526_v8   ;;  %535 = vperm.xlu0 %10198, %v525_v9   ;;  %v8135_v30 = vld [vmem:[%s11155_s29 + $0x24] sm:$0xff]  ;;  %v8137_v32 = vld [vmem:[%s11155_s29 + $0x34] sm:$0xff]  ;;  %v8136_v33 = vld [vmem:[%s11155_s29 + $0x2c] sm:$0xff] }
  0x69   : >> { %v8141_v34 = vld [vmem:[%s11155_s29 + $0x48] sm:$0xff]  ;;  %v8140_v35 = vld [vmem:[%s11155_s29 + $0x40] sm:$0xff]  ;;  %v8142_v37 = vld [vmem:[%s11155_s29 + $0x50] sm:$0xff] }
  0x6a   : >> { %v8144_v36 = vld [vmem:[%s11155_s29 + $0x41] sm:$0xff]  ;;  %v8146_v38 = vld [vmem:[%s11155_s29 + $0x51] sm:$0xff]  ;;  %v8145_v39 = vld [vmem:[%s11155_s29 + $0x49] sm:$0xff] }
  0x6b   : >> { %v8149_v40 = vld [vmem:[%s11155_s29 + $0x4a] sm:$0xff]  ;;  %v8148_v41 = vld [vmem:[%s11155_s29 + $0x42] sm:$0xff]  ;;  %v8150_v43 = vld [vmem:[%s11155_s29 + $0x52] sm:$0xff] }
  0x6c   : >> { %564 = vperm.xlu1 %10199, %v554_v10   ;;  %559 = vperm.xlu0 %10198, %v553_v11   ;;  %v8152_v42 = vld [vmem:[%s11155_s29 + $0x43] sm:$0xff]  ;;  %v8154_v44 = vld [vmem:[%s11155_s29 + $0x53] sm:$0xff]  ;;  %v8153_v45 = vld [vmem:[%s11155_s29 + $0x4b] sm:$0xff] }
  0x6d   : >> { %v8157_v46 = vld [vmem:[%s11155_s29 + $0x4c] sm:$0xff]  ;;  %v8156_v47 = vld [vmem:[%s11155_s29 + $0x44] sm:$0xff]  ;;  %v8158_v49 = vld [vmem:[%s11155_s29 + $0x54] sm:$0xff] }
  0x6e   : >> { %v8161_v48 = vld [vmem:[%s11155_s29 + $0x60] sm:$0xff]  ;;  %v8163_v50 = vld [vmem:[%s11155_s29 + $0x70] sm:$0xff]  ;;  %v8162_v51 = vld [vmem:[%s11155_s29 + $0x68] sm:$0xff] }
  0x6f   : >> { %v8166_v52 = vld [vmem:[%s11155_s29 + $0x69] sm:$0xff]  ;;  %v8165_v53 = vld [vmem:[%s11155_s29 + $0x61] sm:$0xff]  ;;  %v8167_v55 = vld [vmem:[%s11155_s29 + $0x71] sm:$0xff] }
  0x70   : >> { %588 = vperm.xlu1 %10199, %v582_v12   ;;  %569 = vperm.xlu0 %10198, %v555_v13   ;;  %v8169_v54 = vld [vmem:[%s11155_s29 + $0x62] sm:$0xff]  ;;  %v8171_v56 = vld [vmem:[%s11155_s29 + $0x72] sm:$0xff]  ;;  %v8170_v57 = vld [vmem:[%s11155_s29 + $0x6a] sm:$0xff] }
  0x71   : >> { %v8174_v58 = vld [vmem:[%s11155_s29 + $0x6b] sm:$0xff]  ;;  %v8173_v59 = vld [vmem:[%s11155_s29 + $0x63] sm:$0xff]  ;;  %v8175_v61 = vld [vmem:[%s11155_s29 + $0x73] sm:$0xff] }
  0x72   : >> { %v8177_v60 = vld [vmem:[%s11155_s29 + $0x64] sm:$0xff]  ;;  %v8179_v62 = vld [vmem:[%s11155_s29 + $0x74] sm:$0xff]  ;;  %v8178_v63 = vld [vmem:[%s11155_s29 + $0x6c] sm:$0xff] }
  0x73   : >> { %v8183_v3 = vld [vmem:[%s11155_s29 + $0x88] sm:$0xff]  ;;  %v8182_v4 = vld [vmem:[%s11155_s29 + $0x80] sm:$0xff]  ;;  %v8184_v6 = vld [vmem:[%s11155_s29 + $0x90] sm:$0xff] }
  0x74   : >> { %598 = vperm.xlu1 %10199, %v584_v14   ;;  %593 = vperm.xlu0 %10198, %v583_v15   ;;  %v8186_v5 = vld [vmem:[%s11155_s29 + $0x81] sm:$0xff]  ;;  %v8188_v7 = vld [vmem:[%s11155_s29 + $0x91] sm:$0xff]  ;;  %v8187_v8 = vld [vmem:[%s11155_s29 + $0x89] sm:$0xff] }
  0x75   : >> { %v8113_v11 = vld [vmem:[%s12501_s1] ss:$0 sm:$0xff]  ;;  %v8114_v12 = vld [vmem:[%s12501_s1 + $0x1] ss:$0 sm:$0xff]  ;;  %v8191_v13 = vld [vmem:[%s11155_s29 + $0x8a] sm:$0xff] }
  0x76   : >> { %v8190_v14 = vld [vmem:[%s11155_s29 + $0x82] sm:$0xff] }
  0x78   : >> { %622 = vperm.xlu1 %10199, %v612_v16   ;;  %617 = vperm.xlu0 %10198, %v611_v17  }
  0x7c   : >> { %649 = vperm.xlu1 %10199, %v8119_v18   ;;  %627 = vperm.xlu0 %10198, %v613_v19   ;;  %v8194_v19 = vld [vmem:[%s11155_s29 + $0x83] sm:$0xff] }
  0x80   : >> { %659 = vperm.xlu1 %10199, %v8121_v20   ;;  %654 = vperm.xlu0 %10198, %v8120_v21   ;;  %v8192_v20 = vld [vmem:[%s11155_s29 + $0x92] sm:$0xff] }
  0x84   : >> { %683 = vperm.xlu1 %10199, %v8124_v22   ;;  %678 = vperm.xlu0 %10198, %v8123_v23  }
  0x88   : >> { %707 = vperm.xlu1 %10199, %v8127_v24   ;;  %688 = vperm.xlu0 %10198, %v8125_v25  }
  0x8c   : >> { %717 = vperm.xlu1 %10199, %v8129_v26   ;;  %712 = vperm.xlu0 %10198, %v8128_v27  }
  0x90   : >> { %741 = vperm.xlu1 %10199, %v8132_v28   ;;  %736 = vperm.xlu0 %10198, %v8131_v29   ;;  %v8115_v28 = vld [vmem:[%s12501_s1 + $0x2] ss:$0 sm:$0xff]  ;;  %v8196_v29 = vld [vmem:[%s11155_s29 + $0x93] sm:$0xff] }
  0x94   : >> { %765 = vperm.xlu1 %10199, %v8135_v30   ;;  %746 = vperm.xlu0 %10198, %v8133_v31   ;;  %v8195_v30 = vld [vmem:[%s11155_s29 + $0x8b] sm:$0xff] }
  0x98   : >> { %775 = vperm.xlu1 %10199, %v8137_v32   ;;  %770 = vperm.xlu0 %10198, %v8136_v33  }
  0x9c   : >> { %802 = vperm.xlu1 %10199, %v8141_v34   ;;  %797 = vperm.xlu0 %10198, %v8140_v35  }
  0xa0   : >> { %826 = vperm.xlu1 %10199, %v8144_v36   ;;  %807 = vperm.xlu0 %10198, %v8142_v37   ;;  %v8116_v37 = vld [vmem:[%s12501_s1 + $0x3] ss:$0 sm:$0xff] }
  0xa4   : >> { %836 = vperm.xlu1 %10199, %v8146_v38   ;;  %831 = vperm.xlu0 %10198, %v8145_v39   ;;  %v8199_v38 = vld [vmem:[%s11155_s29 + $0x8c] sm:$0xff]  ;;  %v8198_v39 = vld [vmem:[%s11155_s29 + $0x84] sm:$0xff] }
  0xa8   : >> { %860 = vperm.xlu1 %10199, %v8149_v40   ;;  %855 = vperm.xlu0 %10198, %v8148_v41  }
  0xac   : >> { %884 = vperm.xlu1 %10199, %v8152_v42   ;;  %865 = vperm.xlu0 %10198, %v8150_v43  }
  0xb0   : >> { %894 = vperm.xlu1 %10199, %v8154_v44   ;;  %889 = vperm.xlu0 %10198, %v8153_v45  }
  0xb4   : >> { %918 = vperm.xlu1 %10199, %v8157_v46   ;;  %913 = vperm.xlu0 %10198, %v8156_v47   ;;  %v8200_v46 = vld [vmem:[%s11155_s29 + $0x94] sm:$0xff] }
  0xb8   : >> { %945 = vperm.xlu1 %10199, %v8161_v48   ;;  %923 = vperm.xlu0 %10198, %v8158_v49  }
  0xbc   : >> { %955 = vperm.xlu1 %10199, %v8163_v50   ;;  %950 = vperm.xlu0 %10198, %v8162_v51  }
  0xc0   : >> { %979 = vperm.xlu1 %10199, %v8166_v52   ;;  %974 = vperm.xlu0 %10198, %v8165_v53   ;;  %v8117_v53 = vld [vmem:[%s12501_s1 + $0x4] ss:$0 sm:$0xff] }
  0xc4   : >> { %1003 = vperm.xlu1 %10199, %v8169_v54   ;;  %984 = vperm.xlu0 %10198, %v8167_v55  }
  0xc8   : >> { %1013 = vperm.xlu1 %10199, %v8171_v56   ;;  %1008 = vperm.xlu0 %10198, %v8170_v57  }
  0xcc   : >> { %1037 = vperm.xlu1 %10199, %v8174_v58   ;;  %1032 = vperm.xlu0 %10198, %v8173_v59  }
  0xd0   : >> { %1061 = vperm.xlu1 %10199, %v8177_v60   ;;  %1042 = vperm.xlu0 %10198, %v8175_v61   ;;  %v8122_v60 = vld [vmem:[%s12501_s1 + $0x5] ss:$0 sm:$0xff] }
  0xd4   : >> { %1071 = vperm.xlu1 %10199, %v8179_v62   ;;  %1066 = vperm.xlu0 %10198, %v8178_v63  }
  0xd8   : >> { %1098 = vperm.xlu1 %10199, %v8183_v3   ;;  %1093 = vperm.xlu0 %10198, %v8182_v4  }
  0xdc   : >> { %1122 = vperm.xlu1 %10199, %v8186_v5   ;;  %1103 = vperm.xlu0 %10198, %v8184_v6  }
  0xdf   : >> { %v512_v9 = vpop.permute.xlu1 %511  ;;  %v502_v10 = vpop.permute.xlu0 %501 }
  0xe0   : >> { %1132 = vperm.xlu1 %10199, %v8188_v7   ;;  %1127 = vperm.xlu0 %10198, %v8187_v8   ;;  %v518_v17 = vmul.f32 %v8113_v11, %v502_v10  ;;  %v520_v22 = vmul.f32 %v8113_v11, %v512_v9 }
  0xe3   : >> { %v531_v15 = vpop.permute.xlu1 %530  ;;  %v507_v16 = vpop.permute.xlu0 %506 }
  0xe4   : >> { %v547_v18 = vmul.f32 %v8114_v12, %v531_v15  ;;  %1156 = vperm.xlu1 %10199, %v8191_v13   ;;  %1151 = vperm.xlu0 %10198, %v8190_v14   ;;  %v519_v25 = vmul.f32 %v8113_v11, %v507_v16 }
  0xe6   : >> { %v550_v21 = vadd.f32 %v547_v18, %v518_v17 }
  0xe7   : >> { %v541_v23 = vpop.permute.xlu1 %540  ;;  %v536_v24 = vpop.permute.xlu0 %535 }
  0xe8   : >> { %v549_v26 = vmul.f32 %v8114_v12, %v541_v23  ;;  %v548_v27 = vmul.f32 %v8114_v12, %v536_v24  ;;  %1180 = vperm.xlu1 %10199, %v8194_v19   ;;  %1161 = vperm.xlu0 %10198, %v8192_v20   ;;  %v8126_v12 = vld [vmem:[%s12501_s1 + $0x6] ss:$0 sm:$0xff]  ;;  %v8130_v19 = vld [vmem:[%s12501_s1 + $0x7] ss:$0 sm:$0xff] }
  0xea   : >> { %v552_v31 = vadd.f32 %v549_v26, %v520_v22  ;;  %v551_v32 = vadd.f32 %v548_v27, %v519_v25 }
  0xeb   : >> { %v565_v33 = vpop.permute.xlu1 %564  ;;  %v560_v34 = vpop.permute.xlu0 %559 }
  0xec   : >> { %v577_v35 = vmul.f32 %v8115_v28, %v565_v33  ;;  %v576_v36 = vmul.f32 %v8115_v28, %v560_v34  ;;  %1190 = vperm.xlu1 %10199, %v8196_v29   ;;  %1185 = vperm.xlu0 %10198, %v8195_v30  }
  0xee   : >> { %v580_v40 = vadd.f32 %v577_v35, %v551_v32  ;;  %v579_v41 = vadd.f32 %v576_v36, %v550_v21  ;;  %v8134_v32 = vld [vmem:[%s12501_s1 + $0x8] ss:$0 sm:$0xff] }
  0xef   : >> { %v589_v42 = vpop.permute.xlu1 %588  ;;  %v570_v43 = vpop.permute.xlu0 %569 }
  0xf0   : >> { %v605_v44 = vmul.f32 %v8116_v37, %v589_v42  ;;  %v578_v45 = vmul.f32 %v8115_v28, %v570_v43  ;;  %1214 = vperm.xlu1 %10199, %v8199_v38   ;;  %1209 = vperm.xlu0 %10198, %v8198_v39  }
  0xf2   : >> { %v608_v47 = vadd.f32 %v605_v44, %v579_v41  ;;  %v581_v48 = vadd.f32 %v578_v45, %v552_v31 }
  0xf3   : >> { %v599_v49 = vpop.permute.xlu1 %598  ;;  %v594_v50 = vpop.permute.xlu0 %593 }
  0xf4   : >> { %v607_v51 = vmul.f32 %v8116_v37, %v599_v49  ;;  %v606_v52 = vmul.f32 %v8116_v37, %v594_v50  ;;  %1219 = vperm.xlu0 %10198, %v8200_v46  }
  0xf6   : >> { %v610_v54 = vadd.f32 %v607_v51, %v581_v48  ;;  %v609_v55 = vadd.f32 %v606_v52, %v580_v40 }
  0xf7   : >> { %v623_v56 = vpop.permute.xlu1 %622  ;;  %v618_v57 = vpop.permute.xlu0 %617 }
  0xf8   : >> { %v635_v58 = vmul.f32 %v8117_v53, %v623_v56  ;;  %v634_v59 = vmul.f32 %v8117_v53, %v618_v57 }
  0xfa   : >> { %v638_v61 = vadd.f32 %v635_v58, %v609_v55  ;;  %v637_v62 = vadd.f32 %v634_v59, %v608_v47 }
  0xfb   : >> { %v650_v63 = vpop.permute.xlu1 %649  ;;  %v628_v3 = vpop.permute.xlu0 %627 }
  0xfc   : >> { %v666_v4 = vmul.f32 %v8122_v60, %v650_v63  ;;  %v636_v5 = vmul.f32 %v8117_v53, %v628_v3 }
  0xfe   : >> { %v669_v6 = vadd.f32 %v666_v4, %v637_v62  ;;  %v639_v7 = vadd.f32 %v636_v5, %v610_v54 }
  0xff   : >> { %v660_v8 = vpop.permute.xlu1 %659  ;;  %v655_v9 = vpop.permute.xlu0 %654 }
 0x100   : >> { %v668_v10 = vmul.f32 %v8122_v60, %v660_v8  ;;  %v667_v11 = vmul.f32 %v8122_v60, %v655_v9 }
 0x102   : >> { %v671_v13 = vadd.f32 %v668_v10, %v639_v7  ;;  %v670_v14 = vadd.f32 %v667_v11, %v638_v61 }
 0x103   : >> { %v684_v15 = vpop.permute.xlu1 %683  ;;  %v679_v16 = vpop.permute.xlu0 %678 }
 0x104   : >> { %v696_v17 = vmul.f32 %v8126_v12, %v684_v15  ;;  %v695_v18 = vmul.f32 %v8126_v12, %v679_v16 }
 0x106   : >> { %v699_v20 = vadd.f32 %v696_v17, %v670_v14  ;;  %v698_v21 = vadd.f32 %v695_v18, %v669_v6  ;;  %v8147_v18 = vld [vmem:[%s12501_s1 + $0xb] ss:$0 sm:$0xff] }
 0x107   : >> { %v708_v22 = vpop.permute.xlu1 %707  ;;  %v689_v23 = vpop.permute.xlu0 %688 }
 0x108   : >> { %v724_v24 = vmul.f32 %v8130_v19, %v708_v22  ;;  %v697_v25 = vmul.f32 %v8126_v12, %v689_v23  ;;  %v8138_v12 = vld [vmem:[%s12501_s1 + $0x9] ss:$0 sm:$0xff] }
 0x10a   : >> { %v727_v26 = vadd.f32 %v724_v24, %v698_v21  ;;  %v700_v27 = vadd.f32 %v697_v25, %v671_v13  ;;  %v8143_v13 = vld [vmem:[%s12501_s1 + $0xa] ss:$0 sm:$0xff]  ;;  %v8151_v21 = vld [vmem:[%s12501_s1 + $0xc] ss:$0 sm:$0xff] }
 0x10b   : >> { %v718_v28 = vpop.permute.xlu1 %717  ;;  %v713_v29 = vpop.permute.xlu0 %712 }
 0x10c   : >> { %v726_v30 = vmul.f32 %v8130_v19, %v718_v28  ;;  %v725_v31 = vmul.f32 %v8130_v19, %v713_v29  ;;  %v8155_v29 = vld [vmem:[%s12501_s1 + $0xd] ss:$0 sm:$0xff] }
 0x10e   : >> { %v729_v33 = vadd.f32 %v726_v30, %v700_v27  ;;  %v728_v34 = vadd.f32 %v725_v31, %v699_v20 }
 0x10f   : >> { %v742_v35 = vpop.permute.xlu1 %741  ;;  %v737_v36 = vpop.permute.xlu0 %736 }
 0x110   : >> { %v754_v37 = vmul.f32 %v8134_v32, %v742_v35  ;;  %v753_v38 = vmul.f32 %v8134_v32, %v737_v36  ;;  %v8159_v35 = vld [vmem:[%s12501_s1 + $0xe] ss:$0 sm:$0xff] }
 0x112   : >> { %v757_v39 = vadd.f32 %v754_v37, %v728_v34  ;;  %v756_v40 = vadd.f32 %v753_v38, %v727_v26 }
 0x113   : >> { %v766_v41 = vpop.permute.xlu1 %765  ;;  %v747_v42 = vpop.permute.xlu0 %746 }
 0x114   : >> { %v755_v43 = vmul.f32 %v8134_v32, %v747_v42  ;;  %v782_v14 = vmul.f32 %v8138_v12, %v766_v41 }
 0x116   : >> { %v758_v44 = vadd.f32 %v755_v43, %v729_v33  ;;  %v785_v22 = vadd.f32 %v782_v14, %v756_v40 }
 0x117   : >> { %v776_v45 = vpop.permute.xlu1 %775  ;;  %v771_v46 = vpop.permute.xlu0 %770 }
 0x118   : >> { %v783_v17 = vmul.f32 %v8138_v12, %v771_v46  ;;  %v784_v23 = vmul.f32 %v8138_v12, %v776_v45  ;;  %v8164_v45 = vld [vmem:[%s12501_s1 + $0xf] ss:$0 sm:$0xff] }
 0x11a   : >> { %v786_v27 = vadd.f32 %v783_v17, %v757_v39  ;;  %v787_v36 = vadd.f32 %v784_v23, %v758_v44  ;;  %v8168_v44 = vld [vmem:[%s12501_s1 + $0x10] ss:$0 sm:$0xff]  ;;  %v8172_v17 = vld [vmem:[%s12501_s1 + $0x11] ss:$0 sm:$0xff] }
 0x11b   : >> { %v803_v47 = vpop.permute.xlu1 %802  ;;  %v798_v48 = vpop.permute.xlu0 %797 }
 0x11c   : >> { %v814_v19 = vmul.f32 %v8143_v13, %v798_v48  ;;  %v815_v20 = vmul.f32 %v8143_v13, %v803_v47 }
 0x11e   : >> { %v817_v30 = vadd.f32 %v814_v19, %v785_v22  ;;  %v818_v33 = vadd.f32 %v815_v20, %v786_v27 }
 0x11f   : >> { %v827_v49 = vpop.permute.xlu1 %826  ;;  %v808_v50 = vpop.permute.xlu0 %807 }
 0x120   : >> { %v843_v24 = vmul.f32 %v8147_v18, %v827_v49  ;;  %v816_v31 = vmul.f32 %v8143_v13, %v808_v50 }
 0x122   : >> { %v846_v37 = vadd.f32 %v843_v24, %v817_v30  ;;  %v819_v46 = vadd.f32 %v816_v31, %v787_v36 }
 0x123   : >> { %v837_v51 = vpop.permute.xlu1 %836  ;;  %v832_v52 = vpop.permute.xlu0 %831 }
 0x124   : >> { %v844_v28 = vmul.f32 %v8147_v18, %v832_v52  ;;  %v845_v38 = vmul.f32 %v8147_v18, %v837_v51 }
 0x126   : >> { %v847_v42 = vadd.f32 %v844_v28, %v818_v33  ;;  %v848_v51 = vadd.f32 %v845_v38, %v819_v46 }
 0x127   : >> { %v861_v53 = vpop.permute.xlu1 %860  ;;  %v856_v54 = vpop.permute.xlu0 %855 }
 0x128   : >> { %v872_v32 = vmul.f32 %v8151_v21, %v856_v54  ;;  %v873_v34 = vmul.f32 %v8151_v21, %v861_v53 }
 0x12a   : >> { %v875_v47 = vadd.f32 %v872_v32, %v846_v37  ;;  %v876_v50 = vadd.f32 %v873_v34, %v847_v42 }
 0x12b   : >> { %v885_v55 = vpop.permute.xlu1 %884  ;;  %v866_v56 = vpop.permute.xlu0 %865 }
 0x12c   : >> { %v901_v40 = vmul.f32 %v8155_v29, %v885_v55  ;;  %v874_v48 = vmul.f32 %v8151_v21, %v866_v56  ;;  %v8176_v21 = vld [vmem:[%s12501_s1 + $0x12] ss:$0 sm:$0xff] }
 0x12e   : >> { %v904_v53 = vadd.f32 %v901_v40, %v875_v47  ;;  %v877_v56 = vadd.f32 %v874_v48, %v848_v51 }
 0x12f   : >> { %v895_v57 = vpop.permute.xlu1 %894  ;;  %v890_v58 = vpop.permute.xlu0 %889 }
 0x130   : >> { %v902_v43 = vmul.f32 %v8155_v29, %v890_v58  ;;  %v903_v54 = vmul.f32 %v8155_v29, %v895_v57 }
 0x132   : >> { %v905_v13 = vadd.f32 %v902_v43, %v876_v50  ;;  %v906_v57 = vadd.f32 %v903_v54, %v877_v56 }
 0x133   : >> { %v919_v59 = vpop.permute.xlu1 %918  ;;  %v914_v60 = vpop.permute.xlu0 %913 }
 0x134   : >> { %v930_v49 = vmul.f32 %v8159_v35, %v914_v60  ;;  %v931_v52 = vmul.f32 %v8159_v35, %v919_v59 }
 0x136   : >> { %v933_v60 = vadd.f32 %v930_v49, %v904_v53  ;;  %v934_v19 = vadd.f32 %v931_v52, %v905_v13 }
 0x137   : >> { %v946_v61 = vpop.permute.xlu1 %945  ;;  %v924_v62 = vpop.permute.xlu0 %923 }
 0x138   : >> { %v962_v55 = vmul.f32 %v8164_v45, %v946_v61  ;;  %v932_v18 = vmul.f32 %v8159_v35, %v924_v62  ;;  %v8180_v62 = vld [vmem:[%s12501_s1 + $0x13] ss:$0 sm:$0xff] }
 0x13a   : >> { %v965_v61 = vadd.f32 %v962_v55, %v933_v60 }
 0x13b   : >> { %v11259_v63 = vpop.permute.xlu1 %955  ;;  %v951_v3 = vpop.permute.xlu0 %950 }
 0x13c   : >> { %v963_v14 = vmul.f32 %v8164_v45, %v951_v3  ;;  %v964_v22 = vmul.f32 %v8164_v45, %v11259_v63 }
 0x13e   : >> { %v966_v27 = vadd.f32 %v963_v14, %v934_v19  ;;  %v8201_v19 = vld [vmem:[%s12501_s1 + $0x18] ss:$0 sm:$0xff] }
 0x13f   : >> { %v980_v4 = vpop.permute.xlu1 %979  ;;  %v975_v5 = vpop.permute.xlu0 %974 }
 0x140   : >> { %v991_v59 = vmul.f32 %v8168_v44, %v975_v5  ;;  %v992_v20 = vmul.f32 %v8168_v44, %v980_v4  ;;  %v935_v4 = vadd.f32 %v932_v18, %v906_v57 }
 0x142   : >> { %v994_v5 = vadd.f32 %v991_v59, %v965_v61  ;;  %v995_v31 = vadd.f32 %v992_v20, %v966_v27  ;;  %v967_v32 = vadd.f32 %v964_v22, %v935_v4 }
 0x143   : >> { %v11261_v6 = vpop.permute.xlu1 %1003  ;;  %v11263_v7 = vpop.permute.xlu0 %984 }
 0x144   : >> { %v1020_v3 = vmul.f32 %v8172_v17, %v11261_v6  ;;  %v993_v29 = vmul.f32 %v8168_v44, %v11263_v7  ;;  %v8185_v6 = vld [vmem:[%s12501_s1 + $0x14] ss:$0 sm:$0xff] }
 0x146   : >> { %v1023_v33 = vadd.f32 %v1020_v3, %v994_v5 }
 0x147   : >> { %v11265_v8 = vpop.permute.xlu1 %1013  ;;  %v11267_v9 = vpop.permute.xlu0 %1008 }
 0x148   : >> { %v1021_v28 = vmul.f32 %v8172_v17, %v11267_v9  ;;  %v1022_v9 = vmul.f32 %v8172_v17, %v11265_v8  ;;  %v8193_v8 = vld [vmem:[%s12501_s1 + $0x16] ss:$0 sm:$0xff] }
 0x14a   : >> { %v1024_v37 = vadd.f32 %v1021_v28, %v995_v31 }
 0x14b   : >> { %v11269_v10 = vpop.permute.xlu1 %1037  ;;  %v11271_v11 = vpop.permute.xlu0 %1032 }
 0x14c   : >> { %v1049_v30 = vmul.f32 %v8176_v21, %v11271_v11  ;;  %v1050_v63 = vmul.f32 %v8176_v21, %v11269_v10  ;;  %v8189_v11 = vld [vmem:[%s12501_s1 + $0x15] ss:$0 sm:$0xff]  ;;  %v996_v10 = vadd.f32 %v993_v29, %v967_v32 }
 0x14e   : >> { %v1052_v38 = vadd.f32 %v1049_v30, %v1023_v33  ;;  %v1053_v43 = vadd.f32 %v1050_v63, %v1024_v37 }
 0x14f   : >> { %v11279_v15 = vpop.permute.xlu1 %1061  ;;  %v11281_v16 = vpop.permute.xlu0 %1042 }
 0x150   : >> { %v1078_v34 = vmul.f32 %v8180_v62, %v11279_v15  ;;  %v1051_v40 = vmul.f32 %v8176_v21, %v11281_v16  ;;  %v1025_v15 = vadd.f32 %v1022_v9, %v996_v10  ;;  %v8197_v16 = vld [vmem:[%s12501_s1 + $0x17] ss:$0 sm:$0xff] }
 0x152   : >> { %v1081_v46 = vadd.f32 %v1078_v34, %v1052_v38  ;;  %v11356_v38 = vld [vmem:[%s12504_s4] ss:$0 sm:$0xff] (%p489_p2) }
 0x153   : >> { %v11289_v25 = vpop.permute.xlu1 %1071  ;;  %v11291_v26 = vpop.permute.xlu0 %1066 }
 0x154   : >> { %v1079_v7 = vmul.f32 %v8180_v62, %v11291_v26  ;;  %v1080_v47 = vmul.f32 %v8180_v62, %v11289_v25 }
 0x156   : >> { %v1082_v50 = vadd.f32 %v1079_v7, %v1053_v43 }
 0x157   : >> { %v1099_v41 = vpop.permute.xlu1 %1098  ;;  %v1094_v39 = vpop.permute.xlu0 %1093 }
 0x158   : >> { %v1110_v42 = vmul.f32 %v8185_v6, %v1094_v39  ;;  %v1111_v45 = vmul.f32 %v8185_v6, %v1099_v41  ;;  %v1054_v39 = vadd.f32 %v1051_v40, %v1025_v15  ;;  %v11361_v40 = vld [vmem:[%s12504_s4 + $0x1] ss:$0 sm:$0xff] (%p489_p2) }
 0x15a   : >> { %v1113_v44 = vadd.f32 %v1110_v42, %v1081_v46  ;;  %v1114_v53 = vadd.f32 %v1111_v45, %v1082_v50  ;;  %v1083_v55 = vadd.f32 %v1080_v47, %v1054_v39  ;;  %v11366_v42 = vld [vmem:[%s12504_s4 + $0x2] ss:$0 sm:$0xff] (%p489_p2) }
 0x15b   : >> { %v1123_v12 = vpop.permute.xlu1 %1122  ;;  %v1104_v58 = vpop.permute.xlu0 %1103 }
 0x15c   : >> { %v1139_v26 = vmul.f32 %v8189_v11, %v1123_v12  ;;  %v1112_v41 = vmul.f32 %v8185_v6, %v1104_v58 }
 0x15e   : >> { %v1142_v13 = vadd.f32 %v1139_v26, %v1113_v44  ;;  %v1115_v18 = vadd.f32 %v1112_v41, %v1083_v55 }
 0x15f   : >> { %v1133_v23 = vpop.permute.xlu1 %1132  ;;  %v1128_v24 = vpop.permute.xlu0 %1127 }
 0x160   : >> { %v1140_v52 = vmul.f32 %v8189_v11, %v1128_v24  ;;  %v1141_v14 = vmul.f32 %v8189_v11, %v1133_v23 }
 0x162   : >> { %v1143_v56 = vadd.f32 %v1140_v52, %v1114_v53  ;;  %v1144_v58 = vadd.f32 %v1141_v14, %v1115_v18 }
 0x163   : >> { %v1157_v35 = vpop.permute.xlu1 %1156  ;;  %v1152_v36 = vpop.permute.xlu0 %1151 }
 0x164   : >> { %v1168_v51 = vmul.f32 %v8193_v8, %v1152_v36  ;;  %v1169_v54 = vmul.f32 %v8193_v8, %v1157_v35 }
 0x166   : >> { %v1171_v59 = vadd.f32 %v1168_v51, %v1142_v13  ;;  %v1172_v20 = vadd.f32 %v1169_v54, %v1143_v56 }
 0x167   : >> { %v1181_v48 = vpop.permute.xlu1 %1180  ;;  %v1162_v49 = vpop.permute.xlu0 %1161 }
 0x168   : >> { %v1197_v17 = vmul.f32 %v8197_v16, %v1181_v48  ;;  %v1170_v21 = vmul.f32 %v8193_v8, %v1162_v49 }
 0x16a   : >> { %v1200_v57 = vadd.f32 %v1197_v17, %v1171_v59  ;;  %v1173_v28 = vadd.f32 %v1170_v21, %v1144_v58 }
 0x16b   : >> { %v1191_v25 = vpop.permute.xlu1 %1190  ;;  %v1186_v12 = vpop.permute.xlu0 %1185 }
 0x16c   : >> { %v1198_v60 = vmul.f32 %v8197_v16, %v1186_v12  ;;  %v1199_v3 = vmul.f32 %v8197_v16, %v1191_v25 }
 0x16e   : >> { %v1201_v23 = vadd.f32 %v1198_v60, %v1172_v20  ;;  %v1202_v29 = vadd.f32 %v1199_v3, %v1173_v28 }
 0x16f   : >> { %v1215_v61 = vpop.permute.xlu1 %1214  ;;  %v1210_v22 = vpop.permute.xlu0 %1209 }
 0x170   : >> { %v1227_v24 = vmul.f32 %v8201_v19, %v1215_v61  ;;  %v1226_v27 = vmul.f32 %v8201_v19, %v1210_v22 }
 0x172   : >> { %v1230_v62 = vadd.f32 %v1227_v24, %v1201_v23  ;;  %v1229_v4 = vadd.f32 %v1226_v27, %v1200_v57 }
 0x173   : >> { %v1220_v5 = vpop.permute.xlu0 %1219 }
 0x174   : >> { %v1237_v30 = vadd.f32 %v11136_v0, %v1230_v62  ;;  %v1236_v31 = vadd.f32 %v11136_v0, %v1229_v4  ;;  %v1228_v63 = vmul.f32 %v8201_v19, %v1220_v5 }
 0x176   : >> { %v1240_v6 = vmax.f32 %v1237_v30, 0.0  ;;  %v1239_v32 = vmax.f32 %v1236_v31, 0.0  ;;  %v1231_v33 = vadd.f32 %v1228_v63, %v1202_v29 }
 0x178   : >> { %v1247_v9 = vmul.f32 %v11141_v1, %v1240_v6  ;;  %v1246_v34 = vmul.f32 %v11141_v1, %v1239_v32  ;;  %v1238_v35 = vadd.f32 %v11136_v0, %v1231_v33 }
 0x17a   : >> { %v1254_v36 = vadd.f32 %v11146_v2, %v1247_v9  ;;  %v1253_v37 = vadd.f32 %v11146_v2, %v1246_v34  ;;  %v1241_v7 = vmax.f32 %v1238_v35, 0.0  ;;  %491 = sbr.rel (!%p489_p2) target bundleno = 93 (0x5d), region = 183 }
 0x17c   : >> { %1259 = vst [vmem:[%s1257_s20 + $0x8] sm:$0xff] %v1254_v36  ;;  %1258 = vst [vmem:[%s1257_s20] sm:$0xff] %v1253_v37  ;;  %v1248_v11 = vmul.f32 %v11141_v1, %v1241_v7 }
 0x17e   : >> { %v1255_v10 = vadd.f32 %v11146_v2, %v1248_v11 }
 0x180   : >> { %1260 = vst [vmem:[%s1257_s20 + $0x10] sm:$0xff] %v1255_v10 }
 0x181 LB: >> { %v10200_v0 = vld [vmem:[%s12503_s3 + $0x40] sm:$0xff]   ;;  %v10202_v2 = vld [vmem:[%s12503_s3 + $0x48] sm:$0xff]   ;;  %v10204_v45 = vld [vmem:[%s12503_s3 + $0x50] sm:$0xff]   ;;  %s1270_s21 = smul.u32 24, %s10906_s18  ;;  %s1269_s18 = sadd.s32 1, %s10906_s18   ;;  %s10906_s18 = sphi %s11368_s18, %s1269_s18  }
 0x182   : >> { %v10201_v1 = vld [vmem:[%s12503_s3] sm:$0xff]   ;;  %9240 = vmatprep.subr.bf16.mxu0 %v10200_v0  ;;  %v10203_v43 = vld [vmem:[%s12503_s3 + $0x8] sm:$0xff]   ;;  %v10205_v8 = vld [vmem:[%s12503_s3 + $0x10] sm:$0xff]   ;;  %p1266_p3 = scmp.ge.s32.totalorder %s1269_s18, 20  }
 0x183   : >> { %9260 = vmatprep.subr.bf16.mxu1 %v10201_v1  ;;  %9241 = vmatpush3.bf16.msra.mxu0 %v10200_v0  ;;  %v10206_v15 = vld [vmem:[%s12503_s3 + $0x58] sm:$0xff]   ;;  %v10208_v47 = vld [vmem:[%s12503_s3 + $0x60] sm:$0xff]   ;;  %v10210_v48 = vld [vmem:[%s12503_s3 + $0x68] sm:$0xff]   ;;  %s11409_s23 = scalar_lea.vmem [#allocation2], %s1270_s21  ;;  %s12103_s19 = smov (%p1266_p3), 0  }
 0x184   : >> { %9261 = vmatpush3.bf16.msra.mxu1 %v10201_v1  ;;  %9242 = vmatprep.subr.bf16.mxu0 %v10202_v2  ;;  %v10207_v46 = vld [vmem:[%s12503_s3 + $0x18] sm:$0xff]   ;;  %v10209_v26 = vld [vmem:[%s12503_s3 + $0x20] sm:$0xff]   ;;  %v10211_v16 = vld [vmem:[%s12503_s3 + $0x28] sm:$0xff]  }
 0x185   : >> { %9262 = vmatprep.subr.bf16.mxu1 %v10203_v43  ;;  %v10212_v51 = vld [vmem:[%s12503_s3 + $0x70] sm:$0xff]   ;;  %v10214_v54 = vld [vmem:[%s12503_s3 + $0x78] sm:$0xff]   ;;  %v10216_v17 = vld [vmem:[%s12503_s3 + $0x80] sm:$0xff]  }
 0x186   : >> { %v10213_v53 = vld [vmem:[%s12503_s3 + $0x30] sm:$0xff]   ;;  %v10215_v55 = vld [vmem:[%s12503_s3 + $0x38] sm:$0xff]   ;;  %v10217_v25 = vld [vmem:[%s12503_s3 + $0xc0] sm:$0xff]  }
 0x187   : >> { %9243 = vmatpush3.bf16.msra.mxu0 %v10202_v2  ;;  %v1293_v49 = vld [vmem:[%s11409_s23 + $0x1] sm:$0xff]  ;;  %v1294_v50 = vld [vmem:[%s11409_s23 + $0x9] sm:$0xff]  ;;  %v1295_v13 = vld [vmem:[%s11409_s23 + $0x11] sm:$0xf] }
 0x188   : >> { %9263 = vmatpush3.bf16.msra.mxu1 %v10203_v43  ;;  %9244 = vmatprep.subr.bf16.mxu0 %v10204_v45  ;;  %v1272_v52 = vld [vmem:[%s11409_s23] sm:$0xff]  ;;  %v1312_v39 = vpack.c.bf16 %v1294_v50, %v1293_v49  ;;  %v1273_v44 = vld [vmem:[%s11409_s23 + $0x8] sm:$0xff]  ;;  %v1274_v14 = vld [vmem:[%s11409_s23 + $0x10] sm:$0xf]  ;;  %v1313_v12 = vpack.c.bf16 %v1295_v13, %v1295_v13 }
 0x189   : >> { %9264 = vmatprep.subr.bf16.mxu1 %v10205_v8  ;;  %v1291_v41 = vpack.c.bf16 %v1273_v44, %v1272_v52  ;;  %v1292_v56 = vpack.c.bf16 %v1274_v14, %v1274_v14  ;;  %v10218_v60 = vld [vmem:[%s12503_s3 + $0x88] sm:$0xff]   ;;  %v10220_v21 = vld [vmem:[%s12503_s3 + $0x90] sm:$0xff]   ;;  %v10222_v3 = vld [vmem:[%s12503_s3 + $0x98] sm:$0xff]  }
 0x18a   : >> { %9256 = vmatprep.mubr.bf16.mxu0 %v1312_v39  ;;  %v10219_v18 = vld [vmem:[%s12503_s3 + $0xc8] sm:$0xff]   ;;  %v10221_v61 = vld [vmem:[%s12503_s3 + $0xd0] sm:$0xff]   ;;  %v10223_v23 = vld [vmem:[%s12503_s3 + $0xd8] sm:$0xff]  }
 0x18b   : >> { %9245 = vmatpush3.bf16.msra.mxu0 %v10204_v45  ;;  %9276 = vmatprep.mubr.bf16.mxu1 %v1291_v41  ;;  %v1506_v59 = vld [vmem:[%s11409_s23 + $0x2] sm:$0xff]  ;;  %v1507_v19 = vld [vmem:[%s11409_s23 + $0xa] sm:$0xff]  ;;  %v10230_v29 = vld [vmem:[%s12503_s3 + $0xb8] sm:$0xff]  }
 0x18c   : >> { %9265 = vmatpush3.bf16.msra.mxu1 %v10205_v8  ;;  %9246 = vmatprep.subr.bf16.mxu0 %v10206_v15  ;;  %v1525_v20 = vpack.c.bf16 %v1507_v19, %v1506_v59  ;;  %v1626_v58 = vld [vmem:[%s11409_s23 + $0x3] sm:$0xff]  ;;  %v1627_v57 = vld [vmem:[%s11409_s23 + $0xb] sm:$0xff]  ;;  %v10231_v30 = vld [vmem:[%s12503_s3 + $0xf8] sm:$0xff]  }
 0x18d   : >> { %9266 = vmatprep.subr.bf16.mxu1 %v10207_v46  ;;  %v1645_v22 = vpack.c.bf16 %v1627_v57, %v1626_v58  ;;  %v10224_v24 = vld [vmem:[%s12503_s3 + $0xa0] sm:$0xff]   ;;  %v10226_v28 = vld [vmem:[%s12503_s3 + $0xa8] sm:$0xff]   ;;  %v10228_v4 = vld [vmem:[%s12503_s3 + $0xb0] sm:$0xff]  }
 0x18e   : >> { %v10225_v27 = vld [vmem:[%s12503_s3 + $0xe0] sm:$0xff]   ;;  %v10227_v62 = vld [vmem:[%s12503_s3 + $0xe8] sm:$0xff]   ;;  %v10229_v5 = vld [vmem:[%s12503_s3 + $0xf0] sm:$0xff]  }
 0x18f   : >> { %9247 = vmatpush3.bf16.msra.mxu0 %v10206_v15  ;;  %v1508_v31 = vld [vmem:[%s11409_s23 + $0x12] sm:$0xf]  ;;  %v10232_v63 = vld [vmem:[%s12503_s3 + $0x100] sm:$0xff]   ;;  %v8245_v35 = vld [vmem:[%s11409_s23 + $0x18] sm:$0xff] }
 0x190   : >> { %9267 = vmatpush3.bf16.msra.mxu1 %v10207_v46  ;;  %9248 = vmatprep.subr.bf16.mxu0 %v10208_v47  ;;  %v1628_v6 = vld [vmem:[%s11409_s23 + $0x13] sm:$0xf]  ;;  %v10233_v32 = vld [vmem:[%s12503_s3 + $0x140] sm:$0xff]   ;;  %v1526_v34 = vpack.c.bf16 %v1508_v31, %v1508_v31  ;;  %v10234_v7 = vld [vmem:[%s12503_s3 + $0x108] sm:$0xff]  }
 0x191   : >> { %9268 = vmatprep.subr.bf16.mxu1 %v10209_v26  ;;  %v1746_v33 = vld [vmem:[%s11409_s23 + $0x4] sm:$0xff]  ;;  %v1747_v9 = vld [vmem:[%s11409_s23 + $0xc] sm:$0xff]  ;;  %v1646_v36 = vpack.c.bf16 %v1628_v6, %v1628_v6  ;;  %v10238_v43 = vld [vmem:[%s12503_s3 + $0x118] sm:$0xff]  }
 0x192   : >> { %v8246_v37 = vld [vmem:[%s11409_s23 + $0x20] sm:$0xff]  ;;  %v10235_v11 = vld [vmem:[%s12503_s3 + $0x148] sm:$0xff]   ;;  %v1765_v10 = vpack.c.bf16 %v1747_v9, %v1746_v33  ;;  %v10236_v1 = vld [vmem:[%s12503_s3 + $0x110] sm:$0xff]  }
 0x193   : >> { %9249 = vmatpush3.bf16.msra.mxu0 %v10208_v47  ;;  %v1888_v0 = vpack.c.bf16 %v8246_v37, %v8245_v35  ;;  %v10237_v2 = vld [vmem:[%s12503_s3 + $0x150] sm:$0xff]   ;;  %v10239_v45 = vld [vmem:[%s12503_s3 + $0x158] sm:$0xff]   ;;  %v10240_v8 = vld [vmem:[%s12503_s3 + $0x120] sm:$0xff]  }
 0x194   : >> { %9269 = vmatpush3.bf16.msra.mxu1 %v10209_v26  ;;  %9250 = vmatprep.subr.bf16.mxu0 %v10210_v48  ;;  %v10241_v15 = vld [vmem:[%s12503_s3 + $0x160] sm:$0xff]   ;;  %v10242_v46 = vld [vmem:[%s12503_s3 + $0x128] sm:$0xff]   ;;  %v10244_v26 = vld [vmem:[%s12503_s3 + $0x130] sm:$0xff]  }
 0x195   : >> { %9270 = vmatprep.subr.bf16.mxu1 %v10211_v16  ;;  %v10243_v47 = vld [vmem:[%s12503_s3 + $0x168] sm:$0xff]   ;;  %v10246_v49 = vld [vmem:[%s12503_s3 + $0x138] sm:$0xff]   ;;  %v1748_v52 = vld [vmem:[%s11409_s23 + $0x14] sm:$0xf] }
 0x196   : >> { %v10247_v50 = vld [vmem:[%s12503_s3 + $0x178] sm:$0xff]   ;;  %v8247_v39 = vld [vmem:[%s11409_s23 + $0x28] sm:$0xf]  ;;  %v10249_v44 = vld [vmem:[%s12503_s3 + $0x1c0] sm:$0xff]  }
 0x197   : >> { %9251 = vmatpush3.bf16.msra.mxu0 %v10210_v48  ;;  %v10245_v48 = vld [vmem:[%s12503_s3 + $0x170] sm:$0xff]   ;;  %v8256_v41 = vld [vmem:[%s11409_s23 + $0x19] sm:$0xff]  ;;  %v8268_v13 = vld [vmem:[%s11409_s23 + $0x22] sm:$0xff] }
 0x198   : >> { %9271 = vmatpush3.bf16.msra.mxu1 %v10211_v16  ;;  %9252 = vmatprep.subr.bf16.mxu0 %v10212_v51  ;;  %v10248_v16 = vld [vmem:[%s12503_s3 + $0x180] sm:$0xff]   ;;  %v10250_v14 = vld [vmem:[%s12503_s3 + $0x188] sm:$0xff]   ;;  %v10255_v59 = vld [vmem:[%s12503_s3 + $0x1d8] sm:$0xff]  }
 0x199   : >> { %9272 = vmatprep.subr.bf16.mxu1 %v10213_v53  ;;  %v10256_v19 = vld [vmem:[%s12503_s3 + $0x1a0] sm:$0xff]   ;;  %v10259_v58 = vld [vmem:[%s12503_s3 + $0x1e8] sm:$0xff]   ;;  %v10260_v57 = vld [vmem:[%s12503_s3 + $0x1b0] sm:$0xff]  }
 0x19a   : >> { %v8290_v31 = vld [vmem:[%s11409_s23 + $0x24] sm:$0xff]  ;;  %v10268_v9 = vld [vmem:[%s12503_s3 + $0x210] sm:$0xff]   ;;  %v10270_v35 = vld [vmem:[%s12503_s3 + $0x218] sm:$0xff]  }
 0x19b   : >> { %9253 = vmatpush3.bf16.msra.mxu0 %v10212_v51  ;;  %v8257_v51 = vld [vmem:[%s11409_s23 + $0x21] sm:$0xff] }
 0x19c   : >> { %9273 = vmatpush3.bf16.msra.mxu1 %v10213_v53  ;;  %9254 = vmatprep.subr.bf16.mxu0 %v10214_v54  ;;  %v1766_v53 = vpack.c.bf16 %v1748_v52, %v1748_v52  ;;  %v10267_v6 = vld [vmem:[%s12503_s3 + $0x248] sm:$0xff]   ;;  %v10272_v37 = vld [vmem:[%s12503_s3 + $0x220] sm:$0xff]  }
 0x19d   : >> { %9274 = vmatprep.subr.bf16.mxu1 %v10215_v55  ;;  %v8312_v52 = vld [vmem:[%s11409_s23 + $0x39] sm:$0xff] }
 0x19f   : >> { %9255 = vmatpush3.bf16.msra.mxu0 %v10214_v54  ;;  %v8267_v54 = vld [vmem:[%s11409_s23 + $0x1a] sm:$0xff] }
 0x1a0   : >> { %9275 = vmatpush3.bf16.msra.mxu1 %v10215_v55  ;;  %9280 = vmatprep.subr.bf16.mxu0 %v10216_v17  ;;  %v1889_v55 = vpack.c.bf16 %v8247_v39, %v8247_v39  ;;  %v10283_v39 = vld [vmem:[%s12503_s3 + $0x2c8] sm:$0xff]  }
 0x1a1   : >> { %9300 = vmatprep.subr.bf16.mxu1 %v10217_v25 }
 0x1a2   : >> { %9257 = vmatmul.mubr.bf16.vlgmr.msra.gmra.mrb[0].mxu0 %v1313_v12  ;;  %v2128_v12 = vpack.c.bf16 %v8268_v13, %v8267_v54  ;;  %v10286_v54 = vld [vmem:[%s12503_s3 + $0x298] sm:$0xff]   ;;  %v10288_v13 = vld [vmem:[%s12503_s3 + $0x2a0] sm:$0xff]  }
 0x1a3   : >> { %9277 = vmatmul.mubr.bf16.vlgmr.msra.gmra.mrb[0].mxu1 %v1292_v56  ;;  %9281 = vmatpush3.bf16.msra.mxu0 %v10216_v17  ;;  %v10251_v17 = vld [vmem:[%s12503_s3 + $0x1c8] sm:$0xff]   ;;  %v10252_v56 = vld [vmem:[%s12503_s3 + $0x190] sm:$0xff]  }
 0x1a4   : >> { %9301 = vmatpush3.bf16.msra.mxu1 %v10217_v25  ;;  %9282 = vmatprep.subr.bf16.mxu0 %v10218_v60  ;;  %v2008_v25 = vpack.c.bf16 %v8257_v51, %v8256_v41  ;;  %v10284_v51 = vld [vmem:[%s12503_s3 + $0x290] sm:$0xff]  }
 0x1a5   : >> { %9302 = vmatprep.subr.bf16.mxu1 %v10219_v18  ;;  %9296 = vmatprep.mubr.bf16.mxu0 %v1525_v20  ;;  %v10257_v20 = vld [vmem:[%s12503_s3 + $0x1e0] sm:$0xff]  }
 0x1a6   : >> { %9316 = vmatprep.mubr.bf16.mxu1 %v1645_v22  ;;  %v10262_v22 = vld [vmem:[%s12503_s3 + $0x1b8] sm:$0xff]  }
 0x1a7   : >> { %9283 = vmatpush3.bf16.msra.mxu0 %v10218_v60  ;;  %v10253_v60 = vld [vmem:[%s12503_s3 + $0x1d0] sm:$0xff]  }
 0x1a8   : >> { %9303 = vmatpush3.bf16.msra.mxu1 %v10219_v18  ;;  %9284 = vmatprep.subr.bf16.mxu0 %v10220_v21  ;;  %v10254_v18 = vld [vmem:[%s12503_s3 + $0x198] sm:$0xff]  }
 0x1a9   : >> { %9304 = vmatprep.subr.bf16.mxu1 %v10221_v61 }
 0x1ab   : >> { %9285 = vmatpush3.bf16.msra.mxu0 %v10220_v21  ;;  %v10258_v21 = vld [vmem:[%s12503_s3 + $0x1a8] sm:$0xff]  }
 0x1ac   : >> { %9305 = vmatpush3.bf16.msra.mxu1 %v10221_v61  ;;  %9286 = vmatprep.subr.bf16.mxu0 %v10222_v3  ;;  %v10261_v61 = vld [vmem:[%s12503_s3 + $0x1f0] sm:$0xff]  }
 0x1ad   : >> { %9306 = vmatprep.subr.bf16.mxu1 %v10223_v23 }
 0x1af   : >> { %9287 = vmatpush3.bf16.msra.mxu0 %v10222_v3  ;;  %v10263_v3 = vld [vmem:[%s12503_s3 + $0x1f8] sm:$0xff]  }
 0x1b0   : >> { %9307 = vmatpush3.bf16.msra.mxu1 %v10223_v23  ;;  %9288 = vmatprep.subr.bf16.mxu0 %v10224_v24  ;;  %v8258_v23 = vld [vmem:[%s11409_s23 + $0x29] sm:$0xf] }
 0x1b1   : >> { %9308 = vmatprep.subr.bf16.mxu1 %v10225_v27 }
 0x1b3   : >> { %9289 = vmatpush3.bf16.msra.mxu0 %v10224_v24  ;;  %v10264_v24 = vld [vmem:[%s12503_s3 + $0x200] sm:$0xff]  }
 0x1b4   : >> { %9309 = vmatpush3.bf16.msra.mxu1 %v10225_v27  ;;  %9290 = vmatprep.subr.bf16.mxu0 %v10226_v28  ;;  %v8269_v27 = vld [vmem:[%s11409_s23 + $0x2a] sm:$0xf] }
 0x1b5   : >> { %9310 = vmatprep.subr.bf16.mxu1 %v10227_v62 }
 0x1b7   : >> { %9291 = vmatpush3.bf16.msra.mxu0 %v10226_v28  ;;  %v10265_v28 = vld [vmem:[%s12503_s3 + $0x240] sm:$0xff]  }
 0x1b8   : >> { %9311 = vmatpush3.bf16.msra.mxu1 %v10227_v62  ;;  %9292 = vmatprep.subr.bf16.mxu0 %v10228_v4  ;;  %v2009_v62 = vpack.c.bf16 %v8258_v23, %v8258_v23  ;;  %v8334_v23 = vld [vmem:[%s11409_s23 + $0x3b] sm:$0xff] }
 0x1b9   : >> { %9312 = vmatprep.subr.bf16.mxu1 %v10229_v5 }
 0x1bb   : >> { %9293 = vmatpush3.bf16.msra.mxu0 %v10228_v4  ;;  %v8278_v4 = vld [vmem:[%s11409_s23 + $0x1b] sm:$0xff] }
 0x1bc   : >> { %9313 = vmatpush3.bf16.msra.mxu1 %v10229_v5  ;;  %9294 = vmatprep.subr.bf16.mxu0 %v10230_v29  ;;  %v8279_v5 = vld [vmem:[%s11409_s23 + $0x23] sm:$0xff] }
 0x1bd   : >> { %9314 = vmatprep.subr.bf16.mxu1 %v10231_v30 }
 0x1bf   : >> { %9295 = vmatpush3.bf16.msra.mxu0 %v10230_v29  ;;  %v8289_v29 = vld [vmem:[%s11409_s23 + $0x1c] sm:$0xff] }
 0x1c0   : >> { %9315 = vmatpush3.bf16.msra.mxu1 %v10231_v30  ;;  %9320 = vmatprep.subr.bf16.mxu0 %v10232_v63  ;;  %v2129_v30 = vpack.c.bf16 %v8269_v27, %v8269_v27  ;;  %v2368_v33 = vpack.c.bf16 %v8290_v31, %v8289_v29  ;;  %v10299_v27 = vld [vmem:[%s12503_s3 + $0x348] sm:$0xff]   ;;  %v10302_v29 = vld [vmem:[%s12503_s3 + $0x318] sm:$0xff]   ;;  %v10304_v31 = vld [vmem:[%s12503_s3 + $0x320] sm:$0xff]  }
 0x1c1   : >> { %9340 = vmatprep.subr.bf16.mxu1 %v10233_v32 }
 0x1c2   : >> { %9297 = vmatmul.mubr.bf16.vlgmr.msra.gmra.mrb[4].mxu0 %v1526_v34  ;;  %v10269_v34 = vld [vmem:[%s12503_s3 + $0x250] sm:$0xff]  }
 0x1c3   : >> { %9321 = vmatpush3.bf16.msra.mxu0 %v10232_v63  ;;  %9317 = vmatmul.mubr.bf16.vlgmr.msra.gmra.mrb[4].mxu1 %v1646_v36  ;;  %v10266_v63 = vld [vmem:[%s12503_s3 + $0x208] sm:$0xff]   ;;  %v10271_v36 = vld [vmem:[%s12503_s3 + $0x258] sm:$0xff]  }
 0x1c4   : >> { %9341 = vmatpush3.bf16.msra.mxu1 %v10233_v32  ;;  %9322 = vmatprep.subr.bf16.mxu0 %v10234_v7  ;;  %v2248_v32 = vpack.c.bf16 %v8279_v5, %v8278_v4  ;;  %v10300_v4 = vld [vmem:[%s12503_s3 + $0x310] sm:$0xff]  }
 0x1c5   : >> { %9342 = vmatprep.subr.bf16.mxu1 %v10235_v11  ;;  %9336 = vmatprep.mubr.bf16.mxu0 %v1765_v10  ;;  %v10275_v10 = vld [vmem:[%s12503_s3 + $0x268] sm:$0xff]   ;;  %v10301_v5 = vld [vmem:[%s12503_s3 + $0x350] sm:$0xff]  }
 0x1c6   : >> { %9356 = vmatprep.mubr.bf16.mxu1 %v1888_v0  ;;  %v10276_v0 = vld [vmem:[%s12503_s3 + $0x230] sm:$0xff]  }
 0x1c7   : >> { %9323 = vmatpush3.bf16.msra.mxu0 %v10234_v7  ;;  %v10273_v7 = vld [vmem:[%s12503_s3 + $0x260] sm:$0xff]  }
 0x1c8   : >> { %9343 = vmatpush3.bf16.msra.mxu1 %v10235_v11  ;;  %9324 = vmatprep.subr.bf16.mxu0 %v10236_v1  ;;  %v10274_v11 = vld [vmem:[%s12503_s3 + $0x228] sm:$0xff]  }
 0x1c9   : >> { %9344 = vmatprep.subr.bf16.mxu1 %v10237_v2 }
 0x1cb   : >> { %9325 = vmatpush3.bf16.msra.mxu0 %v10236_v1  ;;  %v10277_v1 = vld [vmem:[%s12503_s3 + $0x270] sm:$0xff]  }
 0x1cc   : >> { %9345 = vmatpush3.bf16.msra.mxu1 %v10237_v2  ;;  %9326 = vmatprep.subr.bf16.mxu0 %v10238_v43  ;;  %v10278_v2 = vld [vmem:[%s12503_s3 + $0x238] sm:$0xff]  }
 0x1cd   : >> { %9346 = vmatprep.subr.bf16.mxu1 %v10239_v45 }
 0x1cf   : >> { %9327 = vmatpush3.bf16.msra.mxu0 %v10238_v43  ;;  %v10279_v43 = vld [vmem:[%s12503_s3 + $0x278] sm:$0xff]  }
 0x1d0   : >> { %9347 = vmatpush3.bf16.msra.mxu1 %v10239_v45  ;;  %9328 = vmatprep.subr.bf16.mxu0 %v10240_v8  ;;  %v8280_v45 = vld [vmem:[%s11409_s23 + $0x2b] sm:$0xf] }
 0x1d1   : >> { %9348 = vmatprep.subr.bf16.mxu1 %v10241_v15 }
 0x1d3   : >> { %9329 = vmatpush3.bf16.msra.mxu0 %v10240_v8  ;;  %v10280_v8 = vld [vmem:[%s12503_s3 + $0x280] sm:$0xff]  }
 0x1d4   : >> { %9349 = vmatpush3.bf16.msra.mxu1 %v10241_v15  ;;  %9330 = vmatprep.subr.bf16.mxu0 %v10242_v46  ;;  %v8291_v15 = vld [vmem:[%s11409_s23 + $0x2c] sm:$0xf] }
 0x1d5   : >> { %9350 = vmatprep.subr.bf16.mxu1 %v10243_v47 }
 0x1d7   : >> { %9331 = vmatpush3.bf16.msra.mxu0 %v10242_v46  ;;  %v10281_v46 = vld [vmem:[%s12503_s3 + $0x2c0] sm:$0xff]  }
 0x1d8   : >> { %9351 = vmatpush3.bf16.msra.mxu1 %v10243_v47  ;;  %9332 = vmatprep.subr.bf16.mxu0 %v10244_v26  ;;  %v8300_v47 = vld [vmem:[%s11409_s23 + $0x30] sm:$0xff] }
 0x1d9   : >> { %9352 = vmatprep.subr.bf16.mxu1 %v10245_v48 }
 0x1db   : >> { %9333 = vmatpush3.bf16.msra.mxu0 %v10244_v26  ;;  %v8301_v26 = vld [vmem:[%s11409_s23 + $0x38] sm:$0xff] }
 0x1dc   : >> { %9353 = vmatpush3.bf16.msra.mxu1 %v10245_v48  ;;  %9334 = vmatprep.subr.bf16.mxu0 %v10246_v49  ;;  %v2249_v48 = vpack.c.bf16 %v8280_v45, %v8280_v45  ;;  %v8356_v45 = vld [vmem:[%s11409_s23 + $0x50] sm:$0xff] }
 0x1dd   : >> { %9354 = vmatprep.subr.bf16.mxu1 %v10247_v50 }
 0x1df   : >> { %9335 = vmatpush3.bf16.msra.mxu0 %v10246_v49  ;;  %v8311_v49 = vld [vmem:[%s11409_s23 + $0x31] sm:$0xff] }
 0x1e0   : >> { %9355 = vmatpush3.bf16.msra.mxu1 %v10247_v50  ;;  %9360 = vmatprep.subr.bf16.mxu0 %v10248_v16  ;;  %v2369_v50 = vpack.c.bf16 %v8291_v15, %v8291_v15  ;;  %v2611_v41 = vpack.c.bf16 %v8312_v52, %v8311_v49  ;;  %v10315_v15 = vld [vmem:[%s12503_s3 + $0x3c8] sm:$0xff]   ;;  %v10318_v49 = vld [vmem:[%s12503_s3 + $0x398] sm:$0xff]   ;;  %v10320_v52 = vld [vmem:[%s12503_s3 + $0x3a0] sm:$0xff]  }
 0x1e1   : >> { %9380 = vmatprep.subr.bf16.mxu1 %v10249_v44 }
 0x1e2   : >> { %9337 = vmatmul.mubr.bf16.vlgmr.msra.gmra.mrb[8].mxu0 %v1766_v53  ;;  %v10285_v53 = vld [vmem:[%s12503_s3 + $0x2d0] sm:$0xff]  }
 0x1e3   : >> { %9361 = vmatpush3.bf16.msra.mxu0 %v10248_v16  ;;  %9357 = vmatmul.mubr.bf16.vlgmr.msra.gmra.mrb[8].mxu1 %v1889_v55  ;;  %v10282_v16 = vld [vmem:[%s12503_s3 + $0x288] sm:$0xff]   ;;  %v10287_v55 = vld [vmem:[%s12503_s3 + $0x2d8] sm:$0xff]  }
 0x1e4   : >> { %9381 = vmatpush3.bf16.msra.mxu1 %v10249_v44  ;;  %9362 = vmatprep.subr.bf16.mxu0 %v10250_v14  ;;  %v2491_v44 = vpack.c.bf16 %v8301_v26, %v8300_v47  ;;  %v10316_v26 = vld [vmem:[%s12503_s3 + $0x390] sm:$0xff]  }
 0x1e5   : >> { %9382 = vmatprep.subr.bf16.mxu1 %v10251_v17  ;;  %9376 = vmatprep.mubr.bf16.mxu0 %v2008_v25  ;;  %v10291_v25 = vld [vmem:[%s12503_s3 + $0x2e8] sm:$0xff]  }
 0x1e6   : >> { %9396 = vmatprep.mubr.bf16.mxu1 %v2128_v12  ;;  %v10292_v12 = vld [vmem:[%s12503_s3 + $0x2b0] sm:$0xff]  }
 0x1e7   : >> { %9363 = vmatpush3.bf16.msra.mxu0 %v10250_v14  ;;  %v10289_v14 = vld [vmem:[%s12503_s3 + $0x2e0] sm:$0xff]  }
 0x1e8   : >> { %9383 = vmatpush3.bf16.msra.mxu1 %v10251_v17  ;;  %9364 = vmatprep.subr.bf16.mxu0 %v10252_v56  ;;  %v10290_v17 = vld [vmem:[%s12503_s3 + $0x2a8] sm:$0xff]  }
 0x1e9   : >> { %9384 = vmatprep.subr.bf16.mxu1 %v10253_v60 }
 0x1eb   : >> { %9365 = vmatpush3.bf16.msra.mxu0 %v10252_v56  ;;  %v10293_v56 = vld [vmem:[%s12503_s3 + $0x2f0] sm:$0xff]  }
 0x1ec   : >> { %9385 = vmatpush3.bf16.msra.mxu1 %v10253_v60  ;;  %9366 = vmatprep.subr.bf16.mxu0 %v10254_v18  ;;  %v10294_v60 = vld [vmem:[%s12503_s3 + $0x2b8] sm:$0xff]  }
 0x1ed   : >> { %9386 = vmatprep.subr.bf16.mxu1 %v10255_v59 }
 0x1ef   : >> { %9367 = vmatpush3.bf16.msra.mxu0 %v10254_v18  ;;  %v10295_v18 = vld [vmem:[%s12503_s3 + $0x2f8] sm:$0xff]  }
 0x1f0   : >> { %9387 = vmatpush3.bf16.msra.mxu1 %v10255_v59  ;;  %9368 = vmatprep.subr.bf16.mxu0 %v10256_v19  ;;  %v8302_v59 = vld [vmem:[%s11409_s23 + $0x40] sm:$0xf] }
 0x1f1   : >> { %9388 = vmatprep.subr.bf16.mxu1 %v10257_v20 }
 0x1f3   : >> { %9369 = vmatpush3.bf16.msra.mxu0 %v10256_v19  ;;  %v10296_v19 = vld [vmem:[%s12503_s3 + $0x300] sm:$0xff]  }
 0x1f4   : >> { %9389 = vmatpush3.bf16.msra.mxu1 %v10257_v20  ;;  %9370 = vmatprep.subr.bf16.mxu0 %v10258_v21  ;;  %v8313_v20 = vld [vmem:[%s11409_s23 + $0x41] sm:$0xf] }
 0x1f5   : >> { %9390 = vmatprep.subr.bf16.mxu1 %v10259_v58 }
 0x1f7   : >> { %9371 = vmatpush3.bf16.msra.mxu0 %v10258_v21  ;;  %v10297_v21 = vld [vmem:[%s12503_s3 + $0x340] sm:$0xff]  }
 0x1f8   : >> { %9391 = vmatpush3.bf16.msra.mxu1 %v10259_v58  ;;  %9372 = vmatprep.subr.bf16.mxu0 %v10260_v57  ;;  %v8322_v58 = vld [vmem:[%s11409_s23 + $0x32] sm:$0xff] }
 0x1f9   : >> { %9392 = vmatprep.subr.bf16.mxu1 %v10261_v61 }
 0x1fb   : >> { %9373 = vmatpush3.bf16.msra.mxu0 %v10260_v57  ;;  %v8323_v57 = vld [vmem:[%s11409_s23 + $0x3a] sm:$0xff] }
 0x1fc   : >> { %9393 = vmatpush3.bf16.msra.mxu1 %v10261_v61  ;;  %9374 = vmatprep.subr.bf16.mxu0 %v10262_v22  ;;  %v2492_v61 = vpack.c.bf16 %v8302_v59, %v8302_v59  ;;  %v10327_v59 = vld [vmem:[%s12503_s3 + $0x3f8] sm:$0xff]  }
 0x1fd   : >> { %9394 = vmatprep.subr.bf16.mxu1 %v10263_v3 }
 0x1ff   : >> { %9375 = vmatpush3.bf16.msra.mxu0 %v10262_v22  ;;  %v2612_v22 = vpack.c.bf16 %v8313_v20, %v8313_v20  ;;  %v8346_v20 = vld [vmem:[%s11409_s23 + $0x44] sm:$0xf] }
 0x200   : >> { %9395 = vmatpush3.bf16.msra.mxu1 %v10263_v3  ;;  %9400 = vmatprep.subr.bf16.mxu0 %v10264_v24  ;;  %v8333_v3 = vld [vmem:[%s11409_s23 + $0x33] sm:$0xff] }
 0x201   : >> { %9420 = vmatprep.subr.bf16.mxu1 %v10265_v28 }
 0x202   : >> { %9377 = vmatmul.mubr.bf16.vlgmr.msra.gmra.mrb[12].mxu0 %v2009_v62  ;;  %v2851_v62 = vpack.c.bf16 %v8334_v23, %v8333_v3  ;;  %v8367_v3 = vld [vmem:[%s11409_s23 + $0x51] sm:$0xff] }
 0x203   : >> { %9401 = vmatpush3.bf16.msra.mxu0 %v10264_v24  ;;  %9397 = vmatmul.mubr.bf16.vlgmr.msra.gmra.mrb[12].mxu1 %v2129_v30  ;;  %v10298_v24 = vld [vmem:[%s12503_s3 + $0x308] sm:$0xff]   ;;  %v10303_v30 = vld [vmem:[%s12503_s3 + $0x358] sm:$0xff]  }
 0x204   : >> { %9421 = vmatpush3.bf16.msra.mxu1 %v10265_v28  ;;  %9402 = vmatprep.subr.bf16.mxu0 %v10266_v63  ;;  %v2731_v28 = vpack.c.bf16 %v8323_v57, %v8322_v58  ;;  %v8357_v58 = vld [vmem:[%s11409_s23 + $0x58] sm:$0xf]  ;;  %v10329_v57 = vld [vmem:[%s12503_s3 + $0x440] sm:$0xff]  }
 0x205   : >> { %9422 = vmatprep.subr.bf16.mxu1 %v10267_v6  ;;  %9416 = vmatprep.mubr.bf16.mxu0 %v2248_v32  ;;  %v10307_v32 = vld [vmem:[%s12503_s3 + $0x368] sm:$0xff]   ;;  %v3095_v23 = vpack.c.bf16 %v8357_v58, %v8357_v58 }
 0x206   : >> { %9436 = vmatprep.mubr.bf16.mxu1 %v2368_v33  ;;  %v10308_v33 = vld [vmem:[%s12503_s3 + $0x330] sm:$0xff]  }
 0x207   : >> { %9403 = vmatpush3.bf16.msra.mxu0 %v10266_v63  ;;  %v10305_v63 = vld [vmem:[%s12503_s3 + $0x360] sm:$0xff]  }
 0x208   : >> { %9423 = vmatpush3.bf16.msra.mxu1 %v10267_v6  ;;  %9404 = vmatprep.subr.bf16.mxu0 %v10268_v9  ;;  %v10306_v6 = vld [vmem:[%s12503_s3 + $0x328] sm:$0xff]  }
 0x209   : >> { %9424 = vmatprep.subr.bf16.mxu1 %v10269_v34 }
 0x20b   : >> { %9405 = vmatpush3.bf16.msra.mxu0 %v10268_v9  ;;  %v10309_v9 = vld [vmem:[%s12503_s3 + $0x370] sm:$0xff]  }
 0x20c   : >> { %9425 = vmatpush3.bf16.msra.mxu1 %v10269_v34  ;;  %9406 = vmatprep.subr.bf16.mxu0 %v10270_v35  ;;  %v10310_v34 = vld [vmem:[%s12503_s3 + $0x338] sm:$0xff]  }
 0x20d   : >> { %9426 = vmatprep.subr.bf16.mxu1 %v10271_v36 }
 0x20f   : >> { %9407 = vmatpush3.bf16.msra.mxu0 %v10270_v35  ;;  %v10311_v35 = vld [vmem:[%s12503_s3 + $0x378] sm:$0xff]  }
 0x210   : >> { %9427 = vmatpush3.bf16.msra.mxu1 %v10271_v36  ;;  %9408 = vmatprep.subr.bf16.mxu0 %v10272_v37  ;;  %v8324_v36 = vld [vmem:[%s11409_s23 + $0x42] sm:$0xf] }
 0x211   : >> { %9428 = vmatprep.subr.bf16.mxu1 %v10273_v7 }
 0x213   : >> { %9409 = vmatpush3.bf16.msra.mxu0 %v10272_v37  ;;  %v10312_v37 = vld [vmem:[%s12503_s3 + $0x380] sm:$0xff]  }
 0x214   : >> { %9429 = vmatpush3.bf16.msra.mxu1 %v10273_v7  ;;  %9410 = vmatprep.subr.bf16.mxu0 %v10274_v11  ;;  %v8335_v7 = vld [vmem:[%s11409_s23 + $0x43] sm:$0xf] }
 0x215   : >> { %9430 = vmatprep.subr.bf16.mxu1 %v10275_v10 }
 0x217   : >> { %9411 = vmatpush3.bf16.msra.mxu0 %v10274_v11  ;;  %v10313_v11 = vld [vmem:[%s12503_s3 + $0x3c0] sm:$0xff]  }
 0x218   : >> { %9431 = vmatpush3.bf16.msra.mxu1 %v10275_v10  ;;  %9412 = vmatprep.subr.bf16.mxu0 %v10276_v0  ;;  %v2732_v10 = vpack.c.bf16 %v8324_v36, %v8324_v36  ;;  %v10341_v36 = vld [vmem:[%s12503_s3 + $0x470] sm:$0xff]  }
 0x219   : >> { %9432 = vmatprep.subr.bf16.mxu1 %v10277_v1 }
 0x21b   : >> { %9413 = vmatpush3.bf16.msra.mxu0 %v10276_v0  ;;  %v8344_v0 = vld [vmem:[%s11409_s23 + $0x34] sm:$0xff] }
 0x21c   : >> { %9433 = vmatpush3.bf16.msra.mxu1 %v10277_v1  ;;  %9414 = vmatprep.subr.bf16.mxu0 %v10278_v2  ;;  %v8345_v1 = vld [vmem:[%s11409_s23 + $0x3c] sm:$0xff] }
 0x21d   : >> { %9434 = vmatprep.subr.bf16.mxu1 %v10279_v43 }
 0x21f   : >> { %9415 = vmatpush3.bf16.msra.mxu0 %v10278_v2  ;;  %v2852_v2 = vpack.c.bf16 %v8335_v7, %v8335_v7 }
 0x220   : >> { %9435 = vmatpush3.bf16.msra.mxu1 %v10279_v43  ;;  %9440 = vmatprep.subr.bf16.mxu0 %v10280_v8  ;;  %v8355_v43 = vld [vmem:[%s11409_s23 + $0x48] sm:$0xff] }
 0x221   : >> { %9460 = vmatprep.subr.bf16.mxu1 %v10281_v46  ;;  %v3094_v47 = vpack.c.bf16 %v8356_v45, %v8355_v43 }
 0x222   : >> { %9417 = vmatmul.mubr.bf16.vlgmr.msra.gmra.mrb[16].mxu0 %v2249_v48  ;;  %v10317_v48 = vld [vmem:[%s12503_s3 + $0x3d0] sm:$0xff]  }
 0x223   : >> { %9441 = vmatpush3.bf16.msra.mxu0 %v10280_v8  ;;  %9437 = vmatmul.mubr.bf16.vlgmr.msra.gmra.mrb[16].mxu1 %v2369_v50  ;;  %v10314_v8 = vld [vmem:[%s12503_s3 + $0x388] sm:$0xff]   ;;  %v10319_v50 = vld [vmem:[%s12503_s3 + $0x3d8] sm:$0xff]  }
 0x224   : >> { %9461 = vmatpush3.bf16.msra.mxu1 %v10281_v46  ;;  %9442 = vmatprep.subr.bf16.mxu0 %v10282_v16  ;;  %v2971_v46 = vpack.c.bf16 %v8345_v1, %v8344_v0 }
 0x225   : >> { %9462 = vmatprep.subr.bf16.mxu1 %v10283_v39  ;;  %9456 = vmatprep.mubr.bf16.mxu0 %v2491_v44  ;;  %v10323_v44 = vld [vmem:[%s12503_s3 + $0x3e8] sm:$0xff]  }
 0x226   : >> { %9476 = vmatprep.mubr.bf16.mxu1 %v2611_v41  ;;  %v10324_v41 = vld [vmem:[%s12503_s3 + $0x3b0] sm:$0xff]  }
 0x227   : >> { %9443 = vmatpush3.bf16.msra.mxu0 %v10282_v16  ;;  %v10321_v16 = vld [vmem:[%s12503_s3 + $0x3e0] sm:$0xff]  }
 0x228   : >> { %9463 = vmatpush3.bf16.msra.mxu1 %v10283_v39  ;;  %9444 = vmatprep.subr.bf16.mxu0 %v10284_v51  ;;  %v10322_v39 = vld [vmem:[%s12503_s3 + $0x3a8] sm:$0xff]  }
 0x229   : >> { %9464 = vmatprep.subr.bf16.mxu1 %v10285_v53 }
 0x22b   : >> { %9445 = vmatpush3.bf16.msra.mxu0 %v10284_v51 }
 0x22c   : >> { %9465 = vmatpush3.bf16.msra.mxu1 %v10285_v53  ;;  %9446 = vmatprep.subr.bf16.mxu0 %v10286_v54  ;;  %v10325_v53 = vld [vmem:[%s12503_s3 + $0x3f0] sm:$0xff]  }
 0x22d   : >> { %9466 = vmatprep.subr.bf16.mxu1 %v10287_v55 }
 0x22f   : >> { %9447 = vmatpush3.bf16.msra.mxu0 %v10286_v54 }
 0x230   : >> { %9467 = vmatpush3.bf16.msra.mxu1 %v10287_v55  ;;  %9448 = vmatprep.subr.bf16.mxu0 %v10288_v13 }
 0x231   : >> { %9468 = vmatprep.subr.bf16.mxu1 %v10289_v14 }
 0x233   : >> { %9449 = vmatpush3.bf16.msra.mxu0 %v10288_v13 }
 0x234   : >> { %9469 = vmatpush3.bf16.msra.mxu1 %v10289_v14  ;;  %9450 = vmatprep.subr.bf16.mxu0 %v10290_v17 }
 0x235   : >> { %9470 = vmatprep.subr.bf16.mxu1 %v10291_v25 }
 0x237   : >> { %9451 = vmatpush3.bf16.msra.mxu0 %v10290_v17 }
 0x238   : >> { %9471 = vmatpush3.bf16.msra.mxu1 %v10291_v25  ;;  %9452 = vmatprep.subr.bf16.mxu0 %v10292_v12 }
 0x239   : >> { %9472 = vmatprep.subr.bf16.mxu1 %v10293_v56 }
 0x23b   : >> { %9453 = vmatpush3.bf16.msra.mxu0 %v10292_v12 }
 0x23c   : >> { %9473 = vmatpush3.bf16.msra.mxu1 %v10293_v56  ;;  %9454 = vmatprep.subr.bf16.mxu0 %v10294_v60 }
 0x23d   : >> { %9474 = vmatprep.subr.bf16.mxu1 %v10295_v18 }
 0x23f   : >> { %9455 = vmatpush3.bf16.msra.mxu0 %v10294_v60  ;;  %v10326_v60 = vld [vmem:[%s12503_s3 + $0x3b8] sm:$0xff]  }
 0x240   : >> { %9475 = vmatpush3.bf16.msra.mxu1 %v10295_v18  ;;  %9480 = vmatprep.subr.bf16.mxu0 %v10296_v19 }
 0x241   : >> { %9500 = vmatprep.subr.bf16.mxu1 %v10297_v21 }
 0x242   : >> { %9457 = vmatmul.mubr.bf16.vlgmr.msra.gmra.mrb[20].mxu0 %v2492_v61  ;;  %v2972_v61 = vpack.c.bf16 %v8346_v20, %v8346_v20  ;;  %v10355_v20 = vld [vmem:[%s12503_s3 + $0x4e8] sm:$0xff]  }
 0x243   : >> { %9481 = vmatpush3.bf16.msra.mxu0 %v10296_v19  ;;  %9477 = vmatmul.mubr.bf16.vlgmr.msra.gmra.mrb[20].mxu1 %v2612_v22  ;;  %v8366_v22 = vld [vmem:[%s11409_s23 + $0x49] sm:$0xff] }
 0x244   : >> { %9501 = vmatpush3.bf16.msra.mxu1 %v10297_v21  ;;  %9482 = vmatprep.subr.bf16.mxu0 %v10298_v24  ;;  %v10328_v21 = vld [vmem:[%s12503_s3 + $0x400] sm:$0xff]  }
 0x245   : >> { %9502 = vmatprep.subr.bf16.mxu1 %v10299_v27  ;;  %9496 = vmatprep.mubr.bf16.mxu0 %v2731_v28  ;;  %v10330_v28 = vld [vmem:[%s12503_s3 + $0x408] sm:$0xff]  }
 0x246   : >> { %9516 = vmatprep.mubr.bf16.mxu1 %v2851_v62  ;;  %v10331_v62 = vld [vmem:[%s12503_s3 + $0x448] sm:$0xff]  }
 0x247   : >> { %9483 = vmatpush3.bf16.msra.mxu0 %v10298_v24  ;;  %v8377_v24 = vld [vmem:[%s11409_s23 + $0x4a] sm:$0xff] }
 0x248   : >> { %9503 = vmatpush3.bf16.msra.mxu1 %v10299_v27  ;;  %9484 = vmatprep.subr.bf16.mxu0 %v10300_v4  ;;  %v8378_v27 = vld [vmem:[%s11409_s23 + $0x52] sm:$0xff] }
 0x249   : >> { %9504 = vmatprep.subr.bf16.mxu1 %v10301_v5 }
 0x24b   : >> { %9485 = vmatpush3.bf16.msra.mxu0 %v10300_v4  ;;  %v3214_v4 = vpack.c.bf16 %v8367_v3, %v8366_v22 }
 0x24c   : >> { %9505 = vmatpush3.bf16.msra.mxu1 %v10301_v5  ;;  %9486 = vmatprep.subr.bf16.mxu0 %v10302_v29  ;;  %v3334_v5 = vpack.c.bf16 %v8378_v27, %v8377_v24 }
 0x24d   : >> { %9506 = vmatprep.subr.bf16.mxu1 %v10303_v30 }
 0x24f   : >> { %9487 = vmatpush3.bf16.msra.mxu0 %v10302_v29  ;;  %v10332_v29 = vld [vmem:[%s12503_s3 + $0x410] sm:$0xff]  }
 0x250   : >> { %9507 = vmatpush3.bf16.msra.mxu1 %v10303_v30  ;;  %9488 = vmatprep.subr.bf16.mxu0 %v10304_v31  ;;  %v10333_v30 = vld [vmem:[%s12503_s3 + $0x450] sm:$0xff]  }
 0x251   : >> { %9508 = vmatprep.subr.bf16.mxu1 %v10305_v63 }
 0x253   : >> { %9489 = vmatpush3.bf16.msra.mxu0 %v10304_v31  ;;  %v10334_v31 = vld [vmem:[%s12503_s3 + $0x418] sm:$0xff]  }
 0x254   : >> { %9509 = vmatpush3.bf16.msra.mxu1 %v10305_v63  ;;  %9490 = vmatprep.subr.bf16.mxu0 %v10306_v6  ;;  %v10335_v63 = vld [vmem:[%s12503_s3 + $0x458] sm:$0xff]  }
 0x255   : >> { %9510 = vmatprep.subr.bf16.mxu1 %v10307_v32 }
 0x257   : >> { %9491 = vmatpush3.bf16.msra.mxu0 %v10306_v6  ;;  %v10336_v6 = vld [vmem:[%s12503_s3 + $0x420] sm:$0xff]  }
 0x258   : >> { %9511 = vmatpush3.bf16.msra.mxu1 %v10307_v32  ;;  %9492 = vmatprep.subr.bf16.mxu0 %v10308_v33  ;;  %v10337_v32 = vld [vmem:[%s12503_s3 + $0x460] sm:$0xff]  }
 0x259   : >> { %9512 = vmatprep.subr.bf16.mxu1 %v10309_v9 }
 0x25b   : >> { %9493 = vmatpush3.bf16.msra.mxu0 %v10308_v33  ;;  %v10338_v33 = vld [vmem:[%s12503_s3 + $0x428] sm:$0xff]  }
 0x25c   : >> { %9513 = vmatpush3.bf16.msra.mxu1 %v10309_v9  ;;  %9494 = vmatprep.subr.bf16.mxu0 %v10310_v34  ;;  %v10339_v9 = vld [vmem:[%s12503_s3 + $0x468] sm:$0xff]  }
 0x25d   : >> { %9514 = vmatprep.subr.bf16.mxu1 %v10311_v35 }
 0x25f   : >> { %9495 = vmatpush3.bf16.msra.mxu0 %v10310_v34  ;;  %v10340_v34 = vld [vmem:[%s12503_s3 + $0x430] sm:$0xff]  }
 0x260   : >> { %9515 = vmatpush3.bf16.msra.mxu1 %v10311_v35  ;;  %9520 = vmatprep.subr.bf16.mxu0 %v10312_v37 }
 0x261   : >> { %9540 = vmatprep.subr.bf16.mxu1 %v10313_v11 }
 0x262   : >> { %9497 = vmatmul.mubr.bf16.vlgmr.msra.gmra.mrb[24].mxu0 %v2732_v10 }
 0x263   : >> { %9521 = vmatpush3.bf16.msra.mxu0 %v10312_v37  ;;  %9517 = vmatmul.mubr.bf16.vlgmr.msra.gmra.mrb[24].mxu1 %v2852_v2 }
 0x264   : >> { %9541 = vmatpush3.bf16.msra.mxu1 %v10313_v11  ;;  %9522 = vmatprep.subr.bf16.mxu0 %v10314_v8 }
 0x265   : >> { %9542 = vmatprep.subr.bf16.mxu1 %v10315_v15  ;;  %9536 = vmatprep.mubr.bf16.mxu0 %v2971_v46 }
 0x266   : >> { %9556 = vmatprep.mubr.bf16.mxu1 %v3094_v47 }
 0x267   : >> { %9523 = vmatpush3.bf16.msra.mxu0 %v10314_v8  ;;  %v10342_v8 = vld [vmem:[%s12503_s3 + $0x438] sm:$0xff]  }
 0x268   : >> { %9543 = vmatpush3.bf16.msra.mxu1 %v10315_v15  ;;  %9524 = vmatprep.subr.bf16.mxu0 %v10316_v26 }
 0x269   : >> { %9544 = vmatprep.subr.bf16.mxu1 %v10317_v48 }
 0x26b   : >> { %9525 = vmatpush3.bf16.msra.mxu0 %v10316_v26  ;;  %v10343_v26 = vld [vmem:[%s12503_s3 + $0x478] sm:$0xff]  }
 0x26c   : >> { %9545 = vmatpush3.bf16.msra.mxu1 %v10317_v48  ;;  %9526 = vmatprep.subr.bf16.mxu0 %v10318_v49 }
 0x26d   : >> { %9546 = vmatprep.subr.bf16.mxu1 %v10319_v50 }
 0x26f   : >> { %9527 = vmatpush3.bf16.msra.mxu0 %v10318_v49  ;;  %v8368_v49 = vld [vmem:[%s11409_s23 + $0x59] sm:$0xf] }
 0x270   : >> { %9547 = vmatpush3.bf16.msra.mxu1 %v10319_v50  ;;  %9528 = vmatprep.subr.bf16.mxu0 %v10320_v52  ;;  %v10344_v50 = vld [vmem:[%s12503_s3 + $0x480] sm:$0xff]  }
 0x271   : >> { %9548 = vmatprep.subr.bf16.mxu1 %v10321_v16 }
 0x273   : >> { %9529 = vmatpush3.bf16.msra.mxu0 %v10320_v52  ;;  %v8379_v52 = vld [vmem:[%s11409_s23 + $0x5a] sm:$0xf] }
 0x274   : >> { %9549 = vmatpush3.bf16.msra.mxu1 %v10321_v16  ;;  %9530 = vmatprep.subr.bf16.mxu0 %v10322_v39  ;;  %v10345_v16 = vld [vmem:[%s12503_s3 + $0x4c0] sm:$0xff]  }
 0x275   : >> { %v9258_v51 = vpop.f32.mrb[0].mxu0  ;;  %9550 = vmatprep.subr.bf16.mxu1 %v10323_v44 }
 0x276   : >> { %v9278_v54 = vpop.f32.mrb[0].mxu1  ;;  %v1396_v55 = vpop.f32.mrb[1].mxu0 }
 0x277   : >> { %v11802_v13 = vadd.f32 %v9278_v54, %v9258_v51  ;;  %v1492_v14 = vpop.f32.mrb[1].mxu1  ;;  %v9259_v17 = vpop.f32.mrb[2].mxu0  ;;  %9531 = vmatpush3.bf16.msra.mxu0 %v10322_v39  ;;  %v3215_v39 = vpack.c.bf16 %v8368_v49, %v8368_v49  ;;  %v3335_v51 = vpack.c.bf16 %v8379_v52, %v8379_v52  ;;  %v8400_v54 = vld [vmem:[%s11409_s23 + $0x54] sm:$0xff]  ;;  %v10371_v49 = vld [vmem:[%s12503_s3 + $0x568] sm:$0xff]  }
 0x278   : >> { %v11804_v25 = vadd.f32 %v1492_v14, %v1396_v55  ;;  %v9279_v12 = vpop.f32.mrb[2].mxu1  ;;  %v1399_v56 = vpop.f32.mrb[3].mxu0  ;;  %9551 = vmatpush3.bf16.msra.mxu1 %v10323_v44  ;;  %9532 = vmatprep.subr.bf16.mxu0 %v10324_v41  ;;  %v8388_v44 = vld [vmem:[%s11409_s23 + $0x4b] sm:$0xff] }
 0x279   : >> { %v1495_v18 = vpop.f32.mrb[3].mxu1  ;;  %9552 = vmatprep.subr.bf16.mxu1 %v10325_v53  ;;  %v10346_v55 = vld [vmem:[%s12503_s3 + $0x488] sm:$0xff]   ;;  %v10349_v12 = vld [vmem:[%s12503_s3 + $0x4d0] sm:$0xff]  }
 0x27a   : >> { %v11812_v19 = vadd.f32 %v1495_v18, %v1399_v56  ;;  %v10350_v56 = vld [vmem:[%s12503_s3 + $0x498] sm:$0xff]   ;;  %v10352_v18 = vld [vmem:[%s12503_s3 + $0x4a0] sm:$0xff]  }
 0x27b   : >> { %9533 = vmatpush3.bf16.msra.mxu0 %v10324_v41  ;;  %v8389_v41 = vld [vmem:[%s11409_s23 + $0x53] sm:$0xff] }
 0x27c   : >> { %9553 = vmatpush3.bf16.msra.mxu1 %v10325_v53  ;;  %9534 = vmatprep.subr.bf16.mxu0 %v10326_v60  ;;  %v8399_v53 = vld [vmem:[%s11409_s23 + $0x4c] sm:$0xff]  ;;  %v3454_v14 = vpack.c.bf16 %v8389_v41, %v8388_v44 }
 0x27d   : >> { %9554 = vmatprep.subr.bf16.mxu1 %v10327_v59  ;;  %v3574_v17 = vpack.c.bf16 %v8400_v54, %v8399_v53 }
 0x27f   : >> { %9535 = vmatpush3.bf16.msra.mxu0 %v10326_v60  ;;  %v10351_v60 = vld [vmem:[%s12503_s3 + $0x4d8] sm:$0xff]  }
 0x280   : >> { %9555 = vmatpush3.bf16.msra.mxu1 %v10327_v59  ;;  %9560 = vmatprep.subr.bf16.mxu0 %v10328_v21  ;;  %v10353_v59 = vld [vmem:[%s12503_s3 + $0x4e0] sm:$0xff]  }
 0x281   : >> { %9580 = vmatprep.subr.bf16.mxu1 %v10329_v57 }
 0x282   : >> { %9537 = vmatmul.mubr.bf16.vlgmr.msra.gmra.mrb[28].mxu0 %v2972_v61 }
 0x283   : >> { %9561 = vmatpush3.bf16.msra.mxu0 %v10328_v21  ;;  %9557 = vmatmul.mubr.bf16.vlgmr.msra.gmra.mrb[28].mxu1 %v3095_v23  ;;  %v10356_v21 = vld [vmem:[%s12503_s3 + $0x4b0] sm:$0xff]  }
 0x284   : >> { %9581 = vmatpush3.bf16.msra.mxu1 %v10329_v57  ;;  %9562 = vmatprep.subr.bf16.mxu0 %v10330_v28  ;;  %v10357_v57 = vld [vmem:[%s12503_s3 + $0x4f0] sm:$0xff]  }
 0x285   : >> { %9582 = vmatprep.subr.bf16.mxu1 %v10331_v62  ;;  %9576 = vmatprep.mubr.bf16.mxu0 %v3214_v4 }
 0x286   : >> { %9596 = vmatprep.mubr.bf16.mxu1 %v3334_v5  ;;  %v10358_v5 = vld [vmem:[%s12503_s3 + $0x4b8] sm:$0xff]  }
 0x287   : >> { %9563 = vmatpush3.bf16.msra.mxu0 %v10330_v28 }
 0x288   : >> { %9583 = vmatpush3.bf16.msra.mxu1 %v10331_v62  ;;  %9564 = vmatprep.subr.bf16.mxu0 %v10332_v29 }
 0x289   : >> { %9584 = vmatprep.subr.bf16.mxu1 %v10333_v30 }
 0x28b   : >> { %9565 = vmatpush3.bf16.msra.mxu0 %v10332_v29 }
 0x28c   : >> { %9585 = vmatpush3.bf16.msra.mxu1 %v10333_v30  ;;  %9566 = vmatprep.subr.bf16.mxu0 %v10334_v31 }
 0x28d   : >> { %9586 = vmatprep.subr.bf16.mxu1 %v10335_v63 }
 0x28f   : >> { %9567 = vmatpush3.bf16.msra.mxu0 %v10334_v31 }
 0x290   : >> { %9587 = vmatpush3.bf16.msra.mxu1 %v10335_v63  ;;  %9568 = vmatprep.subr.bf16.mxu0 %v10336_v6  ;;  %v10359_v63 = vld [vmem:[%s12503_s3 + $0x4f8] sm:$0xff]  }
 0x291   : >> { %9588 = vmatprep.subr.bf16.mxu1 %v10337_v32 }
 0x293   : >> { %9569 = vmatpush3.bf16.msra.mxu0 %v10336_v6 }
 0x294   : >> { %9589 = vmatpush3.bf16.msra.mxu1 %v10337_v32  ;;  %9570 = vmatprep.subr.bf16.mxu0 %v10338_v33  ;;  %v8390_v32 = vld [vmem:[%s11409_s23 + $0x5b] sm:$0xf] }
 0x295   : >> { %v9298_v35 = vpop.f32.mrb[4].mxu0  ;;  %9590 = vmatprep.subr.bf16.mxu1 %v10339_v9 }
 0x296   : >> { %v1625_v37 = vadd.f32 %v9298_v35, %v11802_v13  ;;  %v1609_v7 = vpop.f32.mrb[5].mxu0  ;;  %v9318_v11 = vpop.f32.mrb[4].mxu1  ;;  %v10347_v13 = vld [vmem:[%s12503_s3 + $0x4c8] sm:$0xff]   ;;  %v3455_v35 = vpack.c.bf16 %v8390_v32, %v8390_v32 }
 0x297   : >> { %v1623_v10 = vadd.f32 %v1609_v7, %v11804_v25  ;;  %v9299_v0 = vpop.f32.mrb[6].mxu0  ;;  %9571 = vmatpush3.bf16.msra.mxu0 %v10338_v33  ;;  %v1729_v1 = vpop.f32.mrb[5].mxu1  ;;  %v10348_v25 = vld [vmem:[%s12503_s3 + $0x490] sm:$0xff]   ;;  %v10360_v33 = vld [vmem:[%s12503_s3 + $0x500] sm:$0xff]   ;;  %v10387_v32 = vld [vmem:[%s12503_s3 + $0x5e8] sm:$0xff]  }
 0x298   : >> { %v11864_v2 = vadd.f32 %v9318_v11, %v1625_v37  ;;  %v1612_v43 = vpop.f32.mrb[7].mxu0  ;;  %v9319_v45 = vpop.f32.mrb[6].mxu1  ;;  %9591 = vmatpush3.bf16.msra.mxu1 %v10339_v9  ;;  %9572 = vmatprep.subr.bf16.mxu0 %v10340_v34  ;;  %v8401_v9 = vld [vmem:[%s11409_s23 + $0x5c] sm:$0xf]  ;;  %v8411_v37 = vld [vmem:[%s11409_s23 + $0x68] sm:$0xff] }
 0x299   : >> { %v1624_v15 = vadd.f32 %v1612_v43, %v11812_v19  ;;  %v11870_v46 = vadd.f32 %v1729_v1, %v1623_v10  ;;  %v1732_v47 = vpop.f32.mrb[7].mxu1  ;;  %9592 = vmatprep.subr.bf16.mxu1 %v10341_v36  ;;  %v10354_v19 = vld [vmem:[%s12503_s3 + $0x4a8] sm:$0xff]   ;;  %v3575_v7 = vpack.c.bf16 %v8401_v9, %v8401_v9  ;;  %v10364_v45 = vld [vmem:[%s12503_s3 + $0x510] sm:$0xff]  }
 0x29a   : >> { %v8421_v11 = vld [vmem:[%s11409_s23 + $0x61] sm:$0xff]  ;;  %v8422_v10 = vld [vmem:[%s11409_s23 + $0x69] sm:$0xff] }
 0x29b   : >> { %v11875_v48 = vadd.f32 %v1732_v47, %v1624_v15  ;;  %9573 = vmatpush3.bf16.msra.mxu0 %v10340_v34  ;;  %v10361_v34 = vld [vmem:[%s12503_s3 + $0x540] sm:$0xff]   ;;  %v10362_v0 = vld [vmem:[%s12503_s3 + $0x508] sm:$0xff]   ;;  %v3817_v43 = vpack.c.bf16 %v8422_v10, %v8421_v11  ;;  %v10366_v15 = vld [vmem:[%s12503_s3 + $0x518] sm:$0xff]  }
 0x29c   : >> { %9593 = vmatpush3.bf16.msra.mxu1 %v10341_v36  ;;  %9574 = vmatprep.subr.bf16.mxu0 %v10342_v8  ;;  %v8410_v36 = vld [vmem:[%s11409_s23 + $0x60] sm:$0xff]  ;;  %v10363_v1 = vld [vmem:[%s12503_s3 + $0x548] sm:$0xff]  }
 0x29d   : >> { %9594 = vmatprep.subr.bf16.mxu1 %v10343_v26  ;;  %v10368_v47 = vld [vmem:[%s12503_s3 + $0x520] sm:$0xff]  }
 0x29f   : >> { %9575 = vmatpush3.bf16.msra.mxu0 %v10342_v8  ;;  %v10365_v8 = vld [vmem:[%s12503_s3 + $0x550] sm:$0xff]  }
 0x2a0   : >> { %9595 = vmatpush3.bf16.msra.mxu1 %v10343_v26  ;;  %9600 = vmatprep.subr.bf16.mxu0 %v10344_v50  ;;  %v10369_v26 = vld [vmem:[%s12503_s3 + $0x560] sm:$0xff]  }
 0x2a1   : >> { %9620 = vmatprep.subr.bf16.mxu1 %v10345_v16 }
 0x2a2   : >> { %9577 = vmatmul.mubr.bf16.vlgmr.msra.gmra.mrb[32].mxu0 %v3215_v39 }
 0x2a3   : >> { %9601 = vmatpush3.bf16.msra.mxu0 %v10344_v50  ;;  %9597 = vmatmul.mubr.bf16.vlgmr.msra.gmra.mrb[32].mxu1 %v3335_v51  ;;  %v10372_v50 = vld [vmem:[%s12503_s3 + $0x530] sm:$0xff]  }
 0x2a4   : >> { %9621 = vmatpush3.bf16.msra.mxu1 %v10345_v16  ;;  %9602 = vmatprep.subr.bf16.mxu0 %v10346_v55  ;;  %v10373_v16 = vld [vmem:[%s12503_s3 + $0x570] sm:$0xff]  }
 0x2a5   : >> { %9622 = vmatprep.subr.bf16.mxu1 %v10347_v13  ;;  %9616 = vmatprep.mubr.bf16.mxu0 %v3454_v14 }
 0x2a6   : >> { %9636 = vmatprep.mubr.bf16.mxu1 %v3574_v17  ;;  %v10374_v17 = vld [vmem:[%s12503_s3 + $0x538] sm:$0xff]  }
 0x2a7   : >> { %9603 = vmatpush3.bf16.msra.mxu0 %v10346_v55 }
 0x2a8   : >> { %9623 = vmatpush3.bf16.msra.mxu1 %v10347_v13  ;;  %9604 = vmatprep.subr.bf16.mxu0 %v10348_v25 }
 0x2a9   : >> { %9624 = vmatprep.subr.bf16.mxu1 %v10349_v12 }
 0x2ab   : >> { %9605 = vmatpush3.bf16.msra.mxu0 %v10348_v25 }
 0x2ac   : >> { %9625 = vmatpush3.bf16.msra.mxu1 %v10349_v12  ;;  %9606 = vmatprep.subr.bf16.mxu0 %v10350_v56 }
 0x2ad   : >> { %9626 = vmatprep.subr.bf16.mxu1 %v10351_v60 }
 0x2af   : >> { %9607 = vmatpush3.bf16.msra.mxu0 %v10350_v56 }
 0x2b0   : >> { %9627 = vmatpush3.bf16.msra.mxu1 %v10351_v60  ;;  %9608 = vmatprep.subr.bf16.mxu0 %v10352_v18  ;;  %v10375_v60 = vld [vmem:[%s12503_s3 + $0x578] sm:$0xff]  }
 0x2b1   : >> { %9628 = vmatprep.subr.bf16.mxu1 %v10353_v59 }
 0x2b3   : >> { %9609 = vmatpush3.bf16.msra.mxu0 %v10352_v18 }
 0x2b4   : >> { %9629 = vmatpush3.bf16.msra.mxu1 %v10353_v59  ;;  %9610 = vmatprep.subr.bf16.mxu0 %v10354_v19  ;;  %v8412_v59 = vld [vmem:[%s11409_s23 + $0x70] sm:$0xf] }
 0x2b5   : >> { %v9338_v58 = vpop.f32.mrb[8].mxu0  ;;  %9630 = vmatprep.subr.bf16.mxu1 %v10355_v20 }
 0x2b6   : >> { %v1865_v61 = vadd.f32 %v9338_v58, %v11864_v2  ;;  %v1849_v22 = vpop.f32.mrb[9].mxu0  ;;  %v9358_v3 = vpop.f32.mrb[8].mxu1  ;;  %v3697_v2 = vpack.c.bf16 %v8411_v37, %v8410_v36  ;;  %v3698_v58 = vpack.c.bf16 %v8412_v59, %v8412_v59 }
 0x2b7   : >> { %v1863_v23 = vadd.f32 %v1849_v22, %v11870_v46  ;;  %v9339_v24 = vpop.f32.mrb[10].mxu0  ;;  %9611 = vmatpush3.bf16.msra.mxu0 %v10354_v19  ;;  %v1972_v27 = vpop.f32.mrb[9].mxu1  ;;  %v10367_v46 = vld [vmem:[%s12503_s3 + $0x558] sm:$0xff]   ;;  %v10376_v19 = vld [vmem:[%s12503_s3 + $0x580] sm:$0xff]  }
 0x2b8   : >> { %v11927_v28 = vadd.f32 %v9358_v3, %v1865_v61  ;;  %v1852_v62 = vpop.f32.mrb[11].mxu0  ;;  %v9359_v4 = vpop.f32.mrb[10].mxu1  ;;  %9631 = vmatpush3.bf16.msra.mxu1 %v10355_v20  ;;  %9612 = vmatprep.subr.bf16.mxu0 %v10356_v21  ;;  %v8423_v20 = vld [vmem:[%s11409_s23 + $0x71] sm:$0xf]  ;;  %v8443_v3 = vld [vmem:[%s11409_s23 + $0x63] sm:$0xff] }
 0x2b9   : >> { %v1864_v29 = vadd.f32 %v1852_v62, %v11875_v48  ;;  %v11933_v30 = vadd.f32 %v1972_v27, %v1863_v23  ;;  %v1975_v31 = vpop.f32.mrb[11].mxu1  ;;  %9632 = vmatprep.subr.bf16.mxu1 %v10357_v57  ;;  %v10370_v48 = vld [vmem:[%s12503_s3 + $0x528] sm:$0xff]   ;;  %v3818_v22 = vpack.c.bf16 %v8423_v20, %v8423_v20  ;;  %v10380_v4 = vld [vmem:[%s12503_s3 + $0x590] sm:$0xff]  }
 0x2ba   : >> { %v8433_v61 = vld [vmem:[%s11409_s23 + $0x6a] sm:$0xff] }
 0x2bb   : >> { %v11938_v6 = vadd.f32 %v1975_v31, %v1864_v29  ;;  %9613 = vmatpush3.bf16.msra.mxu0 %v10356_v21  ;;  %v10377_v21 = vld [vmem:[%s12503_s3 + $0x5c0] sm:$0xff]   ;;  %v8444_v23 = vld [vmem:[%s11409_s23 + $0x6b] sm:$0xff]  ;;  %v10382_v29 = vld [vmem:[%s12503_s3 + $0x598] sm:$0xff]  }
 0x2bc   : >> { %9633 = vmatpush3.bf16.msra.mxu1 %v10357_v57  ;;  %9614 = vmatprep.subr.bf16.mxu0 %v10358_v5  ;;  %v8432_v57 = vld [vmem:[%s11409_s23 + $0x62] sm:$0xff]  ;;  %v4057_v62 = vpack.c.bf16 %v8444_v23, %v8443_v3  ;;  %v8456_v3 = vld [vmem:[%s11409_s23 + $0x74] sm:$0xf] }
 0x2bd   : >> { %9634 = vmatprep.subr.bf16.mxu1 %v10359_v63  ;;  %v10378_v24 = vld [vmem:[%s12503_s3 + $0x588] sm:$0xff]   ;;  %v10384_v31 = vld [vmem:[%s12503_s3 + $0x5a0] sm:$0xff]   ;;  %v4178_v23 = vpack.c.bf16 %v8456_v3, %v8456_v3 }
 0x2be   : >> { %v10379_v27 = vld [vmem:[%s12503_s3 + $0x5c8] sm:$0xff]  }
 0x2bf   : >> { %9615 = vmatpush3.bf16.msra.mxu0 %v10358_v5  ;;  %v10381_v5 = vld [vmem:[%s12503_s3 + $0x5d0] sm:$0xff]  }
 0x2c0   : >> { %9635 = vmatpush3.bf16.msra.mxu1 %v10359_v63  ;;  %9640 = vmatprep.subr.bf16.mxu0 %v10360_v33  ;;  %v10385_v63 = vld [vmem:[%s12503_s3 + $0x5e0] sm:$0xff]  }
 0x2c1   : >> { %9660 = vmatprep.subr.bf16.mxu1 %v10361_v34 }
 0x2c2   : >> { %9617 = vmatmul.mubr.bf16.vlgmr.msra.gmra.mrb[36].mxu0 %v3455_v35 }
 0x2c3   : >> { %9641 = vmatpush3.bf16.msra.mxu0 %v10360_v33  ;;  %9637 = vmatmul.mubr.bf16.vlgmr.msra.gmra.mrb[36].mxu1 %v3575_v7  ;;  %v10388_v33 = vld [vmem:[%s12503_s3 + $0x5b0] sm:$0xff]  }
 0x2c4   : >> { %9661 = vmatpush3.bf16.msra.mxu1 %v10361_v34  ;;  %9642 = vmatprep.subr.bf16.mxu0 %v10362_v0  ;;  %v10389_v34 = vld [vmem:[%s12503_s3 + $0x5f0] sm:$0xff]  }
 0x2c5   : >> { %9662 = vmatprep.subr.bf16.mxu1 %v10363_v1  ;;  %9656 = vmatprep.mubr.bf16.mxu0 %v3697_v2 }
 0x2c6   : >> { %9676 = vmatprep.mubr.bf16.mxu1 %v3817_v43  ;;  %v10390_v43 = vld [vmem:[%s12503_s3 + $0x5b8] sm:$0xff]  }
 0x2c7   : >> { %9643 = vmatpush3.bf16.msra.mxu0 %v10362_v0 }
 0x2c8   : >> { %9663 = vmatpush3.bf16.msra.mxu1 %v10363_v1  ;;  %9644 = vmatprep.subr.bf16.mxu0 %v10364_v45 }
 0x2c9   : >> { %9664 = vmatprep.subr.bf16.mxu1 %v10365_v8 }
 0x2cb   : >> { %9645 = vmatpush3.bf16.msra.mxu0 %v10364_v45 }
 0x2cc   : >> { %9665 = vmatpush3.bf16.msra.mxu1 %v10365_v8  ;;  %9646 = vmatprep.subr.bf16.mxu0 %v10366_v15 }
 0x2cd   : >> { %9666 = vmatprep.subr.bf16.mxu1 %v10367_v46 }
 0x2cf   : >> { %9647 = vmatpush3.bf16.msra.mxu0 %v10366_v15 }
 0x2d0   : >> { %9667 = vmatpush3.bf16.msra.mxu1 %v10367_v46  ;;  %9648 = vmatprep.subr.bf16.mxu0 %v10368_v47  ;;  %v10391_v46 = vld [vmem:[%s12503_s3 + $0x5f8] sm:$0xff]  }
 0x2d1   : >> { %9668 = vmatprep.subr.bf16.mxu1 %v10369_v26 }
 0x2d3   : >> { %9649 = vmatpush3.bf16.msra.mxu0 %v10368_v47 }
 0x2d4   : >> { %9669 = vmatpush3.bf16.msra.mxu1 %v10369_v26  ;;  %9650 = vmatprep.subr.bf16.mxu0 %v10370_v48  ;;  %v8434_v26 = vld [vmem:[%s11409_s23 + $0x72] sm:$0xf] }
 0x2d5   : >> { %v9378_v52 = vpop.f32.mrb[12].mxu0  ;;  %9670 = vmatprep.subr.bf16.mxu1 %v10371_v49 }
 0x2d6   : >> { %v2108_v39 = vadd.f32 %v9378_v52, %v11927_v28  ;;  %v2092_v44 = vpop.f32.mrb[13].mxu0  ;;  %v9398_v41 = vpop.f32.mrb[12].mxu1  ;;  %v3937_v28 = vpack.c.bf16 %v8433_v61, %v8432_v57  ;;  %v8455_v52 = vld [vmem:[%s11409_s23 + $0x6c] sm:$0xff] }
 0x2d7   : >> { %v2106_v51 = vadd.f32 %v2092_v44, %v11933_v30  ;;  %v9379_v53 = vpop.f32.mrb[14].mxu0  ;;  %9651 = vmatpush3.bf16.msra.mxu0 %v10370_v48  ;;  %v2212_v54 = vpop.f32.mrb[13].mxu1  ;;  %v10383_v30 = vld [vmem:[%s12503_s3 + $0x5d8] sm:$0xff]   ;;  %v10392_v48 = vld [vmem:[%s12503_s3 + $0x600] sm:$0xff]   ;;  %v10393_v44 = vld [vmem:[%s12503_s3 + $0x608] sm:$0xff]  }
 0x2d8   : >> { %v11990_v55 = vadd.f32 %v9398_v41, %v2108_v39  ;;  %v2095_v13 = vpop.f32.mrb[15].mxu0  ;;  %v9399_v14 = vpop.f32.mrb[14].mxu1  ;;  %9671 = vmatpush3.bf16.msra.mxu1 %v10371_v49  ;;  %9652 = vmatprep.subr.bf16.mxu0 %v10372_v50  ;;  %v8445_v49 = vld [vmem:[%s11409_s23 + $0x73] sm:$0xf]  ;;  %v10395_v53 = vld [vmem:[%s12503_s3 + $0x618] sm:$0xff]  }
 0x2d9   : >> { %v2107_v25 = vadd.f32 %v2095_v13, %v11938_v6  ;;  %v11996_v12 = vadd.f32 %v2212_v54, %v2106_v51  ;;  %v2215_v56 = vpop.f32.mrb[15].mxu1  ;;  %9672 = vmatprep.subr.bf16.mxu1 %v10373_v16  ;;  %v10386_v6 = vld [vmem:[%s12503_s3 + $0x5a8] sm:$0xff]   ;;  %v4058_v39 = vpack.c.bf16 %v8445_v49, %v8445_v49  ;;  %v10394_v51 = vld [vmem:[%s12503_s3 + $0x610] sm:$0xff]   ;;  %v10396_v54 = vld [vmem:[%s12503_s3 + $0x620] sm:$0xff]  }
 0x2da   : >> { %v10398_v13 = vld [vmem:[%s12503_s3 + $0x630] sm:$0xff]  }
 0x2db   : >> { %v12001_v18 = vadd.f32 %v2215_v56, %v2107_v25  ;;  %9653 = vmatpush3.bf16.msra.mxu0 %v10372_v50  ;;  %v8454_v50 = vld [vmem:[%s11409_s23 + $0x64] sm:$0xff]  ;;  %s4302_s23 = scalar_lea.vmem [#allocation3], %s1270_s21 }
 0x2dc   : >> { %9673 = vmatpush3.bf16.msra.mxu1 %v10373_v16  ;;  %9654 = vmatprep.subr.bf16.mxu0 %v10374_v17  ;;  %v3938_v16 = vpack.c.bf16 %v8434_v26, %v8434_v26  ;;  %v4177_v41 = vpack.c.bf16 %v8455_v52, %v8454_v50 }
 0x2dd   : >> { %9674 = vmatprep.subr.bf16.mxu1 %v10375_v60 }
 0x2df   : >> { %9655 = vmatpush3.bf16.msra.mxu0 %v10374_v17 }
 0x2e0   : >> { %9675 = vmatpush3.bf16.msra.mxu1 %v10375_v60  ;;  %9680 = vmatprep.subr.bf16.mxu0 %v10376_v19 }
 0x2e1   : >> { %9700 = vmatprep.subr.bf16.mxu1 %v10377_v21 }
 0x2e2   : >> { %9657 = vmatmul.mubr.bf16.vlgmr.msra.gmra.mrb[40].mxu0 %v3698_v58 }
 0x2e3   : >> { %9681 = vmatpush3.bf16.msra.mxu0 %v10376_v19  ;;  %9677 = vmatmul.mubr.bf16.vlgmr.msra.gmra.mrb[40].mxu1 %v3818_v22 }
 0x2e4   : >> { %9701 = vmatpush3.bf16.msra.mxu1 %v10377_v21  ;;  %9682 = vmatprep.subr.bf16.mxu0 %v10378_v24  ;;  %v10399_v21 = vld [vmem:[%s12503_s3 + $0x638] sm:$0xff]  }
 0x2e5   : >> { %9702 = vmatprep.subr.bf16.mxu1 %v10379_v27  ;;  %9696 = vmatprep.mubr.bf16.mxu0 %v3937_v28 }
 0x2e6   : >> { %9716 = vmatprep.mubr.bf16.mxu1 %v4057_v62 }
 0x2e7   : >> { %9683 = vmatpush3.bf16.msra.mxu0 %v10378_v24 }
 0x2e8   : >> { %9703 = vmatpush3.bf16.msra.mxu1 %v10379_v27  ;;  %9684 = vmatprep.subr.bf16.mxu0 %v10380_v4 }
 0x2e9   : >> { %9704 = vmatprep.subr.bf16.mxu1 %v10381_v5 }
 0x2eb   : >> { %9685 = vmatpush3.bf16.msra.mxu0 %v10380_v4 }
 0x2ec   : >> { %9705 = vmatpush3.bf16.msra.mxu1 %v10381_v5  ;;  %9686 = vmatprep.subr.bf16.mxu0 %v10382_v29 }
 0x2ed   : >> { %9706 = vmatprep.subr.bf16.mxu1 %v10383_v30 }
 0x2ef   : >> { %9687 = vmatpush3.bf16.msra.mxu0 %v10382_v29 }
 0x2f0   : >> { %9707 = vmatpush3.bf16.msra.mxu1 %v10383_v30  ;;  %9688 = vmatprep.subr.bf16.mxu0 %v10384_v31 }
 0x2f1   : >> { %9708 = vmatprep.subr.bf16.mxu1 %v10385_v63 }
 0x2f3   : >> { %9689 = vmatpush3.bf16.msra.mxu0 %v10384_v31 }
 0x2f4   : >> { %9709 = vmatpush3.bf16.msra.mxu1 %v10385_v63  ;;  %9690 = vmatprep.subr.bf16.mxu0 %v10386_v6 }
 0x2f5   : >> { %v9418_v9 = vpop.f32.mrb[16].mxu0  ;;  %9710 = vmatprep.subr.bf16.mxu1 %v10387_v32 }
 0x2f6   : >> { %v2348_v35 = vadd.f32 %v9418_v9, %v11990_v55  ;;  %v2332_v36 = vpop.f32.mrb[17].mxu0  ;;  %v9438_v37 = vpop.f32.mrb[16].mxu1  ;;  %v10397_v55 = vld [vmem:[%s12503_s3 + $0x628] sm:$0xff]  }
 0x2f7   : >> { %v2346_v7 = vadd.f32 %v2332_v36, %v11996_v12  ;;  %v9419_v11 = vpop.f32.mrb[18].mxu0  ;;  %9691 = vmatpush3.bf16.msra.mxu0 %v10386_v6  ;;  %v2452_v10 = vpop.f32.mrb[17].mxu1 }
 0x2f8   : >> { %v2468_v0 = vadd.f32 %v9438_v37, %v2348_v35  ;;  %v2335_v1 = vpop.f32.mrb[19].mxu0  ;;  %v9439_v2 = vpop.f32.mrb[18].mxu1  ;;  %9711 = vmatpush3.bf16.msra.mxu1 %v10387_v32  ;;  %9692 = vmatprep.subr.bf16.mxu0 %v10388_v33 }
 0x2f9   : >> { %v2347_v45 = vadd.f32 %v2335_v1, %v12001_v18  ;;  %v2466_v8 = vadd.f32 %v2452_v10, %v2346_v7  ;;  %v2455_v15 = vpop.f32.mrb[19].mxu1  ;;  %9712 = vmatprep.subr.bf16.mxu1 %v10389_v34 }
 0x2fb   : >> { %v2467_v47 = vadd.f32 %v2455_v15, %v2347_v45  ;;  %9693 = vmatpush3.bf16.msra.mxu0 %v10388_v33 }
 0x2fc   : >> { %9713 = vmatpush3.bf16.msra.mxu1 %v10389_v34  ;;  %9694 = vmatprep.subr.bf16.mxu0 %v10390_v43 }
 0x2fd   : >> { %9714 = vmatprep.subr.bf16.mxu1 %v10391_v46 }
 0x2ff   : >> { %9695 = vmatpush3.bf16.msra.mxu0 %v10390_v43 }
 0x300   : >> { %9715 = vmatpush3.bf16.msra.mxu1 %v10391_v46  ;;  %9720 = vmatprep.subr.bf16.mxu0 %v10392_v48 }
 0x302   : >> { %9697 = vmatmul.mubr.bf16.vlgmr.msra.gmra.mrb[44].mxu0 %v3938_v16 }
 0x303   : >> { %9721 = vmatpush3.bf16.msra.mxu0 %v10392_v48  ;;  %9717 = vmatmul.mubr.bf16.vlgmr.msra.gmra.mrb[44].mxu1 %v4058_v39 }
 0x304   : >> { %9722 = vmatprep.subr.bf16.mxu0 %v10393_v44  ;;  %9736 = vmatprep.mubr.bf16.mxu0 %v4177_v41 }
 0x307   : >> { %9723 = vmatpush3.bf16.msra.mxu0 %v10393_v44 }
 0x308   : >> { %9724 = vmatprep.subr.bf16.mxu0 %v10394_v51 }
 0x30b   : >> { %9725 = vmatpush3.bf16.msra.mxu0 %v10394_v51 }
 0x30c   : >> { %9726 = vmatprep.subr.bf16.mxu0 %v10395_v53 }
 0x30f   : >> { %9727 = vmatpush3.bf16.msra.mxu0 %v10395_v53 }
 0x310   : >> { %9728 = vmatprep.subr.bf16.mxu0 %v10396_v54 }
 0x313   : >> { %9729 = vmatpush3.bf16.msra.mxu0 %v10396_v54 }
 0x314   : >> { %9730 = vmatprep.subr.bf16.mxu0 %v10397_v55 }
 0x315   : >> { %v9458_v14 = vpop.f32.mrb[20].mxu0 }
 0x316   : >> { %v2591_v17 = vadd.f32 %v9458_v14, %v2468_v0  ;;  %v2575_v25 = vpop.f32.mrb[21].mxu0  ;;  %v9478_v12 = vpop.f32.mrb[20].mxu1 }
 0x317   : >> { %v2589_v56 = vadd.f32 %v2575_v25, %v2466_v8  ;;  %v9459_v60 = vpop.f32.mrb[22].mxu0  ;;  %9731 = vmatpush3.bf16.msra.mxu0 %v10397_v55  ;;  %v2695_v18 = vpop.f32.mrb[21].mxu1 }
 0x318   : >> { %v2711_v59 = vadd.f32 %v9478_v12, %v2591_v17  ;;  %v2578_v19 = vpop.f32.mrb[23].mxu0  ;;  %v9479_v20 = vpop.f32.mrb[22].mxu1  ;;  %9732 = vmatprep.subr.bf16.mxu0 %v10398_v13 }
 0x319   : >> { %v2590_v58 = vadd.f32 %v2578_v19, %v2467_v47  ;;  %v2709_v57 = vadd.f32 %v2695_v18, %v2589_v56  ;;  %v2698_v61 = vpop.f32.mrb[23].mxu1 }
 0x31b   : >> { %v2710_v22 = vadd.f32 %v2698_v61, %v2590_v58  ;;  %9733 = vmatpush3.bf16.msra.mxu0 %v10398_v13 }
 0x31c   : >> { %9734 = vmatprep.subr.bf16.mxu0 %v10399_v21 }
 0x31f   : >> { %9735 = vmatpush3.bf16.msra.mxu0 %v10399_v21 }
 0x322   : >> { %9737 = vmatmul.mubr.bf16.vlgmr.msra.gmra.mrb[48].mxu0 %v4178_v23 }
 0x335   : >> { %v9498_v24 = vpop.f32.mrb[24].mxu0 }
 0x336   : >> { %v2831_v27 = vadd.f32 %v9498_v24, %v2711_v59  ;;  %v2815_v28 = vpop.f32.mrb[25].mxu0  ;;  %v9518_v62 = vpop.f32.mrb[24].mxu1 }
 0x337   : >> { %v2829_v4 = vadd.f32 %v2815_v28, %v2709_v57  ;;  %v9499_v5 = vpop.f32.mrb[26].mxu0  ;;  %v2935_v29 = vpop.f32.mrb[25].mxu1 }
 0x338   : >> { %v2951_v30 = vadd.f32 %v9518_v62, %v2831_v27  ;;  %v2818_v31 = vpop.f32.mrb[27].mxu0  ;;  %v9519_v63 = vpop.f32.mrb[26].mxu1 }
 0x339   : >> { %v2830_v6 = vadd.f32 %v2818_v31, %v2710_v22  ;;  %v2949_v32 = vadd.f32 %v2935_v29, %v2829_v4  ;;  %v2938_v33 = vpop.f32.mrb[27].mxu1 }
 0x33b   : >> { %v2950_v9 = vadd.f32 %v2938_v33, %v2830_v6 }
 0x355   : >> { %v9538_v34 = vpop.f32.mrb[28].mxu0 }
 0x356   : >> { %v3071_v35 = vadd.f32 %v9538_v34, %v2951_v30  ;;  %v3055_v36 = vpop.f32.mrb[29].mxu0  ;;  %v9558_v37 = vpop.f32.mrb[28].mxu1 }
 0x357   : >> { %v3069_v7 = vadd.f32 %v3055_v36, %v2949_v32  ;;  %v9539_v11 = vpop.f32.mrb[30].mxu0  ;;  %v3178_v10 = vpop.f32.mrb[29].mxu1 }
 0x358   : >> { %v3194_v0 = vadd.f32 %v9558_v37, %v3071_v35  ;;  %v3058_v1 = vpop.f32.mrb[31].mxu0  ;;  %v9559_v2 = vpop.f32.mrb[30].mxu1 }
 0x359   : >> { %v3070_v43 = vadd.f32 %v3058_v1, %v2950_v9  ;;  %v3192_v45 = vadd.f32 %v3178_v10, %v3069_v7  ;;  %v3181_v8 = vpop.f32.mrb[31].mxu1 }
 0x35b   : >> { %v3193_v15 = vadd.f32 %v3181_v8, %v3070_v43 }
 0x375   : >> { %v9578_v46 = vpop.f32.mrb[32].mxu0 }
 0x376   : >> { %v3314_v47 = vadd.f32 %v9578_v46, %v3194_v0  ;;  %v3298_v26 = vpop.f32.mrb[33].mxu0  ;;  %v9598_v48 = vpop.f32.mrb[32].mxu1 }
 0x377   : >> { %v3312_v49 = vadd.f32 %v3298_v26, %v3192_v45  ;;  %v9579_v50 = vpop.f32.mrb[34].mxu0  ;;  %v3418_v52 = vpop.f32.mrb[33].mxu1 }
 0x378   : >> { %v3434_v16 = vadd.f32 %v9598_v48, %v3314_v47  ;;  %v3301_v39 = vpop.f32.mrb[35].mxu0  ;;  %v9599_v44 = vpop.f32.mrb[34].mxu1 }
 0x379   : >> { %v3313_v41 = vadd.f32 %v3301_v39, %v3193_v15  ;;  %v3432_v51 = vadd.f32 %v3418_v52, %v3312_v49  ;;  %v3421_v53 = vpop.f32.mrb[35].mxu1 }
 0x37b   : >> { %v3433_v54 = vadd.f32 %v3421_v53, %v3313_v41 }
 0x395   : >> { %v9618_v55 = vpop.f32.mrb[36].mxu0 }
 0x396   : >> { %v3554_v13 = vadd.f32 %v9618_v55, %v3434_v16  ;;  %v3538_v14 = vpop.f32.mrb[37].mxu0  ;;  %v9638_v17 = vpop.f32.mrb[36].mxu1 }
 0x397   : >> { %v3552_v25 = vadd.f32 %v3538_v14, %v3432_v51  ;;  %v9619_v12 = vpop.f32.mrb[38].mxu0  ;;  %v3658_v56 = vpop.f32.mrb[37].mxu1 }
 0x398   : >> { %v3674_v60 = vadd.f32 %v9638_v17, %v3554_v13  ;;  %v3541_v18 = vpop.f32.mrb[39].mxu0  ;;  %v9639_v59 = vpop.f32.mrb[38].mxu1 }
 0x399   : >> { %v3553_v19 = vadd.f32 %v3541_v18, %v3433_v54  ;;  %v3672_v20 = vadd.f32 %v3658_v56, %v3552_v25  ;;  %v3661_v21 = vpop.f32.mrb[39].mxu1 }
 0x39b   : >> { %v3673_v58 = vadd.f32 %v3661_v21, %v3553_v19 }
 0x3b5   : >> { %v9658_v57 = vpop.f32.mrb[40].mxu0 }
 0x3b6   : >> { %v3797_v61 = vadd.f32 %v9658_v57, %v3674_v60  ;;  %v3781_v22 = vpop.f32.mrb[41].mxu0  ;;  %v9678_v3 = vpop.f32.mrb[40].mxu1 }
 0x3b7   : >> { %v3795_v23 = vadd.f32 %v3781_v22, %v3672_v20  ;;  %v9659_v24 = vpop.f32.mrb[42].mxu0  ;;  %v3901_v27 = vpop.f32.mrb[41].mxu1 }
 0x3b8   : >> { %v3917_v28 = vadd.f32 %v9678_v3, %v3797_v61  ;;  %v3784_v62 = vpop.f32.mrb[43].mxu0  ;;  %v9679_v4 = vpop.f32.mrb[42].mxu1 }
 0x3b9   : >> { %v3796_v5 = vadd.f32 %v3784_v62, %v3673_v58  ;;  %v3915_v29 = vadd.f32 %v3901_v27, %v3795_v23  ;;  %v3904_v30 = vpop.f32.mrb[43].mxu1 }
 0x3bb   : >> { %v3916_v31 = vadd.f32 %v3904_v30, %v3796_v5 }
 0x3d5   : >> { %v9698_v63 = vpop.f32.mrb[44].mxu0 }
 0x3d6   : >> { %v4037_v6 = vadd.f32 %v9698_v63, %v3917_v28  ;;  %v4021_v32 = vpop.f32.mrb[45].mxu0  ;;  %v9718_v33 = vpop.f32.mrb[44].mxu1 }
 0x3d7   : >> { %v4035_v9 = vadd.f32 %v4021_v32, %v3915_v29  ;;  %v9699_v34 = vpop.f32.mrb[46].mxu0  ;;  %v4141_v35 = vpop.f32.mrb[45].mxu1 }
 0x3d8   : >> { %v4157_v36 = vadd.f32 %v9718_v33, %v4037_v6  ;;  %v4024_v37 = vpop.f32.mrb[47].mxu0  ;;  %v9719_v7 = vpop.f32.mrb[46].mxu1 }
 0x3d9   : >> { %v4036_v11 = vadd.f32 %v4024_v37, %v3916_v31  ;;  %v4155_v10 = vadd.f32 %v4141_v35, %v4035_v9  ;;  %v4144_v0 = vpop.f32.mrb[47].mxu1 }
 0x3db   : >> { %v4156_v1 = vadd.f32 %v4144_v0, %v4036_v11 }
 0x3f5   : >> { %v9738_v2 = vpop.f32.mrb[48].mxu0 }
 0x3f6   : >> { %v4277_v43 = vadd.f32 %v9738_v2, %v4157_v36  ;;  %v4261_v45 = vpop.f32.mrb[49].mxu0 }
 0x3f7   : >> { %v4275_v8 = vadd.f32 %v4261_v45, %v4155_v10  ;;  %v9739_v15 = vpop.f32.mrb[50].mxu0 }
 0x3f8   : >> { %v4284_v46 = vadd.f32 %v11356_v38, %v4277_v43  ;;  %v4264_v47 = vpop.f32.mrb[51].mxu0 }
 0x3f9   : >> { %v4282_v26 = vadd.f32 %v11356_v38, %v4275_v8  ;;  %v4276_v48 = vadd.f32 %v4264_v47, %v4156_v1 }
 0x3fa   : >> { %v4287_v49 = vmax.f32 %v4284_v46, 0.0 }
 0x3fb   : >> { %v4285_v50 = vmax.f32 %v4282_v26, 0.0  ;;  %v4283_v52 = vadd.f32 %v11356_v38, %v4276_v48 }
 0x3fc   : >> { %v4294_v16 = vmul.f32 %v11361_v40, %v4287_v49 }
 0x3fd   : >> { %v4292_v39 = vmul.f32 %v11361_v40, %v4285_v50  ;;  %v4286_v44 = vmax.f32 %v4283_v52, 0.0  ;;  %1268 = sbr.rel (!%p1266_p3) target bundleno = 385 (0x181), region = 194 }
 0x3fe   : >> { %v4301_v41 = vadd.f32 %v11366_v42, %v4294_v16 }
 0x3ff   : >> { %v4299_v51 = vadd.f32 %v11366_v42, %v4292_v39  ;;  %v4293_v53 = vmul.f32 %v11361_v40, %v4286_v44 }
 0x400   : >> { %4305 = vst [vmem:[%s4302_s23 + $0x10] sm:$0xf] %v4301_v41 }
 0x401   : >> { %4303 = vst [vmem:[%s4302_s23] sm:$0xff] %v4299_v51  ;;  %v4300_v54 = vadd.f32 %v11366_v42, %v4293_v53 }
 0x403   : >> { %4304 = vst [vmem:[%s4302_s23 + $0x8] sm:$0xff] %v4300_v54 }
 0x404 LB: >> { %s8469_s21 = smul.u32 48, %s10910_s19  ;;  %vm4318_vm0 = vcmask 1041408   ;;  %s8470_s18 = sshll.u32 %s10910_s19, 4  ;;  %s10910_s19 = sphi %s12103_s19, %s4311_s19  }
 0x405   : >> { %s12142_s22 = scalar_lea.vmem [#allocation4], %s8470_s18  ;;  %s4311_s19 = sadd.s32 1, %s10910_s19  }
 0x406   : >> { %s12109_s20 = scalar_lea.vmem [#allocation3], %s8469_s21  ;;  %p4308_p5 = scmp.ge.s32.totalorder %s4311_s19, 10  }
 0x407   : > { %s12174_s29 = smov (%p4308_p5), 0  }
 0x40a   : >> { %v4315_v38 = vld [vmem:[%s12109_s20] sm:$0x3]  ;;  %v4316_v40 = vld [vmem:[%s12109_s20 + $0x18] sm:$0x3]  ;;  %v4329_v42 = vld [vmem:[%s12109_s20 + $0x2] sm:$0x3] }
 0x40b   : >> { %v4317_v55 = vmax.f32 %v4315_v38, %v4316_v40  ;;  %v4330_v13 = vld [vmem:[%s12109_s20 + $0x1a] sm:$0x3]  ;;  %v4340_v14 = vld [vmem:[%s12109_s20 + $0x4] sm:$0x3]  ;;  %v4341_v17 = vld [vmem:[%s12109_s20 + $0x1c] sm:$0x3] }
 0x40c   : >> { %v4331_v25 = vmax.f32 %v4329_v42, %v4330_v13  ;;  %v4342_v12 = vmax.f32 %v4340_v14, %v4341_v17  ;;  %v4351_v56 = vld [vmem:[%s12109_s20 + $0x6] sm:$0x3]  ;;  %v4352_v60 = vld [vmem:[%s12109_s20 + $0x1e] sm:$0x3]  ;;  %v4362_v18 = vld [vmem:[%s12109_s20 + $0x8] sm:$0x3] }
 0x40d   : >> { %v4319_v59 = vsel %vm4318_vm0, %v4317_v55, -inf  ;;  %v4353_v19 = vmax.f32 %v4351_v56, %v4352_v60  ;;  %v4363_v20 = vld [vmem:[%s12109_s20 + $0x20] sm:$0x3]  ;;  %v4373_v21 = vld [vmem:[%s12109_s20 + $0xa] sm:$0x3] }
 0x40e   : >> { %v4320_v58 = vrot.slane %v4319_v59, 4  ;;  %v4332_v57 = vsel %vm4318_vm0, %v4331_v25, -inf  ;;  %v4343_v61 = vsel %vm4318_vm0, %v4342_v12, -inf  ;;  %v4364_v22 = vmax.f32 %v4362_v18, %v4363_v20  ;;  %v4374_v3 = vld [vmem:[%s12109_s20 + $0x22] sm:$0x3] }
 0x40f   : >> { %v4333_v23 = vrot.slane %v4332_v57, 4  ;;  %v4344_v24 = vrot.slane %v4343_v61, 4  ;;  %v4354_v27 = vsel %vm4318_vm0, %v4353_v19, -inf  ;;  %v4375_v28 = vmax.f32 %v4373_v21, %v4374_v3  ;;  %v4384_v62 = vld [vmem:[%s12109_s20 + $0xc] sm:$0x3] }
 0x410   : >> { %v4321_v4 = vmax.f32 %v4319_v59, %v4320_v58  ;;  %v4355_v5 = vrot.slane %v4354_v27, 4  ;;  %v4365_v29 = vsel %vm4318_vm0, %v4364_v22, -inf  ;;  %v4385_v30 = vld [vmem:[%s12109_s20 + $0x24] sm:$0x3]  ;;  %v4395_v31 = vld [vmem:[%s12109_s20 + $0xe] sm:$0x3] }
 0x411   : >> { %v4334_v63 = vmax.f32 %v4332_v57, %v4333_v23  ;;  %v4345_v6 = vmax.f32 %v4343_v61, %v4344_v24  ;;  %v4366_v32 = vrot.slane %v4365_v29, 4  ;;  %v4376_v33 = vsel %vm4318_vm0, %v4375_v28, -inf  ;;  %v4396_v9 = vld [vmem:[%s12109_s20 + $0x26] sm:$0x3]  ;;  %v4406_v41 = vld [vmem:[%s12109_s20 + $0x10] sm:$0x3] }
 0x412   : >> { %v4322_v34 = vrot.slane %v4321_v4, 2  ;;  %v4356_v35 = vmax.f32 %v4354_v27, %v4355_v5  ;;  %v4377_v36 = vrot.slane %v4376_v33, 4  ;;  %v4386_v37 = vmax.f32 %v4384_v62, %v4385_v30  ;;  %v4407_v51 = vld [vmem:[%s12109_s20 + $0x28] sm:$0x3]  ;;  %v4417_v42 = vld [vmem:[%s12109_s20 + $0x12] sm:$0x3] }
 0x413   : >> { %v4335_v7 = vrot.slane %v4334_v63, 2  ;;  %v4346_v11 = vrot.slane %v4345_v6, 2  ;;  %v4367_v10 = vmax.f32 %v4365_v29, %v4366_v32  ;;  %v4397_v0 = vmax.f32 %v4395_v31, %v4396_v9  ;;  %v4418_v55 = vld [vmem:[%s12109_s20 + $0x2a] sm:$0x3] }
 0x414   : >> { %v4323_v1 = vmax.f32 %v4321_v4, %v4322_v34  ;;  %v4357_v2 = vrot.slane %v4356_v35, 2  ;;  %v4378_v43 = vmax.f32 %v4376_v33, %v4377_v36  ;;  %v4387_v45 = vsel %vm4318_vm0, %v4386_v37, -inf  ;;  %v12162_v34 = vld [vmem:[%s12506_s6] ss:$0 sm:$0xff] (%p4308_p5)  ;;  %v12172_v36 = vld [vmem:[%s12506_s6 + $0x2] ss:$0 sm:$0xff] (%p4308_p5) }
 0x415   : >> { %v4336_v8 = vmax.f32 %v4334_v63, %v4335_v7  ;;  %v4347_v15 = vmax.f32 %v4345_v6, %v4346_v11  ;;  %v4368_v46 = vrot.slane %v4367_v10, 2  ;;  %v4388_v47 = vrot.slane %v4387_v45, 4 }
 0x416   : >> { %v4324_v26 = vrot.slane %v4323_v1, 1  ;;  %v4358_v48 = vmax.f32 %v4356_v35, %v4357_v2  ;;  %v4379_v49 = vrot.slane %v4378_v43, 2  ;;  %v4398_v50 = vsel %vm4318_vm0, %v4397_v0, -inf  ;;  %v12167_v35 = vld [vmem:[%s12506_s6 + $0x1] ss:$0 sm:$0xff] (%p4308_p5) }
 0x417   : >> { %v4337_v52 = vrot.slane %v4336_v8, 1  ;;  %v4348_v16 = vrot.slane %v4347_v15, 1  ;;  %v4369_v39 = vmax.f32 %v4367_v10, %v4368_v46  ;;  %v4389_v44 = vmax.f32 %v4387_v45, %v4388_v47 }
 0x418   : >> { %v4325_v53 = vmax.f32 %v4323_v1, %v4324_v26  ;;  %v4359_v54 = vrot.slane %v4358_v48, 1  ;;  %v4380_v38 = vmax.f32 %v4378_v43, %v4379_v49  ;;  %v4399_v40 = vrot.slane %v4398_v50, 4 }
 0x419   : >> { %v4338_v13 = vmax.f32 %v4336_v8, %v4337_v52  ;;  %v4349_v14 = vmax.f32 %v4347_v15, %v4348_v16  ;;  %v4370_v17 = vrot.slane %v4369_v39, 1  ;;  %v4390_v25 = vrot.slane %v4389_v44, 2 }
 0x41a   : >> { %4328 = vst [vmem:[%s12142_s22] sm:$0x1] %v4325_v53  ;;  %v4360_v12 = vmax.f32 %v4358_v48, %v4359_v54  ;;  %v4381_v56 = vrot.slane %v4380_v38, 1  ;;  %v4400_v60 = vmax.f32 %v4398_v50, %v4399_v40  ;;  %v4408_v18 = vmax.f32 %v4406_v41, %v4407_v51 }
 0x41b   : >> { %4339 = vst [vmem:[%s12142_s22 + $0x1] sm:$0x1] %v4338_v13  ;;  %4350 = vst [vmem:[%s12142_s22 + $0x2] sm:$0x1] %v4349_v14  ;;  %v4371_v59 = vmax.f32 %v4369_v39, %v4370_v17  ;;  %v4391_v19 = vmax.f32 %v4389_v44, %v4390_v25  ;;  %v4419_v20 = vmax.f32 %v4417_v42, %v4418_v55 }
 0x41c   : >> { %4361 = vst [vmem:[%s12142_s22 + $0x3] sm:$0x1] %v4360_v12  ;;  %v4382_v21 = vmax.f32 %v4380_v38, %v4381_v56  ;;  %v4401_v58 = vrot.slane %v4400_v60, 2  ;;  %v4409_v57 = vsel %vm4318_vm0, %v4408_v18, -inf }
 0x41d   : >> { %4372 = vst [vmem:[%s12142_s22 + $0x4] sm:$0x1] %v4371_v59  ;;  %v4392_v61 = vrot.slane %v4391_v19, 1  ;;  %v4410_v22 = vrot.slane %v4409_v57, 4  ;;  %v4420_v3 = vsel %vm4318_vm0, %v4419_v20, -inf }
 0x41e   : >> { %4383 = vst [vmem:[%s12142_s22 + $0x5] sm:$0x1] %v4382_v21  ;;  %v4402_v23 = vmax.f32 %v4400_v60, %v4401_v58  ;;  %v4421_v24 = vrot.slane %v4420_v3, 4 }
 0x41f   : >> { %v4393_v27 = vmax.f32 %v4391_v19, %v4392_v61  ;;  %v4411_v28 = vmax.f32 %v4409_v57, %v4410_v22 }
 0x420   : >> { %v4403_v62 = vrot.slane %v4402_v23, 1  ;;  %v4422_v4 = vmax.f32 %v4420_v3, %v4421_v24 }
 0x421   : >> { %4394 = vst [vmem:[%s12142_s22 + $0x6] sm:$0x1] %v4393_v27  ;;  %v4412_v5 = vrot.slane %v4411_v28, 2 }
 0x422   : >> { %v4404_v29 = vmax.f32 %v4402_v23, %v4403_v62  ;;  %v4423_v30 = vrot.slane %v4422_v4, 2 }
 0x423   : >> { %v4413_v31 = vmax.f32 %v4411_v28, %v4412_v5 }
 0x424   : >> { %4405 = vst [vmem:[%s12142_s22 + $0x7] sm:$0x1] %v4404_v29  ;;  %v4424_v63 = vmax.f32 %v4422_v4, %v4423_v30  ;;  %4310 = sbr.rel (!%p4308_p5) target bundleno = 1028 (0x404), region = 205 }
 0x425   : >> { %v4414_v6 = vrot.slane %v4413_v31, 1 }
 0x426   : >> { %v4425_v32 = vrot.slane %v4424_v63, 1 }
 0x427   : >> { %v4415_v33 = vmax.f32 %v4413_v31, %v4414_v6 }
 0x428   : >> { %v4426_v9 = vmax.f32 %v4424_v63, %v4425_v32 }
 0x429   : >> { %4416 = vst [vmem:[%s12142_s22 + $0x8] sm:$0x1] %v4415_v33 }
 0x42a   : >> { %4427 = vst [vmem:[%s12142_s22 + $0x9] sm:$0x1] %v4426_v9 }
 0x42b LB: >> { %v10400_v37 = vld [vmem:[#allocation8 + $0x40] sm:$0xff]   ;;  %v10932_v7 = vmov 0.0   ;;  %v10402_v10 = vld [vmem:[#allocation8 + $0x48] sm:$0xff]   ;;  %vm10933_vm1 = vmmov 0   ;;  %v10404_v1 = vld [vmem:[#allocation8 + $0x50] sm:$0xff]   ;;  %s8471_s12 = sshll.u32 %s10914_s29, 4  ;;  %s10914_s29 = sphi %s12174_s29, %s4436_s29  }
 0x42c   : >> { %9740 = vmatprep.subr.bf16.mxu0 %v10932_v7  ;;  %9760 = vmatprep.subr.bf16.mxu1 %v10932_v7  ;;  %v10401_v11 = vld [vmem:[#allocation8] sm:$0xff]   ;;  %v10403_v0 = vld [vmem:[#allocation8 + $0x8] sm:$0xff]   ;;  %v10405_v2 = vld [vmem:[#allocation8 + $0x10] sm:$0xff]   ;;  %s12198_s15 = scalar_lea.vmem [#allocation4], %s8471_s12  ;;  %s8555_s17 = sshll.u32 %s10914_s29, 3 }
 0x42d   : >> { %9741 = vmatpush3.bf16.msra.mxu0 %v10400_v37  ;;  %9756 = vmatprep.mubr.msk.bf16.mxu0 %vm10933_vm1, %v10932_v7  ;;  %v10406_v43 = vld [vmem:[#allocation8 + $0x58] sm:$0xff]   ;;  %v10408_v8 = vld [vmem:[#allocation8 + $0x60] sm:$0xff]   ;;  %v10410_v46 = vld [vmem:[#allocation8 + $0x68] sm:$0xff]   ;;  %s5423_s27 = scalar_lea.vmem [#allocation5], %s8555_s17  ;;  %s4436_s29 = sadd.s32 1, %s10914_s29  }
 0x42e   : >> { %9761 = vmatpush3.bf16.msra.mxu1 %v10401_v11  ;;  %9742 = vmatprep.subr.bf16.mxu0 %v10932_v7  ;;  %v10407_v45 = vld [vmem:[#allocation8 + $0x18] sm:$0xff]   ;;  %v10409_v15 = vld [vmem:[#allocation8 + $0x20] sm:$0xff]   ;;  %v10411_v47 = vld [vmem:[#allocation8 + $0x28] sm:$0xff]   ;;  %p4433_p13 = scmp.ge.s32.totalorder %s4436_s29, 8  }
 0x42f   : >> { %9762 = vmatprep.subr.bf16.mxu1 %v10932_v7  ;;  %9776 = vmatprep.mubr.msk.bf16.mxu1 %vm10933_vm1, %v10932_v7  ;;  %v10412_v26 = vld [vmem:[#allocation8 + $0x70] sm:$0xff]   ;;  %v10414_v49 = vld [vmem:[#allocation8 + $0x78] sm:$0xff]   ;;  %v10416_v41 = vld [vmem:[#allocation8 + $0x80] sm:$0xff]   ;;  %s12303_s24 = smov (%p4433_p13), 0  }
 0x430   : >> { %v10413_v48 = vld [vmem:[#allocation8 + $0x30] sm:$0xff]   ;;  %v10415_v50 = vld [vmem:[#allocation8 + $0x38] sm:$0xff]   ;;  %v10417_v51 = vld [vmem:[#allocation8 + $0xc0] sm:$0xff]  }
 0x431   : >> { %9743 = vmatpush3.bf16.msra.mxu0 %v10402_v10  ;;  %v4457_v52 = vld [vmem:[%s12198_s15 + $0x1] sm:$0xff]  ;;  %v10420_v38 = vld [vmem:[#allocation8 + $0x90] sm:$0xff]   ;;  %v10422_v42 = vld [vmem:[#allocation8 + $0x98] sm:$0xff]  }
 0x432   : >> { %9763 = vmatpush3.bf16.msra.mxu1 %v10403_v0  ;;  %9744 = vmatprep.subr.bf16.mxu0 %v10932_v7  ;;  %v4439_v16 = vld [vmem:[%s12198_s15] sm:$0xff]  ;;  %v4474_v39 = vpack.c.bf16 %v4457_v52, %v4457_v52  ;;  %v10421_v40 = vld [vmem:[#allocation8 + $0xd0] sm:$0xff]   ;;  %v10423_v55 = vld [vmem:[#allocation8 + $0xd8] sm:$0xff]  }
 0x433   : >> { %9764 = vmatprep.subr.bf16.mxu1 %v10932_v7  ;;  %v4456_v44 = vpack.c.bf16 %v4439_v16, %v4439_v16  ;;  %v10418_v53 = vld [vmem:[#allocation8 + $0x88] sm:$0xff]   ;;  %v10424_v13 = vld [vmem:[#allocation8 + $0xa0] sm:$0xff]   ;;  %v10428_v12 = vld [vmem:[#allocation8 + $0xb0] sm:$0xff]  }
 0x434   : >> { %v10419_v54 = vld [vmem:[#allocation8 + $0xc8] sm:$0xff]   ;;  %v10425_v14 = vld [vmem:[#allocation8 + $0xe0] sm:$0xff]   ;;  %v10429_v56 = vld [vmem:[#allocation8 + $0xf0] sm:$0xff]  }
 0x435   : >> { %9745 = vmatpush3.bf16.msra.mxu0 %v10404_v1  ;;  %v10426_v17 = vld [vmem:[#allocation8 + $0xa8] sm:$0xff]   ;;  %v10430_v60 = vld [vmem:[#allocation8 + $0xb8] sm:$0xff]   ;;  %v10432_v21 = vld [vmem:[#allocation8 + $0x100] sm:$0xff]  }
 0x436   : >> { %9765 = vmatpush3.bf16.msra.mxu1 %v10405_v2  ;;  %9746 = vmatprep.subr.bf16.mxu0 %v10932_v7  ;;  %v10427_v25 = vld [vmem:[#allocation8 + $0xe8] sm:$0xff]   ;;  %v10431_v18 = vld [vmem:[#allocation8 + $0xf8] sm:$0xff]   ;;  %v10433_v57 = vld [vmem:[#allocation8 + $0x140] sm:$0xff]  }
 0x437   : >> { %9766 = vmatprep.subr.bf16.mxu1 %v10932_v7  ;;  %v4651_v59 = vld [vmem:[%s12198_s15 + $0x2] sm:$0xff]  ;;  %v8497_v19 = vld [vmem:[%s12198_s15 + $0x10] sm:$0xff] }
 0x438   : >> { %v4668_v20 = vpack.c.bf16 %v4651_v59, %v4651_v59  ;;  %v4778_v58 = vpack.c.bf16 %v8497_v19, %v8497_v19  ;;  %v10434_v61 = vld [vmem:[#allocation8 + $0x108] sm:$0xff]   ;;  %v10436_v3 = vld [vmem:[#allocation8 + $0x110] sm:$0xff]   ;;  %v10438_v24 = vld [vmem:[#allocation8 + $0x118] sm:$0xff]  }
 0x439   : >> { %9747 = vmatpush3.bf16.msra.mxu0 %v10406_v43  ;;  %v10435_v22 = vld [vmem:[#allocation8 + $0x148] sm:$0xff]   ;;  %v10437_v23 = vld [vmem:[#allocation8 + $0x150] sm:$0xff]   ;;  %v10439_v27 = vld [vmem:[#allocation8 + $0x158] sm:$0xff]  }
 0x43a   : >> { %9767 = vmatpush3.bf16.msra.mxu1 %v10407_v45  ;;  %9748 = vmatprep.subr.bf16.mxu0 %v10932_v7  ;;  %v10440_v28 = vld [vmem:[#allocation8 + $0x120] sm:$0xff]   ;;  %v10442_v4 = vld [vmem:[#allocation8 + $0x128] sm:$0xff]   ;;  %v10444_v29 = vld [vmem:[#allocation8 + $0x130] sm:$0xff]  }
 0x43b   : >> { %9768 = vmatprep.subr.bf16.mxu1 %v10932_v7  ;;  %v10441_v62 = vld [vmem:[#allocation8 + $0x160] sm:$0xff]   ;;  %v10443_v5 = vld [vmem:[#allocation8 + $0x168] sm:$0xff]   ;;  %v10445_v30 = vld [vmem:[#allocation8 + $0x170] sm:$0xff]  }
 0x43c   : >> { %v10446_v31 = vld [vmem:[#allocation8 + $0x138] sm:$0xff]   ;;  %v10448_v9 = vld [vmem:[#allocation8 + $0x180] sm:$0xff]   ;;  %v10450_v10 = vld [vmem:[#allocation8 + $0x188] sm:$0xff]  }
 0x43d   : >> { %9749 = vmatpush3.bf16.msra.mxu0 %v10408_v8  ;;  %v8506_v63 = vld [vmem:[%s12198_s15 + $0x11] sm:$0xff]  ;;  %v10449_v11 = vld [vmem:[#allocation8 + $0x1c0] sm:$0xff]   ;;  %v10451_v0 = vld [vmem:[#allocation8 + $0x1c8] sm:$0xff]  }
 0x43e   : >> { %9769 = vmatpush3.bf16.msra.mxu1 %v10409_v15  ;;  %9750 = vmatprep.subr.bf16.mxu0 %v10932_v7  ;;  %v10447_v6 = vld [vmem:[#allocation8 + $0x178] sm:$0xff]   ;;  %v4885_v33 = vpack.c.bf16 %v8506_v63, %v8506_v63  ;;  %v10452_v1 = vld [vmem:[#allocation8 + $0x190] sm:$0xff]   ;;  %v10456_v8 = vld [vmem:[#allocation8 + $0x1a0] sm:$0xff]  }
 0x43f   : >> { %9770 = vmatprep.subr.bf16.mxu1 %v10932_v7  ;;  %v8515_v32 = vld [vmem:[%s12198_s15 + $0x12] sm:$0xff]  ;;  %v10457_v15 = vld [vmem:[#allocation8 + $0x1e0] sm:$0xff]  }
 0x440   : >> { %v4992_v37 = vpack.c.bf16 %v8515_v32, %v8515_v32  ;;  %v10453_v2 = vld [vmem:[#allocation8 + $0x1d0] sm:$0xff]   ;;  %v10454_v43 = vld [vmem:[#allocation8 + $0x198] sm:$0xff]   ;;  %v8534_v16 = vld [vmem:[%s12198_s15 + $0x21] sm:$0xff] }
 0x441   : >> { %9751 = vmatpush3.bf16.msra.mxu0 %v10410_v46  ;;  %v10455_v45 = vld [vmem:[#allocation8 + $0x1d8] sm:$0xff]   ;;  %v10458_v46 = vld [vmem:[#allocation8 + $0x1a8] sm:$0xff]  }
 0x442   : >> { %9771 = vmatpush3.bf16.msra.mxu1 %v10411_v47  ;;  %9752 = vmatprep.subr.bf16.mxu0 %v10932_v7  ;;  %v10459_v47 = vld [vmem:[#allocation8 + $0x1e8] sm:$0xff]   ;;  %v10463_v52 = vld [vmem:[#allocation8 + $0x1f8] sm:$0xff]  }
 0x443   : >> { %9772 = vmatprep.subr.bf16.mxu1 %v10932_v7 }
 0x445   : >> { %9753 = vmatpush3.bf16.msra.mxu0 %v10412_v26  ;;  %v10460_v26 = vld [vmem:[#allocation8 + $0x1b0] sm:$0xff]  }
 0x446   : >> { %9773 = vmatpush3.bf16.msra.mxu1 %v10413_v48  ;;  %9754 = vmatprep.subr.bf16.mxu0 %v10932_v7  ;;  %v10461_v48 = vld [vmem:[#allocation8 + $0x1f0] sm:$0xff]  }
 0x447   : >> { %9774 = vmatprep.subr.bf16.mxu1 %v10932_v7 }
 0x449   : >> { %9755 = vmatpush3.bf16.msra.mxu0 %v10414_v49  ;;  %v10462_v49 = vld [vmem:[#allocation8 + $0x1b8] sm:$0xff]  }
 0x44a   : >> { %9775 = vmatpush3.bf16.msra.mxu1 %v10415_v50  ;;  %9780 = vmatprep.subr.bf16.mxu0 %v10932_v7  ;;  %v8525_v50 = vld [vmem:[%s12198_s15 + $0x20] sm:$0xff] }
 0x44b   : >> { %9800 = vmatprep.subr.bf16.mxu1 %v10932_v7 }
 0x44c   : >> { %9757 = vmatmul.mubr.bf16.vlgmr.msra.gmra.mrb[0].mxu0 %v4474_v39  ;;  %v5102_v39 = vpack.c.bf16 %v8525_v50, %v8525_v50 }
 0x44d   : >> { %9777 = vmatmul.mubr.bf16.vlgmr.msra.gmra.mrb[0].mxu1 %v4456_v44  ;;  %9781 = vmatpush3.bf16.msra.mxu0 %v10416_v41  ;;  %v10464_v44 = vld [vmem:[#allocation8 + $0x200] sm:$0xff]   ;;  %v5209_v41 = vpack.c.bf16 %v8534_v16, %v8534_v16 }
 0x44e   : >> { %9801 = vmatpush3.bf16.msra.mxu1 %v10417_v51  ;;  %9782 = vmatprep.subr.bf16.mxu0 %v10932_v7  ;;  %v10465_v51 = vld [vmem:[#allocation8 + $0x208] sm:$0xff]   ;;  %v12291_v16 = vld [vmem:[%s12508_s8] ss:$0 sm:$0xff] (%p4433_p13) }
 0x44f   : >> { %9802 = vmatprep.subr.bf16.mxu1 %v10932_v7  ;;  %9796 = vmatprep.mubr.msk.bf16.mxu0 %vm10933_vm1, %v10932_v7 }
 0x450   : >> { %9816 = vmatprep.mubr.msk.bf16.mxu1 %vm10933_vm1, %v10932_v7 }
 0x451   : >> { %9783 = vmatpush3.bf16.msra.mxu0 %v10418_v53  ;;  %v10466_v53 = vld [vmem:[#allocation8 + $0x210] sm:$0xff]  }
 0x452   : >> { %9803 = vmatpush3.bf16.msra.mxu1 %v10419_v54  ;;  %9784 = vmatprep.subr.bf16.mxu0 %v10932_v7  ;;  %v10467_v54 = vld [vmem:[#allocation8 + $0x218] sm:$0xff]  }
 0x453   : >> { %9804 = vmatprep.subr.bf16.mxu1 %v10932_v7 }
 0x455   : >> { %9785 = vmatpush3.bf16.msra.mxu0 %v10420_v38  ;;  %v10468_v38 = vld [vmem:[#allocation8 + $0x220] sm:$0xff]  }
 0x456   : >> { %9805 = vmatpush3.bf16.msra.mxu1 %v10421_v40  ;;  %9786 = vmatprep.subr.bf16.mxu0 %v10932_v7  ;;  %v10469_v40 = vld [vmem:[#allocation8 + $0x228] sm:$0xff]  }
 0x457   : >> { %9806 = vmatprep.subr.bf16.mxu1 %v10932_v7 }
 0x459   : >> { %9787 = vmatpush3.bf16.msra.mxu0 %v10422_v42  ;;  %v10470_v42 = vld [vmem:[#allocation8 + $0x230] sm:$0xff]  }
 0x45a   : >> { %9807 = vmatpush3.bf16.msra.mxu1 %v10423_v55  ;;  %9788 = vmatprep.subr.bf16.mxu0 %v10932_v7  ;;  %v10471_v55 = vld [vmem:[#allocation8 + $0x238] sm:$0xff]  }
 0x45b   : >> { %9808 = vmatprep.subr.bf16.mxu1 %v10932_v7 }
 0x45d   : >> { %9789 = vmatpush3.bf16.msra.mxu0 %v10424_v13  ;;  %v8543_v13 = vld [vmem:[%s12198_s15 + $0x22] sm:$0xff] }
 0x45e   : >> { %9809 = vmatpush3.bf16.msra.mxu1 %v10425_v14  ;;  %9790 = vmatprep.subr.bf16.mxu0 %v10932_v7  ;;  %v5316_v14 = vpack.c.bf16 %v8543_v13, %v8543_v13 }
 0x45f   : >> { %9810 = vmatprep.subr.bf16.mxu1 %v10932_v7 }
 0x461   : >> { %9791 = vmatpush3.bf16.msra.mxu0 %v10426_v17 }
 0x462   : >> { %9811 = vmatpush3.bf16.msra.mxu1 %v10427_v25  ;;  %9792 = vmatprep.subr.bf16.mxu0 %v10932_v7 }
 0x463   : >> { %9812 = vmatprep.subr.bf16.mxu1 %v10932_v7 }
 0x465   : >> { %9793 = vmatpush3.bf16.msra.mxu0 %v10428_v12 }
 0x466   : >> { %9813 = vmatpush3.bf16.msra.mxu1 %v10429_v56  ;;  %9794 = vmatprep.subr.bf16.mxu0 %v10932_v7 }
 0x467   : >> { %9814 = vmatprep.subr.bf16.mxu1 %v10932_v7 }
 0x469   : >> { %9795 = vmatpush3.bf16.msra.mxu0 %v10430_v60 }
 0x46a   : >> { %9815 = vmatpush3.bf16.msra.mxu1 %v10431_v18  ;;  %9820 = vmatprep.subr.bf16.mxu0 %v10932_v7 }
 0x46b   : >> { %9840 = vmatprep.subr.bf16.mxu1 %v10932_v7 }
 0x46c   : >> { %9797 = vmatmul.mubr.bf16.vlgmr.msra.gmra.mrb[4].mxu0 %v4668_v20 }
 0x46d   : >> { %9821 = vmatpush3.bf16.msra.mxu0 %v10432_v21  ;;  %9817 = vmatmul.mubr.bf16.vlgmr.msra.gmra.mrb[4].mxu1 %v4778_v58 }
 0x46e   : >> { %9841 = vmatpush3.bf16.msra.mxu1 %v10433_v57  ;;  %9822 = vmatprep.subr.bf16.mxu0 %v10932_v7 }
 0x46f   : >> { %9842 = vmatprep.subr.bf16.mxu1 %v10932_v7  ;;  %9836 = vmatprep.mubr.msk.bf16.mxu0 %vm10933_vm1, %v10932_v7 }
 0x470   : >> { %9856 = vmatprep.mubr.msk.bf16.mxu1 %vm10933_vm1, %v10932_v7 }
 0x471   : >> { %9823 = vmatpush3.bf16.msra.mxu0 %v10434_v61 }
 0x472   : >> { %9843 = vmatpush3.bf16.msra.mxu1 %v10435_v22  ;;  %9824 = vmatprep.subr.bf16.mxu0 %v10932_v7 }
 0x473   : >> { %9844 = vmatprep.subr.bf16.mxu1 %v10932_v7 }
 0x475   : >> { %9825 = vmatpush3.bf16.msra.mxu0 %v10436_v3 }
 0x476   : >> { %9845 = vmatpush3.bf16.msra.mxu1 %v10437_v23  ;;  %9826 = vmatprep.subr.bf16.mxu0 %v10932_v7 }
 0x477   : >> { %9846 = vmatprep.subr.bf16.mxu1 %v10932_v7 }
 0x479   : >> { %9827 = vmatpush3.bf16.msra.mxu0 %v10438_v24 }
 0x47a   : >> { %9847 = vmatpush3.bf16.msra.mxu1 %v10439_v27  ;;  %9828 = vmatprep.subr.bf16.mxu0 %v10932_v7 }
 0x47b   : >> { %9848 = vmatprep.subr.bf16.mxu1 %v10932_v7 }
 0x47d   : >> { %9829 = vmatpush3.bf16.msra.mxu0 %v10440_v28 }
 0x47e   : >> { %9849 = vmatpush3.bf16.msra.mxu1 %v10441_v62  ;;  %9830 = vmatprep.subr.bf16.mxu0 %v10932_v7 }
 0x47f   : >> { %9850 = vmatprep.subr.bf16.mxu1 %v10932_v7 }
 0x481   : >> { %9831 = vmatpush3.bf16.msra.mxu0 %v10442_v4 }
 0x482   : >> { %9851 = vmatpush3.bf16.msra.mxu1 %v10443_v5  ;;  %9832 = vmatprep.subr.bf16.mxu0 %v10932_v7 }
 0x483   : >> { %9852 = vmatprep.subr.bf16.mxu1 %v10932_v7 }
 0x485   : >> { %9833 = vmatpush3.bf16.msra.mxu0 %v10444_v29 }
 0x486   : >> { %9853 = vmatpush3.bf16.msra.mxu1 %v10445_v30  ;;  %9834 = vmatprep.subr.bf16.mxu0 %v10932_v7 }
 0x487   : >> { %9854 = vmatprep.subr.bf16.mxu1 %v10932_v7 }
 0x489   : >> { %9835 = vmatpush3.bf16.msra.mxu0 %v10446_v31 }
 0x48a   : >> { %9855 = vmatpush3.bf16.msra.mxu1 %v10447_v6  ;;  %9860 = vmatprep.subr.bf16.mxu0 %v10932_v7 }
 0x48b   : >> { %9880 = vmatprep.subr.bf16.mxu1 %v10932_v7 }
 0x48c   : >> { %9837 = vmatmul.mubr.bf16.vlgmr.msra.gmra.mrb[8].mxu0 %v4885_v33 }
 0x48d   : >> { %9861 = vmatpush3.bf16.msra.mxu0 %v10448_v9  ;;  %9857 = vmatmul.mubr.bf16.vlgmr.msra.gmra.mrb[8].mxu1 %v4992_v37 }
 0x48e   : >> { %9881 = vmatpush3.bf16.msra.mxu1 %v10449_v11  ;;  %9862 = vmatprep.subr.bf16.mxu0 %v10932_v7 }
 0x48f   : >> { %9882 = vmatprep.subr.bf16.mxu1 %v10932_v7  ;;  %9876 = vmatprep.mubr.msk.bf16.mxu0 %vm10933_vm1, %v10932_v7 }
 0x490   : >> { %9896 = vmatprep.mubr.msk.bf16.mxu1 %vm10933_vm1, %v10932_v7 }
 0x491   : >> { %9863 = vmatpush3.bf16.msra.mxu0 %v10450_v10 }
 0x492   : >> { %9883 = vmatpush3.bf16.msra.mxu1 %v10451_v0  ;;  %9864 = vmatprep.subr.bf16.mxu0 %v10932_v7 }
 0x493   : >> { %9884 = vmatprep.subr.bf16.mxu1 %v10932_v7 }
 0x495   : >> { %9865 = vmatpush3.bf16.msra.mxu0 %v10452_v1 }
 0x496   : >> { %9885 = vmatpush3.bf16.msra.mxu1 %v10453_v2  ;;  %9866 = vmatprep.subr.bf16.mxu0 %v10932_v7 }
 0x497   : >> { %9886 = vmatprep.subr.bf16.mxu1 %v10932_v7 }
 0x499   : >> { %9867 = vmatpush3.bf16.msra.mxu0 %v10454_v43 }
 0x49a   : >> { %9887 = vmatpush3.bf16.msra.mxu1 %v10455_v45  ;;  %9868 = vmatprep.subr.bf16.mxu0 %v10932_v7 }
 0x49b   : >> { %9888 = vmatprep.subr.bf16.mxu1 %v10932_v7 }
 0x49d   : >> { %9869 = vmatpush3.bf16.msra.mxu0 %v10456_v8 }
 0x49e   : >> { %9889 = vmatpush3.bf16.msra.mxu1 %v10457_v15  ;;  %9870 = vmatprep.subr.bf16.mxu0 %v10932_v7 }
 0x49f   : >> { %9890 = vmatprep.subr.bf16.mxu1 %v10932_v7 }
 0x4a1   : >> { %9871 = vmatpush3.bf16.msra.mxu0 %v10458_v46 }
 0x4a2   : >> { %9891 = vmatpush3.bf16.msra.mxu1 %v10459_v47  ;;  %9872 = vmatprep.subr.bf16.mxu0 %v10932_v7 }
 0x4a3   : >> { %9892 = vmatprep.subr.bf16.mxu1 %v10932_v7 }
 0x4a5   : >> { %9873 = vmatpush3.bf16.msra.mxu0 %v10460_v26 }
 0x4a6   : >> { %9893 = vmatpush3.bf16.msra.mxu1 %v10461_v48  ;;  %9874 = vmatprep.subr.bf16.mxu0 %v10932_v7 }
 0x4a7   : >> { %9894 = vmatprep.subr.bf16.mxu1 %v10932_v7 }
 0x4a9   : >> { %9875 = vmatpush3.bf16.msra.mxu0 %v10462_v49 }
 0x4aa   : >> { %9895 = vmatpush3.bf16.msra.mxu1 %v10463_v52  ;;  %9900 = vmatprep.subr.bf16.mxu0 %v10932_v7 }
 0x4ac   : >> { %9877 = vmatmul.mubr.bf16.vlgmr.msra.gmra.mrb[12].mxu0 %v5102_v39  ;;  %v12296_v39 = vld [vmem:[%s12508_s8 + $0x1] ss:$0 sm:$0xff] (%p4433_p13) }
 0x4ad   : >> { %9901 = vmatpush3.bf16.msra.mxu0 %v10464_v44  ;;  %9897 = vmatmul.mubr.bf16.vlgmr.msra.gmra.mrb[12].mxu1 %v5209_v41  ;;  %v12301_v44 = vld [vmem:[%s12508_s8 + $0x2] ss:$0 sm:$0xff] (%p4433_p13) }
 0x4ae   : >> { %9902 = vmatprep.subr.bf16.mxu0 %v10932_v7  ;;  %9916 = vmatprep.mubr.msk.bf16.mxu0 %vm10933_vm1, %v10932_v7 }
 0x4b1   : >> { %9903 = vmatpush3.bf16.msra.mxu0 %v10465_v51 }
 0x4b2   : >> { %9904 = vmatprep.subr.bf16.mxu0 %v10932_v7 }
 0x4b5   : >> { %9905 = vmatpush3.bf16.msra.mxu0 %v10466_v53 }
 0x4b6   : >> { %9906 = vmatprep.subr.bf16.mxu0 %v10932_v7 }
 0x4b9   : >> { %9907 = vmatpush3.bf16.msra.mxu0 %v10467_v54 }
 0x4ba   : >> { %9908 = vmatprep.subr.bf16.mxu0 %v10932_v7 }
 0x4bd   : >> { %9909 = vmatpush3.bf16.msra.mxu0 %v10468_v38 }
 0x4be   : >> { %9910 = vmatprep.subr.bf16.mxu0 %v10932_v7 }
 0x4c1   : >> { %9911 = vmatpush3.bf16.msra.mxu0 %v10469_v40 }
 0x4c2   : >> { %9912 = vmatprep.subr.bf16.mxu0 %v10932_v7 }
 0x4c5   : >> { %9913 = vmatpush3.bf16.msra.mxu0 %v10470_v42 }
 0x4c6   : >> { %9914 = vmatprep.subr.bf16.mxu0 %v10932_v7 }
 0x4c9   : >> { %9915 = vmatpush3.bf16.msra.mxu0 %v10471_v55 }
 0x4cc   : >> { %9917 = vmatmul.mubr.bf16.vlgmr.msra.gmra.mrb[16].mxu0 %v5316_v14 }
 0x51f   : >> { %v4557_v17 = vpop.f32.mrb[0].mxu0 }
 0x520   : >> { %v9758_v25 = vpop.f32.mrb[1].mxu0  ;;  %v4645_v12 = vpop.f32.mrb[0].mxu1 }
 0x521   : >> { %v4646_v56 = vadd.f32 %v4645_v12, %v4557_v17  ;;  %v4560_v60 = vpop.f32.mrb[2].mxu0  ;;  %v9778_v18 = vpop.f32.mrb[1].mxu1 }
 0x522   : >> { %v9759_v59 = vpop.f32.mrb[3].mxu0  ;;  %v4648_v19 = vpop.f32.mrb[2].mxu1 }
 0x523   : >> { %v9779_v20 = vpop.f32.mrb[3].mxu1 }
 0x53f   : >> { %v4751_v21 = vpop.f32.mrb[4].mxu0 }
 0x540   : >> { %v4757_v58 = vadd.f32 %v4751_v21, %v4646_v56  ;;  %v9798_v57 = vpop.f32.mrb[5].mxu0  ;;  %v4861_v61 = vpop.f32.mrb[4].mxu1 }
 0x541   : >> { %v4754_v22 = vpop.f32.mrb[6].mxu0  ;;  %v9818_v3 = vpop.f32.mrb[5].mxu1 }
 0x542   : >> { %v4867_v23 = vadd.f32 %v4861_v61, %v4757_v58  ;;  %v9799_v7 = vpop.f32.mrb[7].mxu0  ;;  %v4864_v24 = vpop.f32.mrb[6].mxu1 }
 0x543   : >> { %v9819_v27 = vpop.f32.mrb[7].mxu1 }
 0x55f   : >> { %v4968_v28 = vpop.f32.mrb[8].mxu0 }
 0x560   : >> { %v4974_v62 = vadd.f32 %v4968_v28, %v4867_v23  ;;  %v9838_v4 = vpop.f32.mrb[9].mxu0  ;;  %v5075_v5 = vpop.f32.mrb[8].mxu1 }
 0x561   : >> { %v4971_v29 = vpop.f32.mrb[10].mxu0  ;;  %v9858_v30 = vpop.f32.mrb[9].mxu1 }
 0x562   : >> { %v5081_v31 = vadd.f32 %v5075_v5, %v4974_v62  ;;  %v9839_v63 = vpop.f32.mrb[11].mxu0  ;;  %v5078_v6 = vpop.f32.mrb[10].mxu1 }
 0x563   : >> { %v9859_v32 = vpop.f32.mrb[11].mxu1 }
 0x57f   : >> { %v5185_v33 = vpop.f32.mrb[12].mxu0 }
 0x580   : >> { %v5191_v9 = vadd.f32 %v5185_v33, %v5081_v31  ;;  %v9878_v37 = vpop.f32.mrb[13].mxu0  ;;  %v5292_v11 = vpop.f32.mrb[12].mxu1 }
 0x581   : >> { %v5188_v10 = vpop.f32.mrb[14].mxu0  ;;  %v9898_v0 = vpop.f32.mrb[13].mxu1 }
 0x582   : >> { %v5298_v1 = vadd.f32 %v5292_v11, %v5191_v9  ;;  %v9879_v2 = vpop.f32.mrb[15].mxu0  ;;  %v5295_v43 = vpop.f32.mrb[14].mxu1 }
 0x583   : >> { %v9899_v45 = vpop.f32.mrb[15].mxu1 }
 0x59f   : >> { %v5399_v8 = vpop.f32.mrb[16].mxu0 }
 0x5a0   : >> { %v5405_v15 = vadd.f32 %v5399_v8, %v5298_v1  ;;  %v9918_v46 = vpop.f32.mrb[17].mxu0 }
 0x5a1   : >> { %v5402_v47 = vpop.f32.mrb[18].mxu0 }
 0x5a2   : >> { %v5410_v26 = vadd.f32 %v12162_v34, %v5405_v15  ;;  %v9919_v48 = vpop.f32.mrb[19].mxu0 }
 0x5a4   : >> { %v5411_v49 = vmax.f32 %v5410_v26, 0.0  ;;  %4435 = sbr.rel (!%p4433_p13) target bundleno = 1067 (0x42b), region = 216 }
 0x5a6   : >> { %v5416_v50 = vmul.f32 %v12167_v35, %v5411_v49 }
 0x5a8   : >> { %v5421_v52 = vadd.f32 %v12172_v36, %v5416_v50 }
 0x5aa   : >> { %5424 = vst [vmem:[%s5423_s27] sm:$0xff] %v5421_v52 }
 0x5ab LB: >> { %v10472_v34 = vld [vmem:[#allocation10 + $0x40] sm:$0xff]   ;;  %v10934_v35 = vmov 0.0   ;;  %v10474_v41 = vld [vmem:[#allocation10 + $0x48] sm:$0xff]   ;;  %vm10935_vm2 = vmmov 0   ;;  %v10476_v53 = vld [vmem:[#allocation10 + $0x50] sm:$0xff]   ;;  %s8556_s28 = sshll.u32 %s10918_s24, 3  ;;  %s10918_s24 = sphi %s12303_s24, %s5433_s24  }
 0x5ac   : >> { %9920 = vmatprep.subr.bf16.mxu0 %v10934_v35  ;;  %9940 = vmatprep.subr.bf16.mxu1 %v10934_v35  ;;  %v10473_v36 = vld [vmem:[#allocation10] sm:$0xff]   ;;  %v10475_v51 = vld [vmem:[#allocation10 + $0x8] sm:$0xff]   ;;  %v10477_v54 = vld [vmem:[#allocation10 + $0x10] sm:$0xff]   ;;  %s12329_s30 = scalar_lea.vmem [#allocation5], %s8556_s28  ;;  %s6419_s26 = scalar_lea.vmem [#allocation6], %s8556_s28 }
 0x5ad   : >> { %9921 = vmatpush3.bf16.msra.mxu0 %v10472_v34  ;;  %9936 = vmatprep.mubr.msk.bf16.mxu0 %vm10935_vm2, %v10934_v35  ;;  %v10478_v38 = vld [vmem:[#allocation10 + $0x58] sm:$0xff]   ;;  %v10480_v42 = vld [vmem:[#allocation10 + $0x60] sm:$0xff]   ;;  %v10482_v13 = vld [vmem:[#allocation10 + $0x68] sm:$0xff]   ;;  %s5433_s24 = sadd.s32 1, %s10918_s24  }
 0x5ae   : >> { %9941 = vmatpush3.bf16.msra.mxu1 %v10473_v36  ;;  %9922 = vmatprep.subr.bf16.mxu0 %v10934_v35  ;;  %v10479_v40 = vld [vmem:[#allocation10 + $0x18] sm:$0xff]   ;;  %v10481_v55 = vld [vmem:[#allocation10 + $0x20] sm:$0xff]   ;;  %v10483_v14 = vld [vmem:[#allocation10 + $0x28] sm:$0xff]   ;;  %p5430_p0 = scmp.ge.s32.totalorder %s5433_s24, 6  }
 0x5af   : >> { %9942 = vmatprep.subr.bf16.mxu1 %v10934_v35  ;;  %9956 = vmatprep.mubr.msk.bf16.mxu1 %vm10935_vm2, %v10934_v35  ;;  %v10484_v17 = vld [vmem:[#allocation10 + $0x70] sm:$0xff]   ;;  %v10486_v12 = vld [vmem:[#allocation10 + $0x78] sm:$0xff]   ;;  %v10488_v20 = vld [vmem:[#allocation10 + $0x80] sm:$0xff]   ;;  %s12420_s14 = smov (%p5430_p0), 0  }
 0x5b0   : >> { %v10485_v25 = vld [vmem:[#allocation10 + $0x30] sm:$0xff]   ;;  %v10487_v56 = vld [vmem:[#allocation10 + $0x38] sm:$0xff]   ;;  %v10489_v21 = vld [vmem:[#allocation10 + $0xc0] sm:$0xff]  }
 0x5b1   : >> { %9923 = vmatpush3.bf16.msra.mxu0 %v10474_v41  ;;  %v5454_v60 = vld [vmem:[%s12329_s30 + $0x1] sm:$0x3f]  ;;  %v10492_v61 = vld [vmem:[#allocation10 + $0x90] sm:$0xff]   ;;  %v10494_v3 = vld [vmem:[#allocation10 + $0x98] sm:$0xff]  }
 0x5b2   : >> { %9943 = vmatpush3.bf16.msra.mxu1 %v10475_v51  ;;  %9924 = vmatprep.subr.bf16.mxu0 %v10934_v35  ;;  %v5436_v18 = vld [vmem:[%s12329_s30] sm:$0x3f]  ;;  %v5471_v59 = vpack.c.bf16 %v5454_v60, %v5454_v60  ;;  %v10493_v22 = vld [vmem:[#allocation10 + $0xd0] sm:$0xff]   ;;  %v10495_v23 = vld [vmem:[#allocation10 + $0xd8] sm:$0xff]  }
 0x5b3   : >> { %9944 = vmatprep.subr.bf16.mxu1 %v10934_v35  ;;  %v5453_v19 = vpack.c.bf16 %v5436_v18, %v5436_v18  ;;  %v10490_v58 = vld [vmem:[#allocation10 + $0x88] sm:$0xff]   ;;  %v10496_v7 = vld [vmem:[#allocation10 + $0xa0] sm:$0xff]   ;;  %v10500_v62 = vld [vmem:[#allocation10 + $0xb0] sm:$0xff]  }
 0x5b4   : >> { %v10491_v57 = vld [vmem:[#allocation10 + $0xc8] sm:$0xff]   ;;  %v10497_v24 = vld [vmem:[#allocation10 + $0xe0] sm:$0xff]   ;;  %v10501_v4 = vld [vmem:[#allocation10 + $0xf0] sm:$0xff]  }
 0x5b5   : >> { %9925 = vmatpush3.bf16.msra.mxu0 %v10476_v53  ;;  %v10498_v27 = vld [vmem:[#allocation10 + $0xa8] sm:$0xff]   ;;  %v10502_v5 = vld [vmem:[#allocation10 + $0xb8] sm:$0xff]   ;;  %v10504_v6 = vld [vmem:[#allocation10 + $0x100] sm:$0xff]  }
 0x5b6   : >> { %9945 = vmatpush3.bf16.msra.mxu1 %v10477_v54  ;;  %9926 = vmatprep.subr.bf16.mxu0 %v10934_v35  ;;  %v10499_v28 = vld [vmem:[#allocation10 + $0xe8] sm:$0xff]   ;;  %v10503_v29 = vld [vmem:[#allocation10 + $0xf8] sm:$0xff]   ;;  %v10505_v33 = vld [vmem:[#allocation10 + $0x140] sm:$0xff]  }
 0x5b7   : >> { %9946 = vmatprep.subr.bf16.mxu1 %v10934_v35  ;;  %v5648_v30 = vld [vmem:[%s12329_s30 + $0x2] sm:$0x3f]  ;;  %v8582_v31 = vld [vmem:[%s12329_s30 + $0x8] sm:$0x3f]  ;;  %v10510_v0 = vld [vmem:[#allocation10 + $0x118] sm:$0xff]  }
 0x5b8   : >> { %v5665_v63 = vpack.c.bf16 %v5648_v30, %v5648_v30  ;;  %v5775_v32 = vpack.c.bf16 %v8582_v31, %v8582_v31  ;;  %v10506_v9 = vld [vmem:[#allocation10 + $0x108] sm:$0xff]   ;;  %v10508_v11 = vld [vmem:[#allocation10 + $0x110] sm:$0xff]   ;;  %v10511_v1 = vld [vmem:[#allocation10 + $0x158] sm:$0xff]  }
 0x5b9   : >> { %9927 = vmatpush3.bf16.msra.mxu0 %v10478_v38  ;;  %v10507_v37 = vld [vmem:[#allocation10 + $0x148] sm:$0xff]   ;;  %v10509_v10 = vld [vmem:[#allocation10 + $0x150] sm:$0xff]   ;;  %v10512_v2 = vld [vmem:[#allocation10 + $0x120] sm:$0xff]  }
 0x5ba   : >> { %9947 = vmatpush3.bf16.msra.mxu1 %v10479_v40  ;;  %9928 = vmatprep.subr.bf16.mxu0 %v10934_v35  ;;  %v10513_v43 = vld [vmem:[#allocation10 + $0x160] sm:$0xff]   ;;  %v10514_v45 = vld [vmem:[#allocation10 + $0x128] sm:$0xff]   ;;  %v10516_v15 = vld [vmem:[#allocation10 + $0x130] sm:$0xff]  }
 0x5bb   : >> { %9948 = vmatprep.subr.bf16.mxu1 %v10934_v35  ;;  %v10515_v8 = vld [vmem:[#allocation10 + $0x168] sm:$0xff]   ;;  %v10517_v46 = vld [vmem:[#allocation10 + $0x170] sm:$0xff]   ;;  %v10518_v47 = vld [vmem:[#allocation10 + $0x138] sm:$0xff]  }
 0x5bc   : >> { %v8591_v26 = vld [vmem:[%s12329_s30 + $0x9] sm:$0x3f]  ;;  %v10519_v48 = vld [vmem:[#allocation10 + $0x178] sm:$0xff]   ;;  %v10520_v52 = vld [vmem:[#allocation10 + $0x180] sm:$0xff]  }
 0x5bd   : >> { %9929 = vmatpush3.bf16.msra.mxu0 %v10480_v42  ;;  %v8600_v49 = vld [vmem:[%s12329_s30 + $0xa] sm:$0x3f]  ;;  %v5882_v50 = vpack.c.bf16 %v8591_v26, %v8591_v26  ;;  %v10521_v36 = vld [vmem:[#allocation10 + $0x1c0] sm:$0xff]   ;;  %v10526_v38 = vld [vmem:[#allocation10 + $0x198] sm:$0xff]  }
 0x5be   : >> { %9949 = vmatpush3.bf16.msra.mxu1 %v10481_v55  ;;  %9930 = vmatprep.subr.bf16.mxu0 %v10934_v35  ;;  %v5989_v34 = vpack.c.bf16 %v8600_v49, %v8600_v49  ;;  %v10522_v41 = vld [vmem:[#allocation10 + $0x188] sm:$0xff]   ;;  %v10524_v53 = vld [vmem:[#allocation10 + $0x190] sm:$0xff]   ;;  %v10527_v40 = vld [vmem:[#allocation10 + $0x1d8] sm:$0xff]  }
 0x5bf   : >> { %9950 = vmatprep.subr.bf16.mxu1 %v10934_v35  ;;  %v10523_v51 = vld [vmem:[#allocation10 + $0x1c8] sm:$0xff]   ;;  %v10525_v54 = vld [vmem:[#allocation10 + $0x1d0] sm:$0xff]   ;;  %v10528_v42 = vld [vmem:[#allocation10 + $0x1a0] sm:$0xff]  }
 0x5c0   : >> { %v10529_v55 = vld [vmem:[#allocation10 + $0x1e0] sm:$0xff]   ;;  %v10535_v60 = vld [vmem:[#allocation10 + $0x1f8] sm:$0xff]  }
 0x5c1   : >> { %9931 = vmatpush3.bf16.msra.mxu0 %v10482_v13  ;;  %v10530_v13 = vld [vmem:[#allocation10 + $0x1a8] sm:$0xff]   ;;  %v8619_v18 = vld [vmem:[%s12329_s30 + $0x11] sm:$0x3f] }
 0x5c2   : >> { %9951 = vmatpush3.bf16.msra.mxu1 %v10483_v14  ;;  %9932 = vmatprep.subr.bf16.mxu0 %v10934_v35  ;;  %v10531_v14 = vld [vmem:[#allocation10 + $0x1e8] sm:$0xff]  }
 0x5c3   : >> { %9952 = vmatprep.subr.bf16.mxu1 %v10934_v35 }
 0x5c5   : >> { %9933 = vmatpush3.bf16.msra.mxu0 %v10484_v17  ;;  %v10532_v17 = vld [vmem:[#allocation10 + $0x1b0] sm:$0xff]  }
 0x5c6   : >> { %9953 = vmatpush3.bf16.msra.mxu1 %v10485_v25  ;;  %9934 = vmatprep.subr.bf16.mxu0 %v10934_v35  ;;  %v10533_v25 = vld [vmem:[#allocation10 + $0x1f0] sm:$0xff]  }
 0x5c7   : >> { %9954 = vmatprep.subr.bf16.mxu1 %v10934_v35 }
 0x5c9   : >> { %9935 = vmatpush3.bf16.msra.mxu0 %v10486_v12  ;;  %v10534_v12 = vld [vmem:[#allocation10 + $0x1b8] sm:$0xff]  }
 0x5ca   : >> { %9955 = vmatpush3.bf16.msra.mxu1 %v10487_v56  ;;  %9960 = vmatprep.subr.bf16.mxu0 %v10934_v35  ;;  %v8610_v56 = vld [vmem:[%s12329_s30 + $0x10] sm:$0x3f] }
 0x5cb   : >> { %9980 = vmatprep.subr.bf16.mxu1 %v10934_v35 }
 0x5cc   : >> { %9937 = vmatmul.mubr.bf16.vlgmr.msra.gmra.mrb[0].mxu0 %v5471_v59  ;;  %v6099_v59 = vpack.c.bf16 %v8610_v56, %v8610_v56 }
 0x5cd   : >> { %9957 = vmatmul.mubr.bf16.vlgmr.msra.gmra.mrb[0].mxu1 %v5453_v19  ;;  %9961 = vmatpush3.bf16.msra.mxu0 %v10488_v20  ;;  %v10536_v19 = vld [vmem:[#allocation10 + $0x200] sm:$0xff]   ;;  %v6206_v20 = vpack.c.bf16 %v8619_v18, %v8619_v18 }
 0x5ce   : >> { %9981 = vmatpush3.bf16.msra.mxu1 %v10489_v21  ;;  %9962 = vmatprep.subr.bf16.mxu0 %v10934_v35  ;;  %v10537_v21 = vld [vmem:[#allocation10 + $0x208] sm:$0xff]  }
 0x5cf   : >> { %9982 = vmatprep.subr.bf16.mxu1 %v10934_v35  ;;  %9976 = vmatprep.mubr.msk.bf16.mxu0 %vm10935_vm2, %v10934_v35 }
 0x5d0   : >> { %9996 = vmatprep.mubr.msk.bf16.mxu1 %vm10935_vm2, %v10934_v35 }
 0x5d1   : >> { %9963 = vmatpush3.bf16.msra.mxu0 %v10490_v58  ;;  %v10538_v58 = vld [vmem:[#allocation10 + $0x210] sm:$0xff]  }
 0x5d2   : >> { %9983 = vmatpush3.bf16.msra.mxu1 %v10491_v57  ;;  %9964 = vmatprep.subr.bf16.mxu0 %v10934_v35  ;;  %v10539_v57 = vld [vmem:[#allocation10 + $0x218] sm:$0xff]  }
 0x5d3   : >> { %9984 = vmatprep.subr.bf16.mxu1 %v10934_v35 }
 0x5d5   : >> { %9965 = vmatpush3.bf16.msra.mxu0 %v10492_v61  ;;  %v10540_v61 = vld [vmem:[#allocation10 + $0x220] sm:$0xff]  }
 0x5d6   : >> { %9985 = vmatpush3.bf16.msra.mxu1 %v10493_v22  ;;  %9966 = vmatprep.subr.bf16.mxu0 %v10934_v35  ;;  %v10541_v22 = vld [vmem:[#allocation10 + $0x228] sm:$0xff]  }
 0x5d7   : >> { %9986 = vmatprep.subr.bf16.mxu1 %v10934_v35 }
 0x5d9   : >> { %9967 = vmatpush3.bf16.msra.mxu0 %v10494_v3  ;;  %v10542_v3 = vld [vmem:[#allocation10 + $0x230] sm:$0xff]  }
 0x5da   : >> { %9987 = vmatpush3.bf16.msra.mxu1 %v10495_v23  ;;  %9968 = vmatprep.subr.bf16.mxu0 %v10934_v35  ;;  %v10543_v23 = vld [vmem:[#allocation10 + $0x238] sm:$0xff]  }
 0x5db   : >> { %9988 = vmatprep.subr.bf16.mxu1 %v10934_v35 }
 0x5dd   : >> { %9969 = vmatpush3.bf16.msra.mxu0 %v10496_v7  ;;  %v8628_v7 = vld [vmem:[%s12329_s30 + $0x12] sm:$0x3f] }
 0x5de   : >> { %9989 = vmatpush3.bf16.msra.mxu1 %v10497_v24  ;;  %9970 = vmatprep.subr.bf16.mxu0 %v10934_v35  ;;  %v6313_v24 = vpack.c.bf16 %v8628_v7, %v8628_v7 }
 0x5df   : >> { %9990 = vmatprep.subr.bf16.mxu1 %v10934_v35 }
 0x5e1   : >> { %9971 = vmatpush3.bf16.msra.mxu0 %v10498_v27 }
 0x5e2   : >> { %9991 = vmatpush3.bf16.msra.mxu1 %v10499_v28  ;;  %9972 = vmatprep.subr.bf16.mxu0 %v10934_v35 }
 0x5e3   : >> { %9992 = vmatprep.subr.bf16.mxu1 %v10934_v35 }
 0x5e5   : >> { %9973 = vmatpush3.bf16.msra.mxu0 %v10500_v62 }
 0x5e6   : >> { %9993 = vmatpush3.bf16.msra.mxu1 %v10501_v4  ;;  %9974 = vmatprep.subr.bf16.mxu0 %v10934_v35 }
 0x5e7   : >> { %9994 = vmatprep.subr.bf16.mxu1 %v10934_v35 }
 0x5e9   : >> { %9975 = vmatpush3.bf16.msra.mxu0 %v10502_v5 }
 0x5ea   : >> { %9995 = vmatpush3.bf16.msra.mxu1 %v10503_v29  ;;  %10000 = vmatprep.subr.bf16.mxu0 %v10934_v35 }
 0x5eb   : >> { %10020 = vmatprep.subr.bf16.mxu1 %v10934_v35 }
 0x5ec   : >> { %9977 = vmatmul.mubr.bf16.vlgmr.msra.gmra.mrb[4].mxu0 %v5665_v63 }
 0x5ed   : >> { %10001 = vmatpush3.bf16.msra.mxu0 %v10504_v6  ;;  %9997 = vmatmul.mubr.bf16.vlgmr.msra.gmra.mrb[4].mxu1 %v5775_v32 }
 0x5ee   : >> { %10021 = vmatpush3.bf16.msra.mxu1 %v10505_v33  ;;  %10002 = vmatprep.subr.bf16.mxu0 %v10934_v35 }
 0x5ef   : >> { %10022 = vmatprep.subr.bf16.mxu1 %v10934_v35  ;;  %10016 = vmatprep.mubr.msk.bf16.mxu0 %vm10935_vm2, %v10934_v35 }
 0x5f0   : >> { %10036 = vmatprep.mubr.msk.bf16.mxu1 %vm10935_vm2, %v10934_v35 }
 0x5f1   : >> { %10003 = vmatpush3.bf16.msra.mxu0 %v10506_v9 }
 0x5f2   : >> { %10023 = vmatpush3.bf16.msra.mxu1 %v10507_v37  ;;  %10004 = vmatprep.subr.bf16.mxu0 %v10934_v35 }
 0x5f3   : >> { %10024 = vmatprep.subr.bf16.mxu1 %v10934_v35 }
 0x5f5   : >> { %10005 = vmatpush3.bf16.msra.mxu0 %v10508_v11 }
 0x5f6   : >> { %10025 = vmatpush3.bf16.msra.mxu1 %v10509_v10  ;;  %10006 = vmatprep.subr.bf16.mxu0 %v10934_v35 }
 0x5f7   : >> { %10026 = vmatprep.subr.bf16.mxu1 %v10934_v35 }
 0x5f9   : >> { %10007 = vmatpush3.bf16.msra.mxu0 %v10510_v0 }
 0x5fa   : >> { %10027 = vmatpush3.bf16.msra.mxu1 %v10511_v1  ;;  %10008 = vmatprep.subr.bf16.mxu0 %v10934_v35 }
 0x5fb   : >> { %10028 = vmatprep.subr.bf16.mxu1 %v10934_v35 }
 0x5fd   : >> { %10009 = vmatpush3.bf16.msra.mxu0 %v10512_v2 }
 0x5fe   : >> { %10029 = vmatpush3.bf16.msra.mxu1 %v10513_v43  ;;  %10010 = vmatprep.subr.bf16.mxu0 %v10934_v35 }
 0x5ff   : >> { %10030 = vmatprep.subr.bf16.mxu1 %v10934_v35 }
 0x601   : >> { %10011 = vmatpush3.bf16.msra.mxu0 %v10514_v45 }
 0x602   : >> { %10031 = vmatpush3.bf16.msra.mxu1 %v10515_v8  ;;  %10012 = vmatprep.subr.bf16.mxu0 %v10934_v35 }
 0x603   : >> { %10032 = vmatprep.subr.bf16.mxu1 %v10934_v35 }
 0x605   : >> { %10013 = vmatpush3.bf16.msra.mxu0 %v10516_v15 }
 0x606   : >> { %10033 = vmatpush3.bf16.msra.mxu1 %v10517_v46  ;;  %10014 = vmatprep.subr.bf16.mxu0 %v10934_v35 }
 0x607   : >> { %10034 = vmatprep.subr.bf16.mxu1 %v10934_v35 }
 0x609   : >> { %10015 = vmatpush3.bf16.msra.mxu0 %v10518_v47 }
 0x60a   : >> { %10035 = vmatpush3.bf16.msra.mxu1 %v10519_v48  ;;  %10040 = vmatprep.subr.bf16.mxu0 %v10934_v35 }
 0x60b   : >> { %10060 = vmatprep.subr.bf16.mxu1 %v10934_v35 }
 0x60c   : >> { %10017 = vmatmul.mubr.bf16.vlgmr.msra.gmra.mrb[8].mxu0 %v5882_v50 }
 0x60d   : >> { %10041 = vmatpush3.bf16.msra.mxu0 %v10520_v52  ;;  %10037 = vmatmul.mubr.bf16.vlgmr.msra.gmra.mrb[8].mxu1 %v5989_v34 }
 0x60e   : >> { %10061 = vmatpush3.bf16.msra.mxu1 %v10521_v36  ;;  %10042 = vmatprep.subr.bf16.mxu0 %v10934_v35 }
 0x60f   : >> { %10062 = vmatprep.subr.bf16.mxu1 %v10934_v35  ;;  %10056 = vmatprep.mubr.msk.bf16.mxu0 %vm10935_vm2, %v10934_v35 }
 0x610   : >> { %10076 = vmatprep.mubr.msk.bf16.mxu1 %vm10935_vm2, %v10934_v35 }
 0x611   : >> { %10043 = vmatpush3.bf16.msra.mxu0 %v10522_v41 }
 0x612   : >> { %10063 = vmatpush3.bf16.msra.mxu1 %v10523_v51  ;;  %10044 = vmatprep.subr.bf16.mxu0 %v10934_v35 }
 0x613   : >> { %10064 = vmatprep.subr.bf16.mxu1 %v10934_v35 }
 0x615   : >> { %10045 = vmatpush3.bf16.msra.mxu0 %v10524_v53 }
 0x616   : >> { %10065 = vmatpush3.bf16.msra.mxu1 %v10525_v54  ;;  %10046 = vmatprep.subr.bf16.mxu0 %v10934_v35 }
 0x617   : >> { %10066 = vmatprep.subr.bf16.mxu1 %v10934_v35 }
 0x619   : >> { %10047 = vmatpush3.bf16.msra.mxu0 %v10526_v38 }
 0x61a   : >> { %10067 = vmatpush3.bf16.msra.mxu1 %v10527_v40  ;;  %10048 = vmatprep.subr.bf16.mxu0 %v10934_v35 }
 0x61b   : >> { %10068 = vmatprep.subr.bf16.mxu1 %v10934_v35 }
 0x61d   : >> { %10049 = vmatpush3.bf16.msra.mxu0 %v10528_v42 }
 0x61e   : >> { %10069 = vmatpush3.bf16.msra.mxu1 %v10529_v55  ;;  %10050 = vmatprep.subr.bf16.mxu0 %v10934_v35 }
 0x61f   : >> { %10070 = vmatprep.subr.bf16.mxu1 %v10934_v35 }
 0x621   : >> { %10051 = vmatpush3.bf16.msra.mxu0 %v10530_v13 }
 0x622   : >> { %10071 = vmatpush3.bf16.msra.mxu1 %v10531_v14  ;;  %10052 = vmatprep.subr.bf16.mxu0 %v10934_v35 }
 0x623   : >> { %10072 = vmatprep.subr.bf16.mxu1 %v10934_v35 }
 0x625   : >> { %10053 = vmatpush3.bf16.msra.mxu0 %v10532_v17 }
 0x626   : >> { %10073 = vmatpush3.bf16.msra.mxu1 %v10533_v25  ;;  %10054 = vmatprep.subr.bf16.mxu0 %v10934_v35 }
 0x627   : >> { %10074 = vmatprep.subr.bf16.mxu1 %v10934_v35 }
 0x629   : >> { %10055 = vmatpush3.bf16.msra.mxu0 %v10534_v12 }
 0x62a   : >> { %10075 = vmatpush3.bf16.msra.mxu1 %v10535_v60  ;;  %10080 = vmatprep.subr.bf16.mxu0 %v10934_v35 }
 0x62c   : >> { %10057 = vmatmul.mubr.bf16.vlgmr.msra.gmra.mrb[12].mxu0 %v6099_v59 }
 0x62d   : >> { %10081 = vmatpush3.bf16.msra.mxu0 %v10536_v19  ;;  %10077 = vmatmul.mubr.bf16.vlgmr.msra.gmra.mrb[12].mxu1 %v6206_v20 }
 0x62e   : >> { %10082 = vmatprep.subr.bf16.mxu0 %v10934_v35  ;;  %10096 = vmatprep.mubr.msk.bf16.mxu0 %vm10935_vm2, %v10934_v35 }
 0x631   : >> { %10083 = vmatpush3.bf16.msra.mxu0 %v10537_v21 }
 0x632   : >> { %10084 = vmatprep.subr.bf16.mxu0 %v10934_v35 }
 0x635   : >> { %10085 = vmatpush3.bf16.msra.mxu0 %v10538_v58 }
 0x636   : >> { %10086 = vmatprep.subr.bf16.mxu0 %v10934_v35 }
 0x639   : >> { %10087 = vmatpush3.bf16.msra.mxu0 %v10539_v57 }
 0x63a   : >> { %10088 = vmatprep.subr.bf16.mxu0 %v10934_v35 }
 0x63d   : >> { %10089 = vmatpush3.bf16.msra.mxu0 %v10540_v61 }
 0x63e   : >> { %10090 = vmatprep.subr.bf16.mxu0 %v10934_v35 }
 0x641   : >> { %10091 = vmatpush3.bf16.msra.mxu0 %v10541_v22 }
 0x642   : >> { %10092 = vmatprep.subr.bf16.mxu0 %v10934_v35 }
 0x645   : >> { %10093 = vmatpush3.bf16.msra.mxu0 %v10542_v3 }
 0x646   : >> { %10094 = vmatprep.subr.bf16.mxu0 %v10934_v35 }
 0x649   : >> { %10095 = vmatpush3.bf16.msra.mxu0 %v10543_v23 }
 0x64c   : >> { %10097 = vmatmul.mubr.bf16.vlgmr.msra.gmra.mrb[16].mxu0 %v6313_v24 }
 0x69f   : >> { %v5554_v27 = vpop.f32.mrb[0].mxu0 }
 0x6a0   : >> { %v9938_v28 = vpop.f32.mrb[1].mxu0  ;;  %v5642_v62 = vpop.f32.mrb[0].mxu1 }
 0x6a1   : >> { %v5643_v4 = vadd.f32 %v5642_v62, %v5554_v27  ;;  %v5557_v5 = vpop.f32.mrb[2].mxu0  ;;  %v9958_v29 = vpop.f32.mrb[1].mxu1 }
 0x6a2   : >> { %v9939_v30 = vpop.f32.mrb[3].mxu0  ;;  %v5645_v31 = vpop.f32.mrb[2].mxu1 }
 0x6a3   : >> { %v9959_v63 = vpop.f32.mrb[3].mxu1 }
 0x6bf   : >> { %v5748_v6 = vpop.f32.mrb[4].mxu0 }
 0x6c0   : >> { %v5754_v32 = vadd.f32 %v5748_v6, %v5643_v4  ;;  %v9978_v33 = vpop.f32.mrb[5].mxu0  ;;  %v5858_v9 = vpop.f32.mrb[4].mxu1 }
 0x6c1   : >> { %v5751_v37 = vpop.f32.mrb[6].mxu0  ;;  %v9998_v11 = vpop.f32.mrb[5].mxu1 }
 0x6c2   : >> { %v5864_v10 = vadd.f32 %v5858_v9, %v5754_v32  ;;  %v9979_v35 = vpop.f32.mrb[7].mxu0  ;;  %v5861_v0 = vpop.f32.mrb[6].mxu1 }
 0x6c3   : >> { %v9999_v1 = vpop.f32.mrb[7].mxu1 }
 0x6df   : >> { %v5965_v2 = vpop.f32.mrb[8].mxu0 }
 0x6e0   : >> { %v5971_v43 = vadd.f32 %v5965_v2, %v5864_v10  ;;  %v10018_v45 = vpop.f32.mrb[9].mxu0  ;;  %v6072_v8 = vpop.f32.mrb[8].mxu1 }
 0x6e1   : >> { %v5968_v15 = vpop.f32.mrb[10].mxu0  ;;  %v10038_v46 = vpop.f32.mrb[9].mxu1 }
 0x6e2   : >> { %v6078_v47 = vadd.f32 %v6072_v8, %v5971_v43  ;;  %v10019_v26 = vpop.f32.mrb[11].mxu0  ;;  %v6075_v48 = vpop.f32.mrb[10].mxu1 }
 0x6e3   : >> { %v10039_v49 = vpop.f32.mrb[11].mxu1 }
 0x6ff   : >> { %v6182_v50 = vpop.f32.mrb[12].mxu0 }
 0x700   : >> { %v6188_v52 = vadd.f32 %v6182_v50, %v6078_v47  ;;  %v10058_v34 = vpop.f32.mrb[13].mxu0  ;;  %v6289_v36 = vpop.f32.mrb[12].mxu1 }
 0x701   : >> { %v6185_v41 = vpop.f32.mrb[14].mxu0  ;;  %v10078_v51 = vpop.f32.mrb[13].mxu1 }
 0x702   : >> { %v6295_v53 = vadd.f32 %v6289_v36, %v6188_v52  ;;  %v10059_v54 = vpop.f32.mrb[15].mxu0  ;;  %v6292_v38 = vpop.f32.mrb[14].mxu1 }
 0x703   : >> { %v10079_v40 = vpop.f32.mrb[15].mxu1 }
 0x71f   : >> { %v6396_v42 = vpop.f32.mrb[16].mxu0 }
 0x720   : >> { %v6402_v55 = vadd.f32 %v6396_v42, %v6295_v53  ;;  %v10098_v13 = vpop.f32.mrb[17].mxu0 }
 0x721   : >> { %v6399_v14 = vpop.f32.mrb[18].mxu0 }
 0x722   : >> { %v6407_v17 = vadd.f32 %v12291_v16, %v6402_v55  ;;  %v10099_v25 = vpop.f32.mrb[19].mxu0 }
 0x724   : >> { %v6408_v12 = vmax.f32 %v6407_v17, 0.0  ;;  %5432 = sbr.rel (!%p5430_p0) target bundleno = 1451 (0x5ab), region = 227 }
 0x726   : >> { %v6413_v56 = vmul.f32 %v12296_v39, %v6408_v12 }
 0x728   : >> { %v6418_v60 = vadd.f32 %v12301_v44, %v6413_v56 }
 0x72a   : >> { %6420 = vst [vmem:[%s6419_s26] sm:$0x3f] %v6418_v60 }
 0x72b LB: >> { %s8805_s16 = sshll.u32 %s10922_s14, 4  ;;  %s8642_s12 = sshll.u32 %s10922_s14, 2  ;;  %s10922_s14 = sphi %s12420_s14, %s6426_s14  }
 0x72c   : >> { %s6429_s29 = scalar_lea.vmem [#allocation6], %s8805_s16  ;;  %s6442_s15 = scalar_lea.vmem [#allocation7], %s8642_s12 }
 0x72d   : >> { %s6426_s14 = sadd.s32 1, %s10922_s14  }
 0x72e   : >> { %p6423_p1 = scmp.ge.s32.totalorder %s6426_s14, 3  }
 0x72f   : > { %v10544_v11 = vld [vmem:[#allocation12 + $0x84] ss:$8 sps:$4 sm:$0xff] (%p6423_p1)   ;;  %v10936_v35 = vmov (%p6423_p1), 0   ;;  %v10548_v0 = vld [vmem:[#allocation12 + $0x80] ss:$8 sps:$4 sm:$0xff] (%p6423_p1)   ;;  %s12520_s23 = sld [smem:[#allocation16_spill]] (%p6423_p1) }
 0x730   : > { %v10546_v10 = vld [vmem:[#allocation12 + $0x4] ss:$8 sps:$4 sm:$0xff] (%p6423_p1)   ;;  %6614 = vmatprep.mubr.bf16.mxu0 (%p6423_p1), %v10936_v35  ;;  %6735 = vmatprep.mubr.bf16.mxu1 (%p6423_p1), %v10936_v35  ;;  %v10549_v1 = vld [vmem:[#allocation12] ss:$8 sps:$4 sm:$0xff] (%p6423_p1)   ;;  %v10550_v2 = vld [vmem:[#allocation12 + $0x94] ss:$8 sps:$4 sm:$0xff] (%p6423_p1)  }
 0x731   : >> { %v6430_v18 = vld [vmem:[%s6429_s29] sm:$0x3]  ;;  %v6431_v59 = vld [vmem:[%s6429_s29 + $0x8] sm:$0x3]  ;;  %v6444_v19 = vld [vmem:[%s6429_s29 + $0x2] sm:$0x3]  ;;  %6582 = vmatprep.subr.bf16.mxu0 (%p6423_p1), %v10544_v11  ;;  %6703 = vmatprep.subr.bf16.mxu1 (%p6423_p1), %v10546_v10 }
 0x732   : >> { %v6432_v20 = vmax.f32 %v6430_v18, %v6431_v59  ;;  %v6445_v21 = vld [vmem:[%s6429_s29 + $0xa] sm:$0x3]  ;;  %v6455_v58 = vld [vmem:[%s6429_s29 + $0x4] sm:$0x3]  ;;  %v6456_v57 = vld [vmem:[%s6429_s29 + $0xc] sm:$0x3]  ;;  %6583 = vmatpush1.bf16.msra.mxu0 (%p6423_p1), %v10548_v0  ;;  %6704 = vmatpush1.bf16.msra.mxu1 (%p6423_p1), %v10549_v1 }
 0x733   : >> { %v6446_v61 = vmax.f32 %v6444_v19, %v6445_v21  ;;  %v6457_v22 = vmax.f32 %v6455_v58, %v6456_v57  ;;  %v10552_v43 = vld [vmem:[#allocation12 + $0x14] ss:$8 sps:$4 sm:$0xff] (%p6423_p1)   ;;  %v10554_v45 = vld [vmem:[#allocation12 + $0x90] ss:$8 sps:$4 sm:$0xff] (%p6423_p1)   ;;  %6584 = vmatprep.subr.bf16.mxu0 (%p6423_p1), %v10550_v2  ;;  %v10556_v15 = vld [vmem:[#allocation12 + $0xa4] ss:$8 sps:$4 sm:$0xff] (%p6423_p1)  }
 0x734   : >> { %v6434_v16 = vsel %vm4318_vm0, %v6432_v20, -inf  ;;  %v10555_v8 = vld [vmem:[#allocation12 + $0x10] ss:$8 sps:$4 sm:$0xff] (%p6423_p1)   ;;  %6705 = vmatprep.subr.bf16.mxu1 (%p6423_p1), %v10552_v43  ;;  %v10558_v46 = vld [vmem:[#allocation12 + $0x24] ss:$8 sps:$4 sm:$0xff] (%p6423_p1)  }
 0x735   : >> { %v6435_v39 = vrot.slane %v6434_v16, 4  ;;  %v6447_v44 = vsel %vm4318_vm0, %v6446_v61, -inf  ;;  %v6458_v3 = vsel %vm4318_vm0, %v6457_v22, -inf  ;;  %v10560_v47 = vld [vmem:[#allocation12 + $0xa0] ss:$8 sps:$4 sm:$0xff] (%p6423_p1)  }
 0x736   : >> { %v6448_v23 = vrot.slane %v6447_v44, 4  ;;  %v6459_v7 = vrot.slane %v6458_v3, 4  ;;  %v10561_v26 = vld [vmem:[#allocation12 + $0x20] ss:$8 sps:$4 sm:$0xff] (%p6423_p1)   ;;  %6585 = vmatpush1.bf16.msra.mxu0 (%p6423_p1), %v10554_v45  ;;  %6706 = vmatpush1.bf16.msra.mxu1 (%p6423_p1), %v10555_v8  ;;  %v10562_v48 = vld [vmem:[#allocation12 + $0xb4] ss:$8 sps:$4 sm:$0xff] (%p6423_p1)  }
 0x737   : >> { %v6436_v24 = vmax.f32 %v6434_v16, %v6435_v39  ;;  %6586 = vmatprep.subr.bf16.mxu0 (%p6423_p1), %v10556_v15  ;;  %6707 = vmatprep.subr.bf16.mxu1 (%p6423_p1), %v10558_v46  ;;  %v10564_v49 = vld [vmem:[#allocation12 + $0x34] ss:$8 sps:$4 sm:$0xff] (%p6423_p1)   ;;  %v10566_v50 = vld [vmem:[#allocation12 + $0xb0] ss:$8 sps:$4 sm:$0xff] (%p6423_p1)   ;;  %v10568_v34 = vld [vmem:[#allocation12 + $0xc4] ss:$8 sps:$4 sm:$0xff] (%p6423_p1)  }
 0x738   : >> { %v6449_v27 = vmax.f32 %v6447_v44, %v6448_v23  ;;  %v6460_v28 = vmax.f32 %v6458_v3, %v6459_v7  ;;  %v10567_v52 = vld [vmem:[#allocation12 + $0x30] ss:$8 sps:$4 sm:$0xff] (%p6423_p1)   ;;  %v10570_v36 = vld [vmem:[#allocation12 + $0x44] ss:$8 sps:$4 sm:$0xff] (%p6423_p1)   ;;  %v10572_v41 = vld [vmem:[#allocation12 + $0xc0] ss:$8 sps:$4 sm:$0xff] (%p6423_p1)  }
 0x739   : >> { %v6437_v62 = vrot.slane %v6436_v24, 2  ;;  %v10573_v51 = vld [vmem:[#allocation12 + $0x40] ss:$8 sps:$4 sm:$0xff] (%p6423_p1)   ;;  %v10574_v53 = vld [vmem:[#allocation12 + $0xd4] ss:$8 sps:$4 sm:$0xff] (%p6423_p1)  }
 0x73a   : >> { %v6450_v4 = vrot.slane %v6449_v27, 2  ;;  %v6461_v5 = vrot.slane %v6460_v28, 2  ;;  %6587 = vmatpush1.bf16.msra.mxu0 (%p6423_p1), %v10560_v47  ;;  %6708 = vmatpush1.bf16.msra.mxu1 (%p6423_p1), %v10561_v26  ;;  %v10576_v54 = vld [vmem:[#allocation12 + $0x54] ss:$8 sps:$4 sm:$0xff] (%p6423_p1)   ;;  %v10578_v38 = vld [vmem:[#allocation12 + $0xd0] ss:$8 sps:$4 sm:$0xff] (%p6423_p1)  }
 0x73b   : >> { %v6438_v29 = vmax.f32 %v6436_v24, %v6437_v62  ;;  %6588 = vmatprep.subr.bf16.mxu0 (%p6423_p1), %v10562_v48  ;;  %6709 = vmatprep.subr.bf16.mxu1 (%p6423_p1), %v10564_v49  ;;  %v10579_v40 = vld [vmem:[#allocation12 + $0x50] ss:$8 sps:$4 sm:$0xff] (%p6423_p1)   ;;  %v10580_v42 = vld [vmem:[#allocation12 + $0xe4] ss:$8 sps:$4 sm:$0xff] (%p6423_p1)   ;;  %v10584_v13 = vld [vmem:[#allocation12 + $0xe0] ss:$8 sps:$4 sm:$0xff] (%p6423_p1)  }
 0x73c   : >> { %v6451_v30 = vmax.f32 %v6449_v27, %v6450_v4  ;;  %v6462_v31 = vmax.f32 %v6460_v28, %v6461_v5  ;;  %6425 = sbr.rel (!%p6423_p1) target bundleno = 1835 (0x72b), region = 238  ;;  %v10582_v55 = vld [vmem:[#allocation12 + $0x64] ss:$8 sps:$4 sm:$0xff] (%p6423_p1)   ;;  %v10585_v14 = vld [vmem:[#allocation12 + $0x60] ss:$8 sps:$4 sm:$0xff] (%p6423_p1)  }
 0x73d   : >> { %v6439_v63 = vrot.slane %v6438_v29, 1  ;;  %v10586_v17 = vld [vmem:[#allocation12 + $0xf4] ss:$8 sps:$4 sm:$0xff] (%p6423_p1)   ;;  %v10590_v12 = vld [vmem:[#allocation12 + $0xf0] ss:$8 sps:$4 sm:$0xff] (%p6423_p1)  }
 0x73e   : >> { %v6452_v6 = vrot.slane %v6451_v30, 1  ;;  %v6463_v32 = vrot.slane %v6462_v31, 1  ;;  %6589 = vmatpush1.bf16.msra.mxu0 (%p6423_p1), %v10566_v50  ;;  %6710 = vmatpush1.bf16.msra.mxu1 (%p6423_p1), %v10567_v52  ;;  %v10588_v25 = vld [vmem:[#allocation12 + $0x74] ss:$8 sps:$4 sm:$0xff] (%p6423_p1)   ;;  %v10591_v56 = vld [vmem:[#allocation12 + $0x70] ss:$8 sps:$4 sm:$0xff] (%p6423_p1)  }
 0x73f   : >> { %v6440_v33 = vmax.f32 %v6438_v29, %v6439_v63  ;;  %6590 = vmatprep.subr.bf16.mxu0 (%p6423_p1), %v10568_v34  ;;  %6711 = vmatprep.subr.bf16.mxu1 (%p6423_p1), %v10570_v36  ;;  %v10594_v59 = vld [vmem:[#allocation12 + $0x104] ss:$8 sps:$4 sm:$0xff] (%p6423_p1)   ;;  %v10592_v58 = vld [vmem:[#allocation12 + $0x100] ss:$8 sps:$4 sm:$0xff] (%p6423_p1)   ;;  %v10600_v61 = vld [vmem:[#allocation12 + $0x114] ss:$8 sps:$4 sm:$0xff] (%p6423_p1)  }
 0x740   : >> { %v6453_v9 = vmax.f32 %v6451_v30, %v6452_v6  ;;  %v6464_v37 = vmax.f32 %v6462_v31, %v6463_v32  ;;  %v10597_v19 = vld [vmem:[#allocation12 + $0x184] ss:$8 sps:$4 sm:$0xff] (%p6423_p1)   ;;  %v10595_v57 = vld [vmem:[#allocation12 + $0x180] ss:$8 sps:$4 sm:$0xff] (%p6423_p1)   ;;  %v10603_v22 = vld [vmem:[#allocation12 + $0x194] ss:$8 sps:$4 sm:$0xff] (%p6423_p1)  }
 0x741   : >> { %6443 = vst [vmem:[%s6442_s15] sm:$0x1] %v6440_v33  ;;  %v10598_v16 = vld [vmem:[#allocation12 + $0x110] ss:$8 sps:$4 sm:$0xff] (%p6423_p1)   ;;  %v10606_v44 = vld [vmem:[#allocation12 + $0x124] ss:$8 sps:$4 sm:$0xff] (%p6423_p1)  }
 0x742   : >> { %6454 = vst [vmem:[%s6442_s15 + $0x1] sm:$0x1] %v6453_v9  ;;  %6465 = vst [vmem:[%s6442_s15 + $0x2] sm:$0x1] %v6464_v37  ;;  %6591 = vmatpush1.bf16.msra.mxu0 (%p6423_p1), %v10572_v41  ;;  %6712 = vmatpush1.bf16.msra.mxu1 (%p6423_p1), %v10573_v51  ;;  %v10601_v39 = vld [vmem:[#allocation12 + $0x190] ss:$8 sps:$4 sm:$0xff] (%p6423_p1)  }
 0x743   : > { %6592 = vmatprep.subr.bf16.mxu0 %v10574_v53  ;;  %6713 = vmatprep.subr.bf16.mxu1 %v10576_v54  ;;  %v10609_v3 = vld [vmem:[#allocation12 + $0x1a4] ss:$8 sps:$4 sm:$0xff]   ;;  %v10604_v23 = vld [vmem:[#allocation12 + $0x120] ss:$8 sps:$4 sm:$0xff]   ;;  %v10612_v24 = vld [vmem:[#allocation12 + $0x134] ss:$8 sps:$4 sm:$0xff]  }
 0x744   : > { %v10607_v7 = vld [vmem:[#allocation12 + $0x1a0] ss:$8 sps:$4 sm:$0xff]   ;;  %v10615_v27 = vld [vmem:[#allocation12 + $0x1b4] ss:$8 sps:$4 sm:$0xff]   ;;  %v10610_v28 = vld [vmem:[#allocation12 + $0x130] ss:$8 sps:$4 sm:$0xff]  }
 0x745   : > { %v10613_v62 = vld [vmem:[#allocation12 + $0x1b0] ss:$8 sps:$4 sm:$0xff]   ;;  %v10618_v4 = vld [vmem:[#allocation12 + $0x144] ss:$8 sps:$4 sm:$0xff]   ;;  %v10616_v29 = vld [vmem:[#allocation12 + $0x140] ss:$8 sps:$4 sm:$0xff]  }
 0x746   : > { %6593 = vmatpush1.bf16.msra.mxu0 %v10578_v38  ;;  %6714 = vmatpush1.bf16.msra.mxu1 %v10579_v40  ;;  %v10621_v5 = vld [vmem:[#allocation12 + $0x1c4] ss:$8 sps:$4 sm:$0xff]   ;;  %v10619_v30 = vld [vmem:[#allocation12 + $0x1c0] ss:$8 sps:$4 sm:$0xff]   ;;  %v10624_v31 = vld [vmem:[#allocation12 + $0x154] ss:$8 sps:$4 sm:$0xff]  }
 0x747   : > { %6594 = vmatprep.subr.bf16.mxu0 %v10580_v42  ;;  %6715 = vmatprep.subr.bf16.mxu1 %v10582_v55  ;;  %v10627_v63 = vld [vmem:[#allocation12 + $0x1d4] ss:$8 sps:$4 sm:$0xff]   ;;  %v10622_v6 = vld [vmem:[#allocation12 + $0x150] ss:$8 sps:$4 sm:$0xff]   ;;  %v10630_v33 = vld [vmem:[#allocation12 + $0x164] ss:$8 sps:$4 sm:$0xff]  }
 0x748   : > { %v10625_v32 = vld [vmem:[#allocation12 + $0x1d0] ss:$8 sps:$4 sm:$0xff]   ;;  %v10633_v9 = vld [vmem:[#allocation12 + $0x1e4] ss:$8 sps:$4 sm:$0xff]   ;;  %v10628_v37 = vld [vmem:[#allocation12 + $0x160] ss:$8 sps:$4 sm:$0xff]  }
 0x749   : > { %v6484_v60 = vld [vmem:[#allocation7 + $0x1] sm:$0x1]  ;;  %v6466_v18 = vld [vmem:[#allocation7] sm:$0x1]  ;;  %v10631_v11 = vld [vmem:[#allocation12 + $0x1e0] ss:$8 sps:$4 sm:$0xff]  }
 0x74a   : > { %6595 = vmatpush1.bf16.msra.mxu0 %v10584_v13  ;;  %6716 = vmatpush1.bf16.msra.mxu1 %v10585_v14  ;;  %v6501_v20 = vpack.c.bf16 %v6484_v60, %v6484_v60  ;;  %v6483_v21 = vpack.c.bf16 %v6466_v18, %v6466_v18  ;;  %v10636_v10 = vld [vmem:[#allocation12 + $0x174] ss:$8 sps:$4 sm:$0xff]   ;;  %v10634_v1 = vld [vmem:[#allocation12 + $0x170] ss:$8 sps:$4 sm:$0xff]   ;;  %v10642_v45 = vld [vmem:[#allocation12 + $0x204] ss:$8 sps:$4 sm:$0xff]  }
 0x74b   : > { %6596 = vmatprep.subr.bf16.mxu0 %v10586_v17  ;;  %6717 = vmatprep.subr.bf16.mxu1 %v10588_v25  ;;  %v10639_v0 = vld [vmem:[#allocation12 + $0x1f4] ss:$8 sps:$4 sm:$0xff]   ;;  %v10637_v2 = vld [vmem:[#allocation12 + $0x1f0] ss:$8 sps:$4 sm:$0xff]   ;;  %v10645_v15 = vld [vmem:[#allocation12 + $0x284] ss:$8 sps:$4 sm:$0xff]  }
 0x74c   : > { %v6744_v43 = vld [vmem:[#allocation7 + $0x2] sm:$0x1]  ;;  %v6886_v8 = vld [vmem:[#allocation7 + $0x4] sm:$0x1]  ;;  %v10640_v47 = vld [vmem:[#allocation12 + $0x200] ss:$8 sps:$4 sm:$0xff]  }
 0x74d   : > { %v6761_v46 = vpack.c.bf16 %v6744_v43, %v6744_v43  ;;  %v6903_v26 = vpack.c.bf16 %v6886_v8, %v6886_v8  ;;  %v10643_v48 = vld [vmem:[#allocation12 + $0x280] ss:$8 sps:$4 sm:$0xff]   ;;  %v10648_v49 = vld [vmem:[#allocation12 + $0x214] ss:$8 sps:$4 sm:$0xff]   ;;  %v10646_v52 = vld [vmem:[#allocation12 + $0x210] ss:$8 sps:$4 sm:$0xff]  }
 0x74e   : > { %6597 = vmatpush1.bf16.msra.mxu0 %v10590_v12  ;;  %6718 = vmatpush1.bf16.msra.mxu1 %v10591_v56  ;;  %v10651_v50 = vld [vmem:[#allocation12 + $0x294] ss:$8 sps:$4 sm:$0xff]   ;;  %v10649_v34 = vld [vmem:[#allocation12 + $0x290] ss:$8 sps:$4 sm:$0xff]   ;;  %v10654_v36 = vld [vmem:[#allocation12 + $0x224] ss:$8 sps:$4 sm:$0xff]  }
 0x74f   : > { %6842 = vmatprep.subr.bf16.mxu0 %v10594_v59  ;;  %6984 = vmatprep.subr.bf16.mxu1 %v10597_v19  ;;  %v10657_v41 = vld [vmem:[#allocation12 + $0x2a4] ss:$8 sps:$4 sm:$0xff]   ;;  %v10652_v51 = vld [vmem:[#allocation12 + $0x220] ss:$8 sps:$4 sm:$0xff]   ;;  %v10660_v54 = vld [vmem:[#allocation12 + $0x234] ss:$8 sps:$4 sm:$0xff]  }
 0x750   : > { %v10655_v53 = vld [vmem:[#allocation12 + $0x2a0] ss:$8 sps:$4 sm:$0xff]   ;;  %v10663_v38 = vld [vmem:[#allocation12 + $0x2b4] ss:$8 sps:$4 sm:$0xff]   ;;  %v10658_v40 = vld [vmem:[#allocation12 + $0x230] ss:$8 sps:$4 sm:$0xff]  }
 0x751   : > { %6615 = vmatmul.mubr.bf16.vlgmr.msra.gmra.mrb[0].mxu0 %v6501_v20  ;;  %6736 = vmatmul.mubr.bf16.vlgmr.msra.gmra.mrb[0].mxu1 %v6483_v21  ;;  %v10661_v42 = vld [vmem:[#allocation12 + $0x2b0] ss:$8 sps:$4 sm:$0xff]   ;;  %v10666_v55 = vld [vmem:[#allocation12 + $0x244] ss:$8 sps:$4 sm:$0xff]   ;;  %v10664_v14 = vld [vmem:[#allocation12 + $0x240] ss:$8 sps:$4 sm:$0xff]  }
 0x752   : > { %6843 = vmatpush1.bf16.msra.mxu0 %v10592_v58  ;;  %6985 = vmatpush1.bf16.msra.mxu1 %v10595_v57  ;;  %v10669_v13 = vld [vmem:[#allocation12 + $0x2c4] ss:$8 sps:$4 sm:$0xff]   ;;  %v10667_v17 = vld [vmem:[#allocation12 + $0x2c0] ss:$8 sps:$4 sm:$0xff]   ;;  %v10672_v25 = vld [vmem:[#allocation12 + $0x254] ss:$8 sps:$4 sm:$0xff]  }
 0x753   : > { %6844 = vmatprep.subr.bf16.mxu0 %v10600_v61  ;;  %6986 = vmatprep.subr.bf16.mxu1 %v10603_v22  ;;  %v10675_v12 = vld [vmem:[#allocation12 + $0x2d4] ss:$8 sps:$4 sm:$0xff]   ;;  %v10670_v56 = vld [vmem:[#allocation12 + $0x250] ss:$8 sps:$4 sm:$0xff]   ;;  %v10678_v18 = vld [vmem:[#allocation12 + $0x264] ss:$8 sps:$4 sm:$0xff]  }
 0x754   : > { %6874 = vmatprep.mubr.bf16.mxu0 %v10936_v35  ;;  %7016 = vmatprep.mubr.bf16.mxu1 %v10936_v35  ;;  %v10673_v60 = vld [vmem:[#allocation12 + $0x2d0] ss:$8 sps:$4 sm:$0xff]   ;;  %v10681_v59 = vld [vmem:[#allocation12 + $0x2e4] ss:$8 sps:$4 sm:$0xff]   ;;  %v10676_v19 = vld [vmem:[#allocation12 + $0x260] ss:$8 sps:$4 sm:$0xff]  }
 0x755   : > { %v10679_v20 = vld [vmem:[#allocation12 + $0x2e0] ss:$8 sps:$4 sm:$0xff]   ;;  %v10684_v21 = vld [vmem:[#allocation12 + $0x274] ss:$8 sps:$4 sm:$0xff]   ;;  %v10682_v57 = vld [vmem:[#allocation12 + $0x270] ss:$8 sps:$4 sm:$0xff]  }
 0x756   : > { %6845 = vmatpush1.bf16.msra.mxu0 %v10598_v16  ;;  %6987 = vmatpush1.bf16.msra.mxu1 %v10601_v39  ;;  %v10687_v58 = vld [vmem:[#allocation12 + $0x2f4] ss:$8 sps:$4 sm:$0xff]   ;;  %v10685_v61 = vld [vmem:[#allocation12 + $0x2f0] ss:$8 sps:$4 sm:$0xff]   ;;  %v10690_v16 = vld [vmem:[#allocation12 + $0x304] ss:$8 sps:$4 sm:$0xff]  }
 0x757   : > { %6846 = vmatprep.subr.bf16.mxu0 %v10606_v44  ;;  %6988 = vmatprep.subr.bf16.mxu1 %v10609_v3  ;;  %v7027_v22 = vld [vmem:[#allocation7 + $0x5] sm:$0x1]  ;;  %v7168_v39 = vld [vmem:[#allocation7 + $0x6] sm:$0x1]  ;;  %v10693_v44 = vld [vmem:[#allocation12 + $0x384] ss:$8 sps:$4 sm:$0xff]  }
 0x758   : > { %v7044_v3 = vpack.c.bf16 %v7027_v22, %v7027_v22  ;;  %v10721_v43 = vld [vmem:[#allocation12 + $0x3d0] ss:$8 sps:$4 sm:$0xff]   ;;  %v10729_v8 = vld [vmem:[#allocation12 + $0x3e4] ss:$8 sps:$4 sm:$0xff]   ;;  %v10766_v22 = vld [vmem:[%s12511_s11 + $0x58] sm:$0xff]  }
 0x75a   : > { %6847 = vmatpush1.bf16.msra.mxu0 %v10604_v23  ;;  %6989 = vmatpush1.bf16.msra.mxu1 %v10607_v7  ;;  %v10688_v23 = vld [vmem:[#allocation12 + $0x300] ss:$8 sps:$4 sm:$0xff]   ;;  %v7185_v7 = vpack.c.bf16 %v7168_v39, %v7168_v39 }
 0x75b   : > { %6848 = vmatprep.subr.bf16.mxu0 %v10612_v24  ;;  %6990 = vmatprep.subr.bf16.mxu1 %v10615_v27  ;;  %v10691_v24 = vld [vmem:[#allocation12 + $0x380] ss:$8 sps:$4 sm:$0xff]   ;;  %v10696_v27 = vld [vmem:[#allocation12 + $0x314] ss:$8 sps:$4 sm:$0xff]  }
 0x75c   : > { %v10768_v39 = vld [vmem:[%s12511_s11 + $0x60] sm:$0xff]  }
 0x75e   : > { %6849 = vmatpush1.bf16.msra.mxu0 %v10610_v28  ;;  %6991 = vmatpush1.bf16.msra.mxu1 %v10613_v62  ;;  %v10699_v28 = vld [vmem:[#allocation12 + $0x394] ss:$8 sps:$4 sm:$0xff]   ;;  %v10694_v62 = vld [vmem:[#allocation12 + $0x310] ss:$8 sps:$4 sm:$0xff]  }
 0x75f   : > { %6850 = vmatprep.subr.bf16.mxu0 %v10618_v4  ;;  %6992 = vmatprep.subr.bf16.mxu1 %v10621_v5  ;;  %v10697_v4 = vld [vmem:[#allocation12 + $0x390] ss:$8 sps:$4 sm:$0xff]   ;;  %v10702_v5 = vld [vmem:[#allocation12 + $0x324] ss:$8 sps:$4 sm:$0xff]  }
 0x762   : > { %6851 = vmatpush1.bf16.msra.mxu0 %v10616_v29  ;;  %6993 = vmatpush1.bf16.msra.mxu1 %v10619_v30  ;;  %v10705_v29 = vld [vmem:[#allocation12 + $0x3a4] ss:$8 sps:$4 sm:$0xff]   ;;  %v10700_v30 = vld [vmem:[#allocation12 + $0x320] ss:$8 sps:$4 sm:$0xff]  }
 0x763   : > { %6852 = vmatprep.subr.bf16.mxu0 %v10624_v31  ;;  %6994 = vmatprep.subr.bf16.mxu1 %v10627_v63  ;;  %v10703_v31 = vld [vmem:[#allocation12 + $0x3a0] ss:$8 sps:$4 sm:$0xff]   ;;  %v10708_v63 = vld [vmem:[#allocation12 + $0x334] ss:$8 sps:$4 sm:$0xff]  }
 0x766   : > { %6853 = vmatpush1.bf16.msra.mxu0 %v10622_v6  ;;  %6995 = vmatpush1.bf16.msra.mxu1 %v10625_v32  ;;  %v10711_v6 = vld [vmem:[#allocation12 + $0x3b4] ss:$8 sps:$4 sm:$0xff]   ;;  %v10706_v32 = vld [vmem:[#allocation12 + $0x330] ss:$8 sps:$4 sm:$0xff]  }
 0x767   : > { %6854 = vmatprep.subr.bf16.mxu0 %v10630_v33  ;;  %6996 = vmatprep.subr.bf16.mxu1 %v10633_v9  ;;  %v10709_v33 = vld [vmem:[#allocation12 + $0x3b0] ss:$8 sps:$4 sm:$0xff]   ;;  %v10714_v9 = vld [vmem:[#allocation12 + $0x344] ss:$8 sps:$4 sm:$0xff]  }
 0x76a   : > { %6855 = vmatpush1.bf16.msra.mxu0 %v10628_v37  ;;  %6997 = vmatpush1.bf16.msra.mxu1 %v10631_v11  ;;  %v10717_v37 = vld [vmem:[#allocation12 + $0x3c4] ss:$8 sps:$4 sm:$0xff]   ;;  %v10712_v11 = vld [vmem:[#allocation12 + $0x340] ss:$8 sps:$4 sm:$0xff]  }
 0x76b   : > { %6856 = vmatprep.subr.bf16.mxu0 %v10636_v10  ;;  %6998 = vmatprep.subr.bf16.mxu1 %v10639_v0  ;;  %v10715_v10 = vld [vmem:[#allocation12 + $0x3c0] ss:$8 sps:$4 sm:$0xff]   ;;  %v10720_v0 = vld [vmem:[#allocation12 + $0x354] ss:$8 sps:$4 sm:$0xff]  }
 0x76e   : > { %6857 = vmatpush1.bf16.msra.mxu0 %v10634_v1  ;;  %6999 = vmatpush1.bf16.msra.mxu1 %v10637_v2  ;;  %v10723_v1 = vld [vmem:[#allocation12 + $0x3d4] ss:$8 sps:$4 sm:$0xff]   ;;  %v10718_v2 = vld [vmem:[#allocation12 + $0x350] ss:$8 sps:$4 sm:$0xff]  }
 0x76f   : > { %7125 = vmatprep.subr.bf16.mxu0 %v10642_v45  ;;  %7266 = vmatprep.subr.bf16.mxu1 %v10645_v15  ;;  %v10726_v45 = vld [vmem:[#allocation12 + $0x364] ss:$8 sps:$4 sm:$0xff]   ;;  %v10724_v15 = vld [vmem:[#allocation12 + $0x360] ss:$8 sps:$4 sm:$0xff]  }
 0x771   : > { %6875 = vmatmul.mubr.bf16.vlgmr.msra.gmra.mrb[4].mxu0 %v6761_v46  ;;  %7017 = vmatmul.mubr.bf16.vlgmr.msra.gmra.mrb[4].mxu1 %v6903_v26  ;;  %v10727_v46 = vld [vmem:[#allocation12 + $0x3e0] ss:$8 sps:$4 sm:$0xff]   ;;  %v10735_v26 = vld [vmem:[#allocation12 + $0x3f4] ss:$8 sps:$4 sm:$0xff]  }
 0x772   : > { %7126 = vmatpush1.bf16.msra.mxu0 %v10640_v47  ;;  %7267 = vmatpush1.bf16.msra.mxu1 %v10643_v48  ;;  %v10732_v47 = vld [vmem:[#allocation12 + $0x374] ss:$8 sps:$4 sm:$0xff]   ;;  %v10730_v48 = vld [vmem:[#allocation12 + $0x370] ss:$8 sps:$4 sm:$0xff]  }
 0x773   : > { %7127 = vmatprep.subr.bf16.mxu0 %v10648_v49  ;;  %7268 = vmatprep.subr.bf16.mxu1 %v10651_v50  ;;  %v10733_v49 = vld [vmem:[#allocation12 + $0x3f0] ss:$8 sps:$4 sm:$0xff]   ;;  %v7310_v50 = vld [vmem:[#allocation7 + $0x8] sm:$0x1] }
 0x774   : > { %7157 = vmatprep.mubr.bf16.mxu0 %v10936_v35  ;;  %7298 = vmatprep.mubr.bf16.mxu1 %v10936_v35 }
 0x776   : > { %7128 = vmatpush1.bf16.msra.mxu0 %v10646_v52  ;;  %7269 = vmatpush1.bf16.msra.mxu1 %v10649_v34  ;;  %v7451_v52 = vld [vmem:[#allocation7 + $0x9] sm:$0x1]  ;;  %v10738_v34 = vld [vmem:[#allocation12 + $0x404] ss:$8 sps:$4 sm:$0xff]  }
 0x777   : > { %7129 = vmatprep.subr.bf16.mxu0 %v10654_v36  ;;  %7270 = vmatprep.subr.bf16.mxu1 %v10657_v41  ;;  %v7327_v36 = vpack.c.bf16 %v7310_v50, %v7310_v50  ;;  %v7468_v41 = vpack.c.bf16 %v7451_v52, %v7451_v52 }
 0x77a   : > { %7130 = vmatpush1.bf16.msra.mxu0 %v10652_v51  ;;  %7271 = vmatpush1.bf16.msra.mxu1 %v10655_v53  ;;  %v10736_v51 = vld [vmem:[#allocation12 + $0x400] ss:$8 sps:$4 sm:$0xff]   ;;  %v10741_v53 = vld [vmem:[#allocation12 + $0x414] ss:$8 sps:$4 sm:$0xff]  }
 0x77b   : > { %7131 = vmatprep.subr.bf16.mxu0 %v10660_v54  ;;  %7272 = vmatprep.subr.bf16.mxu1 %v10663_v38  ;;  %v10739_v54 = vld [vmem:[#allocation12 + $0x410] ss:$8 sps:$4 sm:$0xff]   ;;  %v10744_v38 = vld [vmem:[#allocation12 + $0x424] ss:$8 sps:$4 sm:$0xff]  }
 0x77e   : > { %7132 = vmatpush1.bf16.msra.mxu0 %v10658_v40  ;;  %7273 = vmatpush1.bf16.msra.mxu1 %v10661_v42  ;;  %v10742_v40 = vld [vmem:[#allocation12 + $0x420] ss:$8 sps:$4 sm:$0xff]   ;;  %v10747_v42 = vld [vmem:[#allocation12 + $0x434] ss:$8 sps:$4 sm:$0xff]  }
 0x77f   : > { %7133 = vmatprep.subr.bf16.mxu0 %v10666_v55  ;;  %7274 = vmatprep.subr.bf16.mxu1 %v10669_v13  ;;  %v10745_v55 = vld [vmem:[#allocation12 + $0x430] ss:$8 sps:$4 sm:$0xff]   ;;  %v10750_v13 = vld [vmem:[#allocation12 + $0x444] ss:$8 sps:$4 sm:$0xff]  }
 0x782   : > { %7134 = vmatpush1.bf16.msra.mxu0 %v10664_v14  ;;  %7275 = vmatpush1.bf16.msra.mxu1 %v10667_v17  ;;  %v10748_v14 = vld [vmem:[#allocation12 + $0x440] ss:$8 sps:$4 sm:$0xff]   ;;  %v10753_v17 = vld [vmem:[#allocation12 + $0x454] ss:$8 sps:$4 sm:$0xff]  }
 0x783   : > { %7135 = vmatprep.subr.bf16.mxu0 %v10672_v25  ;;  %7276 = vmatprep.subr.bf16.mxu1 %v10675_v12  ;;  %v10751_v25 = vld [vmem:[#allocation12 + $0x450] ss:$8 sps:$4 sm:$0xff]   ;;  %v10756_v12 = vld [vmem:[#allocation12 + $0x464] ss:$8 sps:$4 sm:$0xff]  }
 0x786   : > { %7136 = vmatpush1.bf16.msra.mxu0 %v10670_v56  ;;  %7277 = vmatpush1.bf16.msra.mxu1 %v10673_v60  ;;  %v10759_v56 = vld [vmem:[#allocation12 + $0x474] ss:$8 sps:$4 sm:$0xff]   ;;  %v10757_v60 = vld [vmem:[#allocation12 + $0x470] ss:$8 sps:$4 sm:$0xff]  }
 0x787   : > { %7137 = vmatprep.subr.bf16.mxu0 %v10678_v18  ;;  %7278 = vmatprep.subr.bf16.mxu1 %v10681_v59  ;;  %v7592_v18 = vld [vmem:[#allocation7 + $0xa] sm:$0x1] }
 0x788   : > { %v7609_v59 = vpack.c.bf16 %v7592_v18, %v7592_v18  ;;  %v7735_v18 = vlaneseq }
 0x78a   : > { %7138 = vmatpush1.bf16.msra.mxu0 %v10676_v19  ;;  %7279 = vmatpush1.bf16.msra.mxu1 %v10679_v20  ;;  %v10760_v19 = vld [vmem:[%s12511_s11 + $0x40] sm:$0xff]  }
 0x78b   : > { %7139 = vmatprep.subr.bf16.mxu0 %v10684_v21  ;;  %7280 = vmatprep.subr.bf16.mxu1 %v10687_v58  ;;  %v10761_v20 = vld [vmem:[%s12511_s11] sm:$0xff]   ;;  %v10762_v21 = vld [vmem:[%s12511_s11 + $0x48] sm:$0xff]  }
 0x78c   : > { %v10763_v58 = vld [vmem:[%s12511_s11 + $0x8] sm:$0xff]  }
 0x78e   : > { %7140 = vmatpush1.bf16.msra.mxu0 %v10682_v57  ;;  %7281 = vmatpush1.bf16.msra.mxu1 %v10685_v61  ;;  %v10764_v57 = vld [vmem:[%s12511_s11 + $0x50] sm:$0xff]  }
 0x78f   : > { %7408 = vmatprep.subr.bf16.mxu0 %v10690_v16  ;;  %7549 = vmatprep.subr.bf16.mxu1 %v10693_v44  ;;  %v10765_v61 = vld [vmem:[%s12511_s11 + $0x10] sm:$0xff]   ;;  %v10767_v16 = vld [vmem:[%s12511_s11 + $0x18] sm:$0xff]   ;;  %v10769_v44 = vld [vmem:[%s12511_s11 + $0x20] sm:$0xff]  }
 0x791   : > { %7158 = vmatmul.mubr.bf16.vlgmr.msra.gmra.mrb[8].mxu0 %v7044_v3  ;;  %7299 = vmatmul.mubr.bf16.vlgmr.msra.gmra.mrb[8].mxu1 %v7185_v7  ;;  %v10770_v3 = vld [vmem:[%s12511_s11 + $0x68] sm:$0xff]  }
 0x792   : > { %7409 = vmatpush1.bf16.msra.mxu0 %v10688_v23  ;;  %7550 = vmatpush1.bf16.msra.mxu1 %v10691_v24  ;;  %v10771_v23 = vld [vmem:[%s12511_s11 + $0x28] sm:$0xff]  }
 0x793   : > { %7410 = vmatprep.subr.bf16.mxu0 %v10696_v27  ;;  %7551 = vmatprep.subr.bf16.mxu1 %v10699_v28 }
 0x794   : > { %7440 = vmatprep.mubr.bf16.mxu0 %v10936_v35  ;;  %7581 = vmatprep.mubr.bf16.mxu1 %v10936_v35 }
 0x796   : > { %7411 = vmatpush1.bf16.msra.mxu0 %v10694_v62  ;;  %7552 = vmatpush1.bf16.msra.mxu1 %v10697_v4  ;;  %v10772_v4 = vld [vmem:[%s12511_s11 + $0x70] sm:$0xff]  }
 0x797   : > { %7412 = vmatprep.subr.bf16.mxu0 %v10702_v5  ;;  %7553 = vmatprep.subr.bf16.mxu1 %v10705_v29 }
 0x79a   : > { %7413 = vmatpush1.bf16.msra.mxu0 %v10700_v30  ;;  %7554 = vmatpush1.bf16.msra.mxu1 %v10703_v31  ;;  %v10773_v31 = vld [vmem:[%s12511_s11 + $0x30] sm:$0xff]  }
 0x79b   : > { %7414 = vmatprep.subr.bf16.mxu0 %v10708_v63  ;;  %7555 = vmatprep.subr.bf16.mxu1 %v10711_v6 }
 0x79e   : > { %7415 = vmatpush1.bf16.msra.mxu0 %v10706_v32  ;;  %7556 = vmatpush1.bf16.msra.mxu1 %v10709_v33  ;;  %v10774_v32 = vld [vmem:[%s12511_s11 + $0x78] sm:$0xff]  }
 0x79f   : > { %7416 = vmatprep.subr.bf16.mxu0 %v10714_v9  ;;  %7557 = vmatprep.subr.bf16.mxu1 %v10717_v37  ;;  %v10775_v33 = vld [vmem:[%s12511_s11 + $0x38] sm:$0xff]  }
 0x7a2   : > { %7417 = vmatpush1.bf16.msra.mxu0 %v10712_v11  ;;  %7558 = vmatpush1.bf16.msra.mxu1 %v10715_v10 }
 0x7a3   : > { %7418 = vmatprep.subr.bf16.mxu0 %v10720_v0  ;;  %7559 = vmatprep.subr.bf16.mxu1 %v10723_v1 }
 0x7a6   : > { %7419 = vmatpush1.bf16.msra.mxu0 %v10718_v2  ;;  %7560 = vmatpush1.bf16.msra.mxu1 %v10721_v43 }
 0x7a7   : > { %7420 = vmatprep.subr.bf16.mxu0 %v10726_v45  ;;  %7561 = vmatprep.subr.bf16.mxu1 %v10729_v8 }
 0x7aa   : > { %7421 = vmatpush1.bf16.msra.mxu0 %v10724_v15  ;;  %7562 = vmatpush1.bf16.msra.mxu1 %v10727_v46 }
 0x7ab   : > { %7422 = vmatprep.subr.bf16.mxu0 %v10732_v47  ;;  %7563 = vmatprep.subr.bf16.mxu1 %v10735_v26 }
 0x7ae   : > { %7423 = vmatpush1.bf16.msra.mxu0 %v10730_v48  ;;  %7564 = vmatpush1.bf16.msra.mxu1 %v10733_v49 }
 0x7af   : > { %7690 = vmatprep.subr.bf16.mxu0 %v10738_v34  ;;  %9218 = vmatprep.subr.bf16.mxu1 %v10760_v19 }
 0x7b1   : > { %7441 = vmatmul.mubr.bf16.vlgmr.msra.gmra.mrb[12].mxu0 %v7327_v36  ;;  %7582 = vmatmul.mubr.bf16.vlgmr.msra.gmra.mrb[12].mxu1 %v7468_v41 }
 0x7b2   : > { %7691 = vmatpush1.bf16.msra.mxu0 %v10736_v51  ;;  %7722 = vmatprep.mubr.bf16.mxu0 %v10936_v35  ;;  %v10754_v35 = vld [vmem:[#allocation12 + $0x460] ss:$8 sps:$4 sm:$0xff]  }
 0x7b3   : > { %7692 = vmatprep.subr.bf16.mxu0 %v10741_v53  ;;  %9219 = vmatpush3.bf16.msra.mxu1 %v10761_v20  ;;  %v7733_v20 = vld [vmem:[%s12510_s10] sm:$0x3] }
 0x7b4   : > { %9220 = vmatprep.subr.bf16.mxu1 %v10762_v21 }
 0x7b6   : > { %7693 = vmatpush1.bf16.msra.mxu0 %v10739_v54 }
 0x7b7   : > { %7694 = vmatprep.subr.bf16.mxu0 %v10744_v38  ;;  %9221 = vmatpush3.bf16.msra.mxu1 %v10763_v58 }
 0x7b8   : > { %9222 = vmatprep.subr.bf16.mxu1 %v10764_v57 }
 0x7ba   : > { %7695 = vmatpush1.bf16.msra.mxu0 %v10742_v40 }
 0x7bb   : > { %7696 = vmatprep.subr.bf16.mxu0 %v10747_v42  ;;  %9223 = vmatpush3.bf16.msra.mxu1 %v10765_v61 }
 0x7bc   : > { %9224 = vmatprep.subr.bf16.mxu1 %v10766_v22 }
 0x7be   : > { %7697 = vmatpush1.bf16.msra.mxu0 %v10745_v55 }
 0x7bf   : > { %7698 = vmatprep.subr.bf16.mxu0 %v10750_v13  ;;  %9225 = vmatpush3.bf16.msra.mxu1 %v10767_v16 }
 0x7c0   : > { %9226 = vmatprep.subr.bf16.mxu1 %v10768_v39 }
 0x7c2   : > { %7699 = vmatpush1.bf16.msra.mxu0 %v10748_v14 }
 0x7c3   : > { %7700 = vmatprep.subr.bf16.mxu0 %v10753_v17  ;;  %9227 = vmatpush3.bf16.msra.mxu1 %v10769_v44 }
 0x7c4   : > { %9228 = vmatprep.subr.bf16.mxu1 %v10770_v3 }
 0x7c6   : > { %7701 = vmatpush1.bf16.msra.mxu0 %v10751_v25 }
 0x7c7   : > { %7702 = vmatprep.subr.bf16.mxu0 %v10756_v12  ;;  %9229 = vmatpush3.bf16.msra.mxu1 %v10771_v23 }
 0x7c8   : > { %9230 = vmatprep.subr.bf16.mxu1 %v10772_v4 }
 0x7ca   : > { %7703 = vmatpush1.bf16.msra.mxu0 %v10754_v35 }
 0x7cb   : > { %7704 = vmatprep.subr.bf16.mxu0 %v10759_v56  ;;  %9231 = vmatpush3.bf16.msra.mxu1 %v10773_v31 }
 0x7cc   : > { %9232 = vmatprep.subr.bf16.mxu1 %v10774_v32 }
 0x7ce   : > { %7705 = vmatpush1.bf16.msra.mxu0 %v10757_v60 }
 0x7cf   : > { %9233 = vmatpush3.bf16.msra.mxu1 %v10775_v33 }
 0x7d1   : > { %7723 = vmatmul.mubr.bf16.vlgmr.msra.gmra.mrb[16].mxu0 %v7609_v59  ;;  %v7736_v59 = vshrl.u32 %v7735_v18, 7 }
 0x7d3   : > { %v7737_v19 = vsub.s32 0, %v7736_v59  ;;  %v7741_v21 = vsub.s32 1, %v7736_v59 }
 0x7d5   : > { %v7738_v58 = vrot.slane %v7733_v20, %v7737_v19  ;;  %v7742_v61 = vrot.slane %v7733_v20, %v7741_v21 }
 0x824   : > { %v6616_v7 = vpop.f32.mrb[0].mxu0  ;;  %v6737_v24 = vpop.f32.mrb[0].mxu1 }
 0x825   : > { %v6738_v27 = vadd.f32 %v6737_v24, %v6616_v7  ;;  %v6618_v28 = vpop.f32.mrb[1].mxu0  ;;  %v6739_v62 = vpop.f32.mrb[1].mxu1 }
 0x826   : > { %v6740_v5 = vadd.f32 %v6739_v62, %v6618_v28  ;;  %v6620_v29 = vpop.f32.mrb[2].mxu0  ;;  %v6741_v30 = vpop.f32.mrb[2].mxu1 }
 0x827   : > { %v6621_v63 = vpop.f32.mrb[3].mxu0  ;;  %v6742_v6 = vpop.f32.mrb[3].mxu1 }
 0x844   : > { %v6876_v9 = vpop.f32.mrb[4].mxu0  ;;  %v7018_v37 = vpop.f32.mrb[4].mxu1 }
 0x845   : > { %v6883_v11 = vadd.f32 %v6876_v9, %v6738_v27  ;;  %v6878_v10 = vpop.f32.mrb[5].mxu0  ;;  %v7020_v0 = vpop.f32.mrb[5].mxu1 }
 0x846   : > { %v6884_v1 = vadd.f32 %v6878_v10, %v6740_v5  ;;  %v6880_v2 = vpop.f32.mrb[6].mxu0  ;;  %v7022_v43 = vpop.f32.mrb[6].mxu1  ;;  %v7783_v5 = vld [vmem:[%s12520_s23] sm:$0x1] }
 0x847   : > { %v7025_v45 = vadd.f32 %v7018_v37, %v6883_v11  ;;  %v6881_v8 = vpop.f32.mrb[7].mxu0  ;;  %v7023_v15 = vpop.f32.mrb[7].mxu1 }
 0x848   : > { %v7026_v46 = vadd.f32 %v7020_v0, %v6884_v1 }
 0x864   : > { %v7159_v47 = vpop.f32.mrb[8].mxu0  ;;  %v7300_v26 = vpop.f32.mrb[8].mxu1 }
 0x865   : > { %v7166_v48 = vadd.f32 %v7159_v47, %v7025_v45  ;;  %v7161_v49 = vpop.f32.mrb[9].mxu0  ;;  %v7302_v50 = vpop.f32.mrb[9].mxu1 }
 0x866   : > { %v7167_v52 = vadd.f32 %v7161_v49, %v7026_v46  ;;  %v7163_v34 = vpop.f32.mrb[10].mxu0  ;;  %v7304_v36 = vpop.f32.mrb[10].mxu1 }
 0x867   : > { %v7307_v41 = vadd.f32 %v7300_v26, %v7166_v48  ;;  %v7164_v51 = vpop.f32.mrb[11].mxu0  ;;  %v7305_v53 = vpop.f32.mrb[11].mxu1 }
 0x868   : > { %v7308_v54 = vadd.f32 %v7302_v50, %v7167_v52 }
 0x884   : > { %v7442_v38 = vpop.f32.mrb[12].mxu0  ;;  %v7583_v40 = vpop.f32.mrb[12].mxu1 }
 0x885   : > { %v7449_v42 = vadd.f32 %v7442_v38, %v7307_v41  ;;  %v7444_v55 = vpop.f32.mrb[13].mxu0  ;;  %v7585_v13 = vpop.f32.mrb[13].mxu1 }
 0x886   : > { %v7450_v14 = vadd.f32 %v7444_v55, %v7308_v54  ;;  %v7446_v17 = vpop.f32.mrb[14].mxu0  ;;  %v7587_v25 = vpop.f32.mrb[14].mxu1 }
 0x887   : > { %v7590_v12 = vadd.f32 %v7583_v40, %v7449_v42  ;;  %v7447_v35 = vpop.f32.mrb[15].mxu0  ;;  %v7588_v56 = vpop.f32.mrb[15].mxu1 }
 0x888   : > { %v7591_v60 = vadd.f32 %v7585_v13, %v7450_v14 }
 0x8a4   : > { %v7724_v57 = vpop.f32.mrb[16].mxu0 }
 0x8a5   : > { %v7731_v22 = vadd.f32 %v7724_v57, %v7590_v12  ;;  %v7726_v16 = vpop.f32.mrb[17].mxu0 }
 0x8a6   : > { %v7732_v39 = vadd.f32 %v7726_v16, %v7591_v60  ;;  %v7728_v44 = vpop.f32.mrb[18].mxu0 }
 0x8a7   : > { %v7745_v3 = vadd.f32 %v7738_v58, %v7731_v22  ;;  %v7729_v23 = vpop.f32.mrb[19].mxu0 }
 0x8a8   : > { %v7746_v7 = vadd.f32 %v7742_v61, %v7732_v39 }
 0x8a9   : > { %v7747_v24 = vmax.f32 %v7745_v3, 0.0 }
 0x8aa   : > { %v7748_v27 = vmax.f32 %v7746_v7, 0.0 }
 0x8ab   : > { %v7749_v62 = vpack.c.bf16 %v7747_v24, %v7747_v24 }
 0x8ac   : > { %v7750_v28 = vpack.c.bf16 %v7748_v27, %v7748_v27 }
 0x8ae   : > { %7912 = vmatprep.mubr.bf16.mxu1 %v7750_v28 }
 0x8af   : > { %7913 = vmatmul.mubr.bf16.vlgmr.msra.gmra.mrb[16].mxu1 %v7749_v62 }
 0x982   : > { %v9234_v4 = vpop.f32.mrb[16].mxu1 }
 0x983   : > { %v9235_v29 = vpop.f32.mrb[17].mxu1 }
 0x984   : > { %v9236_v30 = vadd.f32 %v9235_v29, %v9234_v4  ;;  %v9237_v31 = vpop.f32.mrb[18].mxu1 }
 0x985   : > { %v9238_v63 = vpop.f32.mrb[19].mxu1 }
 0x986   : > { %v7915_v6 = vadd.f32 %v9236_v30, %v7783_v5 }
 0x988   : > { %v7923_v32 = vrot.slane %v7915_v6, %v7737_v19 }
 0x98a   : > { %7924 = vst [vmem:[%s11126_s25] sm:$0xff] %v7923_v32 }
 0x98b PF: > { %s12521_s19 = sld [smem:[#allocation15_spill]] }
 0x991   : > { %s25_s25 = sadd.s32 1, %s12521_s19  }
 0x992   : > { %p22_p4 = scmp.ge.s32.totalorder %s25_s25, 4  }
 0x994   :  { %24 = sbr.rel (!%p22_p4) target bundleno = 4 (0x4), region = 249 }
 0x99b   :  { %7944 = vsyncpa [#allocation9], 1 }
 0x99c   :  { %7946 = vsyncpa [#allocation9 + $0x1], 1 }
 0x99d   :  { %7947 = vsyncpa [#allocation11], 1 }

</bundles_post_ra>
